<compile_context>
chip_gen: v7x
topology: tpu7x:2x2x1
jax: 0.10.0
libtpu: 0.0.40
codegen_flags: <defaults>
</compile_context>

<pallas_src>
import functools
import math

import jax
import jax.numpy as jnp
from jax.experimental import pallas as pl
from jax.experimental.pallas import tpu as pltpu

# ----------------------- module configuration (DownBlock ctor args) -----------------------
IN_CHANNELS   = 8
OUT_CHANNELS  = 16
T_EMB_DIM     = 32
DOWN_SAMPLE   = True
NUM_HEADS     = 2
NUM_LAYERS    = 2
ATTN          = True
NORM_CHANNELS = 4          # GroupNorm num_groups
B, H, W       = 2, 16, 16
EPS           = 1e-5       # GroupNorm eps (PyTorch default)

_L  = H * W
_LO = (H // 2) * (W // 2)


# =========================== packed-constant slab layout ===================================

def _cvec_layout():
    """Column layout of the single packed f32 constant slab (rows = 3*OUT_CHANNELS)."""
    cols, n = {}, 0
    for i in range(NUM_LAYERS):
        for name in ('gn1_w', 'gn1_b', 'b1', 'gn2_w', 'gn2_b', 'b2', 'bres',
                     'agn_w', 'agn_b', 'bo', 'bqkv'):
            cols[f'{name}{i}'] = n
            n += 1
    cols['down_b'] = n; n += 1
    cols['mavg_in'] = n; n += IN_CHANNELS          # (cin, cin) group-average matrix
    cols['mavg_out'] = n; n += OUT_CHANNELS        # (cout, cout) group-average matrix
    return cols, n


_COLS, _NCOL = _cvec_layout()


# =============================== fused DownBlock kernel ====================================

def _downblock_kernel(x_ref, te_ref, cv_ref, m3_ref, m4_ref, ssub_ref, *rest,
                      cols, n_layers, cin0, cout, heads, eps, hdim, wdim, downsample):
    """Whole DownBlock for one sample (grid=(B,)).  Activations live as (C, L) in VMEM."""
    lw = rest[:6 * n_layers]                   # per-layer bf16 matmul weights
    wd_ref = rest[6 * n_layers]                # downsample conv weights (concat taps)
    o_ref = rest[-1]

    L = hdim * wdim
    cv = cv_ref[...]                           # (3*cout, NCOL) f32 packed constants
    m3 = m3_ref[...]                           # (9, L) f32 border masks for 3x3 conv

    def col(name, rows=cout):                  # (rows, 1) f32 column from the slab
        j = cols[name]
        return cv[0:rows, j:j + 1]

    def gavg(name, c):                         # (c, c) f32 group-average matrix
        j = cols[name]
        return cv[0:c, j:j + c]

    def group_norm(h, m, gamma, beta, silu):
        # Per-channel lane sums, group combine + 1/(L*cg) via the tiny group-avg matmul.
        rs = jnp.sum(h, axis=1, keepdims=True)                                  # (C, 1)
        mean = jnp.dot(m, rs, preferred_element_type=jnp.float32)               # (C, 1)
        d = h - mean
        var = jnp.dot(m, jnp.sum(d * d, axis=1, keepdims=True),
                      preferred_element_type=jnp.float32)                       # (C, 1)
        y = d * (gamma * jax.lax.rsqrt(var + eps)) + beta
        return y * jax.nn.sigmoid(y) if silu else y

    def shift_stack(h, kk, mask):
        # h: (C, L) f32.  Returns (kk*kk*C, L) bf16: tap-major stack of rolled + masked
        # copies (pad-1 conv, zero padding handled by the precomputed masks).
        taps = []
        for dy in range(kk):
            for dx in range(kk):
                t = dy * kk + dx
                off = (dy - 1) * wdim + (dx - 1)
                r = h if off == 0 else pltpu.roll(h, (-off) % L, axis=1)
                taps.append(r * mask[t:t + 1, :])
        return jnp.concatenate(taps, axis=0).astype(jnp.bfloat16)

    def mm(a, b):
        return jnp.dot(a, b, preferred_element_type=jnp.float32)

    # t_emb activation (shared by both layers' t_emb Linear layers)
    te = te_ref[0]                                                              # (T, 1)
    te_act = (te * jax.nn.sigmoid(te)).astype(jnp.bfloat16)

    x = x_ref[0]                                                                # (cin0, L)
    for i in range(n_layers):
        cin = cin0 if i == 0 else cout
        w1_ref, tw_ref, w2_ref, wres_ref, wqkv_ref, wo_ref = lw[6 * i:6 * (i + 1)]
        m_in = gavg('mavg_in' if i == 0 else 'mavg_out', cin)
        m_out = gavg('mavg_out', cout)

        # ---- resnet_conv_first (GN -> SiLU -> conv3x3) + t_emb MLP --------------------
        h = group_norm(x, m_in, col(f'gn1_w{i}', cin), col(f'gn1_b{i}', cin), silu=True)
        h = mm(w1_ref[...], shift_stack(h, 3, m3))
        h = h + mm(tw_ref[...], te_act) + col(f'b1{i}')     # b1 = conv bias + t_emb bias

        # ---- resnet_conv_second (GN -> SiLU -> conv3x3) + 1x1 residual ----------------
        h2 = group_norm(h, m_out, col(f'gn2_w{i}'), col(f'gn2_b{i}'), silu=True)
        h2 = mm(w2_ref[...], shift_stack(h2, 3, m3)) + col(f'b2{i}')
        h = h2 + mm(wres_ref[...], x.astype(jnp.bfloat16)) + col(f'bres{i}')

        # ---- self attention: GN -> fused QKV -> batched heads -> out proj -------------
        hn = group_norm(h, m_out, col(f'agn_w{i}'), col(f'agn_b{i}'), silu=False)
        qkv = mm(wqkv_ref[...], hn.astype(jnp.bfloat16)) + col(f'bqkv{i}', 3 * cout)
        dh = cout // heads
        q3 = qkv[0:cout].reshape(heads, dh, L)
        k3 = qkv[cout:2 * cout].reshape(heads, dh, L)
        v3 = qkv[2 * cout:3 * cout].reshape(heads, dh, L)
        qt = jnp.transpose(q3, (0, 2, 1)).astype(jnp.bfloat16)       # (heads, Lq, dh)
        s = jax.lax.dot_general(qt, k3.astype(jnp.bfloat16),
                                (((2,), (1,)), ((0,), (0,))),
                                preferred_element_type=jnp.float32)   # (heads, Lq, Lk)
        s = s - jnp.max(s, axis=-1, keepdims=True)
        p = jnp.exp(s)
        p = p * pl.reciprocal(jnp.sum(p, axis=-1, keepdims=True), approx=True)
        vt = jnp.transpose(v3, (0, 2, 1)).astype(jnp.bfloat16)       # (heads, Lk, dh)
        o3 = jax.lax.dot_general(p.astype(jnp.bfloat16), vt,
                                 (((2,), (1,)), ((0,), (0,))),
                                 preferred_element_type=jnp.float32)  # (heads, Lq, dh)
        o_cl = jnp.transpose(o3, (0, 2, 1)).reshape(cout, L)          # (C, L) f32
        x = h + mm(wo_ref[...], o_cl.astype(jnp.bfloat16)) + col(f'bo{i}')

    # ---- fused 4x4 / stride-2 / pad-1 downsample conv -------------------------------
    if downsample:
        full = mm(wd_ref[...], shift_stack(x, 4, m4_ref[...]))        # (cout, L)
        down = mm(full.astype(jnp.bfloat16), ssub_ref[...])           # (cout, Lo)
        o_ref[0] = down + col('down_b')
    else:
        o_ref[0] = x


# =============================== pallas_call wrapper =======================================

def _const_spec(a):
    return pl.BlockSpec(a.shape, lambda i, nd=a.ndim: (0,) * nd)


def down_block_forward(x_nchw, t_emb, kp):
    b = x_nchw.shape[0]
    # (C, L) layout: NCHW -> (B, C, H*W) is a pure reshape (channels in sublanes).
    x = x_nchw.reshape(b, IN_CHANNELS, _L).astype(jnp.float32)
    te = t_emb.reshape(b, T_EMB_DIM, 1).astype(jnp.float32)

    args = [x, te, kp['cvec'], kp['mask3'], kp['mask4'], kp['ssub']]
    specs = [
        pl.BlockSpec((1, IN_CHANNELS, _L), lambda i: (i, 0, 0)),
        pl.BlockSpec((1, T_EMB_DIM, 1), lambda i: (i, 0, 0)),
        _const_spec(kp['cvec']), _const_spec(kp['mask3']),
        _const_spec(kp['mask4']), _const_spec(kp['ssub']),
    ]
    for i in range(NUM_LAYERS):
        for name in ('w1cat', 'tembw', 'w2cat', 'wres', 'wqkv', 'wo'):
            a = kp[f'{name}{i}']
            args.append(a)
            specs.append(_const_spec(a))
    args.append(kp['wdcat'])
    specs.append(_const_spec(kp['wdcat']))

    lo = _LO if DOWN_SAMPLE else _L
    kern = functools.partial(
        _downblock_kernel, cols=_COLS, n_layers=NUM_LAYERS, cin0=IN_CHANNELS,
        cout=OUT_CHANNELS, heads=NUM_HEADS, eps=EPS, hdim=H, wdim=W,
        downsample=DOWN_SAMPLE)
    out = pl.pallas_call(
        kern,
        out_shape=jax.ShapeDtypeStruct((b, OUT_CHANNELS, lo), jnp.float32),
        grid=(b,),
        in_specs=specs,
        out_specs=pl.BlockSpec((1, OUT_CHANNELS, lo), lambda i: (i, 0, 0)),
        compiler_params=pltpu.CompilerParams(dimension_semantics=("parallel",)),
    )(*args)
    ho, wo = (H // 2, W // 2) if DOWN_SAMPLE else (H, W)
    return out.reshape(b, OUT_CHANNELS, ho, wo)


# =============================== host-side constant builders ===============================

def build_conv_mask(k, h, w):
    """(k*k, L) f32 validity mask of the pad-1 conv tap source pixel, per output pixel."""
    L = h * w
    y = jnp.arange(L) // w
    x = jnp.arange(L) % w
    rows = []
    for dy in range(k):
        for dx in range(k):
            sy = y + dy - 1
            sx = x + dx - 1
            rows.append(((sy >= 0) & (sy < h) & (sx >= 0) & (sx < w)).astype(jnp.float32))
    return jnp.stack(rows, axis=0)


def build_subsample(h, w):
    """(L, Lo) one-hot matrix picking the stride-2 base pixel of each downsample output."""
    ho, wo = h // 2, w // 2
    lo = ho * wo
    oy = jnp.arange(lo) // wo
    ox = jnp.arange(lo) % wo
    src = (2 * oy) * w + 2 * ox
    return (jnp.arange(h * w)[:, None] == src[None, :]).astype(jnp.bfloat16)


def conv_weight_cat(wt):
    """PyTorch (Cout, Cin, kh, kw) -> (Cout, kh*kw*Cin), tap-major (matches shift_stack)."""
    co, ci, kh, kw = wt.shape
    return jnp.transpose(wt, (0, 2, 3, 1)).reshape(co, kh * kw * ci)


def group_avg_matrix(c):
    cg = c // NORM_CHANNELS
    gid = jnp.arange(c) // cg
    return (gid[:, None] == gid[None, :]).astype(jnp.float32) / float(_L * cg)


def init_torch_params(key):
    """Random parameters in PyTorch layout (used by both the kernel pack and the reference)."""
    st = {'key': key}

    def take(*shape):
        st['key'], sub = jax.random.split(st['key'])
        return 0.05 * jax.random.normal(sub, shape, dtype=jnp.float32)

    P = {}
    for i in range(NUM_LAYERS):
        cin = IN_CHANNELS if i == 0 else OUT_CHANNELS
        co = OUT_CHANNELS
        P[f'gn1_w{i}'] = jnp.ones((cin,), jnp.float32)
        P[f'gn1_b{i}'] = jnp.zeros((cin,), jnp.float32)
        P[f'w1{i}'] = take(co, cin, 3, 3); P[f'b1{i}'] = take(co)
        P[f'tw{i}'] = take(co, T_EMB_DIM); P[f'tb{i}'] = take(co)
        P[f'gn2_w{i}'] = jnp.ones((co,), jnp.float32)
        P[f'gn2_b{i}'] = jnp.zeros((co,), jnp.float32)
        P[f'w2{i}'] = take(co, co, 3, 3); P[f'b2{i}'] = take(co)
        P[f'wr{i}'] = take(co, cin, 1, 1); P[f'br{i}'] = take(co)
        P[f'agn_w{i}'] = jnp.ones((co,), jnp.float32)
        P[f'agn_b{i}'] = jnp.zeros((co,), jnp.float32)
        P[f'wqkv{i}'] = take(3 * co, co); P[f'bqkv{i}'] = take(3 * co)
        P[f'wo{i}'] = take(co, co); P[f'bo{i}'] = take(co)
    P['wd'] = take(OUT_CHANNELS, OUT_CHANNELS, 4, 4)
    P['bd'] = take(OUT_CHANNELS)
    return P


def to_kernel_params(P):
    """Convert PyTorch-layout params to the fused-kernel layout (slab + bf16 matrices)."""
    rows = 3 * OUT_CHANNELS
    col_vals = [jnp.zeros((rows,), jnp.float32) for _ in range(_NCOL)]

    def put(idx, vec):
        v = jnp.asarray(vec, jnp.float32)
        col_vals[idx] = jnp.pad(v, (0, rows - v.shape[0]))

    kp = {}
    scale = 1.0 / math.sqrt(OUT_CHANNELS // NUM_HEADS)
    for i in range(NUM_LAYERS):
        cin = IN_CHANNELS if i == 0 else OUT_CHANNELS
        co = OUT_CHANNELS
        put(_COLS[f'gn1_w{i}'], P[f'gn1_w{i}']); put(_COLS[f'gn1_b{i}'], P[f'gn1_b{i}'])
        put(_COLS[f'b1{i}'], P[f'b1{i}'] + P[f'tb{i}'])        # conv1 + t_emb biases folded
        put(_COLS[f'gn2_w{i}'], P[f'gn2_w{i}']); put(_COLS[f'gn2_b{i}'], P[f'gn2_b{i}'])
        put(_COLS[f'b2{i}'], P[f'b2{i}'])
        put(_COLS[f'bres{i}'], P[f'br{i}'])
        put(_COLS[f'agn_w{i}'], P[f'agn_w{i}']); put(_COLS[f'agn_b{i}'], P[f'agn_b{i}'])
        put(_COLS[f'bo{i}'], P[f'bo{i}'])
        put(_COLS[f'bqkv{i}'], P[f'bqkv{i}'].at[:co].multiply(scale))
        kp[f'w1cat{i}'] = conv_weight_cat(P[f'w1{i}']).astype(jnp.bfloat16)
        kp[f'tembw{i}'] = P[f'tw{i}'].astype(jnp.bfloat16)
        kp[f'w2cat{i}'] = conv_weight_cat(P[f'w2{i}']).astype(jnp.bfloat16)
        kp[f'wres{i}'] = P[f'wr{i}'][:, :, 0, 0].astype(jnp.bfloat16)
        kp[f'wqkv{i}'] = P[f'wqkv{i}'].at[:co].multiply(scale).astype(jnp.bfloat16)
        kp[f'wo{i}'] = P[f'wo{i}'].astype(jnp.bfloat16)
    put(_COLS['down_b'], P['bd'])
    m_in = group_avg_matrix(IN_CHANNELS)
    m_out = group_avg_matrix(OUT_CHANNELS)
    for j in range(IN_CHANNELS):
        put(_COLS['mavg_in'] + j, m_in[:, j])
    for j in range(OUT_CHANNELS):
        put(_COLS['mavg_out'] + j, m_out[:, j])
    kp['cvec'] = jnp.stack(col_vals, axis=1)
    kp['mask3'] = build_conv_mask(3, H, W)
    kp['mask4'] = build_conv_mask(4, H, W)
    kp['ssub'] = build_subsample(H, W)
    kp['wdcat'] = conv_weight_cat(P['wd']).astype(jnp.bfloat16)
    return kp


# ============================ pure-JAX reference (for verification) ========================

def _group_norm_ref(x, w, b, groups, eps):
    shape = x.shape
    bsz, c = shape[0], shape[1]
    xg = x.reshape(bsz, groups, -1)
    m = jnp.mean(xg, axis=2, keepdims=True)
    v = jnp.mean((xg - m) ** 2, axis=2, keepdims=True)
    xn = ((xg - m) * jax.lax.rsqrt(v + eps)).reshape(shape)
    bc = (1, c) + (1,) * (len(shape) - 2)
    return xn * w.reshape(bc) + b.reshape(bc)


def _conv2d_ref(x, w, b, stride, pad):
    out = jax.lax.conv_general_dilated(
        x, w, (stride, stride), [(pad, pad), (pad, pad)],
        dimension_numbers=('NCHW', 'OIHW', 'NCHW'))
    return out + b.reshape(1, -1, 1, 1)


def _silu(x):
    return x * jax.nn.sigmoid(x)


def _mha_ref(x, wqkv, bqkv, wo, bo, heads):
    bsz, l, c = x.shape
    dh = c // heads
    qkv = x @ wqkv.T + bqkv
    q, k, v = qkv[..., :c], qkv[..., c:2 * c], qkv[..., 2 * c:]
    split = lambda a: a.reshape(bsz, l, heads, dh).transpose(0, 2, 1, 3)
    q, k, v = split(q), split(k), split(v)
    s = jnp.einsum('bhid,bhjd->bhij', q, k) / math.sqrt(dh)
    p = jax.nn.softmax(s, axis=-1)
    o = jnp.einsum('bhij,bhjd->bhid', p, v)
    o = o.transpose(0, 2, 1, 3).reshape(bsz, l, c)
    return o @ wo.T + bo


def down_block_reference(x, t_emb, P):
    for i in range(NUM_LAYERS):
        resnet_in = x
        h = _group_norm_ref(x, P[f'gn1_w{i}'], P[f'gn1_b{i}'], NORM_CHANNELS, EPS)
        h = _conv2d_ref(_silu(h), P[f'w1{i}'], P[f'b1{i}'], 1, 1)
        te = _silu(t_emb) @ P[f'tw{i}'].T + P[f'tb{i}']
        h = h + te[:, :, None, None]
        h2 = _group_norm_ref(h, P[f'gn2_w{i}'], P[f'gn2_b{i}'], NORM_CHANNELS, EPS)
        h2 = _conv2d_ref(_silu(h2), P[f'w2{i}'], P[f'b2{i}'], 1, 1)
        x = h2 + _conv2d_ref(resnet_in, P[f'wr{i}'], P[f'br{i}'], 1, 0)
        bsz, c, hh, ww = x.shape
        a = _group_norm_ref(x, P[f'agn_w{i}'], P[f'agn_b{i}'], NORM_CHANNELS, EPS)
        a = a.reshape(bsz, c, hh * ww).transpose(0, 2, 1)
        oa = _mha_ref(a, P[f'wqkv{i}'], P[f'bqkv{i}'], P[f'wo{i}'], P[f'bo{i}'], NUM_HEADS)
        x = x + oa.transpose(0, 2, 1).reshape(bsz, c, hh, ww)
    if DOWN_SAMPLE:
        x = _conv2d_ref(x, P['wd'], P['bd'], 2, 1)
    return x


# ========================================= main ============================================

if __name__ == "__main__":
    key = jax.random.PRNGKey(0)
    kx, kt, kw = jax.random.split(key, 3)
    x = jax.random.normal(kx, (B, IN_CHANNELS, H, W), dtype=jnp.float32)   # NCHW, like PyTorch
    t_emb = jax.random.normal(kt, (B, T_EMB_DIM), dtype=jnp.float32)

    torch_params = init_torch_params(kw)
    kparams = to_kernel_params(torch_params)

    fwd = jax.jit(down_block_forward)
    out = jax.block_until_ready(fwd(x, t_emb, kparams))

    exp_hw = (H // 2, W // 2) if DOWN_SAMPLE else (H, W)
    assert out.shape == (B, OUT_CHANNELS) + exp_hw, out.shape
    assert bool(jnp.all(jnp.isfinite(out)))

    # Structural correctness check against a pure-JAX/XLA reference of the PyTorch forward.
    # Loose tolerance: the kernel uses bf16 MXU operands and an approx softmax reciprocal.
    ref = jax.jit(down_block_reference)(x, t_emb, torch_params)
    err = float(jnp.max(jnp.abs(out - ref)))
    scale = float(jnp.max(jnp.abs(ref))) + 1e-6
    assert err / scale < 0.1, ("kernel/reference mismatch", err, scale)
    print("KERNEL_OK")
</pallas_src>

<mosaic_0001>
module attributes {stable_mosaic.version = 11 : i64} {
  func.func @_downblock_kernel(%arg0: i32, %arg1: memref<1x8x256xf32, #tpu.memory_space<vmem>>, %arg2: memref<1x32x1xf32, #tpu.memory_space<vmem>>, %arg3: memref<48x47xf32, #tpu.memory_space<vmem>>, %arg4: memref<9x256xf32, #tpu.memory_space<vmem>>, %arg5: memref<16x256xf32, #tpu.memory_space<vmem>>, %arg6: memref<256x64xbf16, #tpu.memory_space<vmem>>, %arg7: memref<16x72xbf16, #tpu.memory_space<vmem>>, %arg8: memref<16x32xbf16, #tpu.memory_space<vmem>>, %arg9: memref<16x144xbf16, #tpu.memory_space<vmem>>, %arg10: memref<16x8xbf16, #tpu.memory_space<vmem>>, %arg11: memref<48x16xbf16, #tpu.memory_space<vmem>>, %arg12: memref<16x16xbf16, #tpu.memory_space<vmem>>, %arg13: memref<16x144xbf16, #tpu.memory_space<vmem>>, %arg14: memref<16x32xbf16, #tpu.memory_space<vmem>>, %arg15: memref<16x144xbf16, #tpu.memory_space<vmem>>, %arg16: memref<16x16xbf16, #tpu.memory_space<vmem>>, %arg17: memref<48x16xbf16, #tpu.memory_space<vmem>>, %arg18: memref<16x16xbf16, #tpu.memory_space<vmem>>, %arg19: memref<16x256xbf16, #tpu.memory_space<vmem>>, %arg20: memref<1x16x64xf32, #tpu.memory_space<vmem>>) attributes {dimension_semantics = [#tpu.dimension_semantics<parallel>], iteration_bounds = array<i64: 2>, scalar_prefetch = 0 : i64, scratch_operands = 0 : i64, tpu.core_type = #tpu.core_type<tc>, window_params = [{transform_indices = @transform_0, window_bounds = array<i64: 1, 8, 256>}, {transform_indices = @transform_1, window_bounds = array<i64: 1, 32, 1>}, {pipeline_mode = #tpu.pipeline_mode<synchronous>, transform_indices = @transform_2, window_bounds = array<i64: 48, 47>}, {pipeline_mode = #tpu.pipeline_mode<synchronous>, transform_indices = @transform_3, window_bounds = array<i64: 9, 256>}, {pipeline_mode = #tpu.pipeline_mode<synchronous>, transform_indices = @transform_4, window_bounds = array<i64: 16, 256>}, {pipeline_mode = #tpu.pipeline_mode<synchronous>, transform_indices = @transform_5, window_bounds = array<i64: 256, 64>}, {pipeline_mode = #tpu.pipeline_mode<synchronous>, transform_indices = @transform_6, window_bounds = array<i64: 16, 72>}, {pipeline_mode = #tpu.pipeline_mode<synchronous>, transform_indices = @transform_7, window_bounds = array<i64: 16, 32>}, {pipeline_mode = #tpu.pipeline_mode<synchronous>, transform_indices = @transform_8, window_bounds = array<i64: 16, 144>}, {pipeline_mode = #tpu.pipeline_mode<synchronous>, transform_indices = @transform_9, window_bounds = array<i64: 16, 8>}, {pipeline_mode = #tpu.pipeline_mode<synchronous>, transform_indices = @transform_10, window_bounds = array<i64: 48, 16>}, {pipeline_mode = #tpu.pipeline_mode<synchronous>, transform_indices = @transform_11, window_bounds = array<i64: 16, 16>}, {pipeline_mode = #tpu.pipeline_mode<synchronous>, transform_indices = @transform_12, window_bounds = array<i64: 16, 144>}, {pipeline_mode = #tpu.pipeline_mode<synchronous>, transform_indices = @transform_13, window_bounds = array<i64: 16, 32>}, {pipeline_mode = #tpu.pipeline_mode<synchronous>, transform_indices = @transform_14, window_bounds = array<i64: 16, 144>}, {pipeline_mode = #tpu.pipeline_mode<synchronous>, transform_indices = @transform_15, window_bounds = array<i64: 16, 16>}, {pipeline_mode = #tpu.pipeline_mode<synchronous>, transform_indices = @transform_16, window_bounds = array<i64: 48, 16>}, {pipeline_mode = #tpu.pipeline_mode<synchronous>, transform_indices = @transform_17, window_bounds = array<i64: 16, 16>}, {pipeline_mode = #tpu.pipeline_mode<synchronous>, transform_indices = @transform_18, window_bounds = array<i64: 16, 256>}, {transform_indices = @transform_19, window_bounds = array<i64: 1, 16, 64>}]} {
    %c0 = arith.constant 0 : index
    %c0_0 = arith.constant 0 : index
    %0 = vector.load %arg3[%c0, %c0_0] : memref<48x47xf32, #tpu.memory_space<vmem>>, vector<48x47xf32>
    %c0_1 = arith.constant 0 : index
    %c0_2 = arith.constant 0 : index
    %1 = vector.load %arg4[%c0_1, %c0_2] : memref<9x256xf32, #tpu.memory_space<vmem>>, vector<9x256xf32>
    %c0_3 = arith.constant 0 : index
    %c0_4 = arith.constant 0 : index
    %c0_5 = arith.constant 0 : index
    %2 = vector.load %arg2[%c0_3, %c0_4, %c0_5] : memref<1x32x1xf32, #tpu.memory_space<vmem>>, vector<1x32x1xf32>
    %3 = vector.shape_cast %2 : vector<1x32x1xf32> to vector<32x1xf32>
    %4 = arith.negf %3 : vector<32x1xf32>
    %5 = math.exp %4 : vector<32x1xf32>
    %cst = arith.constant 1.000000e+00 : f32
    %6 = vector.broadcast %cst : f32 to vector<32x1xf32>
    %7 = arith.addf %6, %5 : vector<32x1xf32>
    %8 = arith.divf %6, %7 : vector<32x1xf32>
    %9 = arith.mulf %3, %8 : vector<32x1xf32>
    %10 = arith.truncf %9 : vector<32x1xf32> to vector<32x1xbf16>
    %c0_6 = arith.constant 0 : index
    %c0_7 = arith.constant 0 : index
    %c0_8 = arith.constant 0 : index
    %11 = vector.load %arg1[%c0_6, %c0_7, %c0_8] : memref<1x8x256xf32, #tpu.memory_space<vmem>>, vector<1x8x256xf32>
    %12 = vector.shape_cast %11 : vector<1x8x256xf32> to vector<8x256xf32>
    %13 = vector.extract_strided_slice %0 {offsets = [0, 23], sizes = [8, 8], strides = [1, 1]} : vector<48x47xf32> to vector<8x8xf32>
    %14 = vector.extract_strided_slice %0 {offsets = [0, 31], sizes = [16, 16], strides = [1, 1]} : vector<48x47xf32> to vector<16x16xf32>
    %15 = vector.extract_strided_slice %0 {offsets = [0, 0], sizes = [8, 1], strides = [1, 1]} : vector<48x47xf32> to vector<8x1xf32>
    %16 = vector.extract_strided_slice %0 {offsets = [0, 1], sizes = [8, 1], strides = [1, 1]} : vector<48x47xf32> to vector<8x1xf32>
    %cst_9 = arith.constant dense<0.000000e+00> : vector<8xf32>
    %17 = vector.multi_reduction <add>, %12, %cst_9 [1] : vector<8x256xf32> to vector<8xf32>
    %18 = vector.shape_cast %17 : vector<8xf32> to vector<8x1xf32>
    %cst_10 = arith.constant dense<0.000000e+00> : vector<8x1xf32>
    %19 = tpu.matmul %13, %18, %cst_10 {dimension_numbers = #tpu.dot_dimension_numbers<[1], [0], [0], [1], [0, 0, 1, 1], [], []>} : vector<8x8xf32>, vector<8x1xf32>, vector<8x1xf32> -> vector<8x1xf32>
    %20 = vector.broadcast %19 : vector<8x1xf32> to vector<8x256xf32>
    %21 = arith.subf %12, %20 : vector<8x256xf32>
    %22 = arith.mulf %21, %21 : vector<8x256xf32>
    %cst_11 = arith.constant dense<0.000000e+00> : vector<8xf32>
    %23 = vector.multi_reduction <add>, %22, %cst_11 [1] : vector<8x256xf32> to vector<8xf32>
    %24 = vector.shape_cast %23 : vector<8xf32> to vector<8x1xf32>
    %cst_12 = arith.constant dense<0.000000e+00> : vector<8x1xf32>
    %25 = tpu.matmul %13, %24, %cst_12 {dimension_numbers = #tpu.dot_dimension_numbers<[1], [0], [0], [1], [0, 0, 1, 1], [], []>} : vector<8x8xf32>, vector<8x1xf32>, vector<8x1xf32> -> vector<8x1xf32>
    %cst_13 = arith.constant 9.99999974E-6 : f32
    %26 = vector.broadcast %cst_13 : f32 to vector<8x1xf32>
    %27 = arith.addf %25, %26 : vector<8x1xf32>
    %28 = math.rsqrt %27 : vector<8x1xf32>
    %29 = arith.mulf %15, %28 : vector<8x1xf32>
    %30 = vector.broadcast %29 : vector<8x1xf32> to vector<8x256xf32>
    %31 = arith.mulf %21, %30 : vector<8x256xf32>
    %32 = vector.broadcast %16 : vector<8x1xf32> to vector<8x256xf32>
    %33 = arith.addf %31, %32 : vector<8x256xf32>
    %34 = arith.negf %33 : vector<8x256xf32>
    %35 = math.exp %34 : vector<8x256xf32>
    %cst_14 = arith.constant 1.000000e+00 : f32
    %36 = vector.broadcast %cst_14 : f32 to vector<8x256xf32>
    %37 = arith.addf %36, %35 : vector<8x256xf32>
    %38 = arith.divf %36, %37 : vector<8x256xf32>
    %39 = arith.mulf %33, %38 : vector<8x256xf32>
    %c0_15 = arith.constant 0 : index
    %c0_16 = arith.constant 0 : index
    %40 = vector.load %arg7[%c0_15, %c0_16] : memref<16x72xbf16, #tpu.memory_space<vmem>>, vector<16x72xbf16>
    %c17_i32 = arith.constant 17 : i32
    %41 = tpu.dynamic_rotate %39 by %c17_i32 dim 1 : vector<8x256xf32>, i32 -> vector<8x256xf32>
    %42 = vector.extract_strided_slice %1 {offsets = [0, 0], sizes = [1, 256], strides = [1, 1]} : vector<9x256xf32> to vector<1x256xf32>
    %43 = vector.broadcast %42 : vector<1x256xf32> to vector<8x256xf32>
    %44 = arith.mulf %41, %43 : vector<8x256xf32>
    %c16_i32 = arith.constant 16 : i32
    %45 = tpu.dynamic_rotate %39 by %c16_i32 dim 1 : vector<8x256xf32>, i32 -> vector<8x256xf32>
    %46 = vector.extract_strided_slice %1 {offsets = [1, 0], sizes = [1, 256], strides = [1, 1]} : vector<9x256xf32> to vector<1x256xf32>
    %47 = vector.broadcast %46 : vector<1x256xf32> to vector<8x256xf32>
    %48 = arith.mulf %45, %47 : vector<8x256xf32>
    %c15_i32 = arith.constant 15 : i32
    %49 = tpu.dynamic_rotate %39 by %c15_i32 dim 1 : vector<8x256xf32>, i32 -> vector<8x256xf32>
    %50 = vector.extract_strided_slice %1 {offsets = [2, 0], sizes = [1, 256], strides = [1, 1]} : vector<9x256xf32> to vector<1x256xf32>
    %51 = vector.broadcast %50 : vector<1x256xf32> to vector<8x256xf32>
    %52 = arith.mulf %49, %51 : vector<8x256xf32>
    %c1_i32 = arith.constant 1 : i32
    %53 = tpu.dynamic_rotate %39 by %c1_i32 dim 1 : vector<8x256xf32>, i32 -> vector<8x256xf32>
    %54 = vector.extract_strided_slice %1 {offsets = [3, 0], sizes = [1, 256], strides = [1, 1]} : vector<9x256xf32> to vector<1x256xf32>
    %55 = vector.broadcast %54 : vector<1x256xf32> to vector<8x256xf32>
    %56 = arith.mulf %53, %55 : vector<8x256xf32>
    %57 = vector.extract_strided_slice %1 {offsets = [4, 0], sizes = [1, 256], strides = [1, 1]} : vector<9x256xf32> to vector<1x256xf32>
    %58 = vector.broadcast %57 : vector<1x256xf32> to vector<8x256xf32>
    %59 = arith.mulf %39, %58 : vector<8x256xf32>
    %c255_i32 = arith.constant 255 : i32
    %60 = tpu.dynamic_rotate %39 by %c255_i32 dim 1 : vector<8x256xf32>, i32 -> vector<8x256xf32>
    %61 = vector.extract_strided_slice %1 {offsets = [5, 0], sizes = [1, 256], strides = [1, 1]} : vector<9x256xf32> to vector<1x256xf32>
    %62 = vector.broadcast %61 : vector<1x256xf32> to vector<8x256xf32>
    %63 = arith.mulf %60, %62 : vector<8x256xf32>
    %c241_i32 = arith.constant 241 : i32
    %64 = tpu.dynamic_rotate %39 by %c241_i32 dim 1 : vector<8x256xf32>, i32 -> vector<8x256xf32>
    %65 = vector.extract_strided_slice %1 {offsets = [6, 0], sizes = [1, 256], strides = [1, 1]} : vector<9x256xf32> to vector<1x256xf32>
    %66 = vector.broadcast %65 : vector<1x256xf32> to vector<8x256xf32>
    %67 = arith.mulf %64, %66 : vector<8x256xf32>
    %c240_i32 = arith.constant 240 : i32
    %68 = tpu.dynamic_rotate %39 by %c240_i32 dim 1 : vector<8x256xf32>, i32 -> vector<8x256xf32>
    %69 = vector.extract_strided_slice %1 {offsets = [7, 0], sizes = [1, 256], strides = [1, 1]} : vector<9x256xf32> to vector<1x256xf32>
    %70 = vector.broadcast %69 : vector<1x256xf32> to vector<8x256xf32>
    %71 = arith.mulf %68, %70 : vector<8x256xf32>
    %c239_i32 = arith.constant 239 : i32
    %72 = tpu.dynamic_rotate %39 by %c239_i32 dim 1 : vector<8x256xf32>, i32 -> vector<8x256xf32>
    %73 = vector.extract_strided_slice %1 {offsets = [8, 0], sizes = [1, 256], strides = [1, 1]} : vector<9x256xf32> to vector<1x256xf32>
    %74 = vector.broadcast %73 : vector<1x256xf32> to vector<8x256xf32>
    %75 = arith.mulf %72, %74 : vector<8x256xf32>
    %76 = tpu.concatenate %44, %48, %52, %56, %59, %63, %67, %71, %75 in 0 : vector<8x256xf32>, vector<8x256xf32>, vector<8x256xf32>, vector<8x256xf32>, vector<8x256xf32>, vector<8x256xf32>, vector<8x256xf32>, vector<8x256xf32>, vector<8x256xf32> -> vector<72x256xf32>
    %77 = arith.truncf %76 : vector<72x256xf32> to vector<72x256xbf16>
    %cst_17 = arith.constant dense<0.000000e+00> : vector<16x256xf32>
    %78 = tpu.matmul %40, %77, %cst_17 {dimension_numbers = #tpu.dot_dimension_numbers<[1], [0], [0], [1], [0, 0, 1, 1], [], []>} : vector<16x72xbf16>, vector<72x256xbf16>, vector<16x256xf32> -> vector<16x256xf32>
    %c0_18 = arith.constant 0 : index
    %c0_19 = arith.constant 0 : index
    %79 = vector.load %arg8[%c0_18, %c0_19] : memref<16x32xbf16, #tpu.memory_space<vmem>>, vector<16x32xbf16>
    %cst_20 = arith.constant dense<0.000000e+00> : vector<16x1xf32>
    %80 = tpu.matmul %79, %10, %cst_20 {dimension_numbers = #tpu.dot_dimension_numbers<[1], [0], [0], [1], [0, 0, 1, 1], [], []>} : vector<16x32xbf16>, vector<32x1xbf16>, vector<16x1xf32> -> vector<16x1xf32>
    %81 = vector.broadcast %80 : vector<16x1xf32> to vector<16x256xf32>
    %82 = arith.addf %78, %81 : vector<16x256xf32>
    %83 = vector.extract_strided_slice %0 {offsets = [0, 2], sizes = [16, 1], strides = [1, 1]} : vector<48x47xf32> to vector<16x1xf32>
    %84 = vector.broadcast %83 : vector<16x1xf32> to vector<16x256xf32>
    %85 = arith.addf %82, %84 : vector<16x256xf32>
    %86 = vector.extract_strided_slice %0 {offsets = [0, 3], sizes = [16, 1], strides = [1, 1]} : vector<48x47xf32> to vector<16x1xf32>
    %87 = vector.extract_strided_slice %0 {offsets = [0, 4], sizes = [16, 1], strides = [1, 1]} : vector<48x47xf32> to vector<16x1xf32>
    %cst_21 = arith.constant dense<0.000000e+00> : vector<16xf32>
    %88 = vector.multi_reduction <add>, %85, %cst_21 [1] : vector<16x256xf32> to vector<16xf32>
    %89 = vector.shape_cast %88 : vector<16xf32> to vector<16x1xf32>
    %cst_22 = arith.constant dense<0.000000e+00> : vector<16x1xf32>
    %90 = tpu.matmul %14, %89, %cst_22 {dimension_numbers = #tpu.dot_dimension_numbers<[1], [0], [0], [1], [0, 0, 1, 1], [], []>} : vector<16x16xf32>, vector<16x1xf32>, vector<16x1xf32> -> vector<16x1xf32>
    %91 = vector.broadcast %90 : vector<16x1xf32> to vector<16x256xf32>
    %92 = arith.subf %85, %91 : vector<16x256xf32>
    %93 = arith.mulf %92, %92 : vector<16x256xf32>
    %cst_23 = arith.constant dense<0.000000e+00> : vector<16xf32>
    %94 = vector.multi_reduction <add>, %93, %cst_23 [1] : vector<16x256xf32> to vector<16xf32>
    %95 = vector.shape_cast %94 : vector<16xf32> to vector<16x1xf32>
    %cst_24 = arith.constant dense<0.000000e+00> : vector<16x1xf32>
    %96 = tpu.matmul %14, %95, %cst_24 {dimension_numbers = #tpu.dot_dimension_numbers<[1], [0], [0], [1], [0, 0, 1, 1], [], []>} : vector<16x16xf32>, vector<16x1xf32>, vector<16x1xf32> -> vector<16x1xf32>
    %cst_25 = arith.constant 9.99999974E-6 : f32
    %97 = vector.broadcast %cst_25 : f32 to vector<16x1xf32>
    %98 = arith.addf %96, %97 : vector<16x1xf32>
    %99 = math.rsqrt %98 : vector<16x1xf32>
    %100 = arith.mulf %86, %99 : vector<16x1xf32>
    %101 = vector.broadcast %100 : vector<16x1xf32> to vector<16x256xf32>
    %102 = arith.mulf %92, %101 : vector<16x256xf32>
    %103 = vector.broadcast %87 : vector<16x1xf32> to vector<16x256xf32>
    %104 = arith.addf %102, %103 : vector<16x256xf32>
    %105 = arith.negf %104 : vector<16x256xf32>
    %106 = math.exp %105 : vector<16x256xf32>
    %cst_26 = arith.constant 1.000000e+00 : f32
    %107 = vector.broadcast %cst_26 : f32 to vector<16x256xf32>
    %108 = arith.addf %107, %106 : vector<16x256xf32>
    %109 = arith.divf %107, %108 : vector<16x256xf32>
    %110 = arith.mulf %104, %109 : vector<16x256xf32>
    %c0_27 = arith.constant 0 : index
    %c0_28 = arith.constant 0 : index
    %111 = vector.load %arg9[%c0_27, %c0_28] : memref<16x144xbf16, #tpu.memory_space<vmem>>, vector<16x144xbf16>
    %c17_i32_29 = arith.constant 17 : i32
    %112 = tpu.dynamic_rotate %110 by %c17_i32_29 dim 1 : vector<16x256xf32>, i32 -> vector<16x256xf32>
    %113 = vector.extract_strided_slice %1 {offsets = [0, 0], sizes = [1, 256], strides = [1, 1]} : vector<9x256xf32> to vector<1x256xf32>
    %114 = vector.broadcast %113 : vector<1x256xf32> to vector<16x256xf32>
    %115 = arith.mulf %112, %114 : vector<16x256xf32>
    %c16_i32_30 = arith.constant 16 : i32
    %116 = tpu.dynamic_rotate %110 by %c16_i32_30 dim 1 : vector<16x256xf32>, i32 -> vector<16x256xf32>
    %117 = vector.extract_strided_slice %1 {offsets = [1, 0], sizes = [1, 256], strides = [1, 1]} : vector<9x256xf32> to vector<1x256xf32>
    %118 = vector.broadcast %117 : vector<1x256xf32> to vector<16x256xf32>
    %119 = arith.mulf %116, %118 : vector<16x256xf32>
    %c15_i32_31 = arith.constant 15 : i32
    %120 = tpu.dynamic_rotate %110 by %c15_i32_31 dim 1 : vector<16x256xf32>, i32 -> vector<16x256xf32>
    %121 = vector.extract_strided_slice %1 {offsets = [2, 0], sizes = [1, 256], strides = [1, 1]} : vector<9x256xf32> to vector<1x256xf32>
    %122 = vector.broadcast %121 : vector<1x256xf32> to vector<16x256xf32>
    %123 = arith.mulf %120, %122 : vector<16x256xf32>
    %c1_i32_32 = arith.constant 1 : i32
    %124 = tpu.dynamic_rotate %110 by %c1_i32_32 dim 1 : vector<16x256xf32>, i32 -> vector<16x256xf32>
    %125 = vector.extract_strided_slice %1 {offsets = [3, 0], sizes = [1, 256], strides = [1, 1]} : vector<9x256xf32> to vector<1x256xf32>
    %126 = vector.broadcast %125 : vector<1x256xf32> to vector<16x256xf32>
    %127 = arith.mulf %124, %126 : vector<16x256xf32>
    %128 = vector.extract_strided_slice %1 {offsets = [4, 0], sizes = [1, 256], strides = [1, 1]} : vector<9x256xf32> to vector<1x256xf32>
    %129 = vector.broadcast %128 : vector<1x256xf32> to vector<16x256xf32>
    %130 = arith.mulf %110, %129 : vector<16x256xf32>
    %c255_i32_33 = arith.constant 255 : i32
    %131 = tpu.dynamic_rotate %110 by %c255_i32_33 dim 1 : vector<16x256xf32>, i32 -> vector<16x256xf32>
    %132 = vector.extract_strided_slice %1 {offsets = [5, 0], sizes = [1, 256], strides = [1, 1]} : vector<9x256xf32> to vector<1x256xf32>
    %133 = vector.broadcast %132 : vector<1x256xf32> to vector<16x256xf32>
    %134 = arith.mulf %131, %133 : vector<16x256xf32>
    %c241_i32_34 = arith.constant 241 : i32
    %135 = tpu.dynamic_rotate %110 by %c241_i32_34 dim 1 : vector<16x256xf32>, i32 -> vector<16x256xf32>
    %136 = vector.extract_strided_slice %1 {offsets = [6, 0], sizes = [1, 256], strides = [1, 1]} : vector<9x256xf32> to vector<1x256xf32>
    %137 = vector.broadcast %136 : vector<1x256xf32> to vector<16x256xf32>
    %138 = arith.mulf %135, %137 : vector<16x256xf32>
    %c240_i32_35 = arith.constant 240 : i32
    %139 = tpu.dynamic_rotate %110 by %c240_i32_35 dim 1 : vector<16x256xf32>, i32 -> vector<16x256xf32>
    %140 = vector.extract_strided_slice %1 {offsets = [7, 0], sizes = [1, 256], strides = [1, 1]} : vector<9x256xf32> to vector<1x256xf32>
    %141 = vector.broadcast %140 : vector<1x256xf32> to vector<16x256xf32>
    %142 = arith.mulf %139, %141 : vector<16x256xf32>
    %c239_i32_36 = arith.constant 239 : i32
    %143 = tpu.dynamic_rotate %110 by %c239_i32_36 dim 1 : vector<16x256xf32>, i32 -> vector<16x256xf32>
    %144 = vector.extract_strided_slice %1 {offsets = [8, 0], sizes = [1, 256], strides = [1, 1]} : vector<9x256xf32> to vector<1x256xf32>
    %145 = vector.broadcast %144 : vector<1x256xf32> to vector<16x256xf32>
    %146 = arith.mulf %143, %145 : vector<16x256xf32>
    %147 = tpu.concatenate %115, %119, %123, %127, %130, %134, %138, %142, %146 in 0 : vector<16x256xf32>, vector<16x256xf32>, vector<16x256xf32>, vector<16x256xf32>, vector<16x256xf32>, vector<16x256xf32>, vector<16x256xf32>, vector<16x256xf32>, vector<16x256xf32> -> vector<144x256xf32>
    %148 = arith.truncf %147 : vector<144x256xf32> to vector<144x256xbf16>
    %cst_37 = arith.constant dense<0.000000e+00> : vector<16x256xf32>
    %149 = tpu.matmul %111, %148, %cst_37 {dimension_numbers = #tpu.dot_dimension_numbers<[1], [0], [0], [1], [0, 0, 1, 1], [], []>} : vector<16x144xbf16>, vector<144x256xbf16>, vector<16x256xf32> -> vector<16x256xf32>
    %150 = vector.extract_strided_slice %0 {offsets = [0, 5], sizes = [16, 1], strides = [1, 1]} : vector<48x47xf32> to vector<16x1xf32>
    %151 = vector.broadcast %150 : vector<16x1xf32> to vector<16x256xf32>
    %152 = arith.addf %149, %151 : vector<16x256xf32>
    %c0_38 = arith.constant 0 : index
    %c0_39 = arith.constant 0 : index
    %153 = vector.load %arg10[%c0_38, %c0_39] : memref<16x8xbf16, #tpu.memory_space<vmem>>, vector<16x8xbf16>
    %154 = arith.truncf %12 : vector<8x256xf32> to vector<8x256xbf16>
    %cst_40 = arith.constant dense<0.000000e+00> : vector<16x256xf32>
    %155 = tpu.matmul %153, %154, %cst_40 {dimension_numbers = #tpu.dot_dimension_numbers<[1], [0], [0], [1], [0, 0, 1, 1], [], []>} : vector<16x8xbf16>, vector<8x256xbf16>, vector<16x256xf32> -> vector<16x256xf32>
    %156 = arith.addf %152, %155 : vector<16x256xf32>
    %157 = vector.extract_strided_slice %0 {offsets = [0, 6], sizes = [16, 1], strides = [1, 1]} : vector<48x47xf32> to vector<16x1xf32>
    %158 = vector.broadcast %157 : vector<16x1xf32> to vector<16x256xf32>
    %159 = arith.addf %156, %158 : vector<16x256xf32>
    %160 = vector.extract_strided_slice %0 {offsets = [0, 7], sizes = [16, 1], strides = [1, 1]} : vector<48x47xf32> to vector<16x1xf32>
    %161 = vector.extract_strided_slice %0 {offsets = [0, 8], sizes = [16, 1], strides = [1, 1]} : vector<48x47xf32> to vector<16x1xf32>
    %cst_41 = arith.constant dense<0.000000e+00> : vector<16xf32>
    %162 = vector.multi_reduction <add>, %159, %cst_41 [1] : vector<16x256xf32> to vector<16xf32>
    %163 = vector.shape_cast %162 : vector<16xf32> to vector<16x1xf32>
    %cst_42 = arith.constant dense<0.000000e+00> : vector<16x1xf32>
    %164 = tpu.matmul %14, %163, %cst_42 {dimension_numbers = #tpu.dot_dimension_numbers<[1], [0], [0], [1], [0, 0, 1, 1], [], []>} : vector<16x16xf32>, vector<16x1xf32>, vector<16x1xf32> -> vector<16x1xf32>
    %165 = vector.broadcast %164 : vector<16x1xf32> to vector<16x256xf32>
    %166 = arith.subf %159, %165 : vector<16x256xf32>
    %167 = arith.mulf %166, %166 : vector<16x256xf32>
    %cst_43 = arith.constant dense<0.000000e+00> : vector<16xf32>
    %168 = vector.multi_reduction <add>, %167, %cst_43 [1] : vector<16x256xf32> to vector<16xf32>
    %169 = vector.shape_cast %168 : vector<16xf32> to vector<16x1xf32>
    %cst_44 = arith.constant dense<0.000000e+00> : vector<16x1xf32>
    %170 = tpu.matmul %14, %169, %cst_44 {dimension_numbers = #tpu.dot_dimension_numbers<[1], [0], [0], [1], [0, 0, 1, 1], [], []>} : vector<16x16xf32>, vector<16x1xf32>, vector<16x1xf32> -> vector<16x1xf32>
    %cst_45 = arith.constant 9.99999974E-6 : f32
    %171 = vector.broadcast %cst_45 : f32 to vector<16x1xf32>
    %172 = arith.addf %170, %171 : vector<16x1xf32>
    %173 = math.rsqrt %172 : vector<16x1xf32>
    %174 = arith.mulf %160, %173 : vector<16x1xf32>
    %175 = vector.broadcast %174 : vector<16x1xf32> to vector<16x256xf32>
    %176 = arith.mulf %166, %175 : vector<16x256xf32>
    %177 = vector.broadcast %161 : vector<16x1xf32> to vector<16x256xf32>
    %178 = arith.addf %176, %177 : vector<16x256xf32>
    %c0_46 = arith.constant 0 : index
    %c0_47 = arith.constant 0 : index
    %179 = vector.load %arg11[%c0_46, %c0_47] : memref<48x16xbf16, #tpu.memory_space<vmem>>, vector<48x16xbf16>
    %180 = arith.truncf %178 : vector<16x256xf32> to vector<16x256xbf16>
    %cst_48 = arith.constant dense<0.000000e+00> : vector<48x256xf32>
    %181 = tpu.matmul %179, %180, %cst_48 {dimension_numbers = #tpu.dot_dimension_numbers<[1], [0], [0], [1], [0, 0, 1, 1], [], []>} : vector<48x16xbf16>, vector<16x256xbf16>, vector<48x256xf32> -> vector<48x256xf32>
    %182 = vector.extract_strided_slice %0 {offsets = [0, 10], sizes = [48, 1], strides = [1, 1]} : vector<48x47xf32> to vector<48x1xf32>
    %183 = vector.broadcast %182 : vector<48x1xf32> to vector<48x256xf32>
    %184 = arith.addf %181, %183 : vector<48x256xf32>
    %185 = vector.extract_strided_slice %184 {offsets = [0, 0], sizes = [16, 256], strides = [1, 1]} : vector<48x256xf32> to vector<16x256xf32>
    %186 = vector.shape_cast %185 : vector<16x256xf32> to vector<2x8x256xf32>
    %187 = vector.extract_strided_slice %184 {offsets = [16, 0], sizes = [16, 256], strides = [1, 1]} : vector<48x256xf32> to vector<16x256xf32>
    %188 = vector.shape_cast %187 : vector<16x256xf32> to vector<2x8x256xf32>
    %189 = vector.extract_strided_slice %184 {offsets = [32, 0], sizes = [16, 256], strides = [1, 1]} : vector<48x256xf32> to vector<16x256xf32>
    %190 = vector.shape_cast %189 : vector<16x256xf32> to vector<2x8x256xf32>
    %191 = tpu.transpose %186, [0, 2, 1] : vector<2x8x256xf32> -> vector<2x256x8xf32>
    %192 = arith.truncf %191 : vector<2x256x8xf32> to vector<2x256x8xbf16>
    %193 = arith.truncf %188 : vector<2x8x256xf32> to vector<2x8x256xbf16>
    %cst_49 = arith.constant dense<0.000000e+00> : vector<2x256x256xf32>
    %194 = tpu.matmul %192, %193, %cst_49 {dimension_numbers = #tpu.dot_dimension_numbers<[2], [1], [1], [2], [0, 0, 0, 1, 1, 2], [0], [0]>} : vector<2x256x8xbf16>, vector<2x8x256xbf16>, vector<2x256x256xf32> -> vector<2x256x256xf32>
    %cst_50 = arith.constant dense<0xFF800000> : vector<2x256xf32>
    %195 = vector.multi_reduction <maximumf>, %194, %cst_50 [2] : vector<2x256x256xf32> to vector<2x256xf32>
    %196 = vector.shape_cast %195 : vector<2x256xf32> to vector<2x256x1xf32>
    %197 = vector.broadcast %196 : vector<2x256x1xf32> to vector<2x256x256xf32>
    %198 = arith.subf %194, %197 : vector<2x256x256xf32>
    %199 = math.exp %198 : vector<2x256x256xf32>
    %cst_51 = arith.constant dense<0.000000e+00> : vector<2x256xf32>
    %200 = vector.multi_reduction <add>, %199, %cst_51 [2] : vector<2x256x256xf32> to vector<2x256xf32>
    %201 = vector.shape_cast %200 : vector<2x256xf32> to vector<2x256x1xf32>
    %202 = tpu.reciprocal %201 {approx = true} : vector<2x256x1xf32> -> vector<2x256x1xf32>
    %203 = vector.broadcast %202 : vector<2x256x1xf32> to vector<2x256x256xf32>
    %204 = arith.mulf %199, %203 : vector<2x256x256xf32>
    %205 = tpu.transpose %190, [0, 2, 1] : vector<2x8x256xf32> -> vector<2x256x8xf32>
    %206 = arith.truncf %205 : vector<2x256x8xf32> to vector<2x256x8xbf16>
    %207 = arith.truncf %204 : vector<2x256x256xf32> to vector<2x256x256xbf16>
    %cst_52 = arith.constant dense<0.000000e+00> : vector<2x256x8xf32>
    %208 = tpu.matmul %207, %206, %cst_52 {dimension_numbers = #tpu.dot_dimension_numbers<[2], [1], [1], [2], [0, 0, 0, 1, 1, 2], [0], [0]>} : vector<2x256x256xbf16>, vector<2x256x8xbf16>, vector<2x256x8xf32> -> vector<2x256x8xf32>
    %209 = tpu.transpose %208, [0, 2, 1] : vector<2x256x8xf32> -> vector<2x8x256xf32>
    %210 = vector.shape_cast %209 : vector<2x8x256xf32> to vector<16x256xf32>
    %c0_53 = arith.constant 0 : index
    %c0_54 = arith.constant 0 : index
    %211 = vector.load %arg12[%c0_53, %c0_54] : memref<16x16xbf16, #tpu.memory_space<vmem>>, vector<16x16xbf16>
    %212 = arith.truncf %210 : vector<16x256xf32> to vector<16x256xbf16>
    %cst_55 = arith.constant dense<0.000000e+00> : vector<16x256xf32>
    %213 = tpu.matmul %211, %212, %cst_55 {dimension_numbers = #tpu.dot_dimension_numbers<[1], [0], [0], [1], [0, 0, 1, 1], [], []>} : vector<16x16xbf16>, vector<16x256xbf16>, vector<16x256xf32> -> vector<16x256xf32>
    %214 = arith.addf %159, %213 : vector<16x256xf32>
    %215 = vector.extract_strided_slice %0 {offsets = [0, 9], sizes = [16, 1], strides = [1, 1]} : vector<48x47xf32> to vector<16x1xf32>
    %216 = vector.broadcast %215 : vector<16x1xf32> to vector<16x256xf32>
    %217 = arith.addf %214, %216 : vector<16x256xf32>
    %218 = vector.extract_strided_slice %0 {offsets = [0, 31], sizes = [16, 16], strides = [1, 1]} : vector<48x47xf32> to vector<16x16xf32>
    %219 = vector.extract_strided_slice %0 {offsets = [0, 31], sizes = [16, 16], strides = [1, 1]} : vector<48x47xf32> to vector<16x16xf32>
    %220 = vector.extract_strided_slice %0 {offsets = [0, 11], sizes = [16, 1], strides = [1, 1]} : vector<48x47xf32> to vector<16x1xf32>
    %221 = vector.extract_strided_slice %0 {offsets = [0, 12], sizes = [16, 1], strides = [1, 1]} : vector<48x47xf32> to vector<16x1xf32>
    %cst_56 = arith.constant dense<0.000000e+00> : vector<16xf32>
    %222 = vector.multi_reduction <add>, %217, %cst_56 [1] : vector<16x256xf32> to vector<16xf32>
    %223 = vector.shape_cast %222 : vector<16xf32> to vector<16x1xf32>
    %cst_57 = arith.constant dense<0.000000e+00> : vector<16x1xf32>
    %224 = tpu.matmul %218, %223, %cst_57 {dimension_numbers = #tpu.dot_dimension_numbers<[1], [0], [0], [1], [0, 0, 1, 1], [], []>} : vector<16x16xf32>, vector<16x1xf32>, vector<16x1xf32> -> vector<16x1xf32>
    %225 = vector.broadcast %224 : vector<16x1xf32> to vector<16x256xf32>
    %226 = arith.subf %217, %225 : vector<16x256xf32>
    %227 = arith.mulf %226, %226 : vector<16x256xf32>
    %cst_58 = arith.constant dense<0.000000e+00> : vector<16xf32>
    %228 = vector.multi_reduction <add>, %227, %cst_58 [1] : vector<16x256xf32> to vector<16xf32>
    %229 = vector.shape_cast %228 : vector<16xf32> to vector<16x1xf32>
    %cst_59 = arith.constant dense<0.000000e+00> : vector<16x1xf32>
    %230 = tpu.matmul %218, %229, %cst_59 {dimension_numbers = #tpu.dot_dimension_numbers<[1], [0], [0], [1], [0, 0, 1, 1], [], []>} : vector<16x16xf32>, vector<16x1xf32>, vector<16x1xf32> -> vector<16x1xf32>
    %cst_60 = arith.constant 9.99999974E-6 : f32
    %231 = vector.broadcast %cst_60 : f32 to vector<16x1xf32>
    %232 = arith.addf %230, %231 : vector<16x1xf32>
    %233 = math.rsqrt %232 : vector<16x1xf32>
    %234 = arith.mulf %220, %233 : vector<16x1xf32>
    %235 = vector.broadcast %234 : vector<16x1xf32> to vector<16x256xf32>
    %236 = arith.mulf %226, %235 : vector<16x256xf32>
    %237 = vector.broadcast %221 : vector<16x1xf32> to vector<16x256xf32>
    %238 = arith.addf %236, %237 : vector<16x256xf32>
    %239 = arith.negf %238 : vector<16x256xf32>
    %240 = math.exp %239 : vector<16x256xf32>
    %cst_61 = arith.constant 1.000000e+00 : f32
    %241 = vector.broadcast %cst_61 : f32 to vector<16x256xf32>
    %242 = arith.addf %241, %240 : vector<16x256xf32>
    %243 = arith.divf %241, %242 : vector<16x256xf32>
    %244 = arith.mulf %238, %243 : vector<16x256xf32>
    %c0_62 = arith.constant 0 : index
    %c0_63 = arith.constant 0 : index
    %245 = vector.load %arg13[%c0_62, %c0_63] : memref<16x144xbf16, #tpu.memory_space<vmem>>, vector<16x144xbf16>
    %c17_i32_64 = arith.constant 17 : i32
    %246 = tpu.dynamic_rotate %244 by %c17_i32_64 dim 1 : vector<16x256xf32>, i32 -> vector<16x256xf32>
    %247 = vector.extract_strided_slice %1 {offsets = [0, 0], sizes = [1, 256], strides = [1, 1]} : vector<9x256xf32> to vector<1x256xf32>
    %248 = vector.broadcast %247 : vector<1x256xf32> to vector<16x256xf32>
    %249 = arith.mulf %246, %248 : vector<16x256xf32>
    %c16_i32_65 = arith.constant 16 : i32
    %250 = tpu.dynamic_rotate %244 by %c16_i32_65 dim 1 : vector<16x256xf32>, i32 -> vector<16x256xf32>
    %251 = vector.extract_strided_slice %1 {offsets = [1, 0], sizes = [1, 256], strides = [1, 1]} : vector<9x256xf32> to vector<1x256xf32>
    %252 = vector.broadcast %251 : vector<1x256xf32> to vector<16x256xf32>
    %253 = arith.mulf %250, %252 : vector<16x256xf32>
    %c15_i32_66 = arith.constant 15 : i32
    %254 = tpu.dynamic_rotate %244 by %c15_i32_66 dim 1 : vector<16x256xf32>, i32 -> vector<16x256xf32>
    %255 = vector.extract_strided_slice %1 {offsets = [2, 0], sizes = [1, 256], strides = [1, 1]} : vector<9x256xf32> to vector<1x256xf32>
    %256 = vector.broadcast %255 : vector<1x256xf32> to vector<16x256xf32>
    %257 = arith.mulf %254, %256 : vector<16x256xf32>
    %c1_i32_67 = arith.constant 1 : i32
    %258 = tpu.dynamic_rotate %244 by %c1_i32_67 dim 1 : vector<16x256xf32>, i32 -> vector<16x256xf32>
    %259 = vector.extract_strided_slice %1 {offsets = [3, 0], sizes = [1, 256], strides = [1, 1]} : vector<9x256xf32> to vector<1x256xf32>
    %260 = vector.broadcast %259 : vector<1x256xf32> to vector<16x256xf32>
    %261 = arith.mulf %258, %260 : vector<16x256xf32>
    %262 = vector.extract_strided_slice %1 {offsets = [4, 0], sizes = [1, 256], strides = [1, 1]} : vector<9x256xf32> to vector<1x256xf32>
    %263 = vector.broadcast %262 : vector<1x256xf32> to vector<16x256xf32>
    %264 = arith.mulf %244, %263 : vector<16x256xf32>
    %c255_i32_68 = arith.constant 255 : i32
    %265 = tpu.dynamic_rotate %244 by %c255_i32_68 dim 1 : vector<16x256xf32>, i32 -> vector<16x256xf32>
    %266 = vector.extract_strided_slice %1 {offsets = [5, 0], sizes = [1, 256], strides = [1, 1]} : vector<9x256xf32> to vector<1x256xf32>
    %267 = vector.broadcast %266 : vector<1x256xf32> to vector<16x256xf32>
    %268 = arith.mulf %265, %267 : vector<16x256xf32>
    %c241_i32_69 = arith.constant 241 : i32
    %269 = tpu.dynamic_rotate %244 by %c241_i32_69 dim 1 : vector<16x256xf32>, i32 -> vector<16x256xf32>
    %270 = vector.extract_strided_slice %1 {offsets = [6, 0], sizes = [1, 256], strides = [1, 1]} : vector<9x256xf32> to vector<1x256xf32>
    %271 = vector.broadcast %270 : vector<1x256xf32> to vector<16x256xf32>
    %272 = arith.mulf %269, %271 : vector<16x256xf32>
    %c240_i32_70 = arith.constant 240 : i32
    %273 = tpu.dynamic_rotate %244 by %c240_i32_70 dim 1 : vector<16x256xf32>, i32 -> vector<16x256xf32>
    %274 = vector.extract_strided_slice %1 {offsets = [7, 0], sizes = [1, 256], strides = [1, 1]} : vector<9x256xf32> to vector<1x256xf32>
    %275 = vector.broadcast %274 : vector<1x256xf32> to vector<16x256xf32>
    %276 = arith.mulf %273, %275 : vector<16x256xf32>
    %c239_i32_71 = arith.constant 239 : i32
    %277 = tpu.dynamic_rotate %244 by %c239_i32_71 dim 1 : vector<16x256xf32>, i32 -> vector<16x256xf32>
    %278 = vector.extract_strided_slice %1 {offsets = [8, 0], sizes = [1, 256], strides = [1, 1]} : vector<9x256xf32> to vector<1x256xf32>
    %279 = vector.broadcast %278 : vector<1x256xf32> to vector<16x256xf32>
    %280 = arith.mulf %277, %279 : vector<16x256xf32>
    %281 = tpu.concatenate %249, %253, %257, %261, %264, %268, %272, %276, %280 in 0 : vector<16x256xf32>, vector<16x256xf32>, vector<16x256xf32>, vector<16x256xf32>, vector<16x256xf32>, vector<16x256xf32>, vector<16x256xf32>, vector<16x256xf32>, vector<16x256xf32> -> vector<144x256xf32>
    %282 = arith.truncf %281 : vector<144x256xf32> to vector<144x256xbf16>
    %cst_72 = arith.constant dense<0.000000e+00> : vector<16x256xf32>
    %283 = tpu.matmul %245, %282, %cst_72 {dimension_numbers = #tpu.dot_dimension_numbers<[1], [0], [0], [1], [0, 0, 1, 1], [], []>} : vector<16x144xbf16>, vector<144x256xbf16>, vector<16x256xf32> -> vector<16x256xf32>
    %c0_73 = arith.constant 0 : index
    %c0_74 = arith.constant 0 : index
    %284 = vector.load %arg14[%c0_73, %c0_74] : memref<16x32xbf16, #tpu.memory_space<vmem>>, vector<16x32xbf16>
    %cst_75 = arith.constant dense<0.000000e+00> : vector<16x1xf32>
    %285 = tpu.matmul %284, %10, %cst_75 {dimension_numbers = #tpu.dot_dimension_numbers<[1], [0], [0], [1], [0, 0, 1, 1], [], []>} : vector<16x32xbf16>, vector<32x1xbf16>, vector<16x1xf32> -> vector<16x1xf32>
    %286 = vector.broadcast %285 : vector<16x1xf32> to vector<16x256xf32>
    %287 = arith.addf %283, %286 : vector<16x256xf32>
    %288 = vector.extract_strided_slice %0 {offsets = [0, 13], sizes = [16, 1], strides = [1, 1]} : vector<48x47xf32> to vector<16x1xf32>
    %289 = vector.broadcast %288 : vector<16x1xf32> to vector<16x256xf32>
    %290 = arith.addf %287, %289 : vector<16x256xf32>
    %291 = vector.extract_strided_slice %0 {offsets = [0, 14], sizes = [16, 1], strides = [1, 1]} : vector<48x47xf32> to vector<16x1xf32>
    %292 = vector.extract_strided_slice %0 {offsets = [0, 15], sizes = [16, 1], strides = [1, 1]} : vector<48x47xf32> to vector<16x1xf32>
    %cst_76 = arith.constant dense<0.000000e+00> : vector<16xf32>
    %293 = vector.multi_reduction <add>, %290, %cst_76 [1] : vector<16x256xf32> to vector<16xf32>
    %294 = vector.shape_cast %293 : vector<16xf32> to vector<16x1xf32>
    %cst_77 = arith.constant dense<0.000000e+00> : vector<16x1xf32>
    %295 = tpu.matmul %219, %294, %cst_77 {dimension_numbers = #tpu.dot_dimension_numbers<[1], [0], [0], [1], [0, 0, 1, 1], [], []>} : vector<16x16xf32>, vector<16x1xf32>, vector<16x1xf32> -> vector<16x1xf32>
    %296 = vector.broadcast %295 : vector<16x1xf32> to vector<16x256xf32>
    %297 = arith.subf %290, %296 : vector<16x256xf32>
    %298 = arith.mulf %297, %297 : vector<16x256xf32>
    %cst_78 = arith.constant dense<0.000000e+00> : vector<16xf32>
    %299 = vector.multi_reduction <add>, %298, %cst_78 [1] : vector<16x256xf32> to vector<16xf32>
    %300 = vector.shape_cast %299 : vector<16xf32> to vector<16x1xf32>
    %cst_79 = arith.constant dense<0.000000e+00> : vector<16x1xf32>
    %301 = tpu.matmul %219, %300, %cst_79 {dimension_numbers = #tpu.dot_dimension_numbers<[1], [0], [0], [1], [0, 0, 1, 1], [], []>} : vector<16x16xf32>, vector<16x1xf32>, vector<16x1xf32> -> vector<16x1xf32>
    %cst_80 = arith.constant 9.99999974E-6 : f32
    %302 = vector.broadcast %cst_80 : f32 to vector<16x1xf32>
    %303 = arith.addf %301, %302 : vector<16x1xf32>
    %304 = math.rsqrt %303 : vector<16x1xf32>
    %305 = arith.mulf %291, %304 : vector<16x1xf32>
    %306 = vector.broadcast %305 : vector<16x1xf32> to vector<16x256xf32>
    %307 = arith.mulf %297, %306 : vector<16x256xf32>
    %308 = vector.broadcast %292 : vector<16x1xf32> to vector<16x256xf32>
    %309 = arith.addf %307, %308 : vector<16x256xf32>
    %310 = arith.negf %309 : vector<16x256xf32>
    %311 = math.exp %310 : vector<16x256xf32>
    %cst_81 = arith.constant 1.000000e+00 : f32
    %312 = vector.broadcast %cst_81 : f32 to vector<16x256xf32>
    %313 = arith.addf %312, %311 : vector<16x256xf32>
    %314 = arith.divf %312, %313 : vector<16x256xf32>
    %315 = arith.mulf %309, %314 : vector<16x256xf32>
    %c0_82 = arith.constant 0 : index
    %c0_83 = arith.constant 0 : index
    %316 = vector.load %arg15[%c0_82, %c0_83] : memref<16x144xbf16, #tpu.memory_space<vmem>>, vector<16x144xbf16>
    %c17_i32_84 = arith.constant 17 : i32
    %317 = tpu.dynamic_rotate %315 by %c17_i32_84 dim 1 : vector<16x256xf32>, i32 -> vector<16x256xf32>
    %318 = vector.extract_strided_slice %1 {offsets = [0, 0], sizes = [1, 256], strides = [1, 1]} : vector<9x256xf32> to vector<1x256xf32>
    %319 = vector.broadcast %318 : vector<1x256xf32> to vector<16x256xf32>
    %320 = arith.mulf %317, %319 : vector<16x256xf32>
    %c16_i32_85 = arith.constant 16 : i32
    %321 = tpu.dynamic_rotate %315 by %c16_i32_85 dim 1 : vector<16x256xf32>, i32 -> vector<16x256xf32>
    %322 = vector.extract_strided_slice %1 {offsets = [1, 0], sizes = [1, 256], strides = [1, 1]} : vector<9x256xf32> to vector<1x256xf32>
    %323 = vector.broadcast %322 : vector<1x256xf32> to vector<16x256xf32>
    %324 = arith.mulf %321, %323 : vector<16x256xf32>
    %c15_i32_86 = arith.constant 15 : i32
    %325 = tpu.dynamic_rotate %315 by %c15_i32_86 dim 1 : vector<16x256xf32>, i32 -> vector<16x256xf32>
    %326 = vector.extract_strided_slice %1 {offsets = [2, 0], sizes = [1, 256], strides = [1, 1]} : vector<9x256xf32> to vector<1x256xf32>
    %327 = vector.broadcast %326 : vector<1x256xf32> to vector<16x256xf32>
    %328 = arith.mulf %325, %327 : vector<16x256xf32>
    %c1_i32_87 = arith.constant 1 : i32
    %329 = tpu.dynamic_rotate %315 by %c1_i32_87 dim 1 : vector<16x256xf32>, i32 -> vector<16x256xf32>
    %330 = vector.extract_strided_slice %1 {offsets = [3, 0], sizes = [1, 256], strides = [1, 1]} : vector<9x256xf32> to vector<1x256xf32>
    %331 = vector.broadcast %330 : vector<1x256xf32> to vector<16x256xf32>
    %332 = arith.mulf %329, %331 : vector<16x256xf32>
    %333 = vector.extract_strided_slice %1 {offsets = [4, 0], sizes = [1, 256], strides = [1, 1]} : vector<9x256xf32> to vector<1x256xf32>
    %334 = vector.broadcast %333 : vector<1x256xf32> to vector<16x256xf32>
    %335 = arith.mulf %315, %334 : vector<16x256xf32>
    %c255_i32_88 = arith.constant 255 : i32
    %336 = tpu.dynamic_rotate %315 by %c255_i32_88 dim 1 : vector<16x256xf32>, i32 -> vector<16x256xf32>
    %337 = vector.extract_strided_slice %1 {offsets = [5, 0], sizes = [1, 256], strides = [1, 1]} : vector<9x256xf32> to vector<1x256xf32>
    %338 = vector.broadcast %337 : vector<1x256xf32> to vector<16x256xf32>
    %339 = arith.mulf %336, %338 : vector<16x256xf32>
    %c241_i32_89 = arith.constant 241 : i32
    %340 = tpu.dynamic_rotate %315 by %c241_i32_89 dim 1 : vector<16x256xf32>, i32 -> vector<16x256xf32>
    %341 = vector.extract_strided_slice %1 {offsets = [6, 0], sizes = [1, 256], strides = [1, 1]} : vector<9x256xf32> to vector<1x256xf32>
    %342 = vector.broadcast %341 : vector<1x256xf32> to vector<16x256xf32>
    %343 = arith.mulf %340, %342 : vector<16x256xf32>
    %c240_i32_90 = arith.constant 240 : i32
    %344 = tpu.dynamic_rotate %315 by %c240_i32_90 dim 1 : vector<16x256xf32>, i32 -> vector<16x256xf32>
    %345 = vector.extract_strided_slice %1 {offsets = [7, 0], sizes = [1, 256], strides = [1, 1]} : vector<9x256xf32> to vector<1x256xf32>
    %346 = vector.broadcast %345 : vector<1x256xf32> to vector<16x256xf32>
    %347 = arith.mulf %344, %346 : vector<16x256xf32>
    %c239_i32_91 = arith.constant 239 : i32
    %348 = tpu.dynamic_rotate %315 by %c239_i32_91 dim 1 : vector<16x256xf32>, i32 -> vector<16x256xf32>
    %349 = vector.extract_strided_slice %1 {offsets = [8, 0], sizes = [1, 256], strides = [1, 1]} : vector<9x256xf32> to vector<1x256xf32>
    %350 = vector.broadcast %349 : vector<1x256xf32> to vector<16x256xf32>
    %351 = arith.mulf %348, %350 : vector<16x256xf32>
    %352 = tpu.concatenate %320, %324, %328, %332, %335, %339, %343, %347, %351 in 0 : vector<16x256xf32>, vector<16x256xf32>, vector<16x256xf32>, vector<16x256xf32>, vector<16x256xf32>, vector<16x256xf32>, vector<16x256xf32>, vector<16x256xf32>, vector<16x256xf32> -> vector<144x256xf32>
    %353 = arith.truncf %352 : vector<144x256xf32> to vector<144x256xbf16>
    %cst_92 = arith.constant dense<0.000000e+00> : vector<16x256xf32>
    %354 = tpu.matmul %316, %353, %cst_92 {dimension_numbers = #tpu.dot_dimension_numbers<[1], [0], [0], [1], [0, 0, 1, 1], [], []>} : vector<16x144xbf16>, vector<144x256xbf16>, vector<16x256xf32> -> vector<16x256xf32>
    %355 = vector.extract_strided_slice %0 {offsets = [0, 16], sizes = [16, 1], strides = [1, 1]} : vector<48x47xf32> to vector<16x1xf32>
    %356 = vector.broadcast %355 : vector<16x1xf32> to vector<16x256xf32>
    %357 = arith.addf %354, %356 : vector<16x256xf32>
    %c0_93 = arith.constant 0 : index
    %c0_94 = arith.constant 0 : index
    %358 = vector.load %arg16[%c0_93, %c0_94] : memref<16x16xbf16, #tpu.memory_space<vmem>>, vector<16x16xbf16>
    %359 = arith.truncf %217 : vector<16x256xf32> to vector<16x256xbf16>
    %cst_95 = arith.constant dense<0.000000e+00> : vector<16x256xf32>
    %360 = tpu.matmul %358, %359, %cst_95 {dimension_numbers = #tpu.dot_dimension_numbers<[1], [0], [0], [1], [0, 0, 1, 1], [], []>} : vector<16x16xbf16>, vector<16x256xbf16>, vector<16x256xf32> -> vector<16x256xf32>
    %361 = arith.addf %357, %360 : vector<16x256xf32>
    %362 = vector.extract_strided_slice %0 {offsets = [0, 17], sizes = [16, 1], strides = [1, 1]} : vector<48x47xf32> to vector<16x1xf32>
    %363 = vector.broadcast %362 : vector<16x1xf32> to vector<16x256xf32>
    %364 = arith.addf %361, %363 : vector<16x256xf32>
    %365 = vector.extract_strided_slice %0 {offsets = [0, 18], sizes = [16, 1], strides = [1, 1]} : vector<48x47xf32> to vector<16x1xf32>
    %366 = vector.extract_strided_slice %0 {offsets = [0, 19], sizes = [16, 1], strides = [1, 1]} : vector<48x47xf32> to vector<16x1xf32>
    %cst_96 = arith.constant dense<0.000000e+00> : vector<16xf32>
    %367 = vector.multi_reduction <add>, %364, %cst_96 [1] : vector<16x256xf32> to vector<16xf32>
    %368 = vector.shape_cast %367 : vector<16xf32> to vector<16x1xf32>
    %cst_97 = arith.constant dense<0.000000e+00> : vector<16x1xf32>
    %369 = tpu.matmul %219, %368, %cst_97 {dimension_numbers = #tpu.dot_dimension_numbers<[1], [0], [0], [1], [0, 0, 1, 1], [], []>} : vector<16x16xf32>, vector<16x1xf32>, vector<16x1xf32> -> vector<16x1xf32>
    %370 = vector.broadcast %369 : vector<16x1xf32> to vector<16x256xf32>
    %371 = arith.subf %364, %370 : vector<16x256xf32>
    %372 = arith.mulf %371, %371 : vector<16x256xf32>
    %cst_98 = arith.constant dense<0.000000e+00> : vector<16xf32>
    %373 = vector.multi_reduction <add>, %372, %cst_98 [1] : vector<16x256xf32> to vector<16xf32>
    %374 = vector.shape_cast %373 : vector<16xf32> to vector<16x1xf32>
    %cst_99 = arith.constant dense<0.000000e+00> : vector<16x1xf32>
    %375 = tpu.matmul %219, %374, %cst_99 {dimension_numbers = #tpu.dot_dimension_numbers<[1], [0], [0], [1], [0, 0, 1, 1], [], []>} : vector<16x16xf32>, vector<16x1xf32>, vector<16x1xf32> -> vector<16x1xf32>
    %cst_100 = arith.constant 9.99999974E-6 : f32
    %376 = vector.broadcast %cst_100 : f32 to vector<16x1xf32>
    %377 = arith.addf %375, %376 : vector<16x1xf32>
    %378 = math.rsqrt %377 : vector<16x1xf32>
    %379 = arith.mulf %365, %378 : vector<16x1xf32>
    %380 = vector.broadcast %379 : vector<16x1xf32> to vector<16x256xf32>
    %381 = arith.mulf %371, %380 : vector<16x256xf32>
    %382 = vector.broadcast %366 : vector<16x1xf32> to vector<16x256xf32>
    %383 = arith.addf %381, %382 : vector<16x256xf32>
    %c0_101 = arith.constant 0 : index
    %c0_102 = arith.constant 0 : index
    %384 = vector.load %arg17[%c0_101, %c0_102] : memref<48x16xbf16, #tpu.memory_space<vmem>>, vector<48x16xbf16>
    %385 = arith.truncf %383 : vector<16x256xf32> to vector<16x256xbf16>
    %cst_103 = arith.constant dense<0.000000e+00> : vector<48x256xf32>
    %386 = tpu.matmul %384, %385, %cst_103 {dimension_numbers = #tpu.dot_dimension_numbers<[1], [0], [0], [1], [0, 0, 1, 1], [], []>} : vector<48x16xbf16>, vector<16x256xbf16>, vector<48x256xf32> -> vector<48x256xf32>
    %387 = vector.extract_strided_slice %0 {offsets = [0, 21], sizes = [48, 1], strides = [1, 1]} : vector<48x47xf32> to vector<48x1xf32>
    %388 = vector.broadcast %387 : vector<48x1xf32> to vector<48x256xf32>
    %389 = arith.addf %386, %388 : vector<48x256xf32>
    %390 = vector.extract_strided_slice %389 {offsets = [0, 0], sizes = [16, 256], strides = [1, 1]} : vector<48x256xf32> to vector<16x256xf32>
    %391 = vector.shape_cast %390 : vector<16x256xf32> to vector<2x8x256xf32>
    %392 = vector.extract_strided_slice %389 {offsets = [16, 0], sizes = [16, 256], strides = [1, 1]} : vector<48x256xf32> to vector<16x256xf32>
    %393 = vector.shape_cast %392 : vector<16x256xf32> to vector<2x8x256xf32>
    %394 = vector.extract_strided_slice %389 {offsets = [32, 0], sizes = [16, 256], strides = [1, 1]} : vector<48x256xf32> to vector<16x256xf32>
    %395 = vector.shape_cast %394 : vector<16x256xf32> to vector<2x8x256xf32>
    %396 = tpu.transpose %391, [0, 2, 1] : vector<2x8x256xf32> -> vector<2x256x8xf32>
    %397 = arith.truncf %396 : vector<2x256x8xf32> to vector<2x256x8xbf16>
    %398 = arith.truncf %393 : vector<2x8x256xf32> to vector<2x8x256xbf16>
    %cst_104 = arith.constant dense<0.000000e+00> : vector<2x256x256xf32>
    %399 = tpu.matmul %397, %398, %cst_104 {dimension_numbers = #tpu.dot_dimension_numbers<[2], [1], [1], [2], [0, 0, 0, 1, 1, 2], [0], [0]>} : vector<2x256x8xbf16>, vector<2x8x256xbf16>, vector<2x256x256xf32> -> vector<2x256x256xf32>
    %cst_105 = arith.constant dense<0xFF800000> : vector<2x256xf32>
    %400 = vector.multi_reduction <maximumf>, %399, %cst_105 [2] : vector<2x256x256xf32> to vector<2x256xf32>
    %401 = vector.shape_cast %400 : vector<2x256xf32> to vector<2x256x1xf32>
    %402 = vector.broadcast %401 : vector<2x256x1xf32> to vector<2x256x256xf32>
    %403 = arith.subf %399, %402 : vector<2x256x256xf32>
    %404 = math.exp %403 : vector<2x256x256xf32>
    %cst_106 = arith.constant dense<0.000000e+00> : vector<2x256xf32>
    %405 = vector.multi_reduction <add>, %404, %cst_106 [2] : vector<2x256x256xf32> to vector<2x256xf32>
    %406 = vector.shape_cast %405 : vector<2x256xf32> to vector<2x256x1xf32>
    %407 = tpu.reciprocal %406 {approx = true} : vector<2x256x1xf32> -> vector<2x256x1xf32>
    %408 = vector.broadcast %407 : vector<2x256x1xf32> to vector<2x256x256xf32>
    %409 = arith.mulf %404, %408 : vector<2x256x256xf32>
    %410 = tpu.transpose %395, [0, 2, 1] : vector<2x8x256xf32> -> vector<2x256x8xf32>
    %411 = arith.truncf %410 : vector<2x256x8xf32> to vector<2x256x8xbf16>
    %412 = arith.truncf %409 : vector<2x256x256xf32> to vector<2x256x256xbf16>
    %cst_107 = arith.constant dense<0.000000e+00> : vector<2x256x8xf32>
    %413 = tpu.matmul %412, %411, %cst_107 {dimension_numbers = #tpu.dot_dimension_numbers<[2], [1], [1], [2], [0, 0, 0, 1, 1, 2], [0], [0]>} : vector<2x256x256xbf16>, vector<2x256x8xbf16>, vector<2x256x8xf32> -> vector<2x256x8xf32>
    %414 = tpu.transpose %413, [0, 2, 1] : vector<2x256x8xf32> -> vector<2x8x256xf32>
    %415 = vector.shape_cast %414 : vector<2x8x256xf32> to vector<16x256xf32>
    %c0_108 = arith.constant 0 : index
    %c0_109 = arith.constant 0 : index
    %416 = vector.load %arg18[%c0_108, %c0_109] : memref<16x16xbf16, #tpu.memory_space<vmem>>, vector<16x16xbf16>
    %417 = arith.truncf %415 : vector<16x256xf32> to vector<16x256xbf16>
    %cst_110 = arith.constant dense<0.000000e+00> : vector<16x256xf32>
    %418 = tpu.matmul %416, %417, %cst_110 {dimension_numbers = #tpu.dot_dimension_numbers<[1], [0], [0], [1], [0, 0, 1, 1], [], []>} : vector<16x16xbf16>, vector<16x256xbf16>, vector<16x256xf32> -> vector<16x256xf32>
    %419 = arith.addf %364, %418 : vector<16x256xf32>
    %420 = vector.extract_strided_slice %0 {offsets = [0, 20], sizes = [16, 1], strides = [1, 1]} : vector<48x47xf32> to vector<16x1xf32>
    %421 = vector.broadcast %420 : vector<16x1xf32> to vector<16x256xf32>
    %422 = arith.addf %419, %421 : vector<16x256xf32>
    %c0_111 = arith.constant 0 : index
    %c0_112 = arith.constant 0 : index
    %423 = vector.load %arg19[%c0_111, %c0_112] : memref<16x256xbf16, #tpu.memory_space<vmem>>, vector<16x256xbf16>
    %c0_113 = arith.constant 0 : index
    %c0_114 = arith.constant 0 : index
    %424 = vector.load %arg5[%c0_113, %c0_114] : memref<16x256xf32, #tpu.memory_space<vmem>>, vector<16x256xf32>
    %c17_i32_115 = arith.constant 17 : i32
    %425 = tpu.dynamic_rotate %422 by %c17_i32_115 dim 1 : vector<16x256xf32>, i32 -> vector<16x256xf32>
    %426 = vector.extract_strided_slice %424 {offsets = [0, 0], sizes = [1, 256], strides = [1, 1]} : vector<16x256xf32> to vector<1x256xf32>
    %427 = vector.broadcast %426 : vector<1x256xf32> to vector<16x256xf32>
    %428 = arith.mulf %425, %427 : vector<16x256xf32>
    %c16_i32_116 = arith.constant 16 : i32
    %429 = tpu.dynamic_rotate %422 by %c16_i32_116 dim 1 : vector<16x256xf32>, i32 -> vector<16x256xf32>
    %430 = vector.extract_strided_slice %424 {offsets = [1, 0], sizes = [1, 256], strides = [1, 1]} : vector<16x256xf32> to vector<1x256xf32>
    %431 = vector.broadcast %430 : vector<1x256xf32> to vector<16x256xf32>
    %432 = arith.mulf %429, %431 : vector<16x256xf32>
    %c15_i32_117 = arith.constant 15 : i32
    %433 = tpu.dynamic_rotate %422 by %c15_i32_117 dim 1 : vector<16x256xf32>, i32 -> vector<16x256xf32>
    %434 = vector.extract_strided_slice %424 {offsets = [2, 0], sizes = [1, 256], strides = [1, 1]} : vector<16x256xf32> to vector<1x256xf32>
    %435 = vector.broadcast %434 : vector<1x256xf32> to vector<16x256xf32>
    %436 = arith.mulf %433, %435 : vector<16x256xf32>
    %c14_i32 = arith.constant 14 : i32
    %437 = tpu.dynamic_rotate %422 by %c14_i32 dim 1 : vector<16x256xf32>, i32 -> vector<16x256xf32>
    %438 = vector.extract_strided_slice %424 {offsets = [3, 0], sizes = [1, 256], strides = [1, 1]} : vector<16x256xf32> to vector<1x256xf32>
    %439 = vector.broadcast %438 : vector<1x256xf32> to vector<16x256xf32>
    %440 = arith.mulf %437, %439 : vector<16x256xf32>
    %c1_i32_118 = arith.constant 1 : i32
    %441 = tpu.dynamic_rotate %422 by %c1_i32_118 dim 1 : vector<16x256xf32>, i32 -> vector<16x256xf32>
    %442 = vector.extract_strided_slice %424 {offsets = [4, 0], sizes = [1, 256], strides = [1, 1]} : vector<16x256xf32> to vector<1x256xf32>
    %443 = vector.broadcast %442 : vector<1x256xf32> to vector<16x256xf32>
    %444 = arith.mulf %441, %443 : vector<16x256xf32>
    %445 = vector.extract_strided_slice %424 {offsets = [5, 0], sizes = [1, 256], strides = [1, 1]} : vector<16x256xf32> to vector<1x256xf32>
    %446 = vector.broadcast %445 : vector<1x256xf32> to vector<16x256xf32>
    %447 = arith.mulf %422, %446 : vector<16x256xf32>
    %c255_i32_119 = arith.constant 255 : i32
    %448 = tpu.dynamic_rotate %422 by %c255_i32_119 dim 1 : vector<16x256xf32>, i32 -> vector<16x256xf32>
    %449 = vector.extract_strided_slice %424 {offsets = [6, 0], sizes = [1, 256], strides = [1, 1]} : vector<16x256xf32> to vector<1x256xf32>
    %450 = vector.broadcast %449 : vector<1x256xf32> to vector<16x256xf32>
    %451 = arith.mulf %448, %450 : vector<16x256xf32>
    %c254_i32 = arith.constant 254 : i32
    %452 = tpu.dynamic_rotate %422 by %c254_i32 dim 1 : vector<16x256xf32>, i32 -> vector<16x256xf32>
    %453 = vector.extract_strided_slice %424 {offsets = [7, 0], sizes = [1, 256], strides = [1, 1]} : vector<16x256xf32> to vector<1x256xf32>
    %454 = vector.broadcast %453 : vector<1x256xf32> to vector<16x256xf32>
    %455 = arith.mulf %452, %454 : vector<16x256xf32>
    %c241_i32_120 = arith.constant 241 : i32
    %456 = tpu.dynamic_rotate %422 by %c241_i32_120 dim 1 : vector<16x256xf32>, i32 -> vector<16x256xf32>
    %457 = vector.extract_strided_slice %424 {offsets = [8, 0], sizes = [1, 256], strides = [1, 1]} : vector<16x256xf32> to vector<1x256xf32>
    %458 = vector.broadcast %457 : vector<1x256xf32> to vector<16x256xf32>
    %459 = arith.mulf %456, %458 : vector<16x256xf32>
    %c240_i32_121 = arith.constant 240 : i32
    %460 = tpu.dynamic_rotate %422 by %c240_i32_121 dim 1 : vector<16x256xf32>, i32 -> vector<16x256xf32>
    %461 = vector.extract_strided_slice %424 {offsets = [9, 0], sizes = [1, 256], strides = [1, 1]} : vector<16x256xf32> to vector<1x256xf32>
    %462 = vector.broadcast %461 : vector<1x256xf32> to vector<16x256xf32>
    %463 = arith.mulf %460, %462 : vector<16x256xf32>
    %c239_i32_122 = arith.constant 239 : i32
    %464 = tpu.dynamic_rotate %422 by %c239_i32_122 dim 1 : vector<16x256xf32>, i32 -> vector<16x256xf32>
    %465 = vector.extract_strided_slice %424 {offsets = [10, 0], sizes = [1, 256], strides = [1, 1]} : vector<16x256xf32> to vector<1x256xf32>
    %466 = vector.broadcast %465 : vector<1x256xf32> to vector<16x256xf32>
    %467 = arith.mulf %464, %466 : vector<16x256xf32>
    %c238_i32 = arith.constant 238 : i32
    %468 = tpu.dynamic_rotate %422 by %c238_i32 dim 1 : vector<16x256xf32>, i32 -> vector<16x256xf32>
    %469 = vector.extract_strided_slice %424 {offsets = [11, 0], sizes = [1, 256], strides = [1, 1]} : vector<16x256xf32> to vector<1x256xf32>
    %470 = vector.broadcast %469 : vector<1x256xf32> to vector<16x256xf32>
    %471 = arith.mulf %468, %470 : vector<16x256xf32>
    %c225_i32 = arith.constant 225 : i32
    %472 = tpu.dynamic_rotate %422 by %c225_i32 dim 1 : vector<16x256xf32>, i32 -> vector<16x256xf32>
    %473 = vector.extract_strided_slice %424 {offsets = [12, 0], sizes = [1, 256], strides = [1, 1]} : vector<16x256xf32> to vector<1x256xf32>
    %474 = vector.broadcast %473 : vector<1x256xf32> to vector<16x256xf32>
    %475 = arith.mulf %472, %474 : vector<16x256xf32>
    %c224_i32 = arith.constant 224 : i32
    %476 = tpu.dynamic_rotate %422 by %c224_i32 dim 1 : vector<16x256xf32>, i32 -> vector<16x256xf32>
    %477 = vector.extract_strided_slice %424 {offsets = [13, 0], sizes = [1, 256], strides = [1, 1]} : vector<16x256xf32> to vector<1x256xf32>
    %478 = vector.broadcast %477 : vector<1x256xf32> to vector<16x256xf32>
    %479 = arith.mulf %476, %478 : vector<16x256xf32>
    %c223_i32 = arith.constant 223 : i32
    %480 = tpu.dynamic_rotate %422 by %c223_i32 dim 1 : vector<16x256xf32>, i32 -> vector<16x256xf32>
    %481 = vector.extract_strided_slice %424 {offsets = [14, 0], sizes = [1, 256], strides = [1, 1]} : vector<16x256xf32> to vector<1x256xf32>
    %482 = vector.broadcast %481 : vector<1x256xf32> to vector<16x256xf32>
    %483 = arith.mulf %480, %482 : vector<16x256xf32>
    %c222_i32 = arith.constant 222 : i32
    %484 = tpu.dynamic_rotate %422 by %c222_i32 dim 1 : vector<16x256xf32>, i32 -> vector<16x256xf32>
    %485 = vector.extract_strided_slice %424 {offsets = [15, 0], sizes = [1, 256], strides = [1, 1]} : vector<16x256xf32> to vector<1x256xf32>
    %486 = vector.broadcast %485 : vector<1x256xf32> to vector<16x256xf32>
    %487 = arith.mulf %484, %486 : vector<16x256xf32>
    %488 = tpu.concatenate %428, %432, %436, %440, %444, %447, %451, %455, %459, %463, %467, %471, %475, %479, %483, %487 in 0 : vector<16x256xf32>, vector<16x256xf32>, vector<16x256xf32>, vector<16x256xf32>, vector<16x256xf32>, vector<16x256xf32>, vector<16x256xf32>, vector<16x256xf32>, vector<16x256xf32>, vector<16x256xf32>, vector<16x256xf32>, vector<16x256xf32>, vector<16x256xf32>, vector<16x256xf32>, vector<16x256xf32>, vector<16x256xf32> -> vector<256x256xf32>
    %489 = arith.truncf %488 : vector<256x256xf32> to vector<256x256xbf16>
    %cst_123 = arith.constant dense<0.000000e+00> : vector<16x256xf32>
    %490 = tpu.matmul %423, %489, %cst_123 {dimension_numbers = #tpu.dot_dimension_numbers<[1], [0], [0], [1], [0, 0, 1, 1], [], []>} : vector<16x256xbf16>, vector<256x256xbf16>, vector<16x256xf32> -> vector<16x256xf32>
    %491 = arith.truncf %490 : vector<16x256xf32> to vector<16x256xbf16>
    %c0_124 = arith.constant 0 : index
    %c0_125 = arith.constant 0 : index
    %492 = vector.load %arg6[%c0_124, %c0_125] : memref<256x64xbf16, #tpu.memory_space<vmem>>, vector<256x64xbf16>
    %cst_126 = arith.constant dense<0.000000e+00> : vector<16x64xf32>
    %493 = tpu.matmul %491, %492, %cst_126 {dimension_numbers = #tpu.dot_dimension_numbers<[1], [0], [0], [1], [0, 0, 1, 1], [], []>} : vector<16x256xbf16>, vector<256x64xbf16>, vector<16x64xf32> -> vector<16x64xf32>
    %494 = vector.extract_strided_slice %0 {offsets = [0, 22], sizes = [16, 1], strides = [1, 1]} : vector<48x47xf32> to vector<16x1xf32>
    %495 = vector.broadcast %494 : vector<16x1xf32> to vector<16x64xf32>
    %496 = arith.addf %493, %495 : vector<16x64xf32>
    %c0_127 = arith.constant 0 : index
    %c0_128 = arith.constant 0 : index
    %c0_129 = arith.constant 0 : index
    %497 = vector.load %arg20[%c0_127, %c0_128, %c0_129] : memref<1x16x64xf32, #tpu.memory_space<vmem>>, vector<1x16x64xf32>
    %498 = vector.shape_cast %497 : vector<1x16x64xf32> to vector<16x64xf32>
    %499 = vector.shape_cast %496 : vector<16x64xf32> to vector<1x16x64xf32>
    tpu.vector_store %arg20[%c0_127, %c0_128, %c0_129], %499 {strides = array<i32>} : memref<1x16x64xf32, #tpu.memory_space<vmem>>, vector<1x16x64xf32>,
    return
  }
  func.func @transform_0(%arg0: i32) -> (i32, i32, i32) {
    %c0_i32 = arith.constant 0 : i32
    %c0_i32_0 = arith.constant 0 : i32
    %c0_i32_1 = arith.constant 0 : i32
    return %arg0, %c0_i32, %c0_i32_0 : i32, i32, i32
  }
  func.func @transform_1(%arg0: i32) -> (i32, i32, i32) {
    %c0_i32 = arith.constant 0 : i32
    %c0_i32_0 = arith.constant 0 : i32
    %c0_i32_1 = arith.constant 0 : i32
    return %arg0, %c0_i32, %c0_i32_0 : i32, i32, i32
  }
  func.func @transform_2(%arg0: i32) -> (i32, i32) {
    %c0_i32 = arith.constant 0 : i32
    %c0_i32_0 = arith.constant 0 : i32
    %c0_i32_1 = arith.constant 0 : i32
    return %c0_i32, %c0_i32_0 : i32, i32
  }
  func.func @transform_3(%arg0: i32) -> (i32, i32) {
    %c0_i32 = arith.constant 0 : i32
    %c0_i32_0 = arith.constant 0 : i32
    %c0_i32_1 = arith.constant 0 : i32
    return %c0_i32, %c0_i32_0 : i32, i32
  }
  func.func @transform_4(%arg0: i32) -> (i32, i32) {
    %c0_i32 = arith.constant 0 : i32
    %c0_i32_0 = arith.constant 0 : i32
    %c0_i32_1 = arith.constant 0 : i32
    return %c0_i32, %c0_i32_0 : i32, i32
  }
  func.func @transform_5(%arg0: i32) -> (i32, i32) {
    %c0_i32 = arith.constant 0 : i32
    %c0_i32_0 = arith.constant 0 : i32
    %c0_i32_1 = arith.constant 0 : i32
    return %c0_i32, %c0_i32_0 : i32, i32
  }
  func.func @transform_6(%arg0: i32) -> (i32, i32) {
    %c0_i32 = arith.constant 0 : i32
    %c0_i32_0 = arith.constant 0 : i32
    %c0_i32_1 = arith.constant 0 : i32
    return %c0_i32, %c0_i32_0 : i32, i32
  }
  func.func @transform_7(%arg0: i32) -> (i32, i32) {
    %c0_i32 = arith.constant 0 : i32
    %c0_i32_0 = arith.constant 0 : i32
    %c0_i32_1 = arith.constant 0 : i32
    return %c0_i32, %c0_i32_0 : i32, i32
  }
  func.func @transform_8(%arg0: i32) -> (i32, i32) {
    %c0_i32 = arith.constant 0 : i32
    %c0_i32_0 = arith.constant 0 : i32
    %c0_i32_1 = arith.constant 0 : i32
    return %c0_i32, %c0_i32_0 : i32, i32
  }
  func.func @transform_9(%arg0: i32) -> (i32, i32) {
    %c0_i32 = arith.constant 0 : i32
    %c0_i32_0 = arith.constant 0 : i32
    %c0_i32_1 = arith.constant 0 : i32
    return %c0_i32, %c0_i32_0 : i32, i32
  }
  func.func @transform_10(%arg0: i32) -> (i32, i32) {
    %c0_i32 = arith.constant 0 : i32
    %c0_i32_0 = arith.constant 0 : i32
    %c0_i32_1 = arith.constant 0 : i32
    return %c0_i32, %c0_i32_0 : i32, i32
  }
  func.func @transform_11(%arg0: i32) -> (i32, i32) {
    %c0_i32 = arith.constant 0 : i32
    %c0_i32_0 = arith.constant 0 : i32
    %c0_i32_1 = arith.constant 0 : i32
    return %c0_i32, %c0_i32_0 : i32, i32
  }
  func.func @transform_12(%arg0: i32) -> (i32, i32) {
    %c0_i32 = arith.constant 0 : i32
    %c0_i32_0 = arith.constant 0 : i32
    %c0_i32_1 = arith.constant 0 : i32
    return %c0_i32, %c0_i32_0 : i32, i32
  }
  func.func @transform_13(%arg0: i32) -> (i32, i32) {
    %c0_i32 = arith.constant 0 : i32
    %c0_i32_0 = arith.constant 0 : i32
    %c0_i32_1 = arith.constant 0 : i32
    return %c0_i32, %c0_i32_0 : i32, i32
  }
  func.func @transform_14(%arg0: i32) -> (i32, i32) {
    %c0_i32 = arith.constant 0 : i32
    %c0_i32_0 = arith.constant 0 : i32
    %c0_i32_1 = arith.constant 0 : i32
    return %c0_i32, %c0_i32_0 : i32, i32
  }
  func.func @transform_15(%arg0: i32) -> (i32, i32) {
    %c0_i32 = arith.constant 0 : i32
    %c0_i32_0 = arith.constant 0 : i32
    %c0_i32_1 = arith.constant 0 : i32
    return %c0_i32, %c0_i32_0 : i32, i32
  }
  func.func @transform_16(%arg0: i32) -> (i32, i32) {
    %c0_i32 = arith.constant 0 : i32
    %c0_i32_0 = arith.constant 0 : i32
    %c0_i32_1 = arith.constant 0 : i32
    return %c0_i32, %c0_i32_0 : i32, i32
  }
  func.func @transform_17(%arg0: i32) -> (i32, i32) {
    %c0_i32 = arith.constant 0 : i32
    %c0_i32_0 = arith.constant 0 : i32
    %c0_i32_1 = arith.constant 0 : i32
    return %c0_i32, %c0_i32_0 : i32, i32
  }
  func.func @transform_18(%arg0: i32) -> (i32, i32) {
    %c0_i32 = arith.constant 0 : i32
    %c0_i32_0 = arith.constant 0 : i32
    %c0_i32_1 = arith.constant 0 : i32
    return %c0_i32, %c0_i32_0 : i32, i32
  }
  func.func @transform_19(%arg0: i32) -> (i32, i32, i32) {
    %c0_i32 = arith.constant 0 : i32
    %c0_i32_0 = arith.constant 0 : i32
    %c0_i32_1 = arith.constant 0 : i32
    return %arg0, %c0_i32, %c0_i32_0 : i32, i32, i32
  }
}

</mosaic_0001>

<bundles_post_ra>
// kernel: down_block_forward.1
= control target key start
LH: loop header
LB: loop body
LE: loop exit
PB: predicated region body
PF: predicated region fallthrough
CT: control target
= control target key end

     0   :  { %s15821_s0 = inlined_call_operand.vmem [shape: f32[2,8,256], index: 0, kind: input, shape index: {}]   ;;  %s15822_s1 = inlined_call_operand.vmem [shape: f32[2,32,1], index: 1, kind: input, shape index: {}]   ;;  %s15823_s2 = inlined_call_operand.vmem [shape: f32[48,47], index: 2, kind: input, shape index: {}]   ;;  %s15824_s3 = inlined_call_operand.vmem [shape: f32[9,256], index: 3, kind: input, shape index: {}]   ;;  %s15825_s4 = inlined_call_operand.vmem [shape: f32[16,256], index: 4, kind: input, shape index: {}]   ;;  %s15826_s5 = inlined_call_operand.vmem [shape: bf16[256,64], index: 5, kind: input, shape index: {}]   ;;  %s15827_s6 = inlined_call_operand.vmem [shape: bf16[16,72], index: 6, kind: input, shape index: {}]   ;;  %s15828_s7 = inlined_call_operand.vmem [shape: bf16[16,32], index: 7, kind: input, shape index: {}]   ;;  %s15829_s8 = inlined_call_operand.vmem [shape: bf16[16,144], index: 8, kind: input, shape index: {}]   ;;  %s15830_s9 = inlined_call_operand.vmem [shape: bf16[16,8], index: 9, kind: input, shape index: {}]   ;;  %s15831_s10 = inlined_call_operand.vmem [shape: bf16[48,16], index: 10, kind: input, shape index: {}]   ;;  %s15832_s11 = inlined_call_operand.vmem [shape: bf16[16,16], index: 11, kind: input, shape index: {}]   ;;  %s15833_s12 = inlined_call_operand.vmem [shape: bf16[16,144], index: 12, kind: input, shape index: {}]   ;;  %s15834_s13 = inlined_call_operand.vmem [shape: bf16[16,32], index: 13, kind: input, shape index: {}]   ;;  %s15835_s14 = inlined_call_operand.vmem [shape: bf16[16,144], index: 14, kind: input, shape index: {}]   ;;  %s15836_s15 = inlined_call_operand.vmem [shape: bf16[16,16], index: 15, kind: input, shape index: {}]   ;;  %s15837_s16 = inlined_call_operand.vmem [shape: bf16[48,16], index: 16, kind: input, shape index: {}]   ;;  %s15838_s17 = inlined_call_operand.vmem [shape: bf16[16,16], index: 17, kind: input, shape index: {}]   ;;  %s15839_s18 = inlined_call_operand.vmem [shape: bf16[16,256], index: 18, kind: input, shape index: {}]   ;;  %s15840_s19 = inlined_call_operand.vmem [shape: f32[2,16,64], index: 19, kind: output, shape index: {}]  }
   0x1   :  { %16264 = sst [smem:[#allocation121_spill]] %s15821_s0  ;;  %s11719_s0 = smov 0  }
   0x2   :  { %16265 = sst [smem:[#allocation122_spill]] %s15822_s1 }
   0x3   :  { %16266 = sst [smem:[#allocation123_spill]] %s15823_s2 }
   0x4   :  { %16267 = sst [smem:[#allocation124_spill]] %s15824_s3 }
   0x5   :  { %16268 = sst [smem:[#allocation125_spill]] %s15827_s6 }
   0x6   :  { %16269 = sst [smem:[#allocation126_spill]] %s15828_s7 }
   0x7   :  { %16270 = sst [smem:[#allocation127_spill]] %s15829_s8 }
   0x8 LB: > { %s8882_s30 = sadd.s32 4294967295, %s11572_s0   ;;  %p8886_p0 = scmp.ge.s32.totalorder %s11572_s0, 1  ;;  %s11572_s0 = sphi %s11719_s0, %s29_s0  }
   0x9   : > { %p547_p1 = scmp.lt.s32.totalorder %s11572_s0, 3 }
   0xb   : > { %p548_p2 = pnand %p8886_p0, %p547_p1 }
   0xd   : > { %551 = sbr.rel (%p548_p2) target bundleno = 12179 (0x2f93), region = 96 }
  0x14   : > { %p608_p3 = scmp.lt.s32.totalorder %s8882_s30, 1  ;;  %v15850_v0 = vmov 0.0   ;;  %s16271_s22 = sld [smem:[#allocation121_spill]]  ;;  %vm11575_vm0 = vmmov 0   ;;  %v15852_v5 = vmov 0   ;;  %vm676_vm1 = vcmask 64512  }
  0x15   : > { %9583 = vmatprep.subr.mxu0 %v15850_v0  ;;  %9588 = vmatprep.subr.mxu1 %v15850_v0  ;;  %s16272_s25 = sld [smem:[#allocation123_spill]]  ;;  %s11577_s3 = smov 105   ;;  %vm1027_vm2 = vcmask 261120   ;;  %v11578_v49 = vmov 1   ;;  %vm1091_vm11 = vcmask 1043456   ;;  %vm1087_vm12 = vcmask 588800  }
  0x16   : > { %s17044_s30 = smov (!%p608_p3, %s8882_s30), 1  ;;  %9585 = vmatprep.mubr.msk.f32.mxu0 %vm11575_vm0, %v15850_v0  ;;  %9590 = vmatprep.mubr.msk.f32.mxu1 %vm11575_vm0, %v15850_v0  ;;  %s16273_s29 = sld [smem:[#allocation122_spill]]  ;;  %vm1164_vm13 = vcmask 130048  }
  0x17   : > { %s15843_s20 = sshll.u32 %s17044_s30, 4  ;;  %9788 = vset.pattern.permute.xlu1 %v15852_v5  ;;  %9789 = vset.pattern.permute.xlu0 %v15852_v5  ;;  %s9061_s26 = sshll.u32 %s17044_s30, 5 }
  0x18   : > { %s16276_s7 = sld [smem:[#allocation126_spill]]  ;;  %s15870_s23 = smov 17  }
  0x19   : > { %s16089_s24 = smov 15   ;;  %s15864_s27 = smov 127  }
  0x1a   : > { %s11737_s2 = scalar_lea.vmem %s16271_s22, %s15843_s20  ;;  %s15862_s28 = smov 113  }
  0x1b   : > { %v668_v1 = vld [vmem:[%s11737_s2] sm:$0xff]  ;;  %v669_v2 = vld [vmem:[%s11737_s2 + $0x8] sm:$0xff]  ;;  %s16280_s20 = sld [smem:[#allocation124_spill]]  ;;  %s16303_s6 = sld [smem:[#allocation125_spill]] }
  0x1c   : > { %v670_v3 = vadd.f32 %v669_v2, %v668_v1  ;;  %v11748_v4 = vld [vmem:[%s16272_s25] sm:$0xff]  ;;  %s617_s21 = scalar_lea.vmem %s16273_s29, %s9061_s26  ;;  %s15868_s26 = smov 1  }
  0x1d   : > { %v634_v16 = vld [vmem:[%s617_s21] sm:$0xff]  ;;  %v635_v17 = vld [vmem:[%s617_s21 + $0x8] sm:$0xff]  ;;  %v636_v18 = vld [vmem:[%s617_s21 + $0x10] sm:$0xff]  ;;  %s15846_s29 = smov 112   ;;  %s15848_s1 = smov 97  }
  0x1e   : > { %671 = vadd.xlane.f32.xlu0 %v670_v3  ;;  %v8893_v19 = vmul.f32 -1.442695, %v634_v16  ;;  %v8894_v20 = vmul.f32 -1.442695, %v635_v17  ;;  %v637_v21 = vld [vmem:[%s617_s21 + $0x18] sm:$0xff]  ;;  %v10647_v42 = vld [vmem:[%s16276_s7] sm:$0xff]  }
  0x1f   : > { %v8895_v22 = vmul.f32 -1.442695, %v636_v18  ;;  %v8896_v23 = vmul.f32 -1.442695, %v637_v21  ;;  %s15844_s21 = smov 111   ;;  %s11590_s22 = smov 3  }
  0x20   : > { %10688 = vpow2.f32 %v8893_v19  ;;  %s16308_s8 = sld [smem:[#allocation127_spill]]  ;;  %s11615_s7 = smov 96  }
  0x21   : > { %10690 = vpow2.f32 %v8894_v20  ;;  %v11844_v19 = vld [vmem:[%s16280_s20] sm:$0xff] }
  0x22   : > { %10692 = vpow2.f32 %v8895_v22 }
  0x23   : > { %10694 = vpow2.f32 %v8896_v23 }
  0x2a   : > { %v10689_v24 = vpop.eup %10688 }
  0x2b   : > { %v10691_v25 = vpop.eup %10690  ;;  %v650_v26 = vadd.f32 1.0, %v10689_v24 }
  0x2c   : > { %v10693_v27 = vpop.eup %10692  ;;  %v651_v28 = vadd.f32 1.0, %v10691_v25 }
  0x2d   : > { %v10695_v29 = vpop.eup %10694  ;;  %10696 = vrcp.f32 %v650_v26  ;;  %v652_v30 = vadd.f32 1.0, %v10693_v27 }
  0x2e   : > { %10698 = vrcp.f32 %v651_v28  ;;  %v653_v31 = vadd.f32 1.0, %v10695_v29 }
  0x2f   : > { %10700 = vrcp.f32 %v652_v30 }
  0x30   : > { %10702 = vrcp.f32 %v653_v31 }
  0x34   : > { %674 = vrot.lane.b32.xlu0 %v11748_v4, %s11577_s3  ;;  %s15866_s3 = smov 16  }
  0x37   : > { %v10697_v32 = vpop.eup %10696 }
  0x38   : > { %v10699_v33 = vpop.eup %10698  ;;  %v662_v34 = vmul.f32 %v10697_v32, %v634_v16 }
  0x39   : > { %v10701_v35 = vpop.eup %10700  ;;  %v663_v36 = vmul.f32 %v10699_v33, %v635_v17 }
  0x3a   : > { %v10703_v37 = vpop.eup %10702  ;;  %v664_v38 = vmul.f32 %v10701_v35, %v636_v18 }
  0x3b   : > { %v11769_v39 = vpack.c.bf16 %v663_v36, %v662_v34  ;;  %v665_v40 = vmul.f32 %v10703_v37, %v637_v21  ;;  %v11850_v21 = vld [vmem:[%s16280_s20 + $0x8] sm:$0xff] }
  0x3d   : > { %16274 = vst [vmem:[#allocation2_spill] sm:$0xff] %v11769_v39  ;;  %v11772_v41 = vpack.c.bf16 %v665_v40, %v664_v38 }
  0x3f   : > { %16275 = vst [vmem:[#allocation3_spill] sm:$0xff] %v11772_v41 }
  0xab   : > { %v672_v6 = vpop.xlane.xlu0 %671 }
  0xac   : > { %9584 = vmatpush3.msra.mxu0 %v672_v6 }
  0xad   : > { %9593 = vmatprep.subr.bf16.mxu0 %v15850_v0 }
  0xaf   : > { %v675_v7 = vpop.permute.xlu0 %674 }
  0xb0   : > { %9586 = vmatmul.mubr.msk.f32.vlgmr.msra.gmra.mrb[0].mxu0 %vm676_vm1, %v675_v7 }
  0xb1   : > { %9597 = vmatprep.mubr.msk.bf16.mxu0 %vm11575_vm0, %v15850_v0  ;;  %9594 = vmatpush3.bf16.msra.mxu0 %v11769_v39 }
  0xb2   : > { %9595 = vmatprep.subr.bf16.mxu0 %v15850_v0 }
  0xb5   : > { %9596 = vmatpush3.bf16.msra.mxu0 %v11772_v41 }
  0xb8   : > { %9598 = vmatmul.mubr.msk.bf16.vlgmr.msra.gmra.mrb[4].mxu0 %vm1027_vm2, %v10647_v42 }
 0x183   : > { %v745_v8 = vpop.f32.mrb[0].mxu0 }
 0x184   : > { %751 = vperm.xlu1 %9788, %v745_v8   ;;  %v9587_v9 = vpop.f32.mrb[1].mxu0 }
 0x185   : > { %v11587_v9 = vmov 2  }
 0x18b   : > { %v1065_v50 = vpop.f32.mrb[4].mxu0 }
 0x18c   : > { %v9599_v51 = vpop.f32.mrb[5].mxu0 }
 0x18d   : > { %v1068_v52 = vpop.f32.mrb[6].mxu0 }
 0x18e   : > { %v9600_v53 = vpop.f32.mrb[7].mxu0 }
 0x203   : > { %v752_v10 = vpop.permute.xlu1 %751 }
 0x204   : > { %v11757_v11 = vsub.f32 %v668_v1, %v752_v10  ;;  %v11759_v12 = vsub.f32 %v669_v2, %v752_v10  ;;  %v11828_v10 = vld [vmem:[%s16272_s25 + $0x8] sm:$0xff] }
 0x206   : > { %v756_v13 = vmul.f32 %v11757_v11, %v11757_v11  ;;  %v757_v14 = vmul.f32 %v11759_v12, %v11759_v12 }
 0x208   : > { %v758_v15 = vadd.f32 %v757_v14, %v756_v13 }
 0x20a   : > { %759 = vadd.xlane.f32.xlu1 %v758_v15 }
 0x297   : > { %v760_v43 = vpop.xlane.xlu1 %759 }
 0x298   : > { %9589 = vmatpush3.msra.mxu1 %v760_v43 }
 0x299   : > { %9591 = vmatmul.mubr.msk.f32.vlgmr.msra.gmra.mrb[0].mxu1 %vm676_vm1, %v675_v7 }
 0x29a   : > { %1130 = vmatprep.mubr.bf16.mxu1 %v15852_v5 }
 0x36c   : > { %v827_v44 = vpop.f32.mrb[0].mxu1 }
 0x36d   : > { %v828_v45 = vadd.f32 1e-05, %v827_v44  ;;  %v9592_v46 = vpop.f32.mrb[1].mxu1 }
 0x36f   : > { %10704 = vrsqrt.f32 %v828_v45 }
 0x379   : > { %v10705_v47 = vpop.eup %10704 }
 0x37a   : > { %v832_v48 = vmul.f32 %v10705_v47, %v11748_v4 }
 0x37c   : > { %835 = vperm.xlu0 %9789, %v832_v48  }
 0x380   : > { %9790 = vset.pattern.permute.xlu0 %v11578_v49 }
 0x381   : > { %841 = vperm.xlu0 %9790, %v11748_v4  }
 0x385   : > { %9791 = vset.pattern.permute.xlu0 %v15852_v5 }
 0x3fb   : > { %v836_v54 = vpop.permute.xlu0 %835 }
 0x3fc   : > { %v838_v55 = vmul.f32 %v836_v54, %v11757_v11  ;;  %v839_v56 = vmul.f32 %v836_v54, %v11759_v12  ;;  %v866_v11 = vlaneseq }
 0x3fe   : > { %v11831_v12 = vshrl.u32 %v866_v11, 7  ;;  %v11833_v15 = vand.u32 127, %v866_v11 }
 0x400   : > { %v842_v57 = vpop.permute.xlu0 %841  ;;  %16277 = vst [vmem:[#allocation4_spill] sm:$0xff] %v11833_v15  ;;  %v11836_v16 = vsub.s32 0, %v11831_v12  ;;  %v11839_v17 = vsub.s32 1, %v11831_v12  ;;  %vm868_vm3 = vcmp.lt.s32.totalorder %v11833_v15, 17  ;;  %vm885_vm4 = vcmp.lt.s32.totalorder %v11833_v15, 16 }
 0x401   : > { %v844_v58 = vadd.f32 %v842_v57, %v838_v55  ;;  %v845_v59 = vadd.f32 %v842_v57, %v839_v56  ;;  %v11878_v32 = vsub.s32 2, %v11831_v12  ;;  %v11881_v33 = vsub.s32 3, %v11831_v12 }
 0x402   : > { %16278 = vst [vmem:[#allocation5_spill] sm:$0xff] %v11836_v16  ;;  %16279 = vst [vmem:[#allocation6_spill] sm:$0xff] %v11839_v17  ;;  %v11854_v22 = vrot.slane %v11844_v19, %v11836_v16  ;;  %v11858_v23 = vrot.slane %v11850_v21, %v11836_v16  ;;  %v11863_v24 = vrot.slane %v11844_v19, %v11839_v17  ;;  %vm902_vm5 = vcmp.lt.s32.totalorder %v11833_v15, 15 }
 0x403   : > { %v8899_v60 = vmul.f32 -1.442695, %v844_v58  ;;  %v8900_v61 = vmul.f32 -1.442695, %v845_v59  ;;  %v11867_v25 = vrot.slane %v11850_v21, %v11839_v17  ;;  %16285 = vst [vmem:[#allocation11_spill] sm:$0xff] %v11878_v32  ;;  %16286 = vst [vmem:[#allocation12_spill] sm:$0xff] %v11881_v33  ;;  %v11893_v44 = vrot.slane %v11844_v19, %v11878_v32 }
 0x404   : > { %16281 = vst [vmem:[#allocation7_spill] sm:$0xff] %v11854_v22  ;;  %16282 = vst [vmem:[#allocation8_spill] sm:$0xff] %v11858_v23  ;;  %v11889_v43 = vsub.s32 4, %v11831_v12  ;;  %v11896_v45 = vsub.s32 5, %v11831_v12  ;;  %v11900_v46 = vrot.slane %v11850_v21, %v11878_v32  ;;  %vm919_vm6 = vcmp.lt.s32.totalorder %v11833_v15, 1 }
 0x405   : > { %10706 = vpow2.f32 %v8899_v60  ;;  %16283 = vst [vmem:[#allocation9_spill] sm:$0xff] %v11863_v24  ;;  %16284 = vst [vmem:[#allocation10_spill] sm:$0xff] %v11867_v25  ;;  %v11905_v48 = vrot.slane %v11844_v19, %v11881_v33  ;;  %v11909_v49 = vrot.slane %v11850_v21, %v11881_v33  ;;  %vm946_vm7 = vcmp.lt.s32.totalorder %v11833_v15, 127 }
 0x406   : > { %10708 = vpow2.f32 %v8900_v61  ;;  %16287 = vst [vmem:[#allocation13_spill] sm:$0xff] %v11889_v43  ;;  %16288 = vst [vmem:[#allocation14_spill] sm:$0xff] %v11893_v44  ;;  %v11917_v53 = vrot.slane %v11844_v19, %v11889_v43  ;;  %v11922_v54 = vrot.slane %v11850_v21, %v11889_v43  ;;  %v11930_v57 = vrot.slane %v11844_v19, %v11896_v45 }
 0x407   : > { %16289 = vst [vmem:[#allocation15_spill] sm:$0xff] %v11896_v45  ;;  %16290 = vst [vmem:[#allocation16_spill] sm:$0xff] %v11900_v46  ;;  %vm963_vm8 = vcmp.lt.s32.totalorder %v11833_v15, 113  ;;  %vm980_vm9 = vcmp.lt.s32.totalorder %v11833_v15, 112  ;;  %vm997_vm10 = vcmp.lt.s32.totalorder %v11833_v15, 111 }
 0x408   : > { %16291 = vst [vmem:[#allocation17_spill] sm:$0xff] %v11905_v48  ;;  %16292 = vst [vmem:[#allocation18_spill] sm:$0xff] %v11909_v49 }
 0x409   : > { %16293 = vst [vmem:[#allocation19_spill] sm:$0xff] %v11917_v53  ;;  %16294 = vst [vmem:[#allocation20_spill] sm:$0xff] %v11922_v54 }
 0x40a   : > { %16295 = vst [vmem:[#allocation21_spill] sm:$0xff] %v11930_v57 }
 0x40f   : > { %v10707_v62 = vpop.eup %10706 }
 0x410   : > { %v10709_v63 = vpop.eup %10708  ;;  %v852_v1 = vadd.f32 1.0, %v10707_v62 }
 0x411   : > { %v853_v2 = vadd.f32 1.0, %v10709_v63 }
 0x412   : > { %10710 = vrcp.f32 %v852_v1 }
 0x413   : > { %10712 = vrcp.f32 %v853_v2 }
 0x41c   : > { %v10711_v3 = vpop.eup %10710 }
 0x41d   : > { %v10713_v6 = vpop.eup %10712  ;;  %v11787_v7 = vmul.f32 %v10711_v3, %v844_v58  ;;  %v11934_v58 = vrot.slane %v11850_v21, %v11896_v45 }
 0x41e   : > { %v11789_v8 = vmul.f32 %v10713_v6, %v845_v59 }
 0x41f   : > { %862 = vrot.lane.b32.xlu1 %v11787_v7, %s15870_s23  ;;  %16296 = vst [vmem:[#allocation22_spill] sm:$0xff] %v11934_v58  ;;  %v940_v6 = vmul.f32 %v11917_v53, %v11787_v7 }
 0x420   : > { %864 = vrot.lane.b32.xlu0 %v11789_v8, %s15870_s23 }
 0x423   : > { %900 = vrot.lane.b32.xlu1 %v11789_v8, %s16089_s24 }
 0x424   : > { %881 = vrot.lane.b32.xlu0 %v11787_v7, %s15866_s3 }
 0x427   : > { %917 = vrot.lane.b32.xlu1 %v11789_v8, %s15868_s26 }
 0x428   : > { %883 = vrot.lane.b32.xlu0 %v11789_v8, %s15866_s3 }
 0x42b   : > { %944 = vrot.lane.b32.xlu1 %v11789_v8, %s15864_s27 }
 0x42c   : > { %898 = vrot.lane.b32.xlu0 %v11787_v7, %s16089_s24 }
 0x42f   : > { %961 = vrot.lane.b32.xlu1 %v11789_v8, %s15862_s28 }
 0x430   : > { %915 = vrot.lane.b32.xlu0 %v11787_v7, %s15868_s26 }
 0x433   : > { %978 = vrot.lane.b32.xlu1 %v11789_v8, %s15846_s29 }
 0x434   : > { %942 = vrot.lane.b32.xlu0 %v11787_v7, %s15864_s27 }
 0x437   : > { %995 = vrot.lane.b32.xlu1 %v11789_v8, %s15844_s21 }
 0x438   : > { %959 = vrot.lane.b32.xlu0 %v11787_v7, %s15862_s28 }
 0x43b   : > { %1079 = vperm.xlu1 %9788, %v1068_v52  }
 0x43c   : > { %976 = vrot.lane.b32.xlu0 %v11787_v7, %s15846_s29  ;;  %s16306_s29 = smov 112  }
 0x43f   : > { %9792 = vset.pattern.permute.xlu1 %v11587_v9 }
 0x440   : > { %993 = vrot.lane.b32.xlu0 %v11787_v7, %s15844_s21  ;;  %1142 = vperm.xlu1 %9792, %v11748_v4   ;;  %s16307_s21 = smov 111  }
 0x444   : > { %1074 = vperm.xlu0 %9791, %v1065_v50   ;;  %9794 = vset.pattern.permute.xlu1 %v15852_v5 }
 0x448   : > { %9793 = vset.pattern.permute.xlu0 %v11587_v9 }
 0x449   : > { %1147 = vperm.xlu0 %9793, %v11828_v10  }
 0x491   : > { %v863_v13 = vpop.permute.xlu1 %862 }
 0x492   : > { %v865_v14 = vpop.permute.xlu0 %864 }
 0x493   : > { %v869_v26 = vsel %vm868_vm3, %v863_v13, %v865_v14  ;;  %v870_v27 = vsel %vm868_vm3, %v865_v14, %v863_v13  ;;  %v11947_v13 = vsub.s32 6, %v11831_v12 }
 0x494   : > { %v879_v34 = vmul.f32 %v11854_v22, %v870_v27  ;;  %v880_v35 = vmul.f32 %v11858_v23, %v869_v26  ;;  %v11954_v26 = vsub.s32 7, %v11831_v12 }
 0x495   : > { %v901_v18 = vpop.permute.xlu1 %900  ;;  %16297 = vst [vmem:[#allocation23_spill] sm:$0xff] %v11947_v13 }
 0x496   : > { %v882_v20 = vpop.permute.xlu0 %881  ;;  %16298 = vst [vmem:[#allocation24_spill] sm:$0xff] %v11954_v26  ;;  %v11972_v12 = vrot.slane %v11850_v21, %v11954_v26 }
 0x498   : > { %16302 = vst [vmem:[#allocation28_spill] sm:$0xff] %v11972_v12 }
 0x499   : > { %v918_v29 = vpop.permute.xlu1 %917 }
 0x49a   : > { %v884_v28 = vpop.permute.xlu0 %883 }
 0x49b   : > { %v886_v30 = vsel %vm885_vm4, %v882_v20, %v884_v28  ;;  %v887_v31 = vsel %vm885_vm4, %v884_v28, %v882_v20  ;;  %v941_v20 = vmul.f32 %v11922_v54, %v11789_v8  ;;  %v11968_v8 = vrot.slane %v11844_v19, %v11954_v26 }
 0x49c   : > { %v896_v36 = vmul.f32 %v11863_v24, %v887_v31  ;;  %v897_v37 = vmul.f32 %v11867_v25, %v886_v30  ;;  %v11963_v31 = vrot.slane %v11850_v21, %v11947_v13 }
 0x49d   : > { %v945_v47 = vpop.permute.xlu1 %944  ;;  %16301 = vst [vmem:[#allocation27_spill] sm:$0xff] %v11968_v8 }
 0x49e   : > { %v1010_v38 = vpack.c.bf16 %v896_v36, %v879_v34  ;;  %v899_v40 = vpop.permute.xlu0 %898  ;;  %v1011_v42 = vpack.c.bf16 %v897_v37, %v880_v35  ;;  %16300 = vst [vmem:[#allocation26_spill] sm:$0xff] %v11963_v31 }
 0x49f   : > { %v903_v50 = vsel %vm902_vm5, %v899_v40, %v901_v18  ;;  %v904_v51 = vsel %vm902_vm5, %v901_v18, %v899_v40 }
 0x4a0   : > { %1098 = vmatprep.subr.bf16.mxu1 %v1011_v42  ;;  %v913_v59 = vmul.f32 %v11893_v44, %v904_v51  ;;  %v914_v60 = vmul.f32 %v11900_v46, %v903_v50  ;;  %v11995_v50 = vld [vmem:[%s16280_s20 + $0x18] ss:$0 sm:$0xff] }
 0x4a1   : > { %1099 = vmatpush1.bf16.msra.mxu1 %v1010_v38  ;;  %v962_v1 = vpop.permute.xlu1 %961 }
 0x4a2   : > { %v916_v52 = vpop.permute.xlu0 %915 }
 0x4a3   : > { %v920_v55 = vsel %vm919_vm6, %v916_v52, %v918_v29  ;;  %v921_v56 = vsel %vm919_vm6, %v918_v29, %v916_v52  ;;  %v11959_v29 = vrot.slane %v11844_v19, %v11947_v13 }
 0x4a4   : > { %v930_v61 = vmul.f32 %v11905_v48, %v921_v56  ;;  %v931_v62 = vmul.f32 %v11909_v49, %v920_v55 }
 0x4a5   : > { %16299 = vst [vmem:[#allocation25_spill] sm:$0xff] %v11959_v29  ;;  %v979_v30 = vpop.permute.xlu1 %978 }
 0x4a6   : > { %v1012_v63 = vpack.c.bf16 %v930_v61, %v913_v59  ;;  %v943_v2 = vpop.permute.xlu0 %942  ;;  %v1013_v3 = vpack.c.bf16 %v931_v62, %v914_v60 }
 0x4a7   : > { %v947_v9 = vsel %vm946_vm7, %v943_v2, %v945_v47  ;;  %v948_v11 = vsel %vm946_vm7, %v945_v47, %v943_v2  ;;  %v11990_v47 = vld [vmem:[%s16280_s20 + $0x10] ss:$0 sm:$0xff] }
 0x4a8   : > { %v957_v14 = vmul.f32 %v11930_v57, %v947_v9  ;;  %v958_v18 = vmul.f32 %v11934_v58, %v948_v11  ;;  %1100 = vmatprep.subr.bf16.mxu1 %v1013_v3  ;;  %v10648_v3 = vld [vmem:[%s16303_s6] sm:$0xff]   ;;  %s16091_s6 = smov 14  }
 0x4a9   : > { %1101 = vmatpush1.bf16.msra.mxu1 %v1012_v63  ;;  %v996_v51 = vpop.permute.xlu1 %995 }
 0x4aa   : > { %v1014_v7 = vpack.c.bf16 %v957_v14, %v940_v6  ;;  %v960_v27 = vpop.permute.xlu0 %959  ;;  %v1015_v28 = vpack.c.bf16 %v958_v18, %v941_v20 }
 0x4ab   : > { %v964_v34 = vsel %vm963_vm8, %v960_v27, %v962_v1  ;;  %v965_v35 = vsel %vm963_vm8, %v962_v1, %v960_v27 }
 0x4ac   : > { %1102 = vmatprep.subr.bf16.mxu1 %v1015_v28  ;;  %v974_v19 = vmul.f32 %v11959_v29, %v964_v34  ;;  %v975_v21 = vmul.f32 %v11963_v31, %v965_v35 }
 0x4ad   : > { %1103 = vmatpush1.bf16.msra.mxu1 %v1014_v7 }
 0x4ae   : > { %v977_v36 = vpop.permute.xlu0 %976 }
 0x4af   : > { %v981_v37 = vsel %vm980_vm9, %v977_v36, %v979_v30  ;;  %v982_v38 = vsel %vm980_vm9, %v979_v30, %v977_v36 }
 0x4b0   : > { %v991_v40 = vmul.f32 %v11968_v8, %v981_v37  ;;  %v992_v42 = vmul.f32 %v11972_v12, %v982_v38 }
 0x4b2   : > { %v1016_v52 = vpack.c.bf16 %v991_v40, %v974_v19  ;;  %v994_v55 = vpop.permute.xlu0 %993  ;;  %v1017_v56 = vpack.c.bf16 %v992_v42, %v975_v21 }
 0x4b3   : > { %v998_v59 = vsel %vm997_vm10, %v994_v55, %v996_v51  ;;  %v999_v60 = vsel %vm997_vm10, %v996_v51, %v994_v55 }
 0x4b4   : > { %v1008_v61 = vmul.f32 %v11990_v47, %v998_v59  ;;  %v1009_v62 = vmul.f32 %v11995_v50, %v999_v60  ;;  %1104 = vmatprep.subr.bf16.mxu1 %v1017_v56 }
 0x4b5   : > { %1105 = vmatpush1.bf16.msra.mxu1 %v1016_v52 }
 0x4b6   : > { %v1018_v63 = vpack.c.bf16 %v1008_v61, %v1008_v61  ;;  %v1019_v1 = vpack.c.bf16 %v1009_v62, %v1009_v62 }
 0x4b8   : > { %8906 = vmatprep.subr.msk.bf16.mxu1 %vm1091_vm11, %v1019_v1  ;;  %v1093_v2 = vsel %vm1091_vm11, %v1018_v63, 0 }
 0x4b9   : > { %1107 = vmatpush1.bf16.msra.mxu1 %v1093_v2 }
 0x4ba   : > { %v1080_v6 = vpop.permute.xlu1 %1079 }
 0x4bc   : > { %8907 = vmatmul.mubr.msk.bf16.vlgmr.msra.gmra.mrb[4].mxu1 %vm1087_vm12, %v10648_v3 }
 0x4bf   : > { %v1143_v14 = vpop.permute.xlu1 %1142 }
 0x4c3   : > { %v1075_v9 = vpop.permute.xlu0 %1074 }
 0x4c8   : > { %v1148_v28 = vpop.permute.xlu0 %1147 }
 0x58f   : > { %v1132_v11 = vpop.f32.mrb[4].mxu1 }
 0x590   : > { %v1133_v18 = vadd.f32 %v1132_v11, %v1075_v9  ;;  %v1134_v20 = vpop.f32.mrb[5].mxu1 }
 0x591   : > { %v1135_v7 = vadd.f32 %v1134_v20, %v1075_v9  ;;  %v1136_v27 = vpop.f32.mrb[6].mxu1 }
 0x592   : > { %v1137_v30 = vadd.f32 %v1136_v27, %v1080_v6  ;;  %v1150_v34 = vadd.f32 %v1143_v14, %v1133_v18  ;;  %v1138_v35 = vpop.f32.mrb[7].mxu1 }
 0x593   : > { %v1151_v36 = vadd.f32 %v1143_v14, %v1135_v7  ;;  %v1139_v37 = vadd.f32 %v1138_v35, %v1080_v6 }
 0x594   : > { %v1152_v38 = vadd.f32 %v1148_v28, %v1137_v30 }
 0x595   : > { %v1153_v19 = vadd.f32 %v1148_v28, %v1139_v37  ;;  %v1154_v21 = vadd.f32 %v1151_v36, %v1150_v34  ;;  %v11589_v37 = vmov 3  }
 0x596   : > { %9797 = vset.pattern.permute.xlu0 %v11589_v37 }
 0x597   : > { %1155 = vadd.xlane.f32.xlu1 %v1154_v21  ;;  %v1157_v40 = vadd.f32 %v1153_v19, %v1152_v38 }
 0x599   : > { %1158 = vadd.xlane.f32.xlu0 %v1157_v40 }
 0x5a8   : > { %1162 = vrot.lane.b32.xlu1 %v11828_v10, %s15848_s1 }
 0x5af   : > { %1160 = vrot.lane.b32.xlu0 %v11748_v4, %s15848_s1  ;;  %s16663_s1 = smov 16  }
 0x624   : > { %v1156_v42 = vpop.xlane.xlu1 %1155 }
 0x626   : > { %v1159_v51 = vpop.xlane.xlu0 %1158 }
 0x627   : > { %v9679_v52 = vpack.c.bf16 %v1159_v51, %v1156_v42 }
 0x628   : > { %v12014_v56 = vpop.permute.xlu1 %1162 }
 0x629   : > { %9680 = vmatprep.subr.bf16.mxu0 %v9679_v52  ;;  %16305 = vst [vmem:[#allocation30_spill] sm:$0xff] %v12014_v56 }
 0x62a   : > { %9682 = vmatpush3.bf16.msra.mxu0 %v9679_v52  ;;  %v12012_v55 = vpop.permute.xlu0 %1160  ;;  %v11591_v52 = vmov 4  }
 0x62b   : > { %16304 = vst [vmem:[#allocation29_spill] sm:$0xff] %v12012_v55  ;;  %9605 = vmatprep.mubr.msk.f32.mxu0 %vm1164_vm13, %v12012_v55  ;;  %9619 = vmatprep.mubr.msk.f32.mxu1 %vm1164_vm13, %v12012_v55 }
 0x62d   : > { %9606 = vmatmul.mubr.msk.f32.vlgmr.msra.gmra.mrb[2].mxu0 %vm1164_vm13, %v12014_v56 }
 0x62e   : > { %9612 = vmatprep.mubr.msk.f32.mxu0 %vm1164_vm13, %v12012_v55 }
 0x700   : > { %v9607_v59 = vpop.f32.mrb[2].mxu0 }
 0x701   : > { %v1235_v60 = vpop.f32.mrb[3].mxu0 }
 0x702   : > { %1246 = vperm.xlu1 %9794, %v1235_v60  }
 0x706   : > { %1251 = vperm.xlu1 %9794, %v9607_v59  }
 0x70a   : > { %9795 = vset.pattern.permute.xlu1 %v11589_v37 }
 0x781   : > { %v1247_v61 = vpop.permute.xlu1 %1246 }
 0x782   : > { %v1254_v62 = vsub.f32 %v1150_v34, %v1247_v61  ;;  %v1255_v63 = vsub.f32 %v1151_v36, %v1247_v61 }
 0x784   : > { %v1258_v1 = vmul.f32 %v1254_v62, %v1254_v62  ;;  %v1259_v2 = vmul.f32 %v1255_v63, %v1255_v63 }
 0x785   : > { %v1252_v3 = vpop.permute.xlu1 %1251 }
 0x786   : > { %v1256_v6 = vsub.f32 %v1152_v38, %v1252_v3  ;;  %v1257_v9 = vsub.f32 %v1153_v19, %v1252_v3  ;;  %v1262_v11 = vadd.f32 %v1259_v2, %v1258_v1 }
 0x788   : > { %1263 = vadd.xlane.f32.xlu0 %v1262_v11  ;;  %v1260_v14 = vmul.f32 %v1256_v6, %v1256_v6  ;;  %v1261_v18 = vmul.f32 %v1257_v9, %v1257_v9 }
 0x78a   : > { %v1265_v20 = vadd.f32 %v1261_v18, %v1260_v14 }
 0x78c   : > { %1266 = vadd.xlane.f32.xlu1 %v1265_v20 }
 0x815   : > { %v1264_v7 = vpop.xlane.xlu0 %1263 }
 0x819   : > { %v1267_v27 = vpop.xlane.xlu1 %1266 }
 0x81a   : > { %v9683_v28 = vpack.c.bf16 %v1267_v27, %v1264_v7 }
 0x81c   : > { %9684 = vmatprep.subr.bf16.mxu0 %v9683_v28 }
 0x81d   : > { %9686 = vmatpush3.bf16.msra.mxu0 %v9683_v28 }
 0x820   : > { %9613 = vmatmul.mubr.msk.f32.vlgmr.msra.gmra.mrb[8].mxu0 %vm1164_vm13, %v12014_v56 }
 0x8f3   : > { %v9614_v30 = vpop.f32.mrb[8].mxu0 }
 0x8f4   : > { %v1340_v34 = vadd.f32 1e-05, %v9614_v30  ;;  %v1334_v35 = vpop.f32.mrb[9].mxu0 }
 0x8f5   : > { %v1335_v36 = vadd.f32 1e-05, %v1334_v35 }
 0x8f6   : > { %10714 = vrsqrt.f32 %v1340_v34 }
 0x8f7   : > { %10716 = vrsqrt.f32 %v1335_v36 }
 0x900   : > { %v10715_v38 = vpop.eup %10714 }
 0x901   : > { %v10717_v19 = vpop.eup %10716  ;;  %1349 = vrot.lane.b32.xlu1 %v10715_v38, %s11590_s22 }
 0x902   : > { %1347 = vrot.lane.b32.xlu0 %v10717_v19, %s11590_s22  ;;  %s16664_s22 = smov 127  }
 0x973   : > { %v1350_v21 = vpop.permute.xlu1 %1349 }
 0x974   : > { %v1354_v40 = vmul.f32 %v1350_v21, %v11828_v10  ;;  %v1348_v42 = vpop.permute.xlu0 %1347 }
 0x975   : > { %v1353_v51 = vmul.f32 %v1348_v42, %v11748_v4 }
 0x976   : > { %1362 = vperm.xlu1 %9795, %v1354_v40  }
 0x977   : > { %1357 = vperm.xlu0 %9797, %v1353_v51  }
 0x97a   : > { %9796 = vset.pattern.permute.xlu1 %v11591_v52 }
 0x97b   : > { %1370 = vperm.xlu1 %9796, %v11748_v4   ;;  %9798 = vset.pattern.permute.xlu0 %v11591_v52 }
 0x97c   : > { %1374 = vperm.xlu0 %9798, %v11828_v10  }
 0x9f5   : > { %v1363_v59 = vpop.permute.xlu1 %1362 }
 0x9f6   : > { %v1358_v60 = vpop.permute.xlu0 %1357  ;;  %v1367_v2 = vmul.f32 %v1363_v59, %v1256_v6  ;;  %v1368_v3 = vmul.f32 %v1363_v59, %v1257_v9 }
 0x9f7   : > { %v1365_v61 = vmul.f32 %v1358_v60, %v1254_v62  ;;  %v1366_v1 = vmul.f32 %v1358_v60, %v1255_v63 }
 0x9fa   : > { %v1371_v11 = vpop.permute.xlu1 %1370 }
 0x9fb   : > { %v1377_v14 = vadd.f32 %v1371_v11, %v1365_v61  ;;  %v1378_v18 = vadd.f32 %v1371_v11, %v1366_v1  ;;  %v1375_v20 = vpop.permute.xlu0 %1374 }
 0x9fc   : > { %v1379_v7 = vadd.f32 %v1375_v20, %v1367_v2  ;;  %v1380_v27 = vadd.f32 %v1375_v20, %v1368_v3  ;;  %v10649_v20 = vld [vmem:[%s16308_s8 + $0x4] ss:$8 sps:$4 sm:$0xff]  }
 0x9fd   : > { %v8912_v28 = vmul.f32 -1.442695, %v1377_v14  ;;  %v8913_v30 = vmul.f32 -1.442695, %v1378_v18  ;;  %8918 = vmatprep.mubr.msk.bf16.mxu0 %vm1164_vm13, %v10649_v20 }
 0x9fe   : > { %v8914_v34 = vmul.f32 -1.442695, %v1379_v7  ;;  %v8915_v35 = vmul.f32 -1.442695, %v1380_v27 }
 0x9ff   : > { %10718 = vpow2.f32 %v8912_v28 }
 0xa00   : > { %10720 = vpow2.f32 %v8913_v30 }
 0xa01   : > { %10722 = vpow2.f32 %v8914_v34 }
 0xa02   : > { %10724 = vpow2.f32 %v8915_v35 }
 0xa09   : > { %v10719_v36 = vpop.eup %10718 }
 0xa0a   : > { %v10721_v37 = vpop.eup %10720  ;;  %v1393_v62 = vadd.f32 1.0, %v10719_v36 }
 0xa0b   : > { %v10723_v63 = vpop.eup %10722  ;;  %v1394_v6 = vadd.f32 1.0, %v10721_v37 }
 0xa0c   : > { %v10725_v9 = vpop.eup %10724  ;;  %10726 = vrcp.f32 %v1393_v62  ;;  %v1395_v38 = vadd.f32 1.0, %v10723_v63 }
 0xa0d   : > { %10728 = vrcp.f32 %v1394_v6  ;;  %v1396_v19 = vadd.f32 1.0, %v10725_v9 }
 0xa0e   : > { %10730 = vrcp.f32 %v1395_v38 }
 0xa0f   : > { %10732 = vrcp.f32 %v1396_v19 }
 0xa16   : > { %v10727_v21 = vpop.eup %10726 }
 0xa17   : > { %v10729_v40 = vpop.eup %10728  ;;  %v1405_v42 = vmul.f32 %v10727_v21, %v1377_v14 }
 0xa18   : > { %v10731_v51 = vpop.eup %10730  ;;  %v1406_v52 = vmul.f32 %v10729_v40, %v1378_v18 }
 0xa19   : > { %v10733_v59 = vpop.eup %10732  ;;  %v1407_v60 = vmul.f32 %v10731_v51, %v1379_v7  ;;  %v12031_v61 = vmul.f32 %v1405_v42, %v11917_v53  ;;  %v11592_v7 = vmov 5  }
 0xa1a   : > { %v1408_v1 = vmul.f32 %v10733_v59, %v1380_v27  ;;  %1415 = vrot.lane.b32.xlu0 %v1406_v52, %s15870_s23  ;;  %v12035_v2 = vmul.f32 %v1406_v52, %v11922_v54  ;;  %9800 = vset.pattern.permute.xlu1 %v11592_v7  ;;  %v11593_v27 = vmov 6  }
 0xa1b   : > { %1413 = vrot.lane.b32.xlu1 %v1407_v60, %s15870_s23  ;;  %v12039_v3 = vmul.f32 %v1407_v60, %v11917_v53  ;;  %9799 = vset.pattern.permute.xlu0 %v11592_v7 }
 0xa1c   : > { %v12042_v11 = vmul.f32 %v1408_v1, %v11922_v54 }
 0xa1e   : > { %1427 = vrot.lane.b32.xlu0 %v1405_v42, %s15866_s3 }
 0xa1f   : > { %1417 = vrot.lane.b32.xlu1 %v1408_v1, %s15870_s23 }
 0xa22   : > { %1431 = vrot.lane.b32.xlu0 %v1406_v52, %s15866_s3 }
 0xa23   : > { %1429 = vrot.lane.b32.xlu1 %v1407_v60, %s15866_s3 }
 0xa26   : > { %1443 = vrot.lane.b32.xlu0 %v1405_v42, %s16089_s24 }
 0xa27   : > { %1433 = vrot.lane.b32.xlu1 %v1408_v1, %s15866_s3  ;;  %s16661_s3 = smov 17  }
 0xa2a   : > { %1447 = vrot.lane.b32.xlu0 %v1406_v52, %s16089_s24 }
 0xa2b   : > { %1445 = vrot.lane.b32.xlu1 %v1407_v60, %s16089_s24 }
 0xa2e   : > { %1459 = vrot.lane.b32.xlu0 %v1405_v42, %s15868_s26 }
 0xa2f   : > { %1449 = vrot.lane.b32.xlu1 %v1408_v1, %s16089_s24 }
 0xa32   : > { %1463 = vrot.lane.b32.xlu0 %v1406_v52, %s15868_s26 }
 0xa33   : > { %1461 = vrot.lane.b32.xlu1 %v1407_v60, %s15868_s26 }
 0xa36   : > { %1479 = vrot.lane.b32.xlu0 %v1405_v42, %s15864_s27 }
 0xa37   : > { %1465 = vrot.lane.b32.xlu1 %v1408_v1, %s15868_s26  ;;  %s16662_s26 = smov 1  }
 0xa3a   : > { %1483 = vrot.lane.b32.xlu0 %v1406_v52, %s15864_s27 }
 0xa3b   : > { %1411 = vrot.lane.b32.xlu1 %v1405_v42, %s15870_s23  ;;  %s17029_s23 = smov 14  }
 0xa3e   : > { %1495 = vrot.lane.b32.xlu0 %v1405_v42, %s15862_s28 }
 0xa3f   : > { %1481 = vrot.lane.b32.xlu1 %v1407_v60, %s15864_s27 }
 0xa42   : > { %1499 = vrot.lane.b32.xlu0 %v1406_v52, %s15862_s28 }
 0xa43   : > { %1485 = vrot.lane.b32.xlu1 %v1408_v1, %s15864_s27  ;;  %s11601_s27 = smov 11  }
 0xa46   : > { %1511 = vrot.lane.b32.xlu0 %v1405_v42, %s16306_s29 }
 0xa47   : > { %1497 = vrot.lane.b32.xlu1 %v1407_v60, %s15862_s28 }
 0xa4a   : > { %1515 = vrot.lane.b32.xlu0 %v1406_v52, %s16306_s29 }
 0xa4b   : > { %1501 = vrot.lane.b32.xlu1 %v1408_v1, %s15862_s28  ;;  %s17031_s28 = smov 97  }
 0xa4e   : > { %1527 = vrot.lane.b32.xlu0 %v1405_v42, %s16307_s21 }
 0xa4f   : > { %1513 = vrot.lane.b32.xlu1 %v1407_v60, %s16306_s29 }
 0xa52   : > { %1531 = vrot.lane.b32.xlu0 %v1406_v52, %s16307_s21 }
 0xa53   : > { %1517 = vrot.lane.b32.xlu1 %v1408_v1, %s16306_s29 }
 0xa56   : > { %1562 = vperm.xlu0 %9799, %v11748_v4  }
 0xa57   : > { %1529 = vrot.lane.b32.xlu1 %v1407_v60, %s16307_s21 }
 0xa5a   : > { %9802 = vset.pattern.permute.xlu0 %v11593_v27 }
 0xa5b   : > { %1533 = vrot.lane.b32.xlu1 %v1408_v1, %s16307_s21  ;;  %1694 = vperm.xlu0 %9802, %v11828_v10  }
 0xa5f   : > { %1566 = vperm.xlu1 %9800, %v11828_v10   ;;  %9803 = vset.pattern.permute.xlu0 %v15852_v5 }
 0xa63   : > { %9801 = vset.pattern.permute.xlu1 %v11593_v27 }
 0xa64   : > { %1690 = vperm.xlu1 %9801, %v11748_v4  }
 0xa68   : > { %9804 = vset.pattern.permute.xlu1 %v15852_v5 }
 0xa8c   : > { %v1416_v28 = vpop.permute.xlu0 %1415 }
 0xa8d   : > { %v1414_v30 = vpop.permute.xlu1 %1413 }
 0xa90   : > { %v1428_v34 = vpop.permute.xlu0 %1427 }
 0xa91   : > { %v1418_v35 = vpop.permute.xlu1 %1417 }
 0xa92   : > { %v1422_v51 = vsel %vm868_vm3, %v1418_v35, %v1414_v30  ;;  %v1420_v52 = vsel %vm868_vm3, %v1414_v30, %v1418_v35 }
 0xa93   : > { %v1425_v1 = vmul.f32 %v1422_v51, %v11854_v22  ;;  %v1426_v7 = vmul.f32 %v1420_v52, %v11858_v23 }
 0xa94   : > { %v1432_v36 = vpop.permute.xlu0 %1431 }
 0xa95   : > { %v1430_v37 = vpop.permute.xlu1 %1429  ;;  %v1435_v27 = vsel %vm885_vm4, %v1428_v34, %v1432_v36  ;;  %v1437_v26 = vsel %vm885_vm4, %v1432_v36, %v1428_v34 }
 0xa96   : > { %v1440_v13 = vmul.f32 %v1435_v27, %v11867_v25  ;;  %v1439_v43 = vmul.f32 %v1437_v26, %v11863_v24 }
 0xa98   : > { %v1444_v62 = vpop.permute.xlu0 %1443 }
 0xa99   : > { %v1434_v63 = vpop.permute.xlu1 %1433 }
 0xa9a   : > { %v1436_v59 = vsel %vm885_vm4, %v1430_v37, %v1434_v63  ;;  %v1438_v30 = vsel %vm885_vm4, %v1434_v63, %v1430_v37 }
 0xa9b   : > { %v1442_v35 = vmul.f32 %v1436_v59, %v11867_v25  ;;  %v1441_v37 = vmul.f32 %v1438_v30, %v11863_v24 }
 0xa9c   : > { %v1448_v6 = vpop.permute.xlu0 %1447 }
 0xa9d   : > { %v1446_v9 = vpop.permute.xlu1 %1445  ;;  %v1451_v63 = vsel %vm902_vm5, %v1444_v62, %v1448_v6  ;;  %v1546_v59 = vpack.c.bf16 %v1442_v35, %v1440_v13  ;;  %v1453_v36 = vsel %vm902_vm5, %v1448_v6, %v1444_v62  ;;  %v1545_v27 = vpack.c.bf16 %v1441_v37, %v1439_v43 }
 0xa9e   : > { %v1455_v30 = vmul.f32 %v1453_v36, %v11893_v44 }
 0xaa0   : > { %v1460_v38 = vpop.permute.xlu0 %1459 }
 0xaa1   : > { %v1450_v19 = vpop.permute.xlu1 %1449 }
 0xaa2   : > { %v1452_v52 = vsel %vm902_vm5, %v1446_v9, %v1450_v19 }
 0xaa4   : > { %v1464_v21 = vpop.permute.xlu0 %1463 }
 0xaa5   : > { %v1462_v4 = vpop.permute.xlu1 %1461  ;;  %v1467_v13 = vsel %vm919_vm6, %v1460_v38, %v1464_v21  ;;  %v1469_v6 = vsel %vm919_vm6, %v1464_v21, %v1460_v38 }
 0xaa6   : > { %v1472_v43 = vmul.f32 %v1467_v13, %v11909_v49 }
 0xaa8   : > { %v12088_v40 = vpop.permute.xlu0 %1479 }
 0xaa9   : > { %v1466_v42 = vpop.permute.xlu1 %1465 }
 0xaaa   : > { %v1468_v34 = vsel %vm919_vm6, %v1462_v4, %v1466_v42  ;;  %v1470_v26 = vsel %vm919_vm6, %v1466_v42, %v1462_v4  ;;  %v1471_v4 = vmul.f32 %v1469_v6, %v11905_v48 }
 0xaac   : > { %v1484_v60 = vpop.permute.xlu0 %1483 }
 0xaad   : > { %v1412_v20 = vpop.permute.xlu1 %1411  ;;  %v1489_v38 = vsel %vm946_vm7, %v1484_v60, %v12088_v40 }
 0xaae   : > { %v1419_v0 = vsel %vm868_vm3, %v1412_v20, %v1416_v28  ;;  %v1421_v5 = vsel %vm868_vm3, %v1416_v28, %v1412_v20  ;;  %v1492_v36 = vmul.f32 %v1489_v38, %v11934_v58 }
 0xaaf   : > { %v1423_v14 = vmul.f32 %v1421_v5, %v11854_v22  ;;  %v1424_v51 = vmul.f32 %v1419_v0, %v11858_v23  ;;  %v1454_v0 = vsel %vm902_vm5, %v1450_v19, %v1446_v9  ;;  %v1458_v5 = vmul.f32 %v1452_v52, %v11900_v46 }
 0xab0   : > { %v1496_v18 = vpop.permute.xlu0 %1495  ;;  %v1457_v9 = vmul.f32 %v1454_v0, %v11893_v44  ;;  %v1474_v19 = vmul.f32 %v1468_v34, %v11909_v49  ;;  %v1473_v52 = vmul.f32 %v1470_v26, %v11905_v48  ;;  %v1487_v34 = vsel %vm946_vm7, %v12088_v40, %v1484_v60 }
 0xab1   : > { %v1543_v45 = vpack.c.bf16 %v1425_v1, %v1423_v14  ;;  %v1482_v28 = vpop.permute.xlu1 %1481  ;;  %v1544_v20 = vpack.c.bf16 %v1426_v7, %v1424_v51  ;;  %v1456_v1 = vmul.f32 %v1451_v63, %v11900_v46  ;;  %v1491_v40 = vmul.f32 %v1487_v34, %v11930_v57 }
 0xab2   : > { %v1547_v51 = vpack.c.bf16 %v1457_v9, %v1455_v30  ;;  %v1549_v0 = vpack.c.bf16 %v1473_v52, %v1471_v4  ;;  %v16310_v60 = vpack.c.bf16 %v12039_v3, %v12031_v61 }
 0xab3   : > { %1581 = vmatprep.subr.bf16.mxu0 %v1544_v20  ;;  %v1550_v20 = vpack.c.bf16 %v1474_v19, %v1472_v43 }
 0xab4   : > { %1582 = vmatpush1.bf16.msra.mxu0 %v1543_v45  ;;  %v1500_v14 = vpop.permute.xlu0 %1499  ;;  %v1548_v45 = vpack.c.bf16 %v1458_v5, %v1456_v1 }
 0xab5   : > { %v1486_v7 = vpop.permute.xlu1 %1485  ;;  %1583 = vmatprep.subr.bf16.mxu0 %v1546_v59 }
 0xab6   : > { %v1490_v42 = vsel %vm946_vm7, %v1486_v7, %v1482_v28  ;;  %v1488_v21 = vsel %vm946_vm7, %v1482_v28, %v1486_v7  ;;  %v1505_v28 = vsel %vm963_vm8, %v1500_v14, %v1496_v18 }
 0xab7   : > { %v1494_v5 = vmul.f32 %v1490_v42, %v11934_v58  ;;  %v1493_v7 = vmul.f32 %v1488_v21, %v11930_v57 }
 0xab8   : > { %1584 = vmatpush1.bf16.msra.mxu0 %v1545_v27  ;;  %v1512_v62 = vpop.permute.xlu0 %1511  ;;  %v16309_v27 = vpack.c.bf16 %v12042_v11, %v12035_v2  ;;  %v1503_v2 = vsel %vm963_vm8, %v1496_v18, %v1500_v14  ;;  %v1508_v11 = vmul.f32 %v1505_v28, %v11963_v31 }
 0xab9   : > { %v1498_v35 = vpop.permute.xlu1 %1497  ;;  %1585 = vmatprep.subr.bf16.mxu0 %v1548_v45  ;;  %v1554_v19 = vpack.c.bf16 %v1494_v5, %v1492_v36  ;;  %v1553_v30 = vpack.c.bf16 %v1493_v7, %v1491_v40  ;;  %v1507_v18 = vmul.f32 %v1503_v2, %v11959_v29  ;;  %v11550_v7 = vld [vmem:[%s11737_s2] sm:$0xff] }
 0xabc   : > { %1586 = vmatpush1.bf16.msra.mxu0 %v1547_v51  ;;  %v1516_v37 = vpop.permute.xlu0 %1515 }
 0xabd   : > { %v1502_v63 = vpop.permute.xlu1 %1501  ;;  %1587 = vmatprep.subr.bf16.mxu0 %v1550_v20  ;;  %v1521_v6 = vsel %vm980_vm9, %v1516_v37, %v1512_v62  ;;  %v1519_v14 = vsel %vm980_vm9, %v1512_v62, %v1516_v37 }
 0xabe   : > { %v1506_v59 = vsel %vm963_vm8, %v1502_v63, %v1498_v35  ;;  %v1504_v9 = vsel %vm963_vm8, %v1498_v35, %v1502_v63  ;;  %v1524_v52 = vmul.f32 %v1521_v6, %v11972_v12  ;;  %v1523_v38 = vmul.f32 %v1519_v14, %v11968_v8 }
 0xabf   : > { %v1510_v13 = vmul.f32 %v1506_v59, %v11963_v31  ;;  %v1509_v43 = vmul.f32 %v1504_v9, %v11959_v29  ;;  %v1626_v9 = vpack.c.bf16 %v11550_v7, %v11550_v7 }
 0xac0   : > { %1588 = vmatpush1.bf16.msra.mxu0 %v1549_v0  ;;  %v1528_v26 = vpop.permute.xlu0 %1527 }
 0xac1   : > { %v1514_v1 = vpop.permute.xlu1 %1513  ;;  %1589 = vmatprep.subr.bf16.mxu0 %v16309_v27  ;;  %v1556_v51 = vpack.c.bf16 %v1510_v13, %v1508_v11  ;;  %v1555_v42 = vpack.c.bf16 %v1509_v43, %v1507_v18  ;;  %v11551_v13 = vld [vmem:[%s11737_s2 + $0x8] sm:$0xff]  ;;  %v1637_v2 = vsel %vm1091_vm11, %v1626_v9, 0  ;;  %s11596_s2 = smov 7  }
 0xac4   : > { %1590 = vmatpush1.bf16.msra.mxu0 %v16310_v60  ;;  %v1532_v20 = vpop.permute.xlu0 %1531  ;;  %v10651_v60 = vld [vmem:[%s16308_s8] ss:$8 sps:$4 sm:$0xff]   ;;  %s11616_s8 = smov 95  }
 0xac5   : > { %v1518_v45 = vpop.permute.xlu1 %1517  ;;  %1591 = vmatprep.subr.bf16.mxu0 %v1554_v19  ;;  %v1535_v21 = vsel %vm997_vm10, %v1528_v26, %v1532_v20  ;;  %v1537_v5 = vsel %vm997_vm10, %v1532_v20, %v1528_v26  ;;  %v1627_v26 = vpack.c.bf16 %v11551_v13, %v11551_v13 }
 0xac6   : > { %v1522_v35 = vsel %vm980_vm9, %v1518_v45, %v1514_v1  ;;  %v1520_v61 = vsel %vm980_vm9, %v1514_v1, %v1518_v45  ;;  %v1539_v36 = vmul.f32 %v11990_v47, %v1535_v21  ;;  %v1540_v1 = vmul.f32 %v11995_v50, %v1537_v5 }
 0xac7   : > { %v1526_v3 = vmul.f32 %v1522_v35, %v11972_v12  ;;  %v1525_v63 = vmul.f32 %v1520_v61, %v11968_v8 }
 0xac8   : > { %1592 = vmatpush1.bf16.msra.mxu0 %v1553_v30 }
 0xac9   : > { %v1530_v4 = vpop.permute.xlu1 %1529  ;;  %1593 = vmatprep.subr.bf16.mxu0 %v1556_v51  ;;  %v1558_v0 = vpack.c.bf16 %v1526_v3, %v1524_v52  ;;  %v1557_v37 = vpack.c.bf16 %v1525_v63, %v1523_v38 }
 0xacc   : > { %1594 = vmatpush1.bf16.msra.mxu0 %v1555_v42 }
 0xacd   : > { %v1534_v62 = vpop.permute.xlu1 %1533  ;;  %1595 = vmatprep.subr.bf16.mxu0 %v1558_v0 }
 0xace   : > { %v1536_v59 = vsel %vm997_vm10, %v1530_v4, %v1534_v62  ;;  %v1538_v34 = vsel %vm997_vm10, %v1534_v62, %v1530_v4 }
 0xacf   : > { %v1541_v27 = vmul.f32 %v11990_v47, %v1536_v59  ;;  %v1542_v28 = vmul.f32 %v11995_v50, %v1538_v34  ;;  %v16311_v47 = vmov 0   ;;  %v10652_v50 = vld [vmem:[%s15830_s9] sm:$0xff]  }
 0xad0   : > { %1596 = vmatpush1.bf16.msra.mxu0 %v1557_v37 }
 0xad1   : > { %v1559_v19 = vpack.c.bf16 %v1541_v27, %v1539_v36  ;;  %v1560_v40 = vpack.c.bf16 %v1542_v28, %v1540_v1 }
 0xad3   : > { %1597 = vmatprep.subr.bf16.mxu0 %v1560_v40 }
 0xad4   : > { %1598 = vmatpush1.bf16.msra.mxu0 %v1559_v19 }
 0xad5   : > { %8920 = vmatprep.subr.msk.bf16.mxu0 %vm1091_vm11, %v1627_v26  ;;  %v1563_v45 = vpop.permute.xlu0 %1562 }
 0xad7   : > { %1614 = vmatmul.mubr.bf16.vlgmr.msra.gmra.mrb[12].mxu0 %v10651_v60 }
 0xad8   : > { %1643 = vmatpush1.bf16.msra.mxu0 %v1637_v2  ;;  %1674 = vmatprep.mubr.bf16.mxu0 %v16311_v47 }
 0xada   : > { %v1695_v51 = vpop.permute.xlu0 %1694 }
 0xade   : > { %v1567_v11 = vpop.permute.xlu1 %1566 }
 0xae3   : > { %8921 = vmatmul.mubr.msk.bf16.vlgmr.msra.gmra.mrb[12].mxu0 %vm676_vm1, %v10652_v50  ;;  %v1691_v6 = vpop.permute.xlu1 %1690 }
 0xae4   : > { %2539 = vmatprep.mubr.bf16.mxu0 %v16311_v47 }
 0xbb6   : > { %v1676_v30 = vpop.f32.mrb[12].mxu0 }
 0xbb7   : > { %v9719_v43 = vadd.f32 %v1676_v30, %v1563_v45  ;;  %v1678_v35 = vpop.f32.mrb[13].mxu0 }
 0xbb8   : > { %v9720_v61 = vadd.f32 %v1678_v35, %v1563_v45  ;;  %v1680_v3 = vpop.f32.mrb[14].mxu0  ;;  %v11594_v45 = vmov 8   ;;  %v11595_v35 = vmov 7  }
 0xbb9   : > { %v12207_v18 = vadd.f32 %v9719_v43, %v1691_v6  ;;  %v9721_v14 = vadd.f32 %v1680_v3, %v1567_v11  ;;  %v1682_v52 = vpop.f32.mrb[15].mxu0 }
 0xbba   : > { %v12209_v20 = vadd.f32 %v9720_v61, %v1691_v6  ;;  %v9722_v4 = vadd.f32 %v1682_v52, %v1567_v11 }
 0xbbb   : > { %16312 = vst [vmem:[#allocation31_spill] sm:$0xff] %v12207_v18  ;;  %v12211_v42 = vadd.f32 %v9721_v14, %v1695_v51  ;;  %v11552_v14 = vld [vmem:[%s16272_s25] sm:$0xff] }
 0xbbc   : > { %16313 = vst [vmem:[#allocation32_spill] sm:$0xff] %v12209_v20  ;;  %v12213_v63 = vadd.f32 %v9722_v4, %v1695_v51  ;;  %v1701_v0 = vadd.f32 %v12209_v20, %v12207_v18 }
 0xbbd   : > { %16314 = vst [vmem:[#allocation33_spill] sm:$0xff] %v12211_v42 }
 0xbbe   : > { %16315 = vst [vmem:[#allocation34_spill] sm:$0xff] %v12213_v63  ;;  %1702 = vadd.xlane.f32.xlu1 %v1701_v0  ;;  %v1704_v38 = vadd.f32 %v12213_v63, %v12211_v42 }
 0xbc0   : > { %1705 = vadd.xlane.f32.xlu0 %v1704_v38 }
 0xc4b   : > { %v1703_v21 = vpop.xlane.xlu1 %1702 }
 0xc4d   : > { %v1706_v5 = vpop.xlane.xlu0 %1705 }
 0xc4e   : > { %v9687_v62 = vpack.c.bf16 %v1706_v5, %v1703_v21  ;;  %v11597_v21 = vmov 10   ;;  %v11553_v5 = vld [vmem:[%s16272_s25 + $0x8] sm:$0xff] }
 0xc50   : > { %9688 = vmatprep.subr.bf16.mxu1 %v9687_v62 }
 0xc51   : > { %9690 = vmatpush3.bf16.msra.mxu1 %v9687_v62  ;;  %v626_v62 = vld [vmem:[%s16272_s25 + $0x10] sm:$0xff] }
 0xc54   : > { %9620 = vmatmul.mubr.msk.f32.vlgmr.msra.gmra.mrb[2].mxu1 %vm1164_vm13, %v12014_v56 }
 0xc55   : > { %9626 = vmatprep.mubr.msk.f32.mxu1 %vm1164_vm13, %v12012_v55 }
 0xd27   : > { %v9621_v37 = vpop.f32.mrb[2].mxu1 }
 0xd28   : > { %1789 = vperm.xlu1 %9804, %v9621_v37   ;;  %v1773_v59 = vpop.f32.mrb[3].mxu1  ;;  %v629_v37 = vld [vmem:[%s16272_s25 + $0x28] sm:$0xff] }
 0xd29   : > { %1784 = vperm.xlu0 %9803, %v1773_v59  }
 0xd2c   : > { %9806 = vset.pattern.permute.xlu1 %v11594_v45 }
 0xd2d   : > { %9805 = vset.pattern.permute.xlu0 %v11595_v35 }
 0xda7   : > { %v1790_v34 = vpop.permute.xlu1 %1789 }
 0xda8   : > { %v12224_v36 = vsub.f32 %v12211_v42, %v1790_v34  ;;  %v12227_v1 = vsub.f32 %v12213_v63, %v1790_v34  ;;  %v1785_v27 = vpop.permute.xlu0 %1784 }
 0xda9   : > { %v1792_v28 = vsub.f32 %v12207_v18, %v1785_v27  ;;  %v1793_v7 = vsub.f32 %v12209_v20, %v1785_v27 }
 0xdaa   : > { %v1798_v9 = vmul.f32 %v12224_v36, %v12224_v36  ;;  %v1799_v13 = vmul.f32 %v12227_v1, %v12227_v1 }
 0xdab   : > { %v1796_v26 = vmul.f32 %v1792_v28, %v1792_v28  ;;  %v1797_v19 = vmul.f32 %v1793_v7, %v1793_v7 }
 0xdac   : > { %v1803_v40 = vadd.f32 %v1799_v13, %v1798_v9 }
 0xdad   : > { %v1800_v60 = vadd.f32 %v1797_v19, %v1796_v26 }
 0xdae   : > { %1804 = vadd.xlane.f32.xlu0 %v1803_v40 }
 0xdaf   : > { %1801 = vadd.xlane.f32.xlu1 %v1800_v60 }
 0xe3b   : > { %v1805_v2 = vpop.xlane.xlu0 %1804 }
 0xe3c   : > { %v1802_v50 = vpop.xlane.xlu1 %1801 }
 0xe3d   : > { %v9691_v11 = vpack.c.bf16 %v1805_v2, %v1802_v50 }
 0xe3f   : > { %9692 = vmatprep.subr.bf16.mxu1 %v9691_v11 }
 0xe40   : > { %9694 = vmatpush3.bf16.msra.mxu1 %v9691_v11 }
 0xe43   : > { %9627 = vmatmul.mubr.msk.f32.vlgmr.msra.gmra.mrb[8].mxu1 %vm1164_vm13, %v12014_v56 }
 0xe44   : > { %2011 = vmatprep.mubr.bf16.mxu1 %v16311_v47 }
 0xf16   : > { %v9628_v30 = vpop.f32.mrb[8].mxu1 }
 0xf17   : > { %v1872_v6 = vpop.f32.mrb[9].mxu1  ;;  %v1878_v61 = vadd.f32 1e-05, %v9628_v30 }
 0xf18   : > { %v1873_v43 = vadd.f32 1e-05, %v1872_v6  ;;  %v10653_v6 = vld [vmem:[%s15831_s10] sm:$0xff]  }
 0xf1a   : > { %10734 = vrsqrt.f32 %v1873_v43 }
 0xf1b   : > { %10736 = vrsqrt.f32 %v1878_v61 }
 0xf24   : > { %v10735_v3 = vpop.eup %10734 }
 0xf25   : > { %1885 = vrot.lane.b32.xlu1 %v10735_v3, %s11596_s2  ;;  %v10737_v51 = vpop.eup %10736 }
 0xf29   : > { %1887 = vrot.lane.b32.xlu1 %v10737_v51, %s11596_s2  ;;  %s16665_s2 = smov 113  }
 0xf2d   : > { %1908 = vperm.xlu1 %9806, %v11552_v14  }
 0xf31   : > { %9807 = vset.pattern.permute.xlu1 %v11595_v35 }
 0xf97   : > { %v1886_v52 = vpop.permute.xlu1 %1885 }
 0xf98   : > { %v1891_v4 = vmul.f32 %v11552_v14, %v1886_v52 }
 0xf9a   : > { %1895 = vperm.xlu1 %9807, %v1891_v4  }
 0xf9b   : > { %v1888_v0 = vpop.permute.xlu1 %1887 }
 0xf9c   : > { %v1892_v38 = vmul.f32 %v1888_v0, %v11828_v10 }
 0xf9e   : > { %1900 = vperm.xlu0 %9805, %v1892_v38   ;;  %9808 = vset.pattern.permute.xlu1 %v11594_v45 }
 0xf9f   : > { %1912 = vperm.xlu1 %9808, %v11828_v10   ;;  %v627_v10 = vld [vmem:[%s16272_s25 + $0x18] sm:$0xff] }
 0xfa2   : > { %9892 = vset.pattern.permute.xlu0 %v11597_v21 }
 0xfa3   : > { %9809 = vset.pattern.permute.xlu1 %v11597_v21  ;;  %1952 = vperm.xlu0 %9892, %v629_v37  }
 0xfa4   : > { %1928 = vperm.xlu1 %9809, %v11552_v14  }
 0xfa8   : > { %1932 = vperm.xlu1 %9809, %v11553_v5  }
 0xfac   : > { %1937 = vperm.xlu1 %9809, %v626_v62   ;;  %v1909_v59 = vpop.permute.xlu1 %1908 }
 0xfb0   : > { %1942 = vperm.xlu1 %9809, %v627_v10  }
0x1019   : > { %v1896_v34 = vpop.permute.xlu1 %1895 }
0x101a   : > { %v1903_v27 = vmul.f32 %v1896_v34, %v1792_v28  ;;  %v1904_v9 = vmul.f32 %v1896_v34, %v1793_v7 }
0x101c   : > { %v1915_v60 = vadd.f32 %v1909_v59, %v1903_v27  ;;  %v1916_v2 = vadd.f32 %v1909_v59, %v1904_v9 }
0x101d   : > { %v1901_v13 = vpop.permute.xlu0 %1900 }
0x101e   : > { %v1905_v26 = vmul.f32 %v1901_v13, %v12224_v36  ;;  %v1906_v19 = vmul.f32 %v1901_v13, %v12227_v1  ;;  %v1913_v40 = vpop.permute.xlu1 %1912  ;;  %v10654_v36 = vld [vmem:[%s15831_s10 + $0x8] sm:$0xff]   ;;  %v10655_v1 = vld [vmem:[%s15831_s10 + $0x10] sm:$0xff]  }
0x1020   : > { %v1917_v50 = vadd.f32 %v1913_v40, %v1905_v26  ;;  %v1918_v11 = vadd.f32 %v1913_v40, %v1906_v19 }
0x1022   : > { %v1925_v45 = vpack.c.bf16 %v1917_v50, %v1915_v60  ;;  %v1926_v30 = vpack.c.bf16 %v1918_v11, %v1916_v2 }
0x1023   : > { %v1929_v28 = vpop.permute.xlu1 %1928 }
0x1024   : > { %1979 = vmatprep.subr.bf16.mxu1 %v1926_v30 }
0x1025   : > { %1980 = vmatpush1.bf16.msra.mxu1 %v1925_v45 }
0x1027   : > { %v1933_v7 = vpop.permute.xlu1 %1932 }
0x1028   : > { %8929 = vmatmul.mubr.msk.bf16.vlgmr.msra.gmra.mrb[12].mxu1 %vm1164_vm13, %v10653_v6 }
0x1029   : > { %2021 = vmatprep.mubr.bf16.mxu1 %v16311_v47 }
0x102b   : > { %v1938_v52 = vpop.permute.xlu1 %1937 }
0x102f   : > { %v1943_v10 = vpop.permute.xlu1 %1942 }
0x1030   : > { %8930 = vmatmul.mubr.msk.bf16.gmra.mrb[16].mxu1 %vm1164_vm13, %v10654_v36  ;;  %v628_v36 = vld [vmem:[%s16272_s25 + $0x20] sm:$0xff] }
0x1031   : > { %2031 = vmatprep.mubr.bf16.mxu1 %v16311_v47 }
0x1038   : > { %8931 = vmatmul.mubr.msk.bf16.gmra.mrb[20].mxu1 %vm1164_vm13, %v10655_v1  ;;  %v12287_v1 = vpop.permute.xlu0 %1952 }
0x1039   : > { %2292 = vmatprep.mubr.bf16.mxu1 %v16311_v47 }
0x10fb   : > { %v2013_v43 = vpop.f32.mrb[12].mxu1 }
0x10fc   : > { %v2015_v35 = vpop.f32.mrb[13].mxu1  ;;  %v2014_v3 = vadd.f32 %v2013_v43, %v1929_v28 }
0x10fd   : > { %v2017_v61 = vpop.f32.mrb[14].mxu1  ;;  %v2016_v4 = vadd.f32 %v2015_v35, %v1929_v28 }
0x10fe   : > { %v2018_v51 = vadd.f32 %v2017_v61, %v1933_v7  ;;  %v2019_v14 = vpop.f32.mrb[15].mxu1 }
0x10ff   : > { %v2020_v0 = vadd.f32 %v2019_v14, %v1933_v7 }
0x1100   : > { %v9810_v38 = vpack.i.bf16 %v2018_v51, %v2014_v3 }
0x1101   : > { %v9893_v21 = vpack.i.bf16 %v2020_v0, %v2016_v4 }
0x1102   : > { %9811 = vxpose.xlu1.b32.start.end [1/1] (short) %v9810_v38, 128 }
0x1103   : > { %v2023_v5 = vpop.f32.mrb[16].mxu1  ;;  %9894 = vxpose.xlu0.b32.start.end [1/1] (short) %v9893_v21, 128 }
0x1104   : > { %v2024_v62 = vadd.f32 %v2023_v5, %v1938_v52  ;;  %v2025_v37 = vpop.f32.mrb[17].mxu1 }
0x1105   : > { %v2026_v59 = vadd.f32 %v2025_v37, %v1938_v52  ;;  %v2027_v34 = vpop.f32.mrb[18].mxu1 }
0x1106   : > { %v2202_v27 = vpack.c.bf16 %v2024_v62, %v2024_v62  ;;  %v2028_v9 = vadd.f32 %v2027_v34, %v1943_v10  ;;  %v2029_v13 = vpop.f32.mrb[19].mxu1 }
0x1107   : > { %v2203_v26 = vpack.c.bf16 %v2026_v59, %v2026_v59  ;;  %v2030_v19 = vadd.f32 %v2029_v13, %v1943_v10 }
0x1108   : > { %v2204_v40 = vpack.c.bf16 %v2028_v9, %v2028_v9  ;;  %v2255_v60 = vsel %vm1091_vm11, %v2202_v27, 0 }
0x1109   : > { %v2205_v2 = vpack.c.bf16 %v2030_v19, %v2030_v19  ;;  %8932 = vmatprep.subr.msk.bf16.mxu1 %vm1091_vm11, %v2203_v26 }
0x110a   : > { %2261 = vmatpush1.bf16.msra.mxu1 %v2255_v60  ;;  %v2502_v50 = vsel %vm1091_vm11, %v2204_v40, 0 }
0x110b   : > { %8949 = vmatprep.subr.msk.bf16.mxu0 %vm1091_vm11, %v2205_v2  ;;  %v12276_v11 = vpop.f32.mrb[20].mxu1 }
0x110c   : > { %2508 = vmatpush1.bf16.msra.mxu0 %v2502_v50  ;;  %v12278_v45 = vpop.f32.mrb[21].mxu1 }
0x110d   : > { %v12280_v30 = vpop.f32.mrb[22].mxu1 }
0x110e   : > { %v12282_v6 = vpop.f32.mrb[23].mxu1 }
0x115c   : > { %1947 = vperm.xlu1 %9809, %v628_v36  }
0x1182   : > { %v9812_v28 = vpop.trf.xlu1 }
0x1183   : > { %v12289_v7 = vpop.trf.xlu0  ;;  %v9816_v43 = vunpack.i.h.bf16 %v9812_v28  ;;  %v9813_v35 = vunpack.i.l.bf16 %v9812_v28 }
0x1186   : > { %v9817_v61 = vpop.trf.xlu1 }
0x1187   : > { %v9821_v3 = vunpack.i.h.bf16 %v9817_v61  ;;  %v9818_v51 = vunpack.i.l.bf16 %v9817_v61  ;;  %v12291_v14 = vpop.trf.xlu0 }
0x1189   : > { %v2170_v52 = vpack.c.bf16 %v9818_v51, %v9813_v35  ;;  %v2186_v4 = vpack.c.bf16 %v9821_v3, %v9816_v43 }
0x118a   : > { %v9822_v0 = vpop.trf.xlu1 }
0x118b   : > { %8933 = vmatmul.mubr.msk.bf16.vlgmr.msra.gmra.mrb[24].mxu1 %vm676_vm1, %v2170_v52  ;;  %8950 = vmatmul.mubr.msk.bf16.vlgmr.msra.gmra.mrb[16].mxu0 %vm676_vm1, %v2186_v4  ;;  %v12295_v38 = vpop.trf.xlu0  ;;  %v9826_v21 = vunpack.i.h.bf16 %v9822_v0  ;;  %v9823_v5 = vunpack.i.l.bf16 %v9822_v0 }
0x118c   : > { %2302 = vmatprep.mubr.bf16.mxu1 %v16311_v47  ;;  %2549 = vmatprep.mubr.bf16.mxu0 %v16311_v47 }
0x118e   : > { %v9827_v62 = vpop.trf.xlu1 }
0x118f   : > { %v9831_v37 = vunpack.i.h.bf16 %v9827_v62  ;;  %v9828_v10 = vunpack.i.l.bf16 %v9827_v62  ;;  %v12299_v59 = vpop.trf.xlu0 }
0x1191   : > { %v2171_v34 = vpack.c.bf16 %v9828_v10, %v9823_v5  ;;  %v2187_v27 = vpack.c.bf16 %v9831_v37, %v9826_v21 }
0x1192   : > { %v9832_v9 = vpop.trf.xlu1 }
0x1193   : > { %8934 = vmatmul.mubr.msk.bf16.gmra.mrb[28].mxu1 %vm676_vm1, %v2171_v34  ;;  %8951 = vmatmul.mubr.msk.bf16.gmra.mrb[20].mxu0 %vm676_vm1, %v2187_v27  ;;  %v12303_v13 = vpop.trf.xlu0  ;;  %v9836_v26 = vunpack.i.h.bf16 %v9832_v9  ;;  %v9833_v19 = vunpack.i.l.bf16 %v9832_v9 }
0x1194   : > { %2312 = vmatprep.mubr.bf16.mxu1 %v16311_v47  ;;  %2559 = vmatprep.mubr.bf16.mxu0 %v16311_v47 }
0x1196   : > { %v9837_v40 = vpop.trf.xlu1 }
0x1197   : > { %v9841_v60 = vunpack.i.h.bf16 %v9837_v40  ;;  %v9838_v2 = vunpack.i.l.bf16 %v9837_v40  ;;  %v12307_v50 = vpop.trf.xlu0 }
0x1199   : > { %v2172_v36 = vpack.c.bf16 %v9838_v2, %v9833_v19  ;;  %v2188_v28 = vpack.c.bf16 %v9841_v60, %v9836_v26 }
0x119a   : > { %v9842_v43 = vpop.trf.xlu1 }
0x119b   : > { %8935 = vmatmul.mubr.msk.bf16.gmra.mrb[32].mxu1 %vm676_vm1, %v2172_v36  ;;  %8952 = vmatmul.mubr.msk.bf16.gmra.mrb[24].mxu0 %vm676_vm1, %v2188_v28  ;;  %v12311_v35 = vpop.trf.xlu0  ;;  %v9846_v61 = vunpack.i.h.bf16 %v9842_v43  ;;  %v9843_v3 = vunpack.i.l.bf16 %v9842_v43 }
0x119c   : > { %2322 = vmatprep.mubr.bf16.mxu1 %v16311_v47  ;;  %2569 = vmatprep.mubr.bf16.mxu0 %v16311_v47 }
0x119e   : > { %v9847_v51 = vpop.trf.xlu1 }
0x119f   : > { %v9851_v52 = vunpack.i.h.bf16 %v9847_v51  ;;  %v9848_v4 = vunpack.i.l.bf16 %v9847_v51  ;;  %v12315_v0 = vpop.trf.xlu0 }
0x11a1   : > { %v2173_v21 = vpack.c.bf16 %v9848_v4, %v9843_v3  ;;  %v2189_v5 = vpack.c.bf16 %v9851_v52, %v9846_v61 }
0x11a2   : > { %v9852_v62 = vpop.trf.xlu1 }
0x11a3   : > { %8936 = vmatmul.mubr.msk.bf16.gmra.mrb[36].mxu1 %vm676_vm1, %v2173_v21  ;;  %8953 = vmatmul.mubr.msk.bf16.gmra.mrb[28].mxu0 %vm676_vm1, %v2189_v5  ;;  %v12319_v37 = vpop.trf.xlu0  ;;  %v9856_v10 = vunpack.i.h.bf16 %v9852_v62  ;;  %v9853_v34 = vunpack.i.l.bf16 %v9852_v62 }
0x11a4   : > { %2332 = vmatprep.mubr.bf16.mxu1 %v16311_v47  ;;  %2579 = vmatprep.mubr.bf16.mxu0 %v16311_v47 }
0x11a6   : > { %v9857_v27 = vpop.trf.xlu1 }
0x11a7   : > { %v9861_v9 = vunpack.i.h.bf16 %v9857_v27  ;;  %v9858_v26 = vunpack.i.l.bf16 %v9857_v27  ;;  %v12323_v19 = vpop.trf.xlu0 }
0x11a9   : > { %v2174_v40 = vpack.c.bf16 %v9858_v26, %v9853_v34  ;;  %v2190_v60 = vpack.c.bf16 %v9861_v9, %v9856_v10 }
0x11aa   : > { %v9862_v2 = vpop.trf.xlu1 }
0x11ab   : > { %8937 = vmatmul.mubr.msk.bf16.gmra.mrb[40].mxu1 %vm676_vm1, %v2174_v40  ;;  %8954 = vmatmul.mubr.msk.bf16.gmra.mrb[32].mxu0 %vm676_vm1, %v2190_v60  ;;  %v12327_v36 = vpop.trf.xlu0  ;;  %v9866_v28 = vunpack.i.h.bf16 %v9862_v2  ;;  %v9863_v43 = vunpack.i.l.bf16 %v9862_v2 }
0x11ac   : > { %2342 = vmatprep.mubr.bf16.mxu1 %v16311_v47  ;;  %2589 = vmatprep.mubr.bf16.mxu0 %v16311_v47 }
0x11ae   : > { %v9867_v61 = vpop.trf.xlu1 }
0x11af   : > { %v9871_v3 = vunpack.i.h.bf16 %v9867_v61  ;;  %v9868_v51 = vunpack.i.l.bf16 %v9867_v61  ;;  %v12331_v52 = vpop.trf.xlu0 }
0x11b1   : > { %v2175_v4 = vpack.c.bf16 %v9868_v51, %v9863_v43  ;;  %v2191_v21 = vpack.c.bf16 %v9871_v3, %v9866_v28 }
0x11b2   : > { %v9872_v5 = vpop.trf.xlu1 }
0x11b3   : > { %8938 = vmatmul.mubr.msk.bf16.gmra.mrb[44].mxu1 %vm676_vm1, %v2175_v4  ;;  %8955 = vmatmul.mubr.msk.bf16.gmra.mrb[36].mxu0 %vm676_vm1, %v2191_v21  ;;  %v12335_v62 = vpop.trf.xlu0  ;;  %v9876_v10 = vunpack.i.h.bf16 %v9872_v5  ;;  %v9873_v34 = vunpack.i.l.bf16 %v9872_v5 }
0x11b4   : > { %2352 = vmatprep.mubr.bf16.mxu1 %v16311_v47  ;;  %2599 = vmatprep.mubr.bf16.mxu0 %v16311_v47 }
0x11b6   : > { %v9877_v27 = vpop.trf.xlu1 }
0x11b7   : > { %v9881_v9 = vunpack.i.h.bf16 %v9877_v27  ;;  %v9878_v26 = vunpack.i.l.bf16 %v9877_v27  ;;  %v12339_v40 = vpop.trf.xlu0  ;;  %v9899_v27 = vunpack.i.h.bf16 %v12289_v7 }
0x11b9   : > { %v2176_v60 = vpack.c.bf16 %v9878_v26, %v9873_v34  ;;  %v2192_v2 = vpack.c.bf16 %v9881_v9, %v9876_v10  ;;  %v9896_v9 = vunpack.i.l.bf16 %v12289_v7  ;;  %v9904_v26 = vunpack.i.h.bf16 %v12291_v14 }
0x11ba   : > { %v9882_v28 = vpop.trf.xlu1  ;;  %v9914_v7 = vunpack.i.h.bf16 %v12299_v59 }
0x11bb   : > { %8939 = vmatmul.mubr.msk.bf16.gmra.mrb[48].mxu1 %vm676_vm1, %v2176_v60  ;;  %8956 = vmatmul.mubr.msk.bf16.gmra.mrb[40].mxu0 %vm676_vm1, %v2192_v2  ;;  %v12343_v43 = vpop.trf.xlu0  ;;  %v9886_v61 = vunpack.i.h.bf16 %v9882_v28  ;;  %v9883_v3 = vunpack.i.l.bf16 %v9882_v28  ;;  %v9901_v60 = vunpack.i.l.bf16 %v12291_v14  ;;  %v2194_v28 = vpack.c.bf16 %v9904_v26, %v9899_v27 }
0x11bc   : > { %2362 = vmatprep.mubr.bf16.mxu1 %v16311_v47  ;;  %2609 = vmatprep.mubr.bf16.mxu0 %v16311_v47  ;;  %v9929_v26 = vunpack.i.h.bf16 %v12311_v35 }
0x11bd   : > { %v2178_v2 = vpack.c.bf16 %v9901_v60, %v9896_v9  ;;  %v2038_v9 = vadd.f32 %v12280_v30, %v12287_v1 }
0x11be   : > { %v9887_v51 = vpop.trf.xlu1 }
0x11bf   : > { %v9891_v4 = vunpack.i.h.bf16 %v9887_v51  ;;  %v9888_v21 = vunpack.i.l.bf16 %v9887_v51  ;;  %v12347_v5 = vpop.trf.xlu0  ;;  %v9911_v51 = vunpack.i.l.bf16 %v12299_v59 }
0x11c1   : > { %v2177_v34 = vpack.c.bf16 %v9888_v21, %v9883_v3  ;;  %v2193_v10 = vpack.c.bf16 %v9891_v4, %v9886_v61  ;;  %v9909_v61 = vunpack.i.h.bf16 %v12295_v38  ;;  %v9906_v3 = vunpack.i.l.bf16 %v12295_v38 }
0x11c2   : > { %v9919_v21 = vunpack.i.h.bf16 %v12303_v13  ;;  %v9924_v38 = vunpack.i.h.bf16 %v12307_v50 }
0x11c3   : > { %8940 = vmatmul.mubr.msk.bf16.gmra.mrb[52].mxu1 %vm676_vm1, %v2177_v34  ;;  %8957 = vmatmul.mubr.msk.bf16.gmra.mrb[44].mxu0 %vm676_vm1, %v2193_v10  ;;  %v2179_v14 = vpack.c.bf16 %v9911_v51, %v9906_v3  ;;  %v2195_v4 = vpack.c.bf16 %v9914_v7, %v9909_v61  ;;  %v9916_v34 = vunpack.i.l.bf16 %v12303_v13  ;;  %v9921_v10 = vunpack.i.l.bf16 %v12307_v50 }
0x11c4   : > { %2372 = vmatprep.mubr.bf16.mxu1 %v16311_v47  ;;  %2619 = vmatprep.mubr.bf16.mxu0 %v16311_v47  ;;  %v2196_v27 = vpack.c.bf16 %v9924_v38, %v9919_v21  ;;  %v9926_v13 = vunpack.i.l.bf16 %v12311_v35  ;;  %v9934_v50 = vunpack.i.h.bf16 %v12315_v0  ;;  %v9946_v21 = vunpack.i.l.bf16 %v12327_v36 }
0x11c5   : > { %v2180_v59 = vpack.c.bf16 %v9921_v10, %v9916_v34  ;;  %v9951_v34 = vunpack.i.l.bf16 %v12331_v52  ;;  %v9959_v10 = vunpack.i.h.bf16 %v12335_v62 }
0x11c6   : > { %v2197_v51 = vpack.c.bf16 %v9934_v50, %v9929_v26  ;;  %v9969_v26 = vunpack.i.h.bf16 %v12343_v43 }
0x11cb   : > { %8941 = vmatmul.mubr.msk.bf16.gmra.mrb[56].mxu1 %vm676_vm1, %v2178_v2  ;;  %8958 = vmatmul.mubr.msk.bf16.gmra.mrb[48].mxu0 %vm676_vm1, %v2194_v28  ;;  %v9931_v2 = vunpack.i.l.bf16 %v12315_v0  ;;  %v2040_v28 = vadd.f32 %v12282_v6, %v12287_v1  ;;  %v9939_v0 = vunpack.i.h.bf16 %v12319_v37 }
0x11cc   : > { %2382 = vmatprep.mubr.bf16.mxu1 %v16311_v47  ;;  %2629 = vmatprep.mubr.bf16.mxu0 %v16311_v47 }
0x11cd   : > { %v2181_v7 = vpack.c.bf16 %v9931_v2, %v9926_v13  ;;  %v9966_v13 = vunpack.i.l.bf16 %v12343_v43 }
0x11d3   : > { %8942 = vmatmul.mubr.msk.bf16.gmra.mrb[60].mxu1 %vm676_vm1, %v2179_v14  ;;  %8959 = vmatmul.mubr.msk.bf16.gmra.mrb[52].mxu0 %vm676_vm1, %v2195_v4  ;;  %v9936_v14 = vunpack.i.l.bf16 %v12319_v37  ;;  %v9949_v4 = vunpack.i.h.bf16 %v12327_v36  ;;  %v9954_v37 = vunpack.i.h.bf16 %v12331_v52  ;;  %v9964_v36 = vunpack.i.h.bf16 %v12339_v40 }
0x11d4   : > { %2392 = vmatprep.mubr.bf16.mxu1 %v16311_v47  ;;  %2639 = vmatprep.mubr.bf16.mxu0 %v16311_v47 }
0x11d5   : > { %v2199_v38 = vpack.c.bf16 %v9954_v37, %v9949_v4 }
0x11db   : > { %v1948_v60 = vpop.permute.xlu1 %1947  ;;  %8943 = vmatmul.mubr.msk.bf16.gmra.mrb[64].mxu1 %vm676_vm1, %v2180_v59  ;;  %8960 = vmatmul.mubr.msk.bf16.gmra.mrb[56].mxu0 %vm676_vm1, %v2196_v27  ;;  %v9956_v59 = vunpack.i.l.bf16 %v12335_v62  ;;  %v9961_v27 = vunpack.i.l.bf16 %v12339_v40  ;;  %v9974_v62 = vunpack.i.h.bf16 %v12347_v5 }
0x11dc   : > { %v2036_v61 = vadd.f32 %v12278_v45, %v1948_v60  ;;  %v2034_v30 = vadd.f32 %v12276_v11, %v1948_v60  ;;  %2402 = vmatprep.mubr.bf16.mxu1 %v16311_v47  ;;  %2649 = vmatprep.mubr.bf16.mxu0 %v16311_v47  ;;  %v9944_v45 = vunpack.i.h.bf16 %v12323_v19  ;;  %v9941_v11 = vunpack.i.l.bf16 %v12323_v19 }
0x11dd   : > { %v2183_v19 = vpack.c.bf16 %v9951_v34, %v9946_v21  ;;  %v2184_v52 = vpack.c.bf16 %v9961_v27, %v9956_v59  ;;  %v9971_v60 = vunpack.i.l.bf16 %v12347_v5  ;;  %v2201_v50 = vpack.c.bf16 %v9974_v62, %v9969_v26 }
0x11de   : > { %v10057_v35 = vpack.i.bf16 %v2040_v28, %v2036_v61  ;;  %v9975_v3 = vpack.i.bf16 %v2038_v9, %v2034_v30  ;;  %v2182_v6 = vpack.c.bf16 %v9941_v11, %v9936_v14  ;;  %v2198_v1 = vpack.c.bf16 %v9944_v45, %v9939_v0 }
0x11df   : > { %v2200_v9 = vpack.c.bf16 %v9964_v36, %v9959_v10  ;;  %v2185_v40 = vpack.c.bf16 %v9971_v60, %v9966_v13 }
0x11e0   : > { %10058 = vxpose.xlu1.b32.start.end [1/1] (short) %v10057_v35, 128  ;;  %9976 = vxpose.xlu0.b32.start.end [1/1] (short) %v9975_v3, 128 }
0x11e3   : > { %8944 = vmatmul.mubr.msk.bf16.gmra.mrb[68].mxu1 %vm676_vm1, %v2181_v7  ;;  %8961 = vmatmul.mubr.msk.bf16.gmra.mrb[60].mxu0 %vm676_vm1, %v2197_v51 }
0x11e4   : > { %2412 = vmatprep.mubr.bf16.mxu1 %v16311_v47  ;;  %2659 = vmatprep.mubr.bf16.mxu0 %v16311_v47 }
0x11eb   : > { %8945 = vmatmul.mubr.msk.bf16.gmra.mrb[72].mxu1 %vm676_vm1, %v2182_v6  ;;  %8962 = vmatmul.mubr.msk.bf16.gmra.mrb[64].mxu0 %vm676_vm1, %v2198_v1 }
0x11ec   : > { %2422 = vmatprep.mubr.bf16.mxu1 %v16311_v47  ;;  %2669 = vmatprep.mubr.bf16.mxu0 %v16311_v47 }
0x11f3   : > { %8946 = vmatmul.mubr.msk.bf16.gmra.mrb[76].mxu1 %vm676_vm1, %v2183_v19  ;;  %8963 = vmatmul.mubr.msk.bf16.gmra.mrb[68].mxu0 %vm676_vm1, %v2199_v38 }
0x11f4   : > { %2432 = vmatprep.mubr.bf16.mxu1 %v16311_v47  ;;  %2679 = vmatprep.mubr.bf16.mxu0 %v16311_v47 }
0x11fb   : > { %8947 = vmatmul.mubr.msk.bf16.gmra.mrb[80].mxu1 %vm676_vm1, %v2184_v52  ;;  %8964 = vmatmul.mubr.msk.bf16.gmra.mrb[72].mxu0 %vm676_vm1, %v2200_v9 }
0x11fc   : > { %2442 = vmatprep.mubr.bf16.mxu1 %v16311_v47  ;;  %2689 = vmatprep.mubr.bf16.mxu0 %v16311_v47 }
0x1203   : > { %8948 = vmatmul.mubr.msk.bf16.gmra.mrb[84].mxu1 %vm676_vm1, %v2185_v40  ;;  %8965 = vmatmul.mubr.msk.bf16.gmra.mrb[76].mxu0 %vm676_vm1, %v2201_v50 }
0x125e   : > { %v12421_v2 = vpop.f32.mrb[24].mxu1  ;;  %v12423_v43 = vpop.f32.mrb[16].mxu0 }
0x125f   : > { %v12425_v28 = vpop.f32.mrb[25].mxu1  ;;  %v12427_v61 = vpop.f32.mrb[17].mxu0 }
0x1260   : > { %v12429_v5 = vpop.f32.mrb[26].mxu1  ;;  %v12431_v30 = vpop.f32.mrb[18].mxu0  ;;  %v2700_v35 = vmax.f32 %v12421_v2, %v12425_v28  ;;  %v2796_v3 = vmax.f32 %v12423_v43, %v12427_v61 }
0x1261   : > { %v12437_v7 = vpop.f32.mrb[27].mxu1  ;;  %v12439_v51 = vpop.f32.mrb[19].mxu0 }
0x1262   : > { %2701 = vmax.xlane.f32.xlu1 %v2700_v35  ;;  %v2703_v0 = vmax.f32 %v12429_v5, %v12437_v7  ;;  %v2799_v14 = vmax.f32 %v12431_v30, %v12439_v51  ;;  %v10059_v45 = vpop.trf.xlu1  ;;  %v9977_v11 = vpop.trf.xlu0 }
0x1263   : > { %v10060_v36 = vunpack.i.l.bf16 %v10059_v45  ;;  %v10063_v27 = vunpack.i.h.bf16 %v10059_v45  ;;  %v9981_v13 = vunpack.i.h.bf16 %v9977_v11  ;;  %v9978_v62 = vunpack.i.l.bf16 %v9977_v11 }
0x1264   : > { %2704 = vmax.xlane.f32.xlu0 %v2703_v0 }
0x1266   : > { %v12445_v6 = vpop.f32.mrb[20].mxu0  ;;  %2797 = vmax.xlane.f32.xlu1 %v2796_v3  ;;  %v12447_v1 = vpop.f32.mrb[28].mxu1 }
0x1267   : > { %v12449_v4 = vpop.f32.mrb[29].mxu1  ;;  %v12451_v21 = vpop.f32.mrb[21].mxu0 }
0x1268   : > { %v12453_v37 = vpop.f32.mrb[30].mxu1  ;;  %v12455_v34 = vpop.f32.mrb[22].mxu0  ;;  %v2706_v19 = vmax.f32 %v12447_v1, %v12449_v4  ;;  %v2802_v38 = vmax.f32 %v12445_v6, %v12451_v21 }
0x1269   : > { %v12461_v10 = vpop.f32.mrb[31].mxu1  ;;  %v12463_v59 = vpop.f32.mrb[23].mxu0 }
0x126a   : > { %2800 = vmax.xlane.f32.xlu1 %v2799_v14  ;;  %v2709_v52 = vmax.f32 %v12453_v37, %v12461_v10  ;;  %v2805_v9 = vmax.f32 %v12455_v34, %v12463_v59  ;;  %v10064_v26 = vpop.trf.xlu1  ;;  %v9982_v60 = vpop.trf.xlu0 }
0x126b   : > { %v10065_v40 = vunpack.i.l.bf16 %v10064_v26  ;;  %v10068_v50 = vunpack.i.h.bf16 %v10064_v26  ;;  %v9986_v35 = vunpack.i.h.bf16 %v9982_v60  ;;  %v9983_v3 = vunpack.i.l.bf16 %v9982_v60 }
0x126c   : > { %2710 = vmax.xlane.f32.xlu0 %v2709_v52 }
0x126d   : > { %v3796_v0 = vpack.c.bf16 %v10065_v40, %v10060_v36  ;;  %v3812_v33 = vpack.c.bf16 %v10068_v50, %v10063_v27  ;;  %v3788_v45 = vpack.c.bf16 %v9983_v3, %v9978_v62  ;;  %v3804_v17 = vpack.c.bf16 %v9986_v35, %v9981_v13 }
0x126e   : > { %v12469_v32 = vpop.f32.mrb[24].mxu0  ;;  %2707 = vmax.xlane.f32.xlu1 %v2706_v19  ;;  %v12471_v14 = vpop.f32.mrb[32].mxu1 }
0x126f   : > { %v12473_v16 = vpop.f32.mrb[33].mxu1  ;;  %v12475_v12 = vpop.f32.mrb[25].mxu0  ;;  %9086 = vmatprep.subr.bf16.mxu1 %v3796_v0  ;;  %9198 = vmatprep.subr.bf16.mxu0 %v3812_v33 }
0x1270   : > { %v12477_v11 = vpop.f32.mrb[26].mxu0  ;;  %2806 = vmax.xlane.f32.xlu0 %v2805_v9  ;;  %v12479_v52 = vpop.f32.mrb[34].mxu1  ;;  %v2712_v36 = vmax.f32 %v12471_v14, %v12473_v16  ;;  %v2808_v19 = vmax.f32 %v12469_v32, %v12475_v12  ;;  %9087 = vmatpush3.bf16.msra.mxu1 %v3788_v45 }
0x1271   : > { %v12485_v27 = vpop.f32.mrb[35].mxu1  ;;  %v12487_v26 = vpop.f32.mrb[27].mxu0  ;;  %9199 = vmatpush3.bf16.msra.mxu0 %v3804_v17 }
0x1272   : > { %2803 = vmax.xlane.f32.xlu1 %v2802_v38  ;;  %v2715_v33 = vmax.f32 %v12479_v52, %v12485_v27  ;;  %v2811_v9 = vmax.f32 %v12477_v11, %v12487_v26  ;;  %v10069_v13 = vpop.trf.xlu1  ;;  %v9987_v62 = vpop.trf.xlu0 }
0x1273   : > { %v10073_v8 = vunpack.i.h.bf16 %v10069_v13  ;;  %v9991_v58 = vunpack.i.h.bf16 %v9987_v62  ;;  %v9988_v57 = vunpack.i.l.bf16 %v9987_v62 }
0x1274   : > { %2716 = vmax.xlane.f32.xlu0 %v2715_v33  ;;  %v10070_v33 = vunpack.i.l.bf16 %v10069_v13 }
0x1276   : > { %v12493_v60 = vpop.f32.mrb[28].mxu0  ;;  %2713 = vmax.xlane.f32.xlu1 %v2712_v36  ;;  %v12495_v40 = vpop.f32.mrb[36].mxu1 }
0x1277   : > { %v12497_v50 = vpop.f32.mrb[37].mxu1  ;;  %v12499_v35 = vpop.f32.mrb[29].mxu0 }
0x1278   : > { %v12501_v17 = vpop.f32.mrb[30].mxu0  ;;  %2812 = vmax.xlane.f32.xlu0 %v2811_v9  ;;  %v12503_v38 = vpop.f32.mrb[38].mxu1  ;;  %v2718_v3 = vmax.f32 %v12495_v40, %v12497_v50  ;;  %v2814_v0 = vmax.f32 %v12493_v60, %v12499_v35 }
0x1279   : > { %v12509_v45 = vpop.f32.mrb[39].mxu1  ;;  %v12511_v36 = vpop.f32.mrb[31].mxu0 }
0x127a   : > { %2809 = vmax.xlane.f32.xlu1 %v2808_v19  ;;  %v2721_v31 = vmax.f32 %v12503_v38, %v12509_v45  ;;  %v2817_v9 = vmax.f32 %v12501_v17, %v12511_v36  ;;  %v10074_v29 = vpop.trf.xlu1  ;;  %v9992_v53 = vpop.trf.xlu0 }
0x127b   : > { %v10075_v49 = vunpack.i.l.bf16 %v10074_v29  ;;  %v10078_v48 = vunpack.i.h.bf16 %v10074_v29  ;;  %v9996_v54 = vunpack.i.h.bf16 %v9992_v53  ;;  %v9993_v46 = vunpack.i.l.bf16 %v9992_v53 }
0x127c   : > { %2722 = vmax.xlane.f32.xlu0 %v2721_v31 }
0x127d   : > { %v3797_v44 = vpack.c.bf16 %v10075_v49, %v10070_v33  ;;  %v3813_v25 = vpack.c.bf16 %v10078_v48, %v10073_v8  ;;  %v3789_v13 = vpack.c.bf16 %v9993_v46, %v9988_v57  ;;  %v3805_v23 = vpack.c.bf16 %v9996_v54, %v9991_v58 }
0x127e   : > { %v12517_v24 = vpop.f32.mrb[32].mxu0  ;;  %2719 = vmax.xlane.f32.xlu1 %v2718_v3  ;;  %v12519_v19 = vpop.f32.mrb[40].mxu1 }
0x127f   : > { %16316 = vst [vmem:[#allocation35_spill] sm:$0xff] %v12517_v24  ;;  %v12521_v22 = vpop.f32.mrb[41].mxu1  ;;  %v12523_v15 = vpop.f32.mrb[33].mxu0  ;;  %9088 = vmatprep.subr.bf16.mxu1 %v3797_v44  ;;  %9200 = vmatprep.subr.bf16.mxu0 %v3813_v25 }
0x1280   : > { %16317 = vst [vmem:[#allocation36_spill] sm:$0xff] %v12521_v22  ;;  %16318 = vst [vmem:[#allocation37_spill] sm:$0xff] %v12523_v15  ;;  %v12525_v62 = vpop.f32.mrb[34].mxu0  ;;  %2818 = vmax.xlane.f32.xlu0 %v2817_v9  ;;  %v12527_v29 = vpop.f32.mrb[42].mxu1  ;;  %v2724_v48 = vmax.f32 %v12519_v19, %v12521_v22  ;;  %v2820_v49 = vmax.f32 %v12517_v24, %v12523_v15  ;;  %9089 = vmatpush3.bf16.msra.mxu1 %v3789_v13 }
0x1281   : > { %16319 = vst [vmem:[#allocation38_spill] sm:$0xff] %v12525_v62  ;;  %v12533_v46 = vpop.f32.mrb[43].mxu1  ;;  %v12535_v53 = vpop.f32.mrb[35].mxu0  ;;  %9201 = vmatpush3.bf16.msra.mxu0 %v3805_v23 }
0x1282   : > { %16320 = vst [vmem:[#allocation39_spill] sm:$0xff] %v12535_v53  ;;  %2815 = vmax.xlane.f32.xlu1 %v2814_v0  ;;  %v2727_v25 = vmax.f32 %v12527_v29, %v12533_v46  ;;  %v2823_v44 = vmax.f32 %v12525_v62, %v12535_v53  ;;  %v10079_v54 = vpop.trf.xlu1  ;;  %v9997_v57 = vpop.trf.xlu0 }
0x1283   : > { %v10083_v41 = vunpack.i.h.bf16 %v10079_v54  ;;  %v10001_v63 = vunpack.i.h.bf16 %v9997_v57  ;;  %v9998_v42 = vunpack.i.l.bf16 %v9997_v57 }
0x1284   : > { %2728 = vmax.xlane.f32.xlu0 %v2727_v25  ;;  %v10080_v25 = vunpack.i.l.bf16 %v10079_v54 }
0x1286   : > { %v12541_v58 = vpop.f32.mrb[36].mxu0  ;;  %2725 = vmax.xlane.f32.xlu1 %v2724_v48  ;;  %v12543_v31 = vpop.f32.mrb[44].mxu1 }
0x1287   : > { %16321 = vst [vmem:[#allocation40_spill] sm:$0xff] %v12541_v58  ;;  %16322 = vst [vmem:[#allocation41_spill] sm:$0xff] %v12543_v31  ;;  %v12545_v8 = vpop.f32.mrb[45].mxu1  ;;  %v12547_v3 = vpop.f32.mrb[37].mxu0 }
0x1288   : > { %16323 = vst [vmem:[#allocation42_spill] sm:$0xff] %v12545_v8  ;;  %16324 = vst [vmem:[#allocation43_spill] sm:$0xff] %v12547_v3  ;;  %v12549_v23 = vpop.f32.mrb[38].mxu0  ;;  %2824 = vmax.xlane.f32.xlu0 %v2823_v44  ;;  %v12551_v0 = vpop.f32.mrb[46].mxu1  ;;  %v2730_v33 = vmax.f32 %v12543_v31, %v12545_v8  ;;  %v2826_v9 = vmax.f32 %v12541_v58, %v12547_v3 }
0x1289   : > { %16325 = vst [vmem:[#allocation44_spill] sm:$0xff] %v12549_v23  ;;  %16326 = vst [vmem:[#allocation45_spill] sm:$0xff] %v12551_v0  ;;  %v12557_v13 = vpop.f32.mrb[47].mxu1  ;;  %v12559_v48 = vpop.f32.mrb[39].mxu0 }
0x128a   : > { %16327 = vst [vmem:[#allocation46_spill] sm:$0xff] %v12557_v13  ;;  %16328 = vst [vmem:[#allocation47_spill] sm:$0xff] %v12559_v48  ;;  %2821 = vmax.xlane.f32.xlu1 %v2820_v49  ;;  %v2733_v39 = vmax.f32 %v12551_v0, %v12557_v13  ;;  %v2829_v44 = vmax.f32 %v12549_v23, %v12559_v48  ;;  %v10084_v56 = vpop.trf.xlu1  ;;  %v10002_v20 = vpop.trf.xlu0 }
0x128b   : > { %v10085_v18 = vunpack.i.l.bf16 %v10084_v56  ;;  %v10088_v55 = vunpack.i.h.bf16 %v10084_v56  ;;  %v10006_v47 = vunpack.i.h.bf16 %v10002_v20  ;;  %v10003_v3 = vunpack.i.l.bf16 %v10002_v20 }
0x128c   : > { %2734 = vmax.xlane.f32.xlu0 %v2733_v39 }
0x128d   : > { %v3798_v58 = vpack.c.bf16 %v10085_v18, %v10080_v25  ;;  %v3814_v8 = vpack.c.bf16 %v10088_v55, %v10083_v41  ;;  %v3790_v31 = vpack.c.bf16 %v10003_v3, %v9998_v42  ;;  %v3806_v13 = vpack.c.bf16 %v10006_v47, %v10001_v63 }
0x128e   : > { %2731 = vmax.xlane.f32.xlu1 %v2730_v33  ;;  %v12565_v54 = vpop.f32.mrb[48].mxu1  ;;  %v12567_v49 = vpop.f32.mrb[40].mxu0 }
0x128f   : > { %16329 = vst [vmem:[#allocation48_spill] sm:$0xff] %v12565_v54  ;;  %16330 = vst [vmem:[#allocation49_spill] sm:$0xff] %v12567_v49  ;;  %v12569_v0 = vpop.f32.mrb[49].mxu1  ;;  %v12571_v48 = vpop.f32.mrb[41].mxu0  ;;  %9090 = vmatprep.subr.bf16.mxu1 %v3798_v58  ;;  %9202 = vmatprep.subr.bf16.mxu0 %v3814_v8 }
0x1290   : > { %16331 = vst [vmem:[#allocation50_spill] sm:$0xff] %v12569_v0  ;;  %16332 = vst [vmem:[#allocation51_spill] sm:$0xff] %v12571_v48  ;;  %v2736_v39 = vmax.f32 %v12565_v54, %v12569_v0  ;;  %v12575_v56 = vpop.f32.mrb[50].mxu1  ;;  %v12577_v18 = vpop.f32.mrb[42].mxu0  ;;  %v2832_v41 = vmax.f32 %v12567_v49, %v12571_v48  ;;  %9091 = vmatpush3.bf16.msra.mxu1 %v3790_v31  ;;  %9203 = vmatpush3.bf16.msra.mxu0 %v3806_v13 }
0x1291   : > { %16333 = vst [vmem:[#allocation52_spill] sm:$0xff] %v12575_v56  ;;  %16334 = vst [vmem:[#allocation53_spill] sm:$0xff] %v12577_v18  ;;  %v12581_v55 = vpop.f32.mrb[43].mxu0  ;;  %v12583_v47 = vpop.f32.mrb[51].mxu1 }
0x1292   : > { %16335 = vst [vmem:[#allocation54_spill] sm:$0xff] %v12581_v55  ;;  %16336 = vst [vmem:[#allocation55_spill] sm:$0xff] %v12583_v47  ;;  %2827 = vmax.xlane.f32.xlu1 %v2826_v9  ;;  %v2739_v20 = vmax.f32 %v12575_v56, %v12583_v47  ;;  %v2835_v42 = vmax.f32 %v12577_v18, %v12581_v55  ;;  %v10089_v63 = vpop.trf.xlu1  ;;  %v10007_v57 = vpop.trf.xlu0 }
0x1293   : > { %v10090_v18 = vunpack.i.l.bf16 %v10089_v63  ;;  %v10093_v48 = vunpack.i.h.bf16 %v10089_v63  ;;  %v10011_v47 = vunpack.i.h.bf16 %v10007_v57  ;;  %v10008_v56 = vunpack.i.l.bf16 %v10007_v57 }
0x1296   : > { %2830 = vmax.xlane.f32.xlu1 %v2829_v44  ;;  %v12589_v58 = vpop.f32.mrb[52].mxu1  ;;  %v12591_v8 = vpop.f32.mrb[44].mxu0 }
0x1297   : > { %16337 = vst [vmem:[#allocation56_spill] sm:$0xff] %v12589_v58  ;;  %16338 = vst [vmem:[#allocation57_spill] sm:$0xff] %v12591_v8  ;;  %v12593_v31 = vpop.f32.mrb[53].mxu1  ;;  %v12595_v3 = vpop.f32.mrb[45].mxu0 }
0x1298   : > { %16339 = vst [vmem:[#allocation58_spill] sm:$0xff] %v12593_v31  ;;  %16340 = vst [vmem:[#allocation59_spill] sm:$0xff] %v12595_v3  ;;  %v2742_v33 = vmax.f32 %v12589_v58, %v12593_v31  ;;  %v12599_v9 = vpop.f32.mrb[54].mxu1  ;;  %v12601_v13 = vpop.f32.mrb[46].mxu0 }
0x1299   : > { %16341 = vst [vmem:[#allocation60_spill] sm:$0xff] %v12599_v9  ;;  %16342 = vst [vmem:[#allocation61_spill] sm:$0xff] %v12601_v13  ;;  %v12605_v55 = vpop.f32.mrb[55].mxu1  ;;  %v12607_v44 = vpop.f32.mrb[47].mxu0 }
0x129a   : > { %16343 = vst [vmem:[#allocation62_spill] sm:$0xff] %v12605_v55  ;;  %16344 = vst [vmem:[#allocation63_spill] sm:$0xff] %v12607_v44  ;;  %v2745_v49 = vmax.f32 %v12599_v9, %v12605_v55  ;;  %2737 = vmax.xlane.f32.xlu1 %v2736_v39  ;;  %v2841_v31 = vmax.f32 %v12601_v13, %v12607_v44  ;;  %v10094_v58 = vpop.trf.xlu1  ;;  %v10012_v0 = vpop.trf.xlu0 }
0x129b   : > { %v10095_v54 = vunpack.i.l.bf16 %v10094_v58  ;;  %v10098_v23 = vunpack.i.h.bf16 %v10094_v58  ;;  %v10016_v25 = vunpack.i.h.bf16 %v10012_v0  ;;  %v10013_v15 = vunpack.i.l.bf16 %v10012_v0 }
0x129c   : > { %2746 = vmax.xlane.f32.xlu0 %v2745_v49 }
0x129d   : > { %v3799_v24 = vpack.c.bf16 %v10095_v54, %v10090_v18  ;;  %v3815_v53 = vpack.c.bf16 %v10098_v23, %v10093_v48  ;;  %v3791_v39 = vpack.c.bf16 %v10013_v15, %v10008_v56  ;;  %v3807_v55 = vpack.c.bf16 %v10016_v25, %v10011_v47 }
0x129e   : > { %2740 = vmax.xlane.f32.xlu1 %v2739_v20  ;;  %v12613_v63 = vpop.f32.mrb[56].mxu1  ;;  %v12615_v62 = vpop.f32.mrb[48].mxu0 }
0x129f   : > { %16345 = vst [vmem:[#allocation64_spill] sm:$0xff] %v12613_v63  ;;  %16346 = vst [vmem:[#allocation65_spill] sm:$0xff] %v12615_v62  ;;  %v12617_v9 = vpop.f32.mrb[57].mxu1  ;;  %v12619_v44 = vpop.f32.mrb[49].mxu0  ;;  %9092 = vmatprep.subr.bf16.mxu1 %v3799_v24  ;;  %9204 = vmatprep.subr.bf16.mxu0 %v3815_v53 }
0x12a0   : > { %16347 = vst [vmem:[#allocation66_spill] sm:$0xff] %v12617_v9  ;;  %16348 = vst [vmem:[#allocation67_spill] sm:$0xff] %v12619_v44  ;;  %v2748_v49 = vmax.f32 %v12613_v63, %v12617_v9  ;;  %2842 = vmax.xlane.f32.xlu0 %v2841_v31  ;;  %v12623_v0 = vpop.f32.mrb[58].mxu1  ;;  %v12627_v48 = vpop.f32.mrb[50].mxu0  ;;  %9093 = vmatpush3.bf16.msra.mxu1 %v3791_v39 }
0x12a1   : > { %16349 = vst [vmem:[#allocation68_spill] sm:$0xff] %v12623_v0  ;;  %16350 = vst [vmem:[#allocation69_spill] sm:$0xff] %v12627_v48  ;;  %v12629_v15 = vpop.f32.mrb[59].mxu1  ;;  %v12631_v54 = vpop.f32.mrb[51].mxu0  ;;  %9205 = vmatpush3.bf16.msra.mxu0 %v3807_v55 }
0x12a2   : > { %16351 = vst [vmem:[#allocation70_spill] sm:$0xff] %v12629_v15  ;;  %16352 = vst [vmem:[#allocation71_spill] sm:$0xff] %v12631_v54  ;;  %v2751_v24 = vmax.f32 %v12623_v0, %v12629_v15  ;;  %2833 = vmax.xlane.f32.xlu1 %v2832_v41  ;;  %v2847_v53 = vmax.f32 %v12627_v48, %v12631_v54  ;;  %v10099_v56 = vpop.trf.xlu1  ;;  %v10017_v18 = vpop.trf.xlu0 }
0x12a3   : > { %v10103_v23 = vunpack.i.h.bf16 %v10099_v56  ;;  %v10018_v63 = vunpack.i.l.bf16 %v10017_v18 }
0x12a4   : > { %2752 = vmax.xlane.f32.xlu0 %v2751_v24  ;;  %v10100_v24 = vunpack.i.l.bf16 %v10099_v56  ;;  %v16361_v56 = vmax.f32 %v12591_v8, %v12595_v3 }
0x12a6   : > { %2836 = vmax.xlane.f32.xlu1 %v2835_v42  ;;  %v12637_v47 = vpop.f32.mrb[60].mxu1  ;;  %v12639_v20 = vpop.f32.mrb[52].mxu0 }
0x12a7   : > { %16353 = vst [vmem:[#allocation72_spill] sm:$0xff] %v12637_v47  ;;  %16354 = vst [vmem:[#allocation73_spill] sm:$0xff] %v12639_v20  ;;  %v12641_v57 = vpop.f32.mrb[61].mxu1  ;;  %v12643_v58 = vpop.f32.mrb[53].mxu0 }
0x12a8   : > { %16355 = vst [vmem:[#allocation74_spill] sm:$0xff] %v12641_v57  ;;  %16356 = vst [vmem:[#allocation75_spill] sm:$0xff] %v12643_v58  ;;  %v2754_v55 = vmax.f32 %v12637_v47, %v12641_v57  ;;  %2848 = vmax.xlane.f32.xlu0 %v2847_v53  ;;  %v12647_v41 = vpop.f32.mrb[62].mxu1  ;;  %v12651_v25 = vpop.f32.mrb[54].mxu0  ;;  %v10021_v47 = vunpack.i.h.bf16 %v10017_v18 }
0x12a9   : > { %16357 = vst [vmem:[#allocation76_spill] sm:$0xff] %v12647_v41  ;;  %16358 = vst [vmem:[#allocation77_spill] sm:$0xff] %v12651_v25  ;;  %v12653_v42 = vpop.f32.mrb[63].mxu1  ;;  %v12655_v39 = vpop.f32.mrb[55].mxu0 }
0x12aa   : > { %16359 = vst [vmem:[#allocation78_spill] sm:$0xff] %v12653_v42  ;;  %16360 = vst [vmem:[#allocation79_spill] sm:$0xff] %v12655_v39  ;;  %v2757_v9 = vmax.f32 %v12647_v41, %v12653_v42  ;;  %2743 = vmax.xlane.f32.xlu1 %v2742_v33  ;;  %v2853_v53 = vmax.f32 %v12651_v25, %v12655_v39  ;;  %v10104_v57 = vpop.trf.xlu1  ;;  %v10022_v54 = vpop.trf.xlu0 }
0x12ab   : > { %v10105_v31 = vunpack.i.l.bf16 %v10104_v57  ;;  %v10108_v48 = vunpack.i.h.bf16 %v10104_v57  ;;  %v10026_v15 = vunpack.i.h.bf16 %v10022_v54  ;;  %v10023_v0 = vunpack.i.l.bf16 %v10022_v54 }
0x12ac   : > { %2758 = vmax.xlane.f32.xlu0 %v2757_v9  ;;  %v16370_v57 = vmax.f32 %v12615_v62, %v12619_v44 }
0x12ad   : > { %v3800_v13 = vpack.c.bf16 %v10105_v31, %v10100_v24  ;;  %v3816_v22 = vpack.c.bf16 %v10108_v48, %v10103_v23  ;;  %v3792_v39 = vpack.c.bf16 %v10023_v0, %v10018_v63  ;;  %v3808_v25 = vpack.c.bf16 %v10026_v15, %v10021_v47 }
0x12ae   : > { %2839 = vmax.xlane.f32.xlu1 %v16361_v56  ;;  %v12664_v42 = vpop.f32.mrb[64].mxu1  ;;  %v12666_v33 = vpop.f32.mrb[56].mxu0 }
0x12af   : > { %16362 = vst [vmem:[#allocation80_spill] sm:$0xff] %v12664_v42  ;;  %16363 = vst [vmem:[#allocation81_spill] sm:$0xff] %v12666_v33  ;;  %v12668_v41 = vpop.f32.mrb[65].mxu1  ;;  %v12670_v18 = vpop.f32.mrb[57].mxu0  ;;  %9094 = vmatprep.subr.bf16.mxu1 %v3800_v13  ;;  %9206 = vmatprep.subr.bf16.mxu0 %v3816_v22 }
0x12b0   : > { %16364 = vst [vmem:[#allocation82_spill] sm:$0xff] %v12668_v41  ;;  %16365 = vst [vmem:[#allocation83_spill] sm:$0xff] %v12670_v18  ;;  %v2760_v9 = vmax.f32 %v12664_v42, %v12668_v41  ;;  %2854 = vmax.xlane.f32.xlu0 %v2853_v53  ;;  %v12674_v23 = vpop.f32.mrb[66].mxu1  ;;  %v12678_v54 = vpop.f32.mrb[58].mxu0  ;;  %9095 = vmatpush3.bf16.msra.mxu1 %v3792_v39 }
0x12b1   : > { %16366 = vst [vmem:[#allocation84_spill] sm:$0xff] %v12674_v23  ;;  %16367 = vst [vmem:[#allocation85_spill] sm:$0xff] %v12678_v54  ;;  %v12680_v63 = vpop.f32.mrb[67].mxu1  ;;  %v12682_v0 = vpop.f32.mrb[59].mxu0  ;;  %9207 = vmatpush3.bf16.msra.mxu0 %v3808_v25 }
0x12b2   : > { %16368 = vst [vmem:[#allocation86_spill] sm:$0xff] %v12680_v63  ;;  %16369 = vst [vmem:[#allocation87_spill] sm:$0xff] %v12682_v0  ;;  %v2763_v22 = vmax.f32 %v12674_v23, %v12680_v63  ;;  %2749 = vmax.xlane.f32.xlu1 %v2748_v49  ;;  %v2859_v13 = vmax.f32 %v12678_v54, %v12682_v0  ;;  %v10109_v15 = vpop.trf.xlu1  ;;  %v10027_v47 = vpop.trf.xlu0 }
0x12b3   : > { %v10110_v41 = vunpack.i.l.bf16 %v10109_v15  ;;  %v10113_v42 = vunpack.i.h.bf16 %v10109_v15  ;;  %v10028_v54 = vunpack.i.l.bf16 %v10027_v47  ;;  %v16377_v15 = vmax.f32 %v12639_v20, %v12643_v58 }
0x12b4   : > { %2764 = vmax.xlane.f32.xlu0 %v2763_v22 }
0x12b6   : > { %2845 = vmax.xlane.f32.xlu1 %v16370_v57  ;;  %v12691_v31 = vpop.f32.mrb[68].mxu1  ;;  %v12693_v39 = vpop.f32.mrb[60].mxu0 }
0x12b7   : > { %16371 = vst [vmem:[#allocation88_spill] sm:$0xff] %v12691_v31  ;;  %v12695_v24 = vpop.f32.mrb[69].mxu1  ;;  %v12697_v25 = vpop.f32.mrb[61].mxu0 }
0x12b8   : > { %16372 = vst [vmem:[#allocation89_spill] sm:$0xff] %v12695_v24  ;;  %v2766_v49 = vmax.f32 %v12691_v31, %v12695_v24  ;;  %2860 = vmax.xlane.f32.xlu0 %v2859_v13  ;;  %v12701_v53 = vpop.f32.mrb[70].mxu1  ;;  %v12705_v22 = vpop.f32.mrb[62].mxu0  ;;  %v10031_v31 = vunpack.i.h.bf16 %v10027_v47 }
0x12b9   : > { %16373 = vst [vmem:[#allocation90_spill] sm:$0xff] %v12701_v53  ;;  %16374 = vst [vmem:[#allocation91_spill] sm:$0xff] %v12705_v22  ;;  %v12707_v57 = vpop.f32.mrb[71].mxu1  ;;  %v12709_v48 = vpop.f32.mrb[63].mxu0 }
0x12ba   : > { %16375 = vst [vmem:[#allocation92_spill] sm:$0xff] %v12707_v57  ;;  %16376 = vst [vmem:[#allocation93_spill] sm:$0xff] %v12709_v48  ;;  %v2769_v0 = vmax.f32 %v12701_v53, %v12707_v57  ;;  %2755 = vmax.xlane.f32.xlu1 %v2754_v55  ;;  %v2865_v13 = vmax.f32 %v12705_v22, %v12709_v48  ;;  %v10114_v24 = vpop.trf.xlu1  ;;  %v10032_v63 = vpop.trf.xlu0 }
0x12bb   : > { %v10115_v56 = vunpack.i.l.bf16 %v10114_v24  ;;  %v10118_v23 = vunpack.i.h.bf16 %v10114_v24  ;;  %v10036_v44 = vunpack.i.h.bf16 %v10032_v63  ;;  %v10033_v62 = vunpack.i.l.bf16 %v10032_v63 }
0x12bc   : > { %2770 = vmax.xlane.f32.xlu0 %v2769_v0 }
0x12bd   : > { %v3801_v3 = vpack.c.bf16 %v10115_v56, %v10110_v41  ;;  %v3817_v8 = vpack.c.bf16 %v10118_v23, %v10113_v42  ;;  %v3793_v48 = vpack.c.bf16 %v10033_v62, %v10028_v54  ;;  %v3809_v22 = vpack.c.bf16 %v10036_v44, %v10031_v31 }
0x12be   : > { %2851 = vmax.xlane.f32.xlu1 %v16377_v15  ;;  %v12718_v57 = vpop.f32.mrb[72].mxu1  ;;  %v12720_v55 = vpop.f32.mrb[64].mxu0  ;;  %v16386_v31 = vmax.f32 %v12666_v33, %v12670_v18 }
0x12bf   : > { %16378 = vst [vmem:[#allocation94_spill] sm:$0xff] %v12718_v57  ;;  %16379 = vst [vmem:[#allocation95_spill] sm:$0xff] %v12720_v55  ;;  %v12722_v53 = vpop.f32.mrb[73].mxu1  ;;  %v12724_v47 = vpop.f32.mrb[65].mxu0  ;;  %9096 = vmatprep.subr.bf16.mxu1 %v3801_v3  ;;  %9208 = vmatprep.subr.bf16.mxu0 %v3817_v8 }
0x12c0   : > { %16380 = vst [vmem:[#allocation96_spill] sm:$0xff] %v12722_v53  ;;  %16381 = vst [vmem:[#allocation97_spill] sm:$0xff] %v12724_v47  ;;  %v2772_v41 = vmax.f32 %v12718_v57, %v12722_v53  ;;  %2866 = vmax.xlane.f32.xlu0 %v2865_v13  ;;  %v12728_v42 = vpop.f32.mrb[74].mxu1  ;;  %v12732_v63 = vpop.f32.mrb[66].mxu0  ;;  %9097 = vmatpush3.bf16.msra.mxu1 %v3793_v48 }
0x12c1   : > { %16382 = vst [vmem:[#allocation98_spill] sm:$0xff] %v12728_v42  ;;  %16383 = vst [vmem:[#allocation99_spill] sm:$0xff] %v12732_v63  ;;  %v12734_v62 = vpop.f32.mrb[75].mxu1  ;;  %v12736_v44 = vpop.f32.mrb[67].mxu0  ;;  %9209 = vmatpush3.bf16.msra.mxu0 %v3809_v22 }
0x12c2   : > { %16384 = vst [vmem:[#allocation100_spill] sm:$0xff] %v12734_v62  ;;  %16385 = vst [vmem:[#allocation101_spill] sm:$0xff] %v12736_v44  ;;  %v2775_v8 = vmax.f32 %v12728_v42, %v12734_v62  ;;  %2761 = vmax.xlane.f32.xlu1 %v2760_v9  ;;  %v2871_v3 = vmax.f32 %v12732_v63, %v12736_v44  ;;  %v10119_v54 = vpop.trf.xlu1  ;;  %v10037_v0 = vpop.trf.xlu0 }
0x12c3   : > { %v10120_v53 = vunpack.i.l.bf16 %v10119_v54  ;;  %v10123_v57 = vunpack.i.h.bf16 %v10119_v54  ;;  %v10038_v63 = vunpack.i.l.bf16 %v10037_v0  ;;  %v16393_v54 = vmax.f32 %v12693_v39, %v12697_v25 }
0x12c4   : > { %2776 = vmax.xlane.f32.xlu0 %v2775_v8 }
0x12c6   : > { %2857 = vmax.xlane.f32.xlu1 %v16386_v31  ;;  %v12745_v48 = vpop.f32.mrb[76].mxu1  ;;  %v12747_v24 = vpop.f32.mrb[68].mxu0 }
0x12c7   : > { %16387 = vst [vmem:[#allocation102_spill] sm:$0xff] %v12745_v48  ;;  %v12749_v56 = vpop.f32.mrb[77].mxu1  ;;  %v12751_v22 = vpop.f32.mrb[69].mxu0 }
0x12c8   : > { %16388 = vst [vmem:[#allocation103_spill] sm:$0xff] %v12749_v56  ;;  %v2778_v9 = vmax.f32 %v12745_v48, %v12749_v56  ;;  %2872 = vmax.xlane.f32.xlu0 %v2871_v3  ;;  %v12755_v13 = vpop.f32.mrb[78].mxu1  ;;  %v12759_v8 = vpop.f32.mrb[70].mxu0  ;;  %v10041_v48 = vunpack.i.h.bf16 %v10037_v0 }
0x12c9   : > { %16389 = vst [vmem:[#allocation104_spill] sm:$0xff] %v12755_v13  ;;  %16390 = vst [vmem:[#allocation105_spill] sm:$0xff] %v12759_v8  ;;  %v12761_v31 = vpop.f32.mrb[79].mxu1  ;;  %v12763_v23 = vpop.f32.mrb[71].mxu0 }
0x12ca   : > { %16391 = vst [vmem:[#allocation106_spill] sm:$0xff] %v12761_v31  ;;  %16392 = vst [vmem:[#allocation107_spill] sm:$0xff] %v12763_v23  ;;  %v2781_v44 = vmax.f32 %v12755_v13, %v12761_v31  ;;  %2767 = vmax.xlane.f32.xlu1 %v2766_v49  ;;  %v2877_v3 = vmax.f32 %v12759_v8, %v12763_v23  ;;  %v10124_v56 = vpop.trf.xlu1  ;;  %v10042_v62 = vpop.trf.xlu0 }
0x12cb   : > { %v10125_v15 = vunpack.i.l.bf16 %v10124_v56  ;;  %v10128_v42 = vunpack.i.h.bf16 %v10124_v56  ;;  %v10046_v18 = vunpack.i.h.bf16 %v10042_v62  ;;  %v10043_v33 = vunpack.i.l.bf16 %v10042_v62 }
0x12cc   : > { %2782 = vmax.xlane.f32.xlu0 %v2781_v44 }
0x12cd   : > { %v3802_v58 = vpack.c.bf16 %v10125_v15, %v10120_v53  ;;  %v3818_v20 = vpack.c.bf16 %v10128_v42, %v10123_v57  ;;  %v3794_v23 = vpack.c.bf16 %v10043_v33, %v10038_v63  ;;  %v3810_v8 = vpack.c.bf16 %v10046_v18, %v10041_v48 }
0x12ce   : > { %2863 = vmax.xlane.f32.xlu1 %v16393_v54  ;;  %v12772_v31 = vpop.f32.mrb[80].mxu1  ;;  %v12774_v49 = vpop.f32.mrb[72].mxu0  ;;  %v16402_v48 = vmax.f32 %v12720_v55, %v12724_v47 }
0x12cf   : > { %16394 = vst [vmem:[#allocation108_spill] sm:$0xff] %v12772_v31  ;;  %16395 = vst [vmem:[#allocation109_spill] sm:$0xff] %v12774_v49  ;;  %v12776_v13 = vpop.f32.mrb[81].mxu1  ;;  %v12778_v0 = vpop.f32.mrb[73].mxu0  ;;  %9098 = vmatprep.subr.bf16.mxu1 %v3802_v58  ;;  %9210 = vmatprep.subr.bf16.mxu0 %v3818_v20 }
0x12d0   : > { %16396 = vst [vmem:[#allocation110_spill] sm:$0xff] %v12776_v13  ;;  %16397 = vst [vmem:[#allocation111_spill] sm:$0xff] %v12778_v0  ;;  %2878 = vmax.xlane.f32.xlu0 %v2877_v3  ;;  %v2784_v53 = vmax.f32 %v12772_v31, %v12776_v13  ;;  %v2880_v57 = vmax.f32 %v12774_v49, %v12778_v0  ;;  %v12784_v42 = vpop.f32.mrb[74].mxu0  ;;  %v12786_v62 = vpop.f32.mrb[82].mxu1  ;;  %9099 = vmatpush3.bf16.msra.mxu1 %v3794_v23 }
0x12d1   : > { %16398 = vst [vmem:[#allocation112_spill] sm:$0xff] %v12784_v42  ;;  %16399 = vst [vmem:[#allocation113_spill] sm:$0xff] %v12786_v62  ;;  %v12788_v33 = vpop.f32.mrb[83].mxu1  ;;  %v12790_v18 = vpop.f32.mrb[75].mxu0  ;;  %9211 = vmatpush3.bf16.msra.mxu0 %v3810_v8 }
0x12d2   : > { %16400 = vst [vmem:[#allocation114_spill] sm:$0xff] %v12788_v33  ;;  %16401 = vst [vmem:[#allocation115_spill] sm:$0xff] %v12790_v18  ;;  %2773 = vmax.xlane.f32.xlu1 %v2772_v41  ;;  %v2787_v20 = vmax.f32 %v12786_v62, %v12788_v33  ;;  %v2883_v58 = vmax.f32 %v12784_v42, %v12790_v18  ;;  %v10129_v63 = vpop.trf.xlu1  ;;  %v10047_v44 = vpop.trf.xlu0 }
0x12d3   : > { %v10130_v49 = vunpack.i.l.bf16 %v10129_v63  ;;  %v10133_v33 = vunpack.i.h.bf16 %v10129_v63  ;;  %v10048_v18 = vunpack.i.l.bf16 %v10047_v44  ;;  %v16408_v63 = vmax.f32 %v12747_v24, %v12751_v22 }
0x12d4   : > { %2785 = vmax.xlane.f32.xlu0 %v2784_v53 }
0x12d6   : > { %2869 = vmax.xlane.f32.xlu1 %v16402_v48  ;;  %v12799_v23 = vpop.f32.mrb[84].mxu1  ;;  %v12801_v56 = vpop.f32.mrb[76].mxu0 }
0x12d7   : > { %16403 = vst [vmem:[#allocation116_spill] sm:$0xff] %v12799_v23  ;;  %16404 = vst [vmem:[#allocation117_spill] sm:$0xff] %v12801_v56  ;;  %v12803_v15 = vpop.f32.mrb[85].mxu1  ;;  %v12805_v41 = vpop.f32.mrb[77].mxu0 }
0x12d8   : > { %16405 = vst [vmem:[#allocation118_spill] sm:$0xff] %v12803_v15  ;;  %16406 = vst [vmem:[#allocation119_spill] sm:$0xff] %v12805_v41  ;;  %v2790_v8 = vmax.f32 %v12799_v23, %v12803_v15  ;;  %2884 = vmax.xlane.f32.xlu0 %v2883_v58  ;;  %v12809_v3 = vpop.f32.mrb[86].mxu1  ;;  %v2886_v54 = vmax.f32 %v12801_v56, %v12805_v41  ;;  %v12813_v53 = vpop.f32.mrb[78].mxu0  ;;  %v10051_v23 = vunpack.i.h.bf16 %v10047_v44 }
0x12d9   : > { %v12815_v48 = vpop.f32.mrb[87].mxu1  ;;  %v12817_v0 = vpop.f32.mrb[79].mxu0 }
0x12da   : > { %16407 = vst [vmem:[#allocation120_spill] sm:$0xff] %v12815_v48  ;;  %v2793_v62 = vmax.f32 %v12809_v3, %v12815_v48  ;;  %2779 = vmax.xlane.f32.xlu1 %v2778_v9  ;;  %v2889_v58 = vmax.f32 %v12813_v53, %v12817_v0  ;;  %v10134_v15 = vpop.trf.xlu1  ;;  %v10052_v56 = vpop.trf.xlu0 }
0x12db   : > { %v10135_v42 = vunpack.i.l.bf16 %v10134_v15  ;;  %v10138_v41 = vunpack.i.h.bf16 %v10134_v15  ;;  %v10056_v13 = vunpack.i.h.bf16 %v10052_v56  ;;  %v10053_v31 = vunpack.i.l.bf16 %v10052_v56 }
0x12dc   : > { %2794 = vmax.xlane.f32.xlu0 %v2793_v62 }
0x12dd   : > { %v3803_v47 = vpack.c.bf16 %v10135_v42, %v10130_v49  ;;  %v3819_v55 = vpack.c.bf16 %v10138_v41, %v10133_v33  ;;  %v3795_v48 = vpack.c.bf16 %v10053_v31, %v10048_v18  ;;  %v3811_v9 = vpack.c.bf16 %v10056_v13, %v10051_v23 }
0x12de   : > { %2875 = vmax.xlane.f32.xlu1 %v16408_v63 }
0x12df   : > { %9100 = vmatprep.subr.bf16.mxu1 %v3803_v47  ;;  %9212 = vmatprep.subr.bf16.mxu0 %v3819_v55 }
0x12e0   : > { %2890 = vmax.xlane.f32.xlu0 %v2889_v58  ;;  %9101 = vmatpush3.bf16.msra.mxu1 %v3795_v48 }
0x12e1   : > { %9213 = vmatpush3.bf16.msra.mxu0 %v3811_v9 }
0x12e2   : > { %2788 = vmax.xlane.f32.xlu1 %v2787_v20 }
0x12e6   : > { %2881 = vmax.xlane.f32.xlu1 %v2880_v57 }
0x12ea   : > { %2791 = vmax.xlane.f32.xlu1 %v2790_v8 }
0x12ee   : > { %2887 = vmax.xlane.f32.xlu1 %v2886_v54 }
0x12ef   : > { %v2702_v62 = vpop.xlane.xlu1 %2701 }
0x12f0   : > { %v2892_v44 = vsub.f32 %v12421_v2, %v2702_v62  ;;  %v2893_v49 = vsub.f32 %v12425_v28, %v2702_v62 }
0x12f1   : > { %v2705_v42 = vpop.xlane.xlu0 %2704 }
0x12f2   : > { %v3020_v33 = vmul.f32 1.442695, %v2892_v44  ;;  %v3022_v56 = vmul.f32 1.442695, %v2893_v49  ;;  %v2894_v31 = vsub.f32 %v12429_v5, %v2705_v42  ;;  %v2895_v47 = vsub.f32 %v12437_v7, %v2705_v42 }
0x12f3   : > { %v2798_v55 = vpop.xlane.xlu1 %2797 }
0x12f4   : > { %10738 = vpow2.f32 %v3020_v33  ;;  %v3024_v13 = vmul.f32 1.442695, %v2894_v31  ;;  %v3026_v18 = vmul.f32 1.442695, %v2895_v47  ;;  %v2956_v57 = vsub.f32 %v12423_v43, %v2798_v55 }
0x12f5   : > { %10740 = vpow2.f32 %v3022_v56  ;;  %v2957_v20 = vsub.f32 %v12427_v61, %v2798_v55 }
0x12f6   : > { %10742 = vpow2.f32 %v3024_v13  ;;  %v3148_v2 = vmul.f32 1.442695, %v2956_v57 }
0x12f7   : > { %10744 = vpow2.f32 %v3026_v18  ;;  %v3150_v28 = vmul.f32 1.442695, %v2957_v20  ;;  %v2801_v23 = vpop.xlane.xlu1 %2800 }
0x12f8   : > { %10746 = vpow2.f32 %v3148_v2  ;;  %v2958_v15 = vsub.f32 %v12431_v30, %v2801_v23  ;;  %v2959_v5 = vsub.f32 %v12439_v51, %v2801_v23 }
0x12f9   : > { %10748 = vpow2.f32 %v3150_v28  ;;  %v2711_v7 = vpop.xlane.xlu0 %2710 }
0x12fa   : > { %v3152_v41 = vmul.f32 1.442695, %v2958_v15  ;;  %v3154_v8 = vmul.f32 1.442695, %v2959_v5  ;;  %v2898_v54 = vsub.f32 %v12453_v37, %v2711_v7  ;;  %v2899_v43 = vsub.f32 %v12461_v10, %v2711_v7 }
0x12fb   : > { %v2708_v48 = vpop.xlane.xlu1 %2707 }
0x12fc   : > { %10750 = vpow2.f32 %v3152_v41  ;;  %v3032_v61 = vmul.f32 1.442695, %v2898_v54  ;;  %v3034_v58 = vmul.f32 1.442695, %v2899_v43  ;;  %v2896_v63 = vsub.f32 %v12447_v1, %v2708_v48 }
0x12fd   : > { %10752 = vpow2.f32 %v3154_v8  ;;  %v2897_v9 = vsub.f32 %v12449_v4, %v2708_v48  ;;  %v2807_v30 = vpop.xlane.xlu0 %2806 }
0x12fe   : > { %v12838_v62 = vpop.eup %10738  ;;  %10754 = vpow2.f32 %v3032_v61  ;;  %v3028_v51 = vmul.f32 1.442695, %v2896_v63  ;;  %v2962_v44 = vsub.f32 %v12455_v34, %v2807_v30  ;;  %v2963_v37 = vsub.f32 %v12463_v59, %v2807_v30 }
0x12ff   : > { %v12842_v49 = vpop.eup %10740  ;;  %10756 = vpow2.f32 %v3034_v58  ;;  %v3030_v10 = vmul.f32 1.442695, %v2897_v9  ;;  %v2804_v42 = vpop.xlane.xlu1 %2803 }
0x1300   : > { %v12844_v33 = vpop.eup %10742  ;;  %10758 = vpow2.f32 %v3028_v51  ;;  %v3160_v1 = vmul.f32 1.442695, %v2962_v44  ;;  %v3162_v56 = vmul.f32 1.442695, %v2963_v37  ;;  %v2960_v4 = vsub.f32 %v12445_v6, %v2804_v42 }
0x1301   : > { %v12847_v31 = vpop.eup %10744  ;;  %10760 = vpow2.f32 %v3030_v10  ;;  %v2961_v47 = vsub.f32 %v12451_v21, %v2804_v42  ;;  %v2717_v34 = vpop.xlane.xlu0 %2716  ;;  %v3276_v59 = vadd.f32 %v12842_v49, %v12838_v62 }
0x1302   : > { %v12852_v55 = vpop.eup %10746  ;;  %10762 = vpow2.f32 %v3160_v1  ;;  %v3156_v13 = vmul.f32 1.442695, %v2960_v4  ;;  %v2902_v18 = vsub.f32 %v12479_v52, %v2717_v34  ;;  %v2903_v57 = vsub.f32 %v12485_v27, %v2717_v34 }
0x1303   : > { %v12856_v20 = vpop.eup %10748  ;;  %10764 = vpow2.f32 %v3162_v56  ;;  %v3158_v6 = vmul.f32 1.442695, %v2961_v47  ;;  %3277 = vadd.xlane.f32.xlu1 %v3276_v59  ;;  %v2714_v2 = vpop.xlane.xlu1 %2713  ;;  %v3279_v21 = vadd.f32 %v12847_v31, %v12844_v33 }
0x1304   : > { %10766 = vpow2.f32 %v3156_v13  ;;  %v3040_v28 = vmul.f32 1.442695, %v2902_v18  ;;  %v3042_v23 = vmul.f32 1.442695, %v2903_v57  ;;  %v2900_v15 = vsub.f32 %v12471_v14, %v2714_v2 }
0x1305   : > { %10768 = vpow2.f32 %v3158_v6  ;;  %v2901_v5 = vsub.f32 %v12473_v16, %v2714_v2  ;;  %3280 = vadd.xlane.f32.xlu0 %v3279_v21  ;;  %v2813_v52 = vpop.xlane.xlu0 %2812  ;;  %v3372_v27 = vadd.f32 %v12856_v20, %v12852_v55 }
0x1306   : > { %v12864_v7 = vpop.eup %10750  ;;  %10770 = vpow2.f32 %v3040_v28  ;;  %v3036_v41 = vmul.f32 1.442695, %v2900_v15  ;;  %v2966_v8 = vsub.f32 %v12477_v11, %v2813_v52  ;;  %v2967_v54 = vsub.f32 %v12487_v26, %v2813_v52 }
0x1307   : > { %v12868_v43 = vpop.eup %10752  ;;  %10772 = vpow2.f32 %v3042_v23  ;;  %v3038_v14 = vmul.f32 1.442695, %v2901_v5  ;;  %3373 = vadd.xlane.f32.xlu1 %v3372_v27  ;;  %v2810_v48 = vpop.xlane.xlu1 %2809 }
0x1308   : > { %v12870_v16 = vpop.eup %10754  ;;  %10774 = vpow2.f32 %v3036_v41  ;;  %v3168_v61 = vmul.f32 1.442695, %v2966_v8  ;;  %v3170_v58 = vmul.f32 1.442695, %v2967_v54  ;;  %v2964_v63 = vsub.f32 %v12469_v32, %v2810_v48 }
0x1309   : > { %v12873_v9 = vpop.eup %10756  ;;  %10776 = vpow2.f32 %v3038_v14  ;;  %v2965_v11 = vsub.f32 %v12475_v12, %v2810_v48  ;;  %v2723_v30 = vpop.xlane.xlu0 %2722  ;;  %v3375_v26 = vadd.f32 %v12868_v43, %v12864_v7 }
0x130a   : > { %v12878_v51 = vpop.eup %10758  ;;  %10778 = vpow2.f32 %v3168_v61  ;;  %v3164_v44 = vmul.f32 1.442695, %v2964_v63  ;;  %v2906_v37 = vsub.f32 %v12503_v38, %v2723_v30  ;;  %v2907_v10 = vsub.f32 %v12509_v45, %v2723_v30 }
0x130b   : > { %v12882_v42 = vpop.eup %10760  ;;  %10780 = vpow2.f32 %v3170_v58  ;;  %v3166_v32 = vmul.f32 1.442695, %v2965_v11  ;;  %3376 = vadd.xlane.f32.xlu0 %v3375_v26  ;;  %v2720_v1 = vpop.xlane.xlu1 %2719  ;;  %v3285_v13 = vadd.f32 %v12873_v9, %v12870_v16 }
0x130c   : > { %v12884_v56 = vpop.eup %10762  ;;  %10782 = vpow2.f32 %v3164_v44  ;;  %v3048_v12 = vmul.f32 1.442695, %v2906_v37  ;;  %v3050_v4 = vmul.f32 1.442695, %v2907_v10  ;;  %v2904_v47 = vsub.f32 %v12495_v40, %v2720_v1 }
0x130d   : > { %v12887_v34 = vpop.eup %10764  ;;  %10784 = vpow2.f32 %v3166_v32  ;;  %v2905_v38 = vsub.f32 %v12497_v50, %v2720_v1  ;;  %v2819_v59 = vpop.xlane.xlu0 %2818  ;;  %v3282_v45 = vadd.f32 %v12882_v42, %v12878_v51 }
0x130e   : > { %v12894_v18 = vpop.eup %10766  ;;  %10786 = vpow2.f32 %v3048_v12  ;;  %v3044_v57 = vmul.f32 1.442695, %v2904_v47  ;;  %v2970_v6 = vsub.f32 %v12501_v17, %v2819_v59  ;;  %v2971_v40 = vsub.f32 %v12511_v36, %v2819_v59  ;;  %v16410_v12 = vld [vmem:[#allocation38_spill] sm:$0xff]  ;;  %v16411_v47 = vld [vmem:[#allocation39_spill] sm:$0xff] }
0x130f   : > { %v12898_v2 = vpop.eup %10768  ;;  %10788 = vpow2.f32 %v3050_v4  ;;  %v3046_v21 = vmul.f32 1.442695, %v2905_v38  ;;  %3283 = vadd.xlane.f32.xlu1 %v3282_v45  ;;  %3286 = vadd.xlane.f32.xlu0 %v3285_v13  ;;  %v2816_v50 = vpop.xlane.xlu1 %2815  ;;  %v3381_v41 = vadd.f32 %v12887_v34, %v12884_v56 }
0x1310   : > { %v12900_v28 = vpop.eup %10770  ;;  %10790 = vpow2.f32 %v3044_v57  ;;  %v3176_v23 = vmul.f32 1.442695, %v2970_v6  ;;  %v3178_v15 = vmul.f32 1.442695, %v2971_v40  ;;  %v2968_v5 = vsub.f32 %v12493_v60, %v2816_v50  ;;  %v16412_v40 = vld [vmem:[#allocation35_spill] sm:$0xff] }
0x1311   : > { %v12903_v52 = vpop.eup %10772  ;;  %10792 = vpow2.f32 %v3046_v21  ;;  %v2969_v17 = vsub.f32 %v12499_v35, %v2816_v50  ;;  %v2729_v36 = vpop.xlane.xlu0 %2728  ;;  %v3378_v27 = vadd.f32 %v12898_v2, %v12894_v18 }
0x1312   : > { %v12910_v8 = vpop.eup %10774  ;;  %10794 = vpow2.f32 %v3176_v23  ;;  %v3172_v54 = vmul.f32 1.442695, %v2968_v5  ;;  %v2910_v14 = vsub.f32 %v12527_v29, %v2729_v36  ;;  %v2911_v60 = vsub.f32 %v12533_v46, %v2729_v36  ;;  %v16409_v29 = vld [vmem:[#allocation36_spill] sm:$0xff]  ;;  %v16413_v23 = vld [vmem:[#allocation37_spill] sm:$0xff] }
0x1313   : > { %v12914_v48 = vpop.eup %10776  ;;  %10796 = vpow2.f32 %v3178_v15  ;;  %v3174_v61 = vmul.f32 1.442695, %v2969_v17  ;;  %3379 = vadd.xlane.f32.xlu1 %v3378_v27  ;;  %3382 = vadd.xlane.f32.xlu0 %v3381_v41  ;;  %v2726_v35 = vpop.xlane.xlu1 %2725  ;;  %v3291_v10 = vadd.f32 %v12903_v52, %v12900_v28 }
0x1314   : > { %v12916_v58 = vpop.eup %10778  ;;  %10798 = vpow2.f32 %v3172_v54  ;;  %v3056_v63 = vmul.f32 1.442695, %v2910_v14  ;;  %v3058_v11 = vmul.f32 1.442695, %v2911_v60  ;;  %v2908_v30 = vsub.f32 %v12519_v19, %v2726_v35  ;;  %v16414_v54 = vld [vmem:[#allocation45_spill] sm:$0xff]  ;;  %v16415_v60 = vld [vmem:[#allocation46_spill] sm:$0xff] }
0x1315   : > { %v12919_v26 = vpop.eup %10780  ;;  %10800 = vpow2.f32 %v3174_v61  ;;  %v2909_v44 = vsub.f32 %v16409_v29, %v2726_v35  ;;  %v2825_v46 = vpop.xlane.xlu0 %2824  ;;  %v3288_v37 = vadd.f32 %v12914_v48, %v12910_v8 }
0x1316   : > { %v12926_v32 = vpop.eup %10782  ;;  %10802 = vpow2.f32 %v3056_v63  ;;  %v3052_v1 = vmul.f32 1.442695, %v2908_v30  ;;  %v2974_v4 = vsub.f32 %v16410_v12, %v2825_v46  ;;  %v2975_v19 = vsub.f32 %v16411_v47, %v2825_v46  ;;  %v16417_v46 = vld [vmem:[#allocation41_spill] sm:$0xff] }
0x1317   : > { %v12930_v38 = vpop.eup %10784  ;;  %10804 = vpow2.f32 %v3058_v11  ;;  %v3054_v59 = vmul.f32 1.442695, %v2909_v44  ;;  %3289 = vadd.xlane.f32.xlu1 %v3288_v37  ;;  %3292 = vadd.xlane.f32.xlu0 %v3291_v10  ;;  %v2822_v45 = vpop.xlane.xlu1 %2821  ;;  %v3387_v36 = vadd.f32 %v12919_v26, %v12916_v58 }
0x1318   : > { %v12932_v13 = vpop.eup %10786  ;;  %10806 = vpow2.f32 %v3052_v1  ;;  %v3184_v57 = vmul.f32 1.442695, %v2974_v4  ;;  %v3186_v6 = vmul.f32 1.442695, %v2975_v19  ;;  %v2972_v21 = vsub.f32 %v16412_v40, %v2822_v45  ;;  %v16419_v1 = vld [vmem:[#allocation42_spill] sm:$0xff] }
0x1319   : > { %v12935_v50 = vpop.eup %10788  ;;  %10808 = vpow2.f32 %v3054_v59  ;;  %v2973_v15 = vsub.f32 %v16413_v23, %v2822_v45  ;;  %v2735_v5 = vpop.xlane.xlu0 %2734  ;;  %v3384_v17 = vadd.f32 %v12930_v38, %v12926_v32 }
0x131a   : > { %v12942_v27 = vpop.eup %10790  ;;  %10810 = vpow2.f32 %v3184_v57  ;;  %v3180_v41 = vmul.f32 1.442695, %v2972_v21  ;;  %v2914_v14 = vsub.f32 %v16414_v54, %v2735_v5  ;;  %v2915_v61 = vsub.f32 %v16415_v60, %v2735_v5  ;;  %v16422_v21 = vld [vmem:[#allocation40_spill] sm:$0xff] }
0x131b   : > { %v12946_v35 = vpop.eup %10792  ;;  %10812 = vpow2.f32 %v3186_v6  ;;  %v3182_v63 = vmul.f32 1.442695, %v2973_v15  ;;  %3385 = vadd.xlane.f32.xlu1 %v3384_v17  ;;  %3388 = vadd.xlane.f32.xlu0 %v3387_v36  ;;  %v2732_v11 = vpop.xlane.xlu1 %2731  ;;  %v3297_v47 = vadd.f32 %v12935_v50, %v12932_v13  ;;  %v16423_v15 = vld [vmem:[#allocation43_spill] sm:$0xff] }
0x131c   : > { %v12948_v30 = vpop.eup %10794  ;;  %10814 = vpow2.f32 %v3180_v41  ;;  %v3064_v29 = vmul.f32 1.442695, %v2914_v14  ;;  %v3066_v44 = vmul.f32 1.442695, %v2915_v61  ;;  %v2912_v37 = vsub.f32 %v16417_v46, %v2732_v11  ;;  %v16429_v46 = vld [vmem:[#allocation47_spill] sm:$0xff] }
0x131d   : > { %16416 = vst [vmem:[#allocation36_spill] sm:$0xff] %v12948_v30  ;;  %v12951_v10 = vpop.eup %10796  ;;  %10816 = vpow2.f32 %v3182_v63  ;;  %v2913_v12 = vsub.f32 %v16419_v1, %v2732_v11  ;;  %v3294_v4 = vadd.f32 %v12946_v35, %v12942_v27 }
0x131e   : > { %16418 = vst [vmem:[#allocation38_spill] sm:$0xff] %v12951_v10  ;;  %v12958_v19 = vpop.eup %10798  ;;  %10818 = vpow2.f32 %v3064_v29  ;;  %v3060_v59 = vmul.f32 1.442695, %v2912_v37  ;;  %v3393_v41 = vadd.f32 %v12951_v10, %v12948_v30  ;;  %v16428_v29 = vld [vmem:[#allocation44_spill] sm:$0xff] }
0x131f   : > { %16420 = vst [vmem:[#allocation39_spill] sm:$0xff] %v12958_v19  ;;  %v12960_v45 = vpop.eup %10800  ;;  %10820 = vpow2.f32 %v3066_v44  ;;  %v3062_v57 = vmul.f32 1.442695, %v2913_v12  ;;  %3295 = vadd.xlane.f32.xlu1 %v3294_v4  ;;  %3298 = vadd.xlane.f32.xlu0 %v3297_v47  ;;  %v2828_v6 = vpop.xlane.xlu1 %2827 }
0x1320   : > { %v12962_v40 = vpop.eup %10802  ;;  %10822 = vpow2.f32 %v3060_v59  ;;  %v2976_v23 = vsub.f32 %v16422_v21, %v2828_v6  ;;  %v2977_v5 = vsub.f32 %v16423_v15, %v2828_v6  ;;  %v3390_v17 = vadd.f32 %v12960_v45, %v12958_v19  ;;  %v16434_v15 = vld [vmem:[#allocation48_spill] sm:$0xff] }
0x1321   : > { %16421 = vst [vmem:[#allocation35_spill] sm:$0xff] %v12962_v40  ;;  %v12968_v36 = vpop.eup %10804  ;;  %10824 = vpow2.f32 %v3062_v57 }
0x1322   : > { %16424 = vst [vmem:[#allocation37_spill] sm:$0xff] %v12968_v36  ;;  %v12972_v54 = vpop.eup %10806  ;;  %v3188_v14 = vmul.f32 1.442695, %v2976_v23  ;;  %v3190_v60 = vmul.f32 1.442695, %v2977_v5  ;;  %v3303_v4 = vadd.f32 %v12968_v36, %v12962_v40 }
0x1323   : > { %16425 = vst [vmem:[#allocation45_spill] sm:$0xff] %v12972_v54  ;;  %v12974_v61 = vpop.eup %10808  ;;  %3391 = vadd.xlane.f32.xlu1 %v3390_v17  ;;  %3394 = vadd.xlane.f32.xlu0 %v3393_v41  ;;  %v2831_v63 = vpop.xlane.xlu1 %2830  ;;  %v16435_v17 = vld [vmem:[#allocation50_spill] sm:$0xff] }
0x1324   : > { %16426 = vst [vmem:[#allocation46_spill] sm:$0xff] %v12974_v61  ;;  %v12976_v11 = vpop.eup %10810  ;;  %10826 = vpow2.f32 %v3188_v14  ;;  %v2978_v44 = vsub.f32 %v16428_v29, %v2831_v63  ;;  %v2979_v37 = vsub.f32 %v16429_v46, %v2831_v63  ;;  %v3300_v1 = vadd.f32 %v12974_v61, %v12972_v54 }
0x1325   : > { %16427 = vst [vmem:[#allocation41_spill] sm:$0xff] %v12976_v11  ;;  %v12982_v12 = vpop.eup %10812  ;;  %10828 = vpow2.f32 %v3190_v60 }
0x1326   : > { %16430 = vst [vmem:[#allocation42_spill] sm:$0xff] %v12982_v12  ;;  %v12986_v47 = vpop.eup %10814  ;;  %v3192_v59 = vmul.f32 1.442695, %v2978_v44  ;;  %v3194_v57 = vmul.f32 1.442695, %v2979_v37  ;;  %v3399_v29 = vadd.f32 %v12982_v12, %v12976_v11 }
0x1327   : > { %16431 = vst [vmem:[#allocation40_spill] sm:$0xff] %v12986_v47  ;;  %v12988_v6 = vpop.eup %10816  ;;  %3301 = vadd.xlane.f32.xlu1 %v3300_v1  ;;  %3304 = vadd.xlane.f32.xlu0 %v3303_v4  ;;  %v2738_v21 = vpop.xlane.xlu1 %2737 }
0x1328   : > { %16432 = vst [vmem:[#allocation43_spill] sm:$0xff] %v12988_v6  ;;  %v12990_v23 = vpop.eup %10818  ;;  %10830 = vpow2.f32 %v3192_v59  ;;  %v2916_v5 = vsub.f32 %v16434_v15, %v2738_v21  ;;  %v2917_v41 = vsub.f32 %v16435_v17, %v2738_v21  ;;  %v3396_v14 = vadd.f32 %v12988_v6, %v12986_v47  ;;  %v16439_v59 = vld [vmem:[#allocation52_spill] sm:$0xff]  ;;  %v16440_v15 = vld [vmem:[#allocation55_spill] sm:$0xff] }
0x1329   : > { %16433 = vst [vmem:[#allocation44_spill] sm:$0xff] %v12990_v23  ;;  %v12996_v60 = vpop.eup %10820  ;;  %10832 = vpow2.f32 %v3194_v57  ;;  %v2747_v63 = vpop.xlane.xlu0 %2746 }
0x132a   : > { %16436 = vst [vmem:[#allocation47_spill] sm:$0xff] %v12996_v60  ;;  %v13000_v44 = vpop.eup %10822  ;;  %v3068_v46 = vmul.f32 1.442695, %v2916_v5  ;;  %v3070_v37 = vmul.f32 1.442695, %v2917_v41  ;;  %v3309_v11 = vadd.f32 %v12996_v60, %v12990_v23 }
0x132b   : > { %16437 = vst [vmem:[#allocation48_spill] sm:$0xff] %v13000_v44  ;;  %v13002_v1 = vpop.eup %10824  ;;  %3397 = vadd.xlane.f32.xlu1 %v3396_v14  ;;  %3400 = vadd.xlane.f32.xlu0 %v3399_v29  ;;  %v2741_v4 = vpop.xlane.xlu1 %2740  ;;  %v16443_v14 = vld [vmem:[#allocation60_spill] sm:$0xff] }
0x132c   : > { %16438 = vst [vmem:[#allocation50_spill] sm:$0xff] %v13002_v1  ;;  %10834 = vpow2.f32 %v3068_v46  ;;  %v2918_v21 = vsub.f32 %v16439_v59, %v2741_v4  ;;  %v2919_v17 = vsub.f32 %v16440_v15, %v2741_v4  ;;  %v3306_v47 = vadd.f32 %v13002_v1, %v13000_v44  ;;  %v16444_v4 = vld [vmem:[#allocation49_spill] sm:$0xff]  ;;  %v16445_v15 = vld [vmem:[#allocation51_spill] sm:$0xff] }
0x132d   : > { %10836 = vpow2.f32 %v3070_v37  ;;  %v2843_v57 = vpop.xlane.xlu0 %2842  ;;  %v2922_v29 = vsub.f32 %v16443_v14, %v2747_v63 }
0x132e   : > { %v13010_v5 = vpop.eup %10826  ;;  %v3072_v41 = vmul.f32 1.442695, %v2918_v21  ;;  %v3074_v46 = vmul.f32 1.442695, %v2919_v17  ;;  %v16447_v21 = vld [vmem:[#allocation62_spill] sm:$0xff] }
0x132f   : > { %16441 = vst [vmem:[#allocation52_spill] sm:$0xff] %v13010_v5  ;;  %v13012_v12 = vpop.eup %10828  ;;  %3307 = vadd.xlane.f32.xlu1 %v3306_v47  ;;  %3310 = vadd.xlane.f32.xlu0 %v3309_v11  ;;  %v2834_v37 = vpop.xlane.xlu1 %2833  ;;  %v2923_v6 = vsub.f32 %v16447_v21, %v2747_v63  ;;  %v3080_v47 = vmul.f32 1.442695, %v2922_v29  ;;  %v16449_v11 = vld [vmem:[#allocation61_spill] sm:$0xff]  ;;  %v16453_v21 = vld [vmem:[#allocation63_spill] sm:$0xff] }
0x1330   : > { %16442 = vst [vmem:[#allocation55_spill] sm:$0xff] %v13012_v12  ;;  %10838 = vpow2.f32 %v3072_v41  ;;  %v2980_v59 = vsub.f32 %v16444_v4, %v2834_v37  ;;  %v2981_v44 = vsub.f32 %v16445_v15, %v2834_v37  ;;  %v3402_v23 = vadd.f32 %v13012_v12, %v13010_v5  ;;  %v16451_v15 = vld [vmem:[#allocation54_spill] sm:$0xff] }
0x1331   : > { %10840 = vpow2.f32 %v3074_v46  ;;  %v2753_v1 = vpop.xlane.xlu0 %2752  ;;  %v2986_v17 = vsub.f32 %v16449_v11, %v2843_v57  ;;  %v16450_v46 = vld [vmem:[#allocation53_spill] sm:$0xff]  ;;  %v2987_v29 = vsub.f32 %v16453_v21, %v2843_v57 }
0x1332   : > { %v13019_v60 = vpop.eup %10830  ;;  %v3196_v40 = vmul.f32 1.442695, %v2980_v59  ;;  %v3198_v41 = vmul.f32 1.442695, %v2981_v44  ;;  %v3082_v59 = vmul.f32 1.442695, %v2923_v6 }
0x1333   : > { %16446 = vst [vmem:[#allocation60_spill] sm:$0xff] %v13019_v60  ;;  %v13022_v14 = vpop.eup %10832  ;;  %3403 = vadd.xlane.f32.xlu1 %v3402_v23  ;;  %v2837_v4 = vpop.xlane.xlu1 %2836  ;;  %v3208_v23 = vmul.f32 1.442695, %v2986_v17  ;;  %v16459_v17 = vld [vmem:[#allocation70_spill] sm:$0xff] }
0x1334   : > { %16448 = vst [vmem:[#allocation49_spill] sm:$0xff] %v13022_v14  ;;  %10842 = vpow2.f32 %v3196_v40  ;;  %v2982_v37 = vsub.f32 %v16450_v46, %v2837_v4  ;;  %v2983_v36 = vsub.f32 %v16451_v15, %v2837_v4  ;;  %v3405_v12 = vadd.f32 %v13022_v14, %v13019_v60  ;;  %v16455_v40 = vld [vmem:[#allocation68_spill] sm:$0xff]  ;;  %v16457_v60 = vld [vmem:[#allocation58_spill] sm:$0xff] }
0x1335   : > { %10844 = vpow2.f32 %v3198_v41  ;;  %v2849_v5 = vpop.xlane.xlu0 %2848  ;;  %v2926_v44 = vsub.f32 %v16455_v40, %v2753_v1  ;;  %v16456_v4 = vld [vmem:[#allocation56_spill] sm:$0xff] }
0x1336   : > { %v13029_v63 = vpop.eup %10834  ;;  %v3200_v54 = vmul.f32 1.442695, %v2982_v37  ;;  %10846 = vpow2.f32 %v3080_v47  ;;  %v3202_v46 = vmul.f32 1.442695, %v2983_v36  ;;  %3406 = vadd.xlane.f32.xlu0 %v3405_v12  ;;  %v3210_v47 = vmul.f32 1.442695, %v2987_v29 }
0x1337   : > { %16452 = vst [vmem:[#allocation51_spill] sm:$0xff] %v13029_v63  ;;  %v13032_v11 = vpop.eup %10836  ;;  %v2744_v41 = vpop.xlane.xlu1 %2743  ;;  %v2927_v37 = vsub.f32 %v16459_v17, %v2753_v1  ;;  %v16461_v12 = vld [vmem:[#allocation69_spill] sm:$0xff] }
0x1338   : > { %16454 = vst [vmem:[#allocation62_spill] sm:$0xff] %v13032_v11  ;;  %10848 = vpow2.f32 %v3200_v54  ;;  %v2920_v15 = vsub.f32 %v16456_v4, %v2744_v41  ;;  %v2921_v14 = vsub.f32 %v16457_v60, %v2744_v41  ;;  %v3312_v6 = vadd.f32 %v13032_v11, %v13029_v63  ;;  %v16462_v41 = vld [vmem:[#allocation57_spill] sm:$0xff]  ;;  %v16463_v63 = vld [vmem:[#allocation59_spill] sm:$0xff] }
0x1339   : > { %10850 = vpow2.f32 %v3202_v46  ;;  %v2759_v61 = vpop.xlane.xlu0 %2758  ;;  %v3088_v54 = vmul.f32 1.442695, %v2926_v44  ;;  %v2990_v40 = vsub.f32 %v16461_v12, %v2849_v5  ;;  %v16465_v44 = vld [vmem:[#allocation71_spill] sm:$0xff] }
0x133a   : > { %v13039_v57 = vpop.eup %10838  ;;  %10852 = vpow2.f32 %v3082_v59  ;;  %v3076_v21 = vmul.f32 1.442695, %v2920_v15  ;;  %v3078_v46 = vmul.f32 1.442695, %v2921_v14  ;;  %3313 = vadd.xlane.f32.xlu1 %v3312_v6  ;;  %v2991_v15 = vsub.f32 %v16465_v44, %v2849_v5 }
0x133b   : > { %16458 = vst [vmem:[#allocation61_spill] sm:$0xff] %v13039_v57  ;;  %v13042_v36 = vpop.eup %10840  ;;  %10854 = vpow2.f32 %v3208_v23  ;;  %v2840_v60 = vpop.xlane.xlu1 %2839  ;;  %v3090_v23 = vmul.f32 1.442695, %v2927_v37  ;;  %v3216_v17 = vmul.f32 1.442695, %v2990_v40 }
0x133c   : > { %16460 = vst [vmem:[#allocation53_spill] sm:$0xff] %v13042_v36  ;;  %10856 = vpow2.f32 %v3076_v21  ;;  %v2984_v4 = vsub.f32 %v16462_v41, %v2840_v60  ;;  %v2985_v11 = vsub.f32 %v16463_v63, %v2840_v60  ;;  %v3315_v1 = vadd.f32 %v13042_v36, %v13039_v57  ;;  %v16467_v21 = vld [vmem:[#allocation76_spill] sm:$0xff] }
0x133d   : > { %10858 = vpow2.f32 %v3078_v46  ;;  %v13047_v59 = vpop.xlane.xlu0 %2854  ;;  %v2930_v12 = vsub.f32 %v16467_v21, %v2759_v61  ;;  %v16468_v60 = vld [vmem:[#allocation64_spill] sm:$0xff]  ;;  %v3218_v40 = vmul.f32 1.442695, %v2991_v15  ;;  %v16474_v21 = vld [vmem:[#allocation77_spill] sm:$0xff] }
0x133e   : > { %v13051_v29 = vpop.eup %10842  ;;  %10860 = vpow2.f32 %v3210_v47  ;;  %v3204_v14 = vmul.f32 1.442695, %v2984_v4  ;;  %v3206_v46 = vmul.f32 1.442695, %v2985_v11  ;;  %3316 = vadd.xlane.f32.xlu0 %v3315_v1  ;;  %v16470_v47 = vld [vmem:[#allocation66_spill] sm:$0xff] }
0x133f   : > { %16464 = vst [vmem:[#allocation54_spill] sm:$0xff] %v13051_v29  ;;  %v13054_v6 = vpop.eup %10844  ;;  %10862 = vpow2.f32 %v3088_v54  ;;  %v2750_v63 = vpop.xlane.xlu1 %2749  ;;  %v16472_v11 = vld [vmem:[#allocation78_spill] sm:$0xff] }
0x1340   : > { %16466 = vst [vmem:[#allocation63_spill] sm:$0xff] %v13054_v6  ;;  %10864 = vpow2.f32 %v3204_v14  ;;  %v2924_v41 = vsub.f32 %v16468_v60, %v2750_v63  ;;  %v13058_v57 = vpop.eup %10846  ;;  %v2925_v37 = vsub.f32 %v16470_v47, %v2750_v63  ;;  %v3408_v5 = vadd.f32 %v13054_v6, %v13051_v29  ;;  %v16476_v29 = vld [vmem:[#allocation65_spill] sm:$0xff] }
0x1341   : > { %16469 = vst [vmem:[#allocation68_spill] sm:$0xff] %v13058_v57  ;;  %10866 = vpow2.f32 %v3206_v46  ;;  %v13061_v36 = vpop.xlane.xlu0 %2764  ;;  %v2931_v4 = vsub.f32 %v16472_v11, %v2759_v61  ;;  %v3096_v14 = vmul.f32 1.442695, %v2930_v12  ;;  %v2994_v46 = vsub.f32 %v16474_v21, %v13047_v59  ;;  %v16478_v61 = vld [vmem:[#allocation67_spill] sm:$0xff] }
0x1342   : > { %v13065_v54 = vpop.eup %10848  ;;  %10868 = vpow2.f32 %v3090_v23  ;;  %v3084_v1 = vmul.f32 1.442695, %v2924_v41  ;;  %v3086_v63 = vmul.f32 1.442695, %v2925_v37  ;;  %3409 = vadd.xlane.f32.xlu1 %v3408_v5  ;;  %v16480_v5 = vld [vmem:[#allocation79_spill] sm:$0xff] }
0x1343   : > { %16471 = vst [vmem:[#allocation56_spill] sm:$0xff] %v13065_v54  ;;  %v13068_v44 = vpop.eup %10850  ;;  %10870 = vpow2.f32 %v3216_v17  ;;  %v2846_v60 = vpop.xlane.xlu1 %2845  ;;  %v3098_v37 = vmul.f32 1.442695, %v2931_v4  ;;  %v2995_v11 = vsub.f32 %v16480_v5, %v13047_v59  ;;  %v16486_v59 = vld [vmem:[#allocation74_spill] sm:$0xff] }
0x1344   : > { %16473 = vst [vmem:[#allocation58_spill] sm:$0xff] %v13068_v44  ;;  %v13072_v47 = vpop.eup %10852  ;;  %10872 = vpow2.f32 %v3084_v1  ;;  %v2988_v6 = vsub.f32 %v16476_v29, %v2846_v60  ;;  %v2989_v15 = vsub.f32 %v16478_v61, %v2846_v60  ;;  %v3411_v17 = vadd.f32 %v13068_v44, %v13065_v54  ;;  %v16484_v54 = vld [vmem:[#allocation72_spill] sm:$0xff] }
0x1345   : > { %16475 = vst [vmem:[#allocation70_spill] sm:$0xff] %v13072_v47  ;;  %v13075_v23 = vpop.eup %10854  ;;  %10874 = vpow2.f32 %v3086_v63  ;;  %v13078_v41 = vpop.xlane.xlu0 %2860  ;;  %v3224_v29 = vmul.f32 1.442695, %v2994_v46  ;;  %v16482_v63 = vld [vmem:[#allocation84_spill] sm:$0xff]  ;;  %v3321_v46 = vadd.f32 %v13072_v47, %v13058_v57 }
0x1346   : > { %16477 = vst [vmem:[#allocation69_spill] sm:$0xff] %v13075_v23  ;;  %v13082_v12 = vpop.eup %10856  ;;  %10876 = vpow2.f32 %v3218_v40  ;;  %v3212_v1 = vmul.f32 1.442695, %v2988_v6  ;;  %v2934_v60 = vsub.f32 %v16482_v63, %v13061_v36  ;;  %v3214_v61 = vmul.f32 1.442695, %v2989_v15  ;;  %3412 = vadd.xlane.f32.xlu0 %v3411_v17 }
0x1347   : > { %16479 = vst [vmem:[#allocation57_spill] sm:$0xff] %v13082_v12  ;;  %v13086_v21 = vpop.eup %10858  ;;  %10878 = vpow2.f32 %v3096_v14  ;;  %v2756_v30 = vpop.xlane.xlu1 %2755  ;;  %v3226_v17 = vmul.f32 1.442695, %v2995_v11 }
0x1348   : > { %16481 = vst [vmem:[#allocation59_spill] sm:$0xff] %v13086_v21  ;;  %v13090_v10 = vpop.eup %10860  ;;  %10880 = vpow2.f32 %v3212_v1  ;;  %v2928_v40 = vsub.f32 %v16484_v54, %v2756_v30  ;;  %v2929_v6 = vsub.f32 %v16486_v59, %v2756_v30  ;;  %v3318_v14 = vadd.f32 %v13086_v21, %v13082_v12  ;;  %v16488_v1 = vld [vmem:[#allocation86_spill] sm:$0xff] }
0x1349   : > { %16483 = vst [vmem:[#allocation71_spill] sm:$0xff] %v13090_v10  ;;  %v13093_v4 = vpop.eup %10862  ;;  %10882 = vpow2.f32 %v3214_v61  ;;  %v13096_v5 = vpop.xlane.xlu0 %2770  ;;  %v2935_v54 = vsub.f32 %v16488_v1, %v13061_v36  ;;  %v3104_v30 = vmul.f32 1.442695, %v2934_v60  ;;  %v16490_v61 = vld [vmem:[#allocation85_spill] sm:$0xff]  ;;  %v16494_v36 = vld [vmem:[#allocation75_spill] sm:$0xff]  ;;  %v3417_v60 = vadd.f32 %v13090_v10, %v13075_v23 }
0x134a   : > { %16485 = vst [vmem:[#allocation76_spill] sm:$0xff] %v13093_v4  ;;  %v13102_v15 = vpop.eup %10864  ;;  %10884 = vpow2.f32 %v3098_v37  ;;  %v3092_v63 = vmul.f32 1.442695, %v2928_v40  ;;  %v2998_v59 = vsub.f32 %v16490_v61, %v13078_v41  ;;  %v3094_v19 = vmul.f32 1.442695, %v2929_v6  ;;  %3319 = vadd.xlane.f32.xlu1 %v3318_v14  ;;  %3322 = vadd.xlane.f32.xlu0 %v3321_v46  ;;  %v16492_v37 = vld [vmem:[#allocation73_spill] sm:$0xff] }
0x134b   : > { %16487 = vst [vmem:[#allocation64_spill] sm:$0xff] %v13102_v15  ;;  %v13106_v44 = vpop.eup %10866  ;;  %10886 = vpow2.f32 %v3224_v29  ;;  %v2852_v12 = vpop.xlane.xlu1 %2851  ;;  %v3106_v14 = vmul.f32 1.442695, %v2935_v54  ;;  %v16496_v46 = vld [vmem:[#allocation87_spill] sm:$0xff] }
0x134c   : > { %16489 = vst [vmem:[#allocation66_spill] sm:$0xff] %v13106_v44  ;;  %v13110_v57 = vpop.eup %10868  ;;  %10888 = vpow2.f32 %v3092_v63  ;;  %v2992_v11 = vsub.f32 %v16492_v37, %v2852_v12  ;;  %v2993_v40 = vsub.f32 %v16494_v36, %v2852_v12  ;;  %v3414_v29 = vadd.f32 %v13106_v44, %v13102_v15  ;;  %v16498_v12 = vld [vmem:[#allocation90_spill] sm:$0xff] }
0x134d   : > { %16491 = vst [vmem:[#allocation78_spill] sm:$0xff] %v13110_v57  ;;  %v13113_v47 = vpop.eup %10870  ;;  %10890 = vpow2.f32 %v3094_v19  ;;  %v13116_v1 = vpop.xlane.xlu0 %2866  ;;  %v2999_v63 = vsub.f32 %v16496_v46, %v13078_v41  ;;  %v3232_v19 = vmul.f32 1.442695, %v2998_v59  ;;  %v2938_v36 = vsub.f32 %v16498_v12, %v13096_v5  ;;  %v16502_v41 = vld [vmem:[#allocation82_spill] sm:$0xff] }
0x134e   : > { %16493 = vst [vmem:[#allocation77_spill] sm:$0xff] %v13113_v47  ;;  %v13122_v6 = vpop.eup %10872  ;;  %10892 = vpow2.f32 %v3226_v17  ;;  %v3220_v61 = vmul.f32 1.442695, %v2992_v11  ;;  %v3222_v21 = vmul.f32 1.442695, %v2993_v40  ;;  %3415 = vadd.xlane.f32.xlu1 %v3414_v29  ;;  %3418 = vadd.xlane.f32.xlu0 %v3417_v60  ;;  %v16500_v17 = vld [vmem:[#allocation80_spill] sm:$0xff]  ;;  %v3327_v59 = vadd.f32 %v13110_v57, %v13093_v4 }
0x134f   : > { %16495 = vst [vmem:[#allocation65_spill] sm:$0xff] %v13122_v6  ;;  %v13126_v37 = vpop.eup %10874  ;;  %10894 = vpow2.f32 %v3104_v30  ;;  %v2762_v15 = vpop.xlane.xlu1 %2761  ;;  %v3234_v29 = vmul.f32 1.442695, %v2999_v63  ;;  %v16504_v60 = vld [vmem:[#allocation92_spill] sm:$0xff] }
0x1350   : > { %16497 = vst [vmem:[#allocation67_spill] sm:$0xff] %v13126_v37  ;;  %v13130_v23 = vpop.eup %10876  ;;  %10896 = vpow2.f32 %v3220_v61  ;;  %v2932_v54 = vsub.f32 %v16500_v17, %v2762_v15  ;;  %v2933_v11 = vsub.f32 %v16502_v41, %v2762_v15  ;;  %v3324_v30 = vadd.f32 %v13126_v37, %v13122_v6  ;;  %v16506_v15 = vld [vmem:[#allocation91_spill] sm:$0xff] }
0x1351   : > { %16499 = vst [vmem:[#allocation79_spill] sm:$0xff] %v13130_v23  ;;  %v13133_v10 = vpop.eup %10878  ;;  %10898 = vpow2.f32 %v3222_v21  ;;  %v13136_v46 = vpop.xlane.xlu0 %2776  ;;  %v2939_v61 = vsub.f32 %v16504_v60, %v13096_v5  ;;  %v3112_v21 = vmul.f32 1.442695, %v2938_v36  ;;  %v3002_v41 = vsub.f32 %v16506_v15, %v13116_v1  ;;  %v16509_v5 = vld [vmem:[#allocation83_spill] sm:$0xff] }
0x1352   : > { %16501 = vst [vmem:[#allocation84_spill] sm:$0xff] %v13133_v10  ;;  %v13142_v40 = vpop.eup %10880  ;;  %10900 = vpow2.f32 %v3106_v14  ;;  %v3100_v12 = vmul.f32 1.442695, %v2932_v54  ;;  %v3102_v44 = vmul.f32 1.442695, %v2933_v11  ;;  %3325 = vadd.xlane.f32.xlu1 %v3324_v30  ;;  %3328 = vadd.xlane.f32.xlu0 %v3327_v59  ;;  %v16507_v14 = vld [vmem:[#allocation81_spill] sm:$0xff]  ;;  %v3423_v36 = vadd.f32 %v13130_v23, %v13113_v47 }
0x1353   : > { %16503 = vst [vmem:[#allocation72_spill] sm:$0xff] %v13142_v40  ;;  %v13146_v17 = vpop.eup %10882  ;;  %10902 = vpow2.f32 %v3232_v19  ;;  %v2858_v6 = vpop.xlane.xlu1 %2857  ;;  %v3114_v30 = vmul.f32 1.442695, %v2939_v61  ;;  %v16511_v59 = vld [vmem:[#allocation93_spill] sm:$0xff] }
0x1354   : > { %16505 = vst [vmem:[#allocation74_spill] sm:$0xff] %v13146_v17  ;;  %v13150_v4 = vpop.eup %10884  ;;  %10904 = vpow2.f32 %v3100_v12  ;;  %v2996_v63 = vsub.f32 %v16507_v14, %v2858_v6  ;;  %v2997_v54 = vsub.f32 %v16509_v5, %v2858_v6  ;;  %v3420_v19 = vadd.f32 %v13146_v17, %v13142_v40  ;;  %v16512_v6 = vld [vmem:[#allocation98_spill] sm:$0xff] }
0x1355   : > { %v13153_v57 = vpop.eup %10886  ;;  %10906 = vpow2.f32 %v3102_v44  ;;  %v13156_v60 = vpop.xlane.xlu0 %2872  ;;  %v3003_v12 = vsub.f32 %v16511_v59, %v13116_v1  ;;  %v3240_v44 = vmul.f32 1.442695, %v3002_v41  ;;  %v2942_v5 = vsub.f32 %v16512_v6, %v13136_v46  ;;  %v16516_v1 = vld [vmem:[#allocation89_spill] sm:$0xff] }
0x1356   : > { %16508 = vst [vmem:[#allocation86_spill] sm:$0xff] %v13153_v57  ;;  %v13162_v11 = vpop.eup %10888  ;;  %10908 = vpow2.f32 %v3234_v29  ;;  %v3228_v15 = vmul.f32 1.442695, %v2996_v63  ;;  %v3230_v37 = vmul.f32 1.442695, %v2997_v54  ;;  %3421 = vadd.xlane.f32.xlu1 %v3420_v19  ;;  %3424 = vadd.xlane.f32.xlu0 %v3423_v36  ;;  %v16514_v29 = vld [vmem:[#allocation88_spill] sm:$0xff]  ;;  %v3333_v41 = vadd.f32 %v13150_v4, %v13133_v10 }
0x1357   : > { %16510 = vst [vmem:[#allocation85_spill] sm:$0xff] %v13162_v11  ;;  %v13166_v14 = vpop.eup %10890  ;;  %10910 = vpow2.f32 %v3112_v21  ;;  %v2768_v40 = vpop.xlane.xlu1 %2767  ;;  %v3242_v19 = vmul.f32 1.442695, %v3003_v12  ;;  %v16518_v36 = vld [vmem:[#allocation100_spill] sm:$0xff] }
0x1358   : > { %v13170_v47 = vpop.eup %10892  ;;  %10912 = vpow2.f32 %v3228_v15  ;;  %v2936_v61 = vsub.f32 %v16514_v29, %v2768_v40  ;;  %v2937_v63 = vsub.f32 %v16516_v1, %v2768_v40  ;;  %v3330_v21 = vadd.f32 %v13166_v14, %v13162_v11  ;;  %v16520_v40 = vld [vmem:[#allocation99_spill] sm:$0xff] }
0x1359   : > { %16513 = vst [vmem:[#allocation73_spill] sm:$0xff] %v13170_v47  ;;  %v13173_v23 = vpop.eup %10894  ;;  %10914 = vpow2.f32 %v3230_v37  ;;  %v13176_v59 = vpop.xlane.xlu0 %2782  ;;  %v2943_v15 = vsub.f32 %v16518_v36, %v13136_v46  ;;  %v3120_v37 = vmul.f32 1.442695, %v2942_v5  ;;  %v3006_v1 = vsub.f32 %v16520_v40, %v13156_v60 }
0x135a   : > { %16515 = vst [vmem:[#allocation75_spill] sm:$0xff] %v13173_v23  ;;  %v13182_v54 = vpop.eup %10896  ;;  %10916 = vpow2.f32 %v3114_v30  ;;  %v3108_v6 = vmul.f32 1.442695, %v2936_v61  ;;  %v3110_v17 = vmul.f32 1.442695, %v2937_v63  ;;  %3331 = vadd.xlane.f32.xlu1 %v3330_v21  ;;  %3334 = vadd.xlane.f32.xlu0 %v3333_v41  ;;  %v3429_v5 = vadd.f32 %v13170_v47, %v13153_v57  ;;  %v16524_v41 = vld [vmem:[#allocation101_spill] sm:$0xff] }
0x135b   : > { %16517 = vst [vmem:[#allocation87_spill] sm:$0xff] %v13182_v54  ;;  %v13186_v29 = vpop.eup %10898  ;;  %10918 = vpow2.f32 %v3240_v44  ;;  %v2864_v11 = vpop.xlane.xlu1 %2863  ;;  %v3122_v21 = vmul.f32 1.442695, %v2943_v15 }
0x135c   : > { %16519 = vst [vmem:[#allocation90_spill] sm:$0xff] %v13186_v29  ;;  %v13190_v10 = vpop.eup %10900  ;;  %10920 = vpow2.f32 %v3108_v6  ;;  %v3000_v30 = vsub.f32 %v12693_v39, %v2864_v11  ;;  %v3001_v46 = vsub.f32 %v12697_v25, %v2864_v11  ;;  %v3426_v44 = vadd.f32 %v13186_v29, %v13182_v54 }
0x135d   : > { %16521 = vst [vmem:[#allocation80_spill] sm:$0xff] %v13190_v10  ;;  %v13193_v12 = vpop.eup %10902  ;;  %10922 = vpow2.f32 %v3110_v17  ;;  %v13196_v61 = vpop.xlane.xlu0 %2878  ;;  %v3007_v39 = vsub.f32 %v16524_v41, %v13156_v60  ;;  %v3248_v25 = vmul.f32 1.442695, %v3006_v1  ;;  %v16525_v17 = vld [vmem:[#allocation104_spill] sm:$0xff]  ;;  %v3339_v1 = vadd.f32 %v13190_v10, %v13173_v23 }
0x135e   : > { %16522 = vst [vmem:[#allocation82_spill] sm:$0xff] %v13193_v12  ;;  %v13202_v63 = vpop.eup %10904  ;;  %10924 = vpow2.f32 %v3242_v19  ;;  %v3236_v36 = vmul.f32 1.442695, %v3000_v30  ;;  %v2946_v11 = vsub.f32 %v16525_v17, %v13176_v59  ;;  %v3238_v40 = vmul.f32 1.442695, %v3001_v46  ;;  %3427 = vadd.xlane.f32.xlu1 %v3426_v44  ;;  %3430 = vadd.xlane.f32.xlu0 %v3429_v5  ;;  %v16527_v19 = vld [vmem:[#allocation94_spill] sm:$0xff] }
0x135f   : > { %16523 = vst [vmem:[#allocation92_spill] sm:$0xff] %v13202_v63  ;;  %v13206_v6 = vpop.eup %10906  ;;  %10926 = vpow2.f32 %v3120_v37  ;;  %v2774_v54 = vpop.xlane.xlu1 %2773  ;;  %v16528_v60 = vld [vmem:[#allocation96_spill] sm:$0xff]  ;;  %v3250_v44 = vmul.f32 1.442695, %v3007_v39  ;;  %v16530_v5 = vld [vmem:[#allocation106_spill] sm:$0xff] }
0x1360   : > { %v13210_v57 = vpop.eup %10908  ;;  %10928 = vpow2.f32 %v3236_v36  ;;  %v2940_v15 = vsub.f32 %v16527_v19, %v2774_v54  ;;  %v2941_v30 = vsub.f32 %v16528_v60, %v2774_v54  ;;  %v3336_v37 = vadd.f32 %v13206_v6, %v13202_v63 }
0x1361   : > { %16526 = vst [vmem:[#allocation91_spill] sm:$0xff] %v13210_v57  ;;  %v13213_v47 = vpop.eup %10910  ;;  %10930 = vpow2.f32 %v3238_v40  ;;  %v13216_v41 = vpop.xlane.xlu0 %2785  ;;  %v2947_v36 = vsub.f32 %v16530_v5, %v13176_v59  ;;  %v3128_v54 = vmul.f32 1.442695, %v2946_v11  ;;  %v16532_v40 = vld [vmem:[#allocation105_spill] sm:$0xff]  ;;  %v3435_v11 = vadd.f32 %v13210_v57, %v13193_v12 }
0x1362   : > { %v13222_v46 = vpop.eup %10912  ;;  %10932 = vpow2.f32 %v3122_v21  ;;  %v3116_v17 = vmul.f32 1.442695, %v2940_v15  ;;  %v3010_v60 = vsub.f32 %v16532_v40, %v13196_v61  ;;  %v3118_v29 = vmul.f32 1.442695, %v2941_v30  ;;  %3337 = vadd.xlane.f32.xlu1 %v3336_v37  ;;  %3340 = vadd.xlane.f32.xlu0 %v3339_v1  ;;  %v16533_v21 = vld [vmem:[#allocation95_spill] sm:$0xff]  ;;  %v16535_v59 = vld [vmem:[#allocation97_spill] sm:$0xff] }
0x1363   : > { %16529 = vst [vmem:[#allocation81_spill] sm:$0xff] %v13222_v46  ;;  %v13226_v19 = vpop.eup %10914  ;;  %10934 = vpow2.f32 %v3248_v25  ;;  %v2870_v63 = vpop.xlane.xlu1 %2869  ;;  %v3130_v37 = vmul.f32 1.442695, %v2947_v36  ;;  %v16537_v1 = vld [vmem:[#allocation107_spill] sm:$0xff] }
0x1364   : > { %16531 = vst [vmem:[#allocation83_spill] sm:$0xff] %v13226_v19  ;;  %v13230_v23 = vpop.eup %10916  ;;  %10936 = vpow2.f32 %v3116_v17  ;;  %v3004_v39 = vsub.f32 %v16533_v21, %v2870_v63  ;;  %v3005_v15 = vsub.f32 %v16535_v59, %v2870_v63  ;;  %v3432_v25 = vadd.f32 %v13226_v19, %v13222_v46  ;;  %v16539_v63 = vld [vmem:[#allocation108_spill] sm:$0xff] }
0x1365   : > { %v13233_v10 = vpop.eup %10918  ;;  %10938 = vpow2.f32 %v3118_v29  ;;  %v3011_v5 = vsub.f32 %v16537_v1, %v13196_v61  ;;  %v3256_v29 = vmul.f32 1.442695, %v3010_v60  ;;  %v2948_v21 = vsub.f32 %v16539_v63, %v13216_v41  ;;  %v2885_v46 = vpop.xlane.xlu0 %2884  ;;  %v16543_v61 = vld [vmem:[#allocation103_spill] sm:$0xff] }
0x1366   : > { %16534 = vst [vmem:[#allocation93_spill] sm:$0xff] %v13233_v10  ;;  %v13240_v30 = vpop.eup %10920  ;;  %10940 = vpow2.f32 %v3250_v44  ;;  %v3244_v17 = vmul.f32 1.442695, %v3004_v39  ;;  %v3246_v59 = vmul.f32 1.442695, %v3005_v15  ;;  %3433 = vadd.xlane.f32.xlu1 %v3432_v25  ;;  %3436 = vadd.xlane.f32.xlu0 %v3435_v11  ;;  %v16541_v44 = vld [vmem:[#allocation102_spill] sm:$0xff]  ;;  %v3345_v60 = vadd.f32 %v13230_v23, %v13213_v47 }
0x1367   : > { %16536 = vst [vmem:[#allocation98_spill] sm:$0xff] %v13240_v30  ;;  %v13244_v40 = vpop.eup %10922  ;;  %10942 = vpow2.f32 %v3128_v54  ;;  %v2780_v12 = vpop.xlane.xlu1 %2779  ;;  %v3258_v25 = vmul.f32 1.442695, %v3011_v5  ;;  %v16545_v11 = vld [vmem:[#allocation110_spill] sm:$0xff] }
0x1368   : > { %16538 = vst [vmem:[#allocation88_spill] sm:$0xff] %v13244_v40  ;;  %v13248_v57 = vpop.eup %10924  ;;  %10944 = vpow2.f32 %v3244_v17  ;;  %v2944_v36 = vsub.f32 %v16541_v44, %v2780_v12  ;;  %v2945_v39 = vsub.f32 %v16543_v61, %v2780_v12  ;;  %v3342_v54 = vadd.f32 %v13244_v40, %v13240_v30  ;;  %v16546_v44 = vld [vmem:[#allocation112_spill] sm:$0xff] }
0x1369   : > { %16540 = vst [vmem:[#allocation89_spill] sm:$0xff] %v13248_v57  ;;  %v13251_v19 = vpop.eup %10926  ;;  %10946 = vpow2.f32 %v3246_v59  ;;  %v2949_v1 = vsub.f32 %v16545_v11, %v13216_v41  ;;  %v3132_v59 = vmul.f32 1.442695, %v2948_v21  ;;  %v3014_v12 = vsub.f32 %v16546_v44, %v2885_v46  ;;  %v2795_v41 = vpop.xlane.xlu0 %2794 }
0x136a   : > { %16542 = vst [vmem:[#allocation100_spill] sm:$0xff] %v13251_v19  ;;  %v13258_v15 = vpop.eup %10928  ;;  %10948 = vpow2.f32 %v3130_v37  ;;  %v3124_v17 = vmul.f32 1.442695, %v2944_v36  ;;  %v3126_v61 = vmul.f32 1.442695, %v2945_v39  ;;  %3343 = vadd.xlane.f32.xlu1 %v3342_v54  ;;  %3346 = vadd.xlane.f32.xlu0 %v3345_v60  ;;  %v3441_v21 = vadd.f32 %v13248_v57, %v13233_v10 }
0x136b   : > { %16544 = vst [vmem:[#allocation99_spill] sm:$0xff] %v13258_v15  ;;  %v13262_v63 = vpop.eup %10930  ;;  %10950 = vpow2.f32 %v3256_v29  ;;  %v2876_v30 = vpop.xlane.xlu1 %2875  ;;  %v3134_v54 = vmul.f32 1.442695, %v2949_v1  ;;  %v3264_v44 = vmul.f32 1.442695, %v3014_v12 }
0x136c   : > { %v13265_v40 = vpop.eup %10932  ;;  %10952 = vpow2.f32 %v3124_v17  ;;  %v3008_v37 = vsub.f32 %v12747_v24, %v2876_v30  ;;  %v3009_v36 = vsub.f32 %v12751_v22, %v2876_v30  ;;  %v3438_v29 = vadd.f32 %v13262_v63, %v13258_v15  ;;  %v16550_v24 = vld [vmem:[#allocation115_spill] sm:$0xff]  ;;  %v16552_v15 = vld [vmem:[#allocation113_spill] sm:$0xff] }
0x136d   : > { %16547 = vst [vmem:[#allocation101_spill] sm:$0xff] %v13265_v40  ;;  %v13268_v5 = vpop.eup %10934  ;;  %10954 = vpow2.f32 %v3126_v61  ;;  %v3015_v17 = vsub.f32 %v16550_v24, %v2885_v46  ;;  %v3351_v46 = vadd.f32 %v13265_v40, %v13251_v19  ;;  %v2891_v24 = vpop.xlane.xlu0 %2890  ;;  %v16556_v19 = vld [vmem:[#allocation109_spill] sm:$0xff] }
0x136e   : > { %16548 = vst [vmem:[#allocation104_spill] sm:$0xff] %v13268_v5  ;;  %v13275_v39 = vpop.eup %10936  ;;  %10956 = vpow2.f32 %v3258_v25  ;;  %v3252_v60 = vmul.f32 1.442695, %v3008_v37  ;;  %v3254_v61 = vmul.f32 1.442695, %v3009_v36  ;;  %3439 = vadd.xlane.f32.xlu1 %v3438_v29  ;;  %3442 = vadd.xlane.f32.xlu0 %v3441_v21  ;;  %v16554_v25 = vld [vmem:[#allocation114_spill] sm:$0xff]  ;;  %v2954_v37 = vsub.f32 %v12809_v3, %v2795_v41 }
0x136f   : > { %16549 = vst [vmem:[#allocation94_spill] sm:$0xff] %v13275_v39  ;;  %v13277_v11 = vpop.eup %10938  ;;  %10958 = vpow2.f32 %v3132_v59  ;;  %v2789_v22 = vpop.xlane.xlu1 %2788  ;;  %v16555_v21 = vld [vmem:[#allocation120_spill] sm:$0xff] }
0x1370   : > { %v13280_v30 = vpop.eup %10940  ;;  %10960 = vpow2.f32 %v3252_v60  ;;  %v2950_v10 = vsub.f32 %v16552_v15, %v2789_v22  ;;  %v2951_v1 = vsub.f32 %v16554_v25, %v2789_v22  ;;  %v3348_v59 = vadd.f32 %v13277_v11, %v13275_v39 }
0x1371   : > { %16551 = vst [vmem:[#allocation96_spill] sm:$0xff] %v13280_v30  ;;  %v13283_v57 = vpop.eup %10942  ;;  %10962 = vpow2.f32 %v3254_v61  ;;  %v3266_v15 = vmul.f32 1.442695, %v3015_v17  ;;  %v2955_v60 = vsub.f32 %v16555_v21, %v2795_v41  ;;  %v3447_v41 = vadd.f32 %v13280_v30, %v13268_v5  ;;  %v16559_v30 = vld [vmem:[#allocation118_spill] sm:$0xff] }
0x1372   : > { %16553 = vst [vmem:[#allocation106_spill] sm:$0xff] %v13283_v57  ;;  %v13290_v12 = vpop.eup %10944  ;;  %10964 = vpow2.f32 %v3134_v54  ;;  %v3136_v36 = vmul.f32 1.442695, %v2950_v10  ;;  %v3138_v61 = vmul.f32 1.442695, %v2951_v1  ;;  %3349 = vadd.xlane.f32.xlu1 %v3348_v59  ;;  %3352 = vadd.xlane.f32.xlu0 %v3351_v46  ;;  %v16557_v54 = vld [vmem:[#allocation111_spill] sm:$0xff]  ;;  %v3018_v1 = vsub.f32 %v12813_v53, %v2891_v24 }
0x1373   : > { %v13293_v29 = vpop.eup %10946  ;;  %10966 = vpow2.f32 %v3264_v44  ;;  %v2882_v22 = vpop.xlane.xlu1 %2881  ;;  %v3144_v44 = vmul.f32 1.442695, %v2954_v37  ;;  %v3019_v21 = vsub.f32 %v12817_v0, %v2891_v24 }
0x1374   : > { %v13296_v25 = vpop.eup %10948  ;;  %10968 = vpow2.f32 %v3136_v36  ;;  %v3012_v40 = vsub.f32 %v16556_v19, %v2882_v22  ;;  %v3013_v39 = vsub.f32 %v16557_v54, %v2882_v22  ;;  %v3444_v3 = vadd.f32 %v13293_v29, %v13290_v12  ;;  %v16558_v54 = vld [vmem:[#allocation116_spill] sm:$0xff] }
0x1375   : > { %v13302_v10 = vpop.eup %10950  ;;  %10970 = vpow2.f32 %v3138_v61  ;;  %v3146_v19 = vmul.f32 1.442695, %v2955_v60 }
0x1376   : > { %v13306_v17 = vpop.eup %10952  ;;  %v3260_v59 = vmul.f32 1.442695, %v3012_v40  ;;  %v3262_v46 = vmul.f32 1.442695, %v3013_v39  ;;  %10972 = vpow2.f32 %v3266_v15  ;;  %3445 = vadd.xlane.f32.xlu1 %v3444_v3  ;;  %3448 = vadd.xlane.f32.xlu0 %v3447_v41  ;;  %v3357_v39 = vadd.f32 %v13296_v25, %v13283_v57 }
0x1377   : > { %v13309_v36 = vpop.eup %10954  ;;  %v2792_v22 = vpop.xlane.xlu1 %2791  ;;  %v3272_v15 = vmul.f32 1.442695, %v3018_v1  ;;  %v3274_v41 = vmul.f32 1.442695, %v3019_v21 }
0x1378   : > { %v13312_v61 = vpop.eup %10956  ;;  %10974 = vpow2.f32 %v3260_v59  ;;  %v2952_v5 = vsub.f32 %v16558_v54, %v2792_v22  ;;  %v2953_v37 = vsub.f32 %v16559_v30, %v2792_v22  ;;  %v3354_v53 = vadd.f32 %v13309_v36, %v13306_v17  ;;  %v16561_v54 = vld [vmem:[#allocation119_spill] sm:$0xff] }
0x1379   : > { %v13318_v40 = vpop.eup %10958  ;;  %10976 = vpow2.f32 %v3262_v46  ;;  %v16560_v46 = vld [vmem:[#allocation117_spill] sm:$0xff] }
0x137a   : > { %v13322_v0 = vpop.eup %10960  ;;  %10978 = vpow2.f32 %v3144_v44  ;;  %v3140_v60 = vmul.f32 1.442695, %v2952_v5  ;;  %v3142_v24 = vmul.f32 1.442695, %v2953_v37  ;;  %3355 = vadd.xlane.f32.xlu1 %v3354_v53  ;;  %3358 = vadd.xlane.f32.xlu0 %v3357_v39  ;;  %v3453_v5 = vadd.f32 %v13312_v61, %v13302_v10 }
0x137b   : > { %v13324_v3 = vpop.eup %10962  ;;  %10980 = vpow2.f32 %v3146_v19  ;;  %v2888_v30 = vpop.xlane.xlu1 %2887 }
0x137c   : > { %v13326_v59 = vpop.eup %10964  ;;  %10982 = vpow2.f32 %v3140_v60  ;;  %v3016_v22 = vsub.f32 %v16560_v46, %v2888_v30  ;;  %v3017_v57 = vsub.f32 %v16561_v54, %v2888_v30  ;;  %v3450_v44 = vadd.f32 %v13324_v3, %v13322_v0 }
0x137d   : > { %v13332_v1 = vpop.eup %10966  ;;  %10984 = vpow2.f32 %v3142_v24  ;;  %v3360_v24 = vadd.f32 %v13326_v59, %v13318_v40 }
0x137e   : > { %16562 = vst [vmem:[#allocation105_spill] sm:$0xff] %v13332_v1  ;;  %v13336_v19 = vpop.eup %10968  ;;  %10986 = vpow2.f32 %v3272_v15  ;;  %v3268_v21 = vmul.f32 1.442695, %v3016_v22  ;;  %v3270_v37 = vmul.f32 1.442695, %v3017_v57  ;;  %3451 = vadd.xlane.f32.xlu1 %v3450_v44  ;;  %3454 = vadd.xlane.f32.xlu0 %v3453_v5 }
0x137f   : > { %v13338_v53 = vpop.eup %10970  ;;  %10988 = vpow2.f32 %v3274_v41 }
0x1380   : > { %10990 = vpow2.f32 %v3268_v21  ;;  %v3363_v39 = vadd.f32 %v13338_v53, %v13336_v19  ;;  %v13342_v60 = vpop.eup %10972 }
0x1381   : > { %16563 = vst [vmem:[#allocation95_spill] sm:$0xff] %v13342_v60  ;;  %10992 = vpow2.f32 %v3270_v37  ;;  %v3459_v22 = vadd.f32 %v13342_v60, %v13332_v1 }
0x1382   : > { %v13346_v30 = vpop.eup %10974  ;;  %3361 = vadd.xlane.f32.xlu1 %v3360_v24  ;;  %3364 = vadd.xlane.f32.xlu0 %v3363_v39 }
0x1383   : > { %16564 = vst [vmem:[#allocation97_spill] sm:$0xff] %v13346_v30  ;;  %v13348_v15 = vpop.eup %10976 }
0x1384   : > { %16565 = vst [vmem:[#allocation107_spill] sm:$0xff] %v13348_v15  ;;  %v13350_v57 = vpop.eup %10978  ;;  %v3456_v41 = vadd.f32 %v13348_v15, %v13346_v30 }
0x1385   : > { %16566 = vst [vmem:[#allocation108_spill] sm:$0xff] %v13350_v57  ;;  %v13354_v46 = vpop.eup %10980 }
0x1386   : > { %16567 = vst [vmem:[#allocation102_spill] sm:$0xff] %v13354_v46  ;;  %v13358_v54 = vpop.eup %10982  ;;  %3457 = vadd.xlane.f32.xlu1 %v3456_v41  ;;  %3460 = vadd.xlane.f32.xlu0 %v3459_v22  ;;  %v3369_v39 = vadd.f32 %v13354_v46, %v13350_v57 }
0x1387   : > { %16568 = vst [vmem:[#allocation103_spill] sm:$0xff] %v13358_v54  ;;  %v13360_v44 = vpop.eup %10984 }
0x1388   : > { %16569 = vst [vmem:[#allocation110_spill] sm:$0xff] %v13360_v44  ;;  %v13362_v5 = vpop.eup %10986  ;;  %v3366_v21 = vadd.f32 %v13360_v44, %v13358_v54 }
0x1389   : > { %16570 = vst [vmem:[#allocation112_spill] sm:$0xff] %v13362_v5  ;;  %v13366_v37 = vpop.eup %10988 }
0x138a   : > { %16571 = vst [vmem:[#allocation115_spill] sm:$0xff] %v13366_v37  ;;  %v13370_v24 = vpop.eup %10990  ;;  %3367 = vadd.xlane.f32.xlu1 %v3366_v21  ;;  %3370 = vadd.xlane.f32.xlu0 %v3369_v39  ;;  %v3465_v22 = vadd.f32 %v13366_v37, %v13362_v5 }
0x138b   : > { %16572 = vst [vmem:[#allocation113_spill] sm:$0xff] %v13370_v24  ;;  %v13372_v30 = vpop.eup %10992 }
0x138c   : > { %v3462_v41 = vadd.f32 %v13372_v30, %v13370_v24 }
0x138e   : > { %3463 = vadd.xlane.f32.xlu1 %v3462_v41  ;;  %3466 = vadd.xlane.f32.xlu0 %v3465_v22 }
0x1390   : > { %v3278_v54 = vpop.xlane.xlu1 %3277 }
0x1391   : > { %10994 = vrcp.f32 %v3278_v54 }
0x1392   : > { %v3281_v44 = vpop.xlane.xlu0 %3280 }
0x1393   : > { %10996 = vrcp.f32 %v3281_v44 }
0x1394   : > { %v3374_v1 = vpop.xlane.xlu1 %3373 }
0x1395   : > { %10998 = vrcp.f32 %v3374_v1 }
0x1398   : > { %v3377_v57 = vpop.xlane.xlu0 %3376 }
0x1399   : > { %11000 = vrcp.f32 %v3377_v57 }
0x139b   : > { %v10995_v46 = vpop.eup %10994 }
0x139c   : > { %v3284_v60 = vpop.xlane.xlu1 %3283  ;;  %v3287_v21 = vpop.xlane.xlu0 %3286  ;;  %v3532_v15 = vmul.f32 %v10995_v46, %v12838_v62  ;;  %v3533_v41 = vmul.f32 %v10995_v46, %v12842_v49 }
0x139d   : > { %v10997_v39 = vpop.eup %10996  ;;  %11002 = vrcp.f32 %v3284_v60 }
0x139e   : > { %v3534_v24 = vmul.f32 %v10997_v39, %v12844_v33  ;;  %11004 = vrcp.f32 %v3287_v21  ;;  %v3535_v54 = vmul.f32 %v10997_v39, %v12847_v31 }
0x139f   : > { %v10999_v37 = vpop.eup %10998 }
0x13a0   : > { %v3380_v22 = vpop.xlane.xlu1 %3379  ;;  %v3383_v44 = vpop.xlane.xlu0 %3382  ;;  %v3821_v5 = vpack.c.bf16 %v3535_v54, %v3533_v41  ;;  %v3820_v1 = vpack.c.bf16 %v3534_v24, %v3532_v15  ;;  %v3596_v62 = vmul.f32 %v10999_v37, %v12852_v55  ;;  %v3597_v49 = vmul.f32 %v10999_v37, %v12856_v20 }
0x13a1   : > { %11006 = vrcp.f32 %v3380_v22 }
0x13a2   : > { %11008 = vrcp.f32 %v3383_v44  ;;  %3916 = vmatprep.mubr.bf16.mxu1 %v3821_v5 }
0x13a3   : > { %v11001_v57 = vpop.eup %11000  ;;  %3917 = vmatmul.mubr.bf16.vlgmr.msra.gmra.mrb[88].mxu1 %v3820_v1 }
0x13a4   : > { %v3598_v60 = vmul.f32 %v11001_v57, %v12864_v7  ;;  %v3290_v33 = vpop.xlane.xlu1 %3289  ;;  %v3293_v21 = vpop.xlane.xlu0 %3292  ;;  %v3599_v31 = vmul.f32 %v11001_v57, %v12868_v43 }
0x13a5   : > { %11010 = vrcp.f32 %v3290_v33 }
0x13a6   : > { %11012 = vrcp.f32 %v3293_v21  ;;  %v3853_v46 = vpack.c.bf16 %v3599_v31, %v3597_v49  ;;  %v3852_v15 = vpack.c.bf16 %v3598_v60, %v3596_v62 }
0x13a7   : > { %v11003_v24 = vpop.eup %11002 }
0x13a8   : > { %v11005_v39 = vpop.eup %11004  ;;  %v3386_v41 = vpop.xlane.xlu1 %3385  ;;  %4077 = vmatprep.mubr.bf16.mxu0 %v3853_v46  ;;  %v3537_v54 = vmul.f32 %v11003_v24, %v12882_v42  ;;  %v3536_v55 = vmul.f32 %v11003_v24, %v12878_v51 }
0x13a9   : > { %v3389_v5 = vpop.xlane.xlu0 %3388  ;;  %11014 = vrcp.f32 %v3386_v41  ;;  %4078 = vmatmul.mubr.bf16.vlgmr.msra.gmra.mrb[80].mxu0 %v3852_v15  ;;  %v3539_v7 = vmul.f32 %v11005_v39, %v12873_v9  ;;  %v3538_v20 = vmul.f32 %v11005_v39, %v12870_v16 }
0x13aa   : > { %11016 = vrcp.f32 %v3389_v5 }
0x13ab   : > { %v11007_v43 = vpop.eup %11006  ;;  %v3823_v37 = vpack.c.bf16 %v3539_v7, %v3537_v54  ;;  %v3822_v22 = vpack.c.bf16 %v3538_v20, %v3536_v55 }
0x13ac   : > { %v11009_v44 = vpop.eup %11008  ;;  %v3296_v1 = vpop.xlane.xlu1 %3295  ;;  %v3601_v62 = vmul.f32 %v11007_v43, %v12898_v2  ;;  %v3600_v60 = vmul.f32 %v11007_v43, %v12894_v18 }
0x13ad   : > { %v3299_v57 = vpop.xlane.xlu0 %3298  ;;  %11018 = vrcp.f32 %v3296_v1  ;;  %3924 = vmatprep.mubr.bf16.mxu1 %v3823_v37  ;;  %v3603_v51 = vmul.f32 %v11009_v44, %v12887_v34  ;;  %v3602_v42 = vmul.f32 %v11009_v44, %v12884_v56 }
0x13ae   : > { %11020 = vrcp.f32 %v3299_v57  ;;  %3925 = vmatmul.mubr.bf16.gmra.mrb[92].mxu1 %v3822_v22 }
0x13af   : > { %v11011_v16 = vpop.eup %11010  ;;  %v3855_v9 = vpack.c.bf16 %v3603_v51, %v3601_v62  ;;  %v3854_v33 = vpack.c.bf16 %v3602_v42, %v3600_v60  ;;  %v16573_v42 = vld [vmem:[#allocation39_spill] sm:$0xff] }
0x13b0   : > { %v11013_v21 = vpop.eup %11012  ;;  %v3392_v49 = vpop.xlane.xlu1 %3391  ;;  %v3541_v46 = vmul.f32 %v11011_v16, %v12914_v48  ;;  %v3540_v2 = vmul.f32 %v11011_v16, %v12910_v8 }
0x13b1   : > { %v3395_v31 = vpop.xlane.xlu0 %3394  ;;  %11022 = vrcp.f32 %v3392_v49  ;;  %4085 = vmatprep.mubr.bf16.mxu0 %v3855_v9  ;;  %v3543_v18 = vmul.f32 %v11013_v21, %v12903_v52  ;;  %v3542_v34 = vmul.f32 %v11013_v21, %v12900_v28  ;;  %v16575_v9 = vld [vmem:[#allocation36_spill] sm:$0xff] }
0x13b2   : > { %11024 = vrcp.f32 %v3395_v31  ;;  %4086 = vmatmul.mubr.bf16.gmra.mrb[84].mxu0 %v3854_v33 }
0x13b3   : > { %v11015_v56 = vpop.eup %11014  ;;  %v3825_v15 = vpack.c.bf16 %v3543_v18, %v3541_v46  ;;  %v3824_v24 = vpack.c.bf16 %v3542_v34, %v3540_v2  ;;  %v16576_v46 = vld [vmem:[#allocation46_spill] sm:$0xff]  ;;  %v16577_v18 = vld [vmem:[#allocation45_spill] sm:$0xff] }
0x13b4   : > { %v11017_v39 = vpop.eup %11016  ;;  %v3302_v41 = vpop.xlane.xlu1 %3301  ;;  %v3605_v54 = vmul.f32 %v11015_v56, %v12930_v38  ;;  %v3604_v48 = vmul.f32 %v11015_v56, %v12926_v32 }
0x13b5   : > { %v3305_v5 = vpop.xlane.xlu0 %3304  ;;  %11026 = vrcp.f32 %v3302_v41  ;;  %3932 = vmatprep.mubr.bf16.mxu1 %v3825_v15  ;;  %v3607_v8 = vmul.f32 %v11017_v39, %v12919_v26  ;;  %v3606_v52 = vmul.f32 %v11017_v39, %v12916_v58  ;;  %v16579_v15 = vld [vmem:[#allocation35_spill] sm:$0xff] }
0x13b6   : > { %11028 = vrcp.f32 %v3305_v5  ;;  %3933 = vmatmul.mubr.bf16.gmra.mrb[96].mxu1 %v3824_v24 }
0x13b7   : > { %v11019_v28 = vpop.eup %11018  ;;  %v3857_v55 = vpack.c.bf16 %v3607_v8, %v3605_v54  ;;  %v3856_v7 = vpack.c.bf16 %v3606_v52, %v3604_v48  ;;  %v16580_v8 = vld [vmem:[#allocation43_spill] sm:$0xff] }
0x13b8   : > { %v11021_v20 = vpop.eup %11020  ;;  %v3398_v43 = vpop.xlane.xlu1 %3397  ;;  %v3545_v22 = vmul.f32 %v11019_v28, %v12946_v35  ;;  %v3544_v38 = vmul.f32 %v11019_v28, %v12942_v27  ;;  %v16574_v27 = vld [vmem:[#allocation38_spill] sm:$0xff]  ;;  %v16581_v28 = vld [vmem:[#allocation40_spill] sm:$0xff] }
0x13b9   : > { %v3401_v37 = vpop.xlane.xlu0 %3400  ;;  %11030 = vrcp.f32 %v3398_v43  ;;  %4093 = vmatprep.mubr.bf16.mxu0 %v3857_v55  ;;  %v3547_v32 = vmul.f32 %v11021_v20, %v12935_v50  ;;  %v3546_v26 = vmul.f32 %v11021_v20, %v12932_v13  ;;  %v16583_v43 = vld [vmem:[#allocation41_spill] sm:$0xff] }
0x13ba   : > { %11032 = vrcp.f32 %v3401_v37  ;;  %4094 = vmatmul.mubr.bf16.gmra.mrb[88].mxu0 %v3856_v7  ;;  %v16582_v7 = vld [vmem:[#allocation42_spill] sm:$0xff] }
0x13bb   : > { %v11023_v58 = vpop.eup %11022  ;;  %v3827_v44 = vpack.c.bf16 %v3547_v32, %v3545_v22  ;;  %v3826_v1 = vpack.c.bf16 %v3546_v26, %v3544_v38 }
0x13bc   : > { %v11025_v57 = vpop.eup %11024  ;;  %v3308_v62 = vpop.xlane.xlu1 %3307  ;;  %v3609_v51 = vmul.f32 %v11023_v58, %v12960_v45  ;;  %v3608_v35 = vmul.f32 %v11023_v58, %v16573_v42  ;;  %v16578_v45 = vld [vmem:[#allocation37_spill] sm:$0xff]  ;;  %v16587_v42 = vld [vmem:[#allocation44_spill] sm:$0xff] }
0x13bd   : > { %v3311_v60 = vpop.xlane.xlu0 %3310  ;;  %11034 = vrcp.f32 %v3308_v62  ;;  %3940 = vmatprep.mubr.bf16.mxu1 %v3827_v44  ;;  %v3611_v16 = vmul.f32 %v11025_v57, %v16574_v27  ;;  %v3610_v50 = vmul.f32 %v11025_v57, %v16575_v9  ;;  %v16584_v44 = vld [vmem:[#allocation50_spill] sm:$0xff]  ;;  %v16585_v57 = vld [vmem:[#allocation48_spill] sm:$0xff] }
0x13be   : > { %11036 = vrcp.f32 %v3311_v60  ;;  %3941 = vmatmul.mubr.bf16.gmra.mrb[100].mxu1 %v3826_v1  ;;  %v16586_v60 = vld [vmem:[#allocation47_spill] sm:$0xff] }
0x13bf   : > { %v11027_v13 = vpop.eup %11026  ;;  %v3859_v33 = vpack.c.bf16 %v3611_v16, %v3609_v51  ;;  %v3858_v21 = vpack.c.bf16 %v3610_v50, %v3608_v35 }
0x13c0   : > { %v11029_v49 = vpop.eup %11028  ;;  %v3404_v31 = vpop.xlane.xlu1 %3403  ;;  %v3549_v2 = vmul.f32 %v11027_v13, %v16576_v46  ;;  %v3548_v34 = vmul.f32 %v11027_v13, %v16577_v18 }
0x13c1   : > { %4101 = vmatprep.mubr.bf16.mxu0 %v3859_v33  ;;  %v3551_v56 = vmul.f32 %v11029_v49, %v16578_v45  ;;  %v3550_v24 = vmul.f32 %v11029_v49, %v16579_v15  ;;  %11038 = vrcp.f32 %v3404_v31  ;;  %v16589_v31 = vld [vmem:[#allocation49_spill] sm:$0xff] }
0x13c2   : > { %4102 = vmatmul.mubr.bf16.gmra.mrb[92].mxu0 %v3858_v21  ;;  %v16588_v21 = vld [vmem:[#allocation55_spill] sm:$0xff] }
0x13c3   : > { %v11031_v39 = vpop.eup %11030  ;;  %v3829_v41 = vpack.c.bf16 %v3551_v56, %v3549_v2  ;;  %v3828_v5 = vpack.c.bf16 %v3550_v24, %v3548_v34  ;;  %v3407_v48 = vpop.xlane.xlu0 %3406  ;;  %v16590_v2 = vld [vmem:[#allocation52_spill] sm:$0xff] }
0x13c4   : > { %v11033_v54 = vpop.eup %11032  ;;  %v3613_v52 = vmul.f32 %v11031_v39, %v16580_v8  ;;  %v3612_v55 = vmul.f32 %v11031_v39, %v16581_v28  ;;  %11040 = vrcp.f32 %v3407_v48  ;;  %v16591_v34 = vld [vmem:[#allocation60_spill] sm:$0xff]  ;;  %v16592_v48 = vld [vmem:[#allocation62_spill] sm:$0xff] }
0x13c5   : > { %3948 = vmatprep.mubr.bf16.mxu1 %v3829_v41  ;;  %v3615_v20 = vmul.f32 %v11033_v54, %v16582_v7  ;;  %v3614_v37 = vmul.f32 %v11033_v54, %v16583_v43 }
0x13c6   : > { %3949 = vmatmul.mubr.bf16.gmra.mrb[104].mxu1 %v3828_v5 }
0x13c7   : > { %v11035_v22 = vpop.eup %11034  ;;  %v3861_v38 = vpack.c.bf16 %v3615_v20, %v3613_v52  ;;  %v3860_v32 = vpack.c.bf16 %v3614_v37, %v3612_v55  ;;  %v3314_v58 = vpop.xlane.xlu1 %3313  ;;  %v16593_v52 = vld [vmem:[#allocation53_spill] sm:$0xff]  ;;  %v16594_v55 = vld [vmem:[#allocation51_spill] sm:$0xff] }
0x13c8   : > { %v11037_v26 = vpop.eup %11036  ;;  %v3553_v1 = vmul.f32 %v11035_v22, %v16584_v44  ;;  %v3552_v62 = vmul.f32 %v11035_v22, %v16585_v57  ;;  %11042 = vrcp.f32 %v3314_v58  ;;  %v16595_v20 = vld [vmem:[#allocation61_spill] sm:$0xff]  ;;  %v16596_v57 = vld [vmem:[#allocation63_spill] sm:$0xff] }
0x13c9   : > { %4109 = vmatprep.mubr.bf16.mxu0 %v3861_v38  ;;  %v3555_v51 = vmul.f32 %v11037_v26, %v16586_v60  ;;  %v3554_v35 = vmul.f32 %v11037_v26, %v16587_v42  ;;  %v16597_v60 = vld [vmem:[#allocation58_spill] sm:$0xff] }
0x13ca   : > { %4110 = vmatmul.mubr.bf16.gmra.mrb[96].mxu0 %v3860_v32  ;;  %v16598_v42 = vld [vmem:[#allocation54_spill] sm:$0xff] }
0x13cb   : > { %v3831_v27 = vpack.c.bf16 %v3555_v51, %v3553_v1  ;;  %v3830_v16 = vpack.c.bf16 %v3554_v35, %v3552_v62  ;;  %v3317_v9 = vpop.xlane.xlu0 %3316  ;;  %v11039_v50 = vpop.eup %11038 }
0x13cc   : > { %11044 = vrcp.f32 %v3317_v9  ;;  %v3617_v49 = vmul.f32 %v11039_v50, %v16588_v21  ;;  %v3616_v18 = vmul.f32 %v11039_v50, %v16590_v2  ;;  %v16601_v2 = vld [vmem:[#allocation57_spill] sm:$0xff] }
0x13cd   : > { %3956 = vmatprep.mubr.bf16.mxu1 %v3831_v27  ;;  %v16599_v27 = vld [vmem:[#allocation56_spill] sm:$0xff] }
0x13ce   : > { %3957 = vmatmul.mubr.bf16.gmra.mrb[108].mxu1 %v3830_v16  ;;  %v11041_v13 = vpop.eup %11040 }
0x13cf   : > { %v3410_v33 = vpop.xlane.xlu1 %3409  ;;  %v3619_v46 = vmul.f32 %v11041_v13, %v16589_v31  ;;  %v3618_v45 = vmul.f32 %v11041_v13, %v16591_v34  ;;  %v16600_v31 = vld [vmem:[#allocation59_spill] sm:$0xff]  ;;  %v16602_v34 = vld [vmem:[#allocation70_spill] sm:$0xff] }
0x13d0   : > { %11046 = vrcp.f32 %v3410_v33 }
0x13d1   : > { %v3863_v56 = vpack.c.bf16 %v3619_v46, %v3617_v49  ;;  %v3862_v15 = vpack.c.bf16 %v3618_v45, %v3616_v18 }
0x13d2   : > { %v11043_v39 = vpop.eup %11042 }
0x13d3   : > { %4117 = vmatprep.mubr.bf16.mxu0 %v3863_v56  ;;  %v3413_v24 = vpop.xlane.xlu0 %3412  ;;  %v3557_v8 = vmul.f32 %v11043_v39, %v16592_v48  ;;  %v3556_v7 = vmul.f32 %v11043_v39, %v16594_v55  ;;  %v16603_v56 = vld [vmem:[#allocation68_spill] sm:$0xff] }
0x13d4   : > { %11048 = vrcp.f32 %v3413_v24  ;;  %4118 = vmatmul.mubr.bf16.gmra.mrb[100].mxu0 %v3862_v15 }
0x13d6   : > { %v11045_v41 = vpop.eup %11044 }
0x13d7   : > { %v3320_v5 = vpop.xlane.xlu1 %3319  ;;  %v3323_v54 = vpop.xlane.xlu0 %3322  ;;  %v3559_v28 = vmul.f32 %v11045_v41, %v16593_v52  ;;  %v3558_v43 = vmul.f32 %v11045_v41, %v16595_v20 }
0x13d8   : > { %11050 = vrcp.f32 %v3320_v5 }
0x13d9   : > { %11052 = vrcp.f32 %v3323_v54  ;;  %v3833_v37 = vpack.c.bf16 %v3559_v28, %v3557_v8  ;;  %v3832_v22 = vpack.c.bf16 %v3558_v43, %v3556_v7  ;;  %v16604_v8 = vld [vmem:[#allocation66_spill] sm:$0xff]  ;;  %v16605_v28 = vld [vmem:[#allocation64_spill] sm:$0xff]  ;;  %v16606_v7 = vld [vmem:[#allocation71_spill] sm:$0xff] }
0x13da   : > { %v11047_v26 = vpop.eup %11046  ;;  %v16607_v43 = vld [vmem:[#allocation69_spill] sm:$0xff] }
0x13db   : > { %v3416_v38 = vpop.xlane.xlu1 %3415  ;;  %3964 = vmatprep.mubr.bf16.mxu1 %v3833_v37  ;;  %v3419_v32 = vpop.xlane.xlu0 %3418  ;;  %v3621_v62 = vmul.f32 %v11047_v26, %v16596_v57  ;;  %v3620_v35 = vmul.f32 %v11047_v26, %v16598_v42 }
0x13dc   : > { %11054 = vrcp.f32 %v3416_v38  ;;  %3965 = vmatmul.mubr.bf16.gmra.mrb[112].mxu1 %v3832_v22 }
0x13dd   : > { %11056 = vrcp.f32 %v3419_v32 }
0x13de   : > { %v11049_v58 = vpop.eup %11048 }
0x13df   : > { %v3326_v44 = vpop.xlane.xlu1 %3325  ;;  %v3329_v1 = vpop.xlane.xlu0 %3328  ;;  %v3623_v51 = vmul.f32 %v11049_v58, %v16597_v60  ;;  %v3622_v16 = vmul.f32 %v11049_v58, %v16599_v27 }
0x13e0   : > { %11058 = vrcp.f32 %v3326_v44 }
0x13e1   : > { %11060 = vrcp.f32 %v3329_v1  ;;  %v3865_v9 = vpack.c.bf16 %v3623_v51, %v3621_v62  ;;  %v3864_v50 = vpack.c.bf16 %v3622_v16, %v3620_v35  ;;  %v16608_v1 = vld [vmem:[#allocation67_spill] sm:$0xff]  ;;  %v16609_v62 = vld [vmem:[#allocation65_spill] sm:$0xff]  ;;  %v16610_v51 = vld [vmem:[#allocation78_spill] sm:$0xff] }
0x13e2   : > { %v11051_v13 = vpop.eup %11050  ;;  %v16611_v35 = vld [vmem:[#allocation76_spill] sm:$0xff] }
0x13e3   : > { %v11053_v33 = vpop.eup %11052  ;;  %v3422_v21 = vpop.xlane.xlu1 %3421  ;;  %4125 = vmatprep.mubr.bf16.mxu0 %v3865_v9  ;;  %v3561_v46 = vmul.f32 %v11051_v13, %v16600_v31  ;;  %v3560_v18 = vmul.f32 %v11051_v13, %v16601_v2 }
0x13e4   : > { %v3425_v49 = vpop.xlane.xlu0 %3424  ;;  %11062 = vrcp.f32 %v3422_v21  ;;  %4126 = vmatmul.mubr.bf16.gmra.mrb[104].mxu0 %v3864_v50  ;;  %v3563_v45 = vmul.f32 %v11053_v33, %v16602_v34  ;;  %v3562_v15 = vmul.f32 %v11053_v33, %v16603_v56 }
0x13e5   : > { %11064 = vrcp.f32 %v3425_v49  ;;  %v16612_v49 = vld [vmem:[#allocation74_spill] sm:$0xff] }
0x13e6   : > { %v11055_v24 = vpop.eup %11054  ;;  %v3835_v39 = vpack.c.bf16 %v3563_v45, %v3561_v46  ;;  %v3834_v41 = vpack.c.bf16 %v3562_v15, %v3560_v18  ;;  %v16613_v46 = vld [vmem:[#allocation72_spill] sm:$0xff]  ;;  %v16614_v18 = vld [vmem:[#allocation79_spill] sm:$0xff]  ;;  %v16615_v45 = vld [vmem:[#allocation77_spill] sm:$0xff] }
0x13e7   : > { %v11057_v5 = vpop.eup %11056  ;;  %v3332_v54 = vpop.xlane.xlu1 %3331  ;;  %v3625_v52 = vmul.f32 %v11055_v24, %v16604_v8  ;;  %v3624_v55 = vmul.f32 %v11055_v24, %v16605_v28  ;;  %v16616_v8 = vld [vmem:[#allocation85_spill] sm:$0xff] }
0x13e8   : > { %v3335_v48 = vpop.xlane.xlu0 %3334  ;;  %11066 = vrcp.f32 %v3332_v54  ;;  %3972 = vmatprep.mubr.bf16.mxu1 %v3835_v39  ;;  %v3627_v20 = vmul.f32 %v11057_v5, %v16606_v7  ;;  %v3626_v37 = vmul.f32 %v11057_v5, %v16607_v43 }
0x13e9   : > { %11068 = vrcp.f32 %v3335_v48  ;;  %3973 = vmatmul.mubr.bf16.gmra.mrb[116].mxu1 %v3834_v41 }
0x13ea   : > { %v11059_v22 = vpop.eup %11058  ;;  %v3867_v38 = vpack.c.bf16 %v3627_v20, %v3625_v52  ;;  %v3866_v32 = vpack.c.bf16 %v3626_v37, %v3624_v55  ;;  %v16617_v55 = vld [vmem:[#allocation84_spill] sm:$0xff] }
0x13eb   : > { %v11061_v26 = vpop.eup %11060  ;;  %v3428_v58 = vpop.xlane.xlu1 %3427  ;;  %v3565_v57 = vmul.f32 %v11059_v22, %v16608_v1  ;;  %v3564_v60 = vmul.f32 %v11059_v22, %v16609_v62  ;;  %v16620_v1 = vld [vmem:[#allocation73_spill] sm:$0xff]  ;;  %v16621_v62 = vld [vmem:[#allocation86_spill] sm:$0xff] }
0x13ec   : > { %v3431_v44 = vpop.xlane.xlu0 %3430  ;;  %11070 = vrcp.f32 %v3428_v58  ;;  %4133 = vmatprep.mubr.bf16.mxu0 %v3867_v38  ;;  %v3567_v42 = vmul.f32 %v11061_v26, %v16610_v51  ;;  %v3566_v27 = vmul.f32 %v11061_v26, %v16611_v35  ;;  %v16618_v26 = vld [vmem:[#allocation90_spill] sm:$0xff] }
0x13ed   : > { %11072 = vrcp.f32 %v3431_v44  ;;  %4134 = vmatmul.mubr.bf16.gmra.mrb[108].mxu0 %v3866_v32  ;;  %v16619_v44 = vld [vmem:[#allocation87_spill] sm:$0xff] }
0x13ee   : > { %v11063_v16 = vpop.eup %11062  ;;  %v3837_v9 = vpack.c.bf16 %v3567_v42, %v3565_v57  ;;  %v3836_v50 = vpack.c.bf16 %v3566_v27, %v3564_v60 }
0x13ef   : > { %v11065_v13 = vpop.eup %11064  ;;  %v3338_v33 = vpop.xlane.xlu1 %3337  ;;  %v3629_v31 = vmul.f32 %v11063_v16, %v16612_v49  ;;  %v3628_v2 = vmul.f32 %v11063_v16, %v16613_v46  ;;  %v16624_v49 = vld [vmem:[#allocation75_spill] sm:$0xff] }
0x13f0   : > { %v3341_v21 = vpop.xlane.xlu0 %3340  ;;  %11074 = vrcp.f32 %v3338_v33  ;;  %3980 = vmatprep.mubr.bf16.mxu1 %v3837_v9  ;;  %v3631_v34 = vmul.f32 %v11065_v13, %v16614_v18  ;;  %v3630_v56 = vmul.f32 %v11065_v13, %v16615_v45  ;;  %v16623_v33 = vld [vmem:[#allocation80_spill] sm:$0xff] }
0x13f1   : > { %11076 = vrcp.f32 %v3341_v21  ;;  %3981 = vmatmul.mubr.bf16.gmra.mrb[120].mxu1 %v3836_v50  ;;  %v16622_v50 = vld [vmem:[#allocation92_spill] sm:$0xff] }
0x13f2   : > { %v11067_v15 = vpop.eup %11066  ;;  %v3869_v24 = vpack.c.bf16 %v3631_v34, %v3629_v31  ;;  %v3868_v39 = vpack.c.bf16 %v3630_v56, %v3628_v2 }
0x13f3   : > { %v11069_v41 = vpop.eup %11068  ;;  %v3434_v5 = vpop.xlane.xlu1 %3433  ;;  %v3569_v48 = vmul.f32 %v11067_v15, %v13166_v14  ;;  %v3568_v52 = vmul.f32 %v11067_v15, %v16616_v8  ;;  %v16625_v15 = vld [vmem:[#allocation83_spill] sm:$0xff] }
0x13f4   : > { %v3437_v54 = vpop.xlane.xlu0 %3436  ;;  %11078 = vrcp.f32 %v3434_v5  ;;  %4141 = vmatprep.mubr.bf16.mxu0 %v3869_v24  ;;  %v3571_v28 = vmul.f32 %v11069_v41, %v13150_v4  ;;  %v3570_v7 = vmul.f32 %v11069_v41, %v16617_v55  ;;  %v16627_v41 = vld [vmem:[#allocation91_spill] sm:$0xff] }
0x13f5   : > { %11080 = vrcp.f32 %v3437_v54  ;;  %4142 = vmatmul.mubr.bf16.gmra.mrb[112].mxu0 %v3868_v39  ;;  %v16626_v39 = vld [vmem:[#allocation81_spill] sm:$0xff]  ;;  %v16628_v54 = vld [vmem:[#allocation82_spill] sm:$0xff] }
0x13f6   : > { %v11071_v20 = vpop.eup %11070  ;;  %v3839_v43 = vpack.c.bf16 %v3571_v28, %v3569_v48  ;;  %v3838_v37 = vpack.c.bf16 %v3570_v7, %v3568_v52 }
0x13f7   : > { %v11073_v22 = vpop.eup %11072  ;;  %v3344_v38 = vpop.xlane.xlu1 %3343  ;;  %v3633_v58 = vmul.f32 %v11071_v20, %v16618_v26  ;;  %v3632_v14 = vmul.f32 %v11071_v20, %v16619_v44 }
0x13f8   : > { %v3347_v32 = vpop.xlane.xlu0 %3346  ;;  %11082 = vrcp.f32 %v3344_v38  ;;  %3988 = vmatprep.mubr.bf16.mxu1 %v3839_v43  ;;  %v3635_v57 = vmul.f32 %v11073_v22, %v16620_v1  ;;  %v3634_v4 = vmul.f32 %v11073_v22, %v16621_v62  ;;  %v16629_v43 = vld [vmem:[#allocation88_spill] sm:$0xff]  ;;  %v16630_v22 = vld [vmem:[#allocation98_spill] sm:$0xff] }
0x13f9   : > { %11084 = vrcp.f32 %v3347_v32  ;;  %3989 = vmatmul.mubr.bf16.gmra.mrb[124].mxu1 %v3838_v37 }
0x13fa   : > { %v11075_v60 = vpop.eup %11074  ;;  %v3871_v51 = vpack.c.bf16 %v3635_v57, %v3633_v58  ;;  %v3870_v42 = vpack.c.bf16 %v3634_v4, %v3632_v14 }
0x13fb   : > { %v11077_v35 = vpop.eup %11076  ;;  %v3440_v27 = vpop.xlane.xlu1 %3439  ;;  %v3573_v9 = vmul.f32 %v11075_v60, %v13206_v6  ;;  %v3572_v13 = vmul.f32 %v11075_v60, %v16622_v50  ;;  %v16631_v60 = vld [vmem:[#allocation99_spill] sm:$0xff] }
0x13fc   : > { %v3443_v16 = vpop.xlane.xlu0 %3442  ;;  %11086 = vrcp.f32 %v3440_v27  ;;  %4149 = vmatprep.mubr.bf16.mxu0 %v3871_v51  ;;  %v3575_v21 = vmul.f32 %v11077_v35, %v16623_v33  ;;  %v3574_v31 = vmul.f32 %v11077_v35, %v16624_v49  ;;  %v16633_v27 = vld [vmem:[#allocation93_spill] sm:$0xff]  ;;  %v16634_v49 = vld [vmem:[#allocation94_spill] sm:$0xff] }
0x13fd   : > { %11088 = vrcp.f32 %v3443_v16  ;;  %4150 = vmatmul.mubr.bf16.gmra.mrb[116].mxu0 %v3870_v42  ;;  %v16632_v42 = vld [vmem:[#allocation89_spill] sm:$0xff] }
0x13fe   : > { %v11079_v46 = vpop.eup %11078  ;;  %v3841_v2 = vpack.c.bf16 %v3575_v21, %v3573_v9  ;;  %v3840_v18 = vpack.c.bf16 %v3574_v31, %v3572_v13  ;;  %v16635_v31 = vld [vmem:[#allocation101_spill] sm:$0xff] }
0x13ff   : > { %v11081_v34 = vpop.eup %11080  ;;  %v3350_v45 = vpop.xlane.xlu1 %3349  ;;  %v3637_v24 = vmul.f32 %v11079_v46, %v16625_v15  ;;  %v3636_v6 = vmul.f32 %v11079_v46, %v16626_v39 }
0x1400   : > { %v3353_v56 = vpop.xlane.xlu0 %3352  ;;  %11090 = vrcp.f32 %v3350_v45  ;;  %3996 = vmatprep.mubr.bf16.mxu1 %v3841_v2  ;;  %v3639_v5 = vmul.f32 %v11081_v34, %v16627_v41  ;;  %v3638_v48 = vmul.f32 %v11081_v34, %v16628_v54  ;;  %v16636_v2 = vld [vmem:[#allocation100_spill] sm:$0xff] }
0x1401   : > { %11092 = vrcp.f32 %v3353_v56  ;;  %3997 = vmatmul.mubr.bf16.gmra.mrb[128].mxu1 %v3840_v18  ;;  %v16637_v41 = vld [vmem:[#allocation96_spill] sm:$0xff] }
0x1402   : > { %v11083_v8 = vpop.eup %11082  ;;  %v3873_v52 = vpack.c.bf16 %v3639_v5, %v3637_v24  ;;  %v3872_v28 = vpack.c.bf16 %v3638_v48, %v3636_v6  ;;  %v16638_v54 = vld [vmem:[#allocation104_spill] sm:$0xff] }
0x1403   : > { %v11085_v55 = vpop.eup %11084  ;;  %v3446_v7 = vpop.xlane.xlu1 %3445  ;;  %v3577_v37 = vmul.f32 %v11083_v8, %v16629_v43  ;;  %v3576_v38 = vmul.f32 %v11083_v8, %v16630_v22 }
0x1404   : > { %v3449_v20 = vpop.xlane.xlu0 %3448  ;;  %11094 = vrcp.f32 %v3446_v7  ;;  %4157 = vmatprep.mubr.bf16.mxu0 %v3873_v52  ;;  %v3579_v32 = vmul.f32 %v11085_v55, %v13230_v23  ;;  %v3578_v26 = vmul.f32 %v11085_v55, %v13213_v47 }
0x1405   : > { %11096 = vrcp.f32 %v3449_v20  ;;  %4158 = vmatmul.mubr.bf16.gmra.mrb[120].mxu0 %v3872_v28 }
0x1406   : > { %v11087_v58 = vpop.eup %11086  ;;  %v3843_v44 = vpack.c.bf16 %v3579_v32, %v3577_v37  ;;  %v3842_v14 = vpack.c.bf16 %v3578_v26, %v3576_v38  ;;  %v16639_v37 = vld [vmem:[#allocation106_spill] sm:$0xff] }
0x1407   : > { %v11089_v1 = vpop.eup %11088  ;;  %v3356_v57 = vpop.xlane.xlu1 %3355  ;;  %v3641_v4 = vmul.f32 %v11087_v58, %v13262_v63  ;;  %v3640_v51 = vmul.f32 %v11087_v58, %v16631_v60 }
0x1408   : > { %v3359_v62 = vpop.xlane.xlu0 %3358  ;;  %11098 = vrcp.f32 %v3356_v57  ;;  %4004 = vmatprep.mubr.bf16.mxu1 %v3843_v44  ;;  %v3643_v35 = vmul.f32 %v11089_v1, %v16632_v42  ;;  %v3642_v23 = vmul.f32 %v11089_v1, %v16633_v27 }
0x1409   : > { %11100 = vrcp.f32 %v3359_v62  ;;  %4005 = vmatmul.mubr.bf16.gmra.mrb[132].mxu1 %v3842_v14 }
0x140a   : > { %v11091_v47 = vpop.eup %11090  ;;  %v3875_v16 = vpack.c.bf16 %v3643_v35, %v3641_v4  ;;  %v3874_v9 = vpack.c.bf16 %v3642_v23, %v3640_v51 }
0x140b   : > { %v11093_v50 = vpop.eup %11092  ;;  %v3452_v13 = vpop.xlane.xlu1 %3451  ;;  %v3581_v21 = vmul.f32 %v11091_v47, %v13277_v11  ;;  %v3580_v63 = vmul.f32 %v11091_v47, %v16634_v49 }
0x140c   : > { %v3455_v33 = vpop.xlane.xlu0 %3454  ;;  %11102 = vrcp.f32 %v3452_v13  ;;  %4165 = vmatprep.mubr.bf16.mxu0 %v3875_v16  ;;  %v3583_v46 = vmul.f32 %v11093_v50, %v16635_v31  ;;  %v3582_v18 = vmul.f32 %v11093_v50, %v16636_v2  ;;  %v16640_v16 = vld [vmem:[#allocation107_spill] sm:$0xff]  ;;  %v16641_v50 = vld [vmem:[#allocation97_spill] sm:$0xff]  ;;  %v16644_v31 = vld [vmem:[#allocation110_spill] sm:$0xff] }
0x140d   : > { %11104 = vrcp.f32 %v3455_v33  ;;  %4166 = vmatmul.mubr.bf16.gmra.mrb[124].mxu0 %v3874_v9  ;;  %v16645_v2 = vld [vmem:[#allocation103_spill] sm:$0xff] }
0x140e   : > { %v11095_v34 = vpop.eup %11094  ;;  %v3845_v45 = vpack.c.bf16 %v3583_v46, %v3581_v21  ;;  %v3844_v56 = vpack.c.bf16 %v3582_v18, %v3580_v63 }
0x140f   : > { %v11097_v15 = vpop.eup %11096  ;;  %v3362_v24 = vpop.xlane.xlu1 %3361  ;;  %v3645_v6 = vmul.f32 %v11095_v34, %v13293_v29  ;;  %v3644_v11 = vmul.f32 %v11095_v34, %v13290_v12  ;;  %v16646_v34 = vld [vmem:[#allocation102_spill] sm:$0xff] }
0x1410   : > { %v3365_v39 = vpop.xlane.xlu0 %3364  ;;  %11106 = vrcp.f32 %v3362_v24  ;;  %4012 = vmatprep.mubr.bf16.mxu1 %v3845_v45  ;;  %v3647_v5 = vmul.f32 %v11097_v15, %v16637_v41  ;;  %v3646_v48 = vmul.f32 %v11097_v15, %v16638_v54 }
0x1411   : > { %11108 = vrcp.f32 %v3365_v39  ;;  %4013 = vmatmul.mubr.bf16.gmra.mrb[136].mxu1 %v3844_v56  ;;  %v16647_v56 = vld [vmem:[#allocation108_spill] sm:$0xff] }
0x1412   : > { %v11099_v8 = vpop.eup %11098  ;;  %v3877_v52 = vpack.c.bf16 %v3647_v5, %v3645_v6  ;;  %v3876_v28 = vpack.c.bf16 %v3646_v48, %v3644_v11  ;;  %v16648_v5 = vld [vmem:[#allocation113_spill] sm:$0xff]  ;;  %v16649_v48 = vld [vmem:[#allocation115_spill] sm:$0xff] }
0x1413   : > { %v11101_v55 = vpop.eup %11100  ;;  %v3458_v7 = vpop.xlane.xlu1 %3457  ;;  %v3585_v43 = vmul.f32 %v11099_v8, %v13309_v36  ;;  %v3584_v29 = vmul.f32 %v11099_v8, %v13306_v17 }
0x1414   : > { %v3461_v20 = vpop.xlane.xlu0 %3460  ;;  %11110 = vrcp.f32 %v3458_v7  ;;  %4173 = vmatprep.mubr.bf16.mxu0 %v3877_v52  ;;  %v3587_v12 = vmul.f32 %v11101_v55, %v13296_v25  ;;  %v3586_v22 = vmul.f32 %v11101_v55, %v16639_v37  ;;  %v16650_v52 = vld [vmem:[#allocation112_spill] sm:$0xff] }
0x1415   : > { %11112 = vrcp.f32 %v3461_v20  ;;  %4174 = vmatmul.mubr.bf16.gmra.mrb[128].mxu0 %v3876_v28  ;;  %v16651_v20 = vmov 0  }
0x1416   : > { %v11103_v38 = vpop.eup %11102  ;;  %v3847_v32 = vpack.c.bf16 %v3587_v12, %v3585_v43  ;;  %v3846_v26 = vpack.c.bf16 %v3586_v22, %v3584_v29  ;;  %v16652_v43 = vld [vmem:[#allocation29_spill] sm:$0xff] }
0x1417   : > { %v11105_v58 = vpop.eup %11104  ;;  %v3368_v44 = vpop.xlane.xlu1 %3367  ;;  %v3649_v1 = vmul.f32 %v11103_v38, %v13324_v3  ;;  %v3648_v36 = vmul.f32 %v11103_v38, %v13322_v0 }
0x1418   : > { %v3371_v14 = vpop.xlane.xlu0 %3370  ;;  %11114 = vrcp.f32 %v3368_v44  ;;  %4020 = vmatprep.mubr.bf16.mxu1 %v3847_v32  ;;  %v3651_v17 = vmul.f32 %v11105_v58, %v13312_v61  ;;  %v3650_v25 = vmul.f32 %v11105_v58, %v13302_v10 }
0x1419   : > { %11116 = vrcp.f32 %v3371_v14  ;;  %4021 = vmatmul.mubr.bf16.gmra.mrb[140].mxu1 %v3846_v26 }
0x141a   : > { %v11107_v57 = vpop.eup %11106  ;;  %v3879_v62 = vpack.c.bf16 %v3651_v17, %v3649_v1  ;;  %v3878_v4 = vpack.c.bf16 %v3650_v25, %v3648_v36 }
0x141b   : > { %v11109_v60 = vpop.eup %11108  ;;  %v3464_v51 = vpop.xlane.xlu1 %3463  ;;  %v3589_v35 = vmul.f32 %v11107_v57, %v13326_v59  ;;  %v3588_v3 = vmul.f32 %v11107_v57, %v13318_v40  ;;  %v16642_v59 = vld [vmem:[#allocation95_spill] sm:$0xff]  ;;  %v16643_v40 = vld [vmem:[#allocation105_spill] sm:$0xff] }
0x141c   : > { %v3467_v42 = vpop.xlane.xlu0 %3466  ;;  %11118 = vrcp.f32 %v3464_v51  ;;  %4181 = vmatprep.mubr.bf16.mxu0 %v3879_v62  ;;  %v3591_v0 = vmul.f32 %v11109_v60, %v13338_v53  ;;  %v3590_v61 = vmul.f32 %v11109_v60, %v13336_v19 }
0x141d   : > { %11120 = vrcp.f32 %v3467_v42  ;;  %4182 = vmatmul.mubr.bf16.gmra.mrb[132].mxu0 %v3878_v4 }
0x141e   : > { %v11111_v10 = vpop.eup %11110  ;;  %v3849_v27 = vpack.c.bf16 %v3591_v0, %v3589_v35  ;;  %v3848_v23 = vpack.c.bf16 %v3590_v61, %v3588_v3 }
0x141f   : > { %v11113_v47 = vpop.eup %11112  ;;  %v3653_v9 = vmul.f32 %v11111_v10, %v16640_v16  ;;  %v3652_v13 = vmul.f32 %v11111_v10, %v16641_v50 }
0x1420   : > { %4028 = vmatprep.mubr.bf16.mxu1 %v3849_v27  ;;  %v3655_v33 = vmul.f32 %v11113_v47, %v16642_v59  ;;  %v3654_v21 = vmul.f32 %v11113_v47, %v16643_v40 }
0x1421   : > { %4029 = vmatmul.mubr.bf16.gmra.mrb[144].mxu1 %v3848_v23 }
0x1422   : > { %v11115_v49 = vpop.eup %11114  ;;  %v3881_v53 = vpack.c.bf16 %v3655_v33, %v3653_v9  ;;  %v3880_v63 = vpack.c.bf16 %v3654_v21, %v3652_v13 }
0x1423   : > { %v11117_v19 = vpop.eup %11116  ;;  %v3593_v46 = vmul.f32 %v11115_v49, %v16644_v31  ;;  %v3592_v18 = vmul.f32 %v11115_v49, %v16645_v2 }
0x1424   : > { %4189 = vmatprep.mubr.bf16.mxu0 %v3881_v53  ;;  %v3595_v45 = vmul.f32 %v11117_v19, %v16646_v34  ;;  %v3594_v15 = vmul.f32 %v11117_v19, %v16647_v56 }
0x1425   : > { %4190 = vmatmul.mubr.bf16.gmra.mrb[136].mxu0 %v3880_v63 }
0x1426   : > { %v11119_v24 = vpop.eup %11118  ;;  %v3851_v39 = vpack.c.bf16 %v3595_v45, %v3593_v46  ;;  %v3850_v6 = vpack.c.bf16 %v3594_v15, %v3592_v18 }
0x1427   : > { %v11121_v11 = vpop.eup %11120  ;;  %v3657_v41 = vmul.f32 %v11119_v24, %v13372_v30  ;;  %v3656_v54 = vmul.f32 %v11119_v24, %v16648_v5 }
0x1428   : > { %4036 = vmatprep.mubr.bf16.mxu1 %v3851_v39  ;;  %v3659_v8 = vmul.f32 %v11121_v11, %v16649_v48  ;;  %v3658_v28 = vmul.f32 %v11121_v11, %v16650_v52 }
0x1429   : > { %4037 = vmatmul.mubr.bf16.gmra.mrb[148].mxu1 %v3850_v6 }
0x142a   : > { %v3883_v55 = vpack.c.bf16 %v3659_v8, %v3657_v41  ;;  %v3882_v7 = vpack.c.bf16 %v3658_v28, %v3656_v54  ;;  %4378 = vmatprep.mubr.bf16.mxu1 %v16651_v20 }
0x142c   : > { %4197 = vmatprep.mubr.bf16.mxu0 %v3883_v55 }
0x142d   : > { %4198 = vmatmul.mubr.bf16.gmra.mrb[140].mxu0 %v3882_v7 }
0x142e   : > { %9640 = vmatprep.mubr.msk.f32.mxu0 %vm1164_vm13, %v16652_v43 }
0x1476   : > { %v9102_v29 = vpop.f32.mrb[88].mxu1 }
0x1477   : > { %v9103_v12 = vpop.f32.mrb[89].mxu1 }
0x1478   : > { %v9104_v30 = vadd.f32 %v9103_v12, %v9102_v29  ;;  %v9105_v37 = vpop.f32.mrb[90].mxu1 }
0x1479   : > { %v9106_v22 = vpop.f32.mrb[91].mxu1 }
0x147a   : > { %v9107_v38 = vadd.f32 %v9106_v22, %v9105_v37 }
0x147c   : > { %v9214_v32 = vpop.f32.mrb[80].mxu0 }
0x147d   : > { %v9215_v26 = vpop.f32.mrb[81].mxu0 }
0x147e   : > { %v9216_v58 = vadd.f32 %v9215_v26, %v9214_v32  ;;  %v9217_v44 = vpop.f32.mrb[82].mxu0 }
0x147f   : > { %v9218_v14 = vpop.f32.mrb[83].mxu0 }
0x1480   : > { %v10176_v1 = vpack.i.bf16 %v9216_v58, %v9104_v30  ;;  %v9219_v36 = vadd.f32 %v9218_v14, %v9217_v44 }
0x1481   : > { %v9108_v17 = vpop.f32.mrb[92].mxu1 }
0x1482   : > { %v10178_v25 = vpack.i.bf16 %v9219_v36, %v9107_v38  ;;  %v9109_v57 = vpop.f32.mrb[93].mxu1  ;;  %10177 = vxpose.xlu0.b32.start [1/16] (narrow) %v10176_v1, 8 }
0x1483   : > { %v9110_v62 = vadd.f32 %v9109_v57, %v9108_v17  ;;  %v9111_v4 = vpop.f32.mrb[94].mxu1 }
0x1484   : > { %v9112_v60 = vpop.f32.mrb[95].mxu1 }
0x1485   : > { %v9113_v51 = vadd.f32 %v9112_v60, %v9111_v4  ;;  %v9220_v42 = vpop.f32.mrb[84].mxu0 }
0x1486   : > { %v9221_v35 = vpop.f32.mrb[85].mxu0  ;;  %10179 = vxpose.xlu0.b32.cont [2/16] (narrow) %v10178_v25, 8 }
0x1487   : > { %v9222_v3 = vadd.f32 %v9221_v35, %v9220_v42  ;;  %v9223_v0 = vpop.f32.mrb[86].mxu0 }
0x1488   : > { %v9224_v61 = vpop.f32.mrb[87].mxu0 }
0x1489   : > { %v10180_v10 = vpack.i.bf16 %v9222_v3, %v9110_v62  ;;  %v9225_v27 = vadd.f32 %v9224_v61, %v9223_v0  ;;  %v9114_v23 = vpop.f32.mrb[96].mxu1 }
0x148a   : > { %v9115_v47 = vpop.f32.mrb[97].mxu1 }
0x148b   : > { %v10182_v16 = vpack.i.bf16 %v9225_v27, %v9113_v51  ;;  %v9116_v9 = vadd.f32 %v9115_v47, %v9114_v23  ;;  %10181 = vxpose.xlu0.b32.cont [3/16] (narrow) %v10180_v10, 8  ;;  %v9117_v50 = vpop.f32.mrb[98].mxu1 }
0x148c   : > { %v9118_v13 = vpop.f32.mrb[99].mxu1 }
0x148d   : > { %v9119_v59 = vadd.f32 %v9118_v13, %v9117_v50  ;;  %v9226_v33 = vpop.f32.mrb[88].mxu0 }
0x148e   : > { %v9227_v40 = vpop.f32.mrb[89].mxu0 }
0x148f   : > { %v9228_v21 = vadd.f32 %v9227_v40, %v9226_v33  ;;  %10183 = vxpose.xlu0.b32.cont [4/16] (narrow) %v10182_v16, 8  ;;  %v9229_v49 = vpop.f32.mrb[90].mxu0 }
0x1490   : > { %v9230_v53 = vpop.f32.mrb[91].mxu0 }
0x1491   : > { %v10184_v63 = vpack.i.bf16 %v9228_v21, %v9116_v9  ;;  %v9231_v19 = vadd.f32 %v9230_v53, %v9229_v49  ;;  %v9120_v31 = vpop.f32.mrb[100].mxu1 }
0x1492   : > { %v9121_v46 = vpop.f32.mrb[101].mxu1 }
0x1493   : > { %v10186_v2 = vpack.i.bf16 %v9231_v19, %v9119_v59  ;;  %v9122_v18 = vadd.f32 %v9121_v46, %v9120_v31  ;;  %10185 = vxpose.xlu0.b32.cont [5/16] (narrow) %v10184_v63, 8  ;;  %v9123_v34 = vpop.f32.mrb[102].mxu1 }
0x1494   : > { %v9124_v45 = vpop.f32.mrb[103].mxu1 }
0x1495   : > { %v9125_v56 = vadd.f32 %v9124_v45, %v9123_v34  ;;  %v9232_v15 = vpop.f32.mrb[92].mxu0 }
0x1496   : > { %v9233_v24 = vpop.f32.mrb[93].mxu0 }
0x1497   : > { %v9234_v39 = vadd.f32 %v9233_v24, %v9232_v15  ;;  %10187 = vxpose.xlu0.b32.cont [6/16] (narrow) %v10186_v2, 8  ;;  %v9235_v6 = vpop.f32.mrb[94].mxu0 }
0x1498   : > { %v9236_v11 = vpop.f32.mrb[95].mxu0 }
0x1499   : > { %v10188_v41 = vpack.i.bf16 %v9234_v39, %v9122_v18  ;;  %v9237_v5 = vadd.f32 %v9236_v11, %v9235_v6  ;;  %v9126_v54 = vpop.f32.mrb[104].mxu1 }
0x149a   : > { %v9127_v48 = vpop.f32.mrb[105].mxu1 }
0x149b   : > { %v10190_v8 = vpack.i.bf16 %v9237_v5, %v9125_v56  ;;  %v9128_v52 = vadd.f32 %v9127_v48, %v9126_v54  ;;  %10189 = vxpose.xlu0.b32.cont [7/16] (narrow) %v10188_v41, 8  ;;  %v9129_v28 = vpop.f32.mrb[106].mxu1 }
0x149c   : > { %v9130_v55 = vpop.f32.mrb[107].mxu1 }
0x149d   : > { %v9131_v7 = vadd.f32 %v9130_v55, %v9129_v28  ;;  %v9238_v29 = vpop.f32.mrb[96].mxu0 }
0x149e   : > { %v9239_v12 = vpop.f32.mrb[97].mxu0 }
0x149f   : > { %v9240_v30 = vadd.f32 %v9239_v12, %v9238_v29  ;;  %10191 = vxpose.xlu0.b32.cont [8/16] (narrow) %v10190_v8, 8  ;;  %v9241_v37 = vpop.f32.mrb[98].mxu0 }
0x14a0   : > { %v9242_v22 = vpop.f32.mrb[99].mxu0 }
0x14a1   : > { %v10192_v38 = vpack.i.bf16 %v9240_v30, %v9128_v52  ;;  %v9243_v32 = vadd.f32 %v9242_v22, %v9241_v37  ;;  %v9132_v26 = vpop.f32.mrb[108].mxu1 }
0x14a2   : > { %v9133_v58 = vpop.f32.mrb[109].mxu1 }
0x14a3   : > { %v10194_v44 = vpack.i.bf16 %v9243_v32, %v9131_v7  ;;  %v9134_v14 = vadd.f32 %v9133_v58, %v9132_v26  ;;  %10193 = vxpose.xlu0.b32.cont [9/16] (narrow) %v10192_v38, 8  ;;  %v9135_v1 = vpop.f32.mrb[110].mxu1 }
0x14a4   : > { %v9136_v36 = vpop.f32.mrb[111].mxu1 }
0x14a5   : > { %v9137_v17 = vadd.f32 %v9136_v36, %v9135_v1 }
0x14a7   : > { %10195 = vxpose.xlu0.b32.cont [10/16] (narrow) %v10194_v44, 8  ;;  %v9244_v25 = vpop.f32.mrb[100].mxu0 }
0x14a8   : > { %v9245_v57 = vpop.f32.mrb[101].mxu0 }
0x14a9   : > { %v9246_v62 = vadd.f32 %v9245_v57, %v9244_v25  ;;  %v9247_v4 = vpop.f32.mrb[102].mxu0 }
0x14aa   : > { %v9248_v60 = vpop.f32.mrb[103].mxu0 }
0x14ab   : > { %v10196_v51 = vpack.i.bf16 %v9246_v62, %v9134_v14  ;;  %v9249_v42 = vadd.f32 %v9248_v60, %v9247_v4 }
0x14ad   : > { %v10198_v35 = vpack.i.bf16 %v9249_v42, %v9137_v17  ;;  %10197 = vxpose.xlu0.b32.cont [11/16] (narrow) %v10196_v51, 8 }
0x14af   : > { %v9138_v3 = vpop.f32.mrb[112].mxu1 }
0x14b0   : > { %v9139_v0 = vpop.f32.mrb[113].mxu1 }
0x14b1   : > { %v9140_v61 = vadd.f32 %v9139_v0, %v9138_v3  ;;  %10199 = vxpose.xlu0.b32.cont [12/16] (narrow) %v10198_v35, 8  ;;  %v9141_v10 = vpop.f32.mrb[114].mxu1 }
0x14b2   : > { %v9142_v27 = vpop.f32.mrb[115].mxu1 }
0x14b3   : > { %v9143_v23 = vadd.f32 %v9142_v27, %v9141_v10 }
0x14b7   : > { %v9250_v47 = vpop.f32.mrb[104].mxu0 }
0x14b8   : > { %v9251_v16 = vpop.f32.mrb[105].mxu0 }
0x14b9   : > { %v9252_v9 = vadd.f32 %v9251_v16, %v9250_v47  ;;  %v9253_v50 = vpop.f32.mrb[106].mxu0 }
0x14ba   : > { %v9254_v13 = vpop.f32.mrb[107].mxu0 }
0x14bb   : > { %v10200_v59 = vpack.i.bf16 %v9252_v9, %v9140_v61  ;;  %v9255_v33 = vadd.f32 %v9254_v13, %v9253_v50 }
0x14bc   : > { %v9144_v40 = vpop.f32.mrb[116].mxu1 }
0x14bd   : > { %v10202_v21 = vpack.i.bf16 %v9255_v33, %v9143_v23  ;;  %v9145_v49 = vpop.f32.mrb[117].mxu1  ;;  %10201 = vxpose.xlu0.b32.cont [13/16] (narrow) %v10200_v59, 8 }
0x14be   : > { %v9146_v53 = vadd.f32 %v9145_v49, %v9144_v40  ;;  %v9147_v63 = vpop.f32.mrb[118].mxu1 }
0x14bf   : > { %v9148_v19 = vpop.f32.mrb[119].mxu1 }
0x14c0   : > { %v9149_v31 = vadd.f32 %v9148_v19, %v9147_v63  ;;  %v9256_v46 = vpop.f32.mrb[108].mxu0 }
0x14c1   : > { %v9257_v2 = vpop.f32.mrb[109].mxu0  ;;  %10203 = vxpose.xlu0.b32.cont [14/16] (narrow) %v10202_v21, 8 }
0x14c2   : > { %v9258_v18 = vadd.f32 %v9257_v2, %v9256_v46  ;;  %v9259_v34 = vpop.f32.mrb[110].mxu0 }
0x14c3   : > { %v9260_v45 = vpop.f32.mrb[111].mxu0 }
0x14c4   : > { %v10204_v56 = vpack.i.bf16 %v9258_v18, %v9146_v53  ;;  %v9261_v15 = vadd.f32 %v9260_v45, %v9259_v34  ;;  %v9150_v24 = vpop.f32.mrb[120].mxu1 }
0x14c5   : > { %v9151_v39 = vpop.f32.mrb[121].mxu1 }
0x14c6   : > { %v10206_v6 = vpack.i.bf16 %v9261_v15, %v9149_v31  ;;  %v9152_v11 = vadd.f32 %v9151_v39, %v9150_v24  ;;  %10205 = vxpose.xlu0.b32.cont [15/16] (narrow) %v10204_v56, 8  ;;  %v9153_v41 = vpop.f32.mrb[122].mxu1 }
0x14c7   : > { %v9154_v5 = vpop.f32.mrb[123].mxu1 }
0x14c8   : > { %v9155_v54 = vadd.f32 %v9154_v5, %v9153_v41  ;;  %v9262_v48 = vpop.f32.mrb[112].mxu0 }
0x14c9   : > { %v9263_v8 = vpop.f32.mrb[113].mxu0 }
0x14ca   : > { %v9264_v52 = vadd.f32 %v9263_v8, %v9262_v48  ;;  %10207 = vxpose.xlu0.b32.end [16/16] (narrow) %v10206_v6, 8  ;;  %v9265_v28 = vpop.f32.mrb[114].mxu0 }
0x14cb   : > { %v9266_v55 = vpop.f32.mrb[115].mxu0 }
0x14cc   : > { %v10139_v7 = vpack.i.bf16 %v9264_v52, %v9152_v11  ;;  %v9267_v29 = vadd.f32 %v9266_v55, %v9265_v28  ;;  %v9156_v12 = vpop.f32.mrb[124].mxu1 }
0x14cd   : > { %v9157_v30 = vpop.f32.mrb[125].mxu1 }
0x14ce   : > { %v10141_v37 = vpack.i.bf16 %v9267_v29, %v9155_v54  ;;  %v9158_v22 = vadd.f32 %v9157_v30, %v9156_v12  ;;  %10140 = vxpose.xlu1.b32.start [1/16] (narrow) %v10139_v7, 8  ;;  %v9159_v38 = vpop.f32.mrb[126].mxu1 }
0x14cf   : > { %v9160_v32 = vpop.f32.mrb[127].mxu1 }
0x14d0   : > { %v9161_v26 = vadd.f32 %v9160_v32, %v9159_v38  ;;  %v9268_v58 = vpop.f32.mrb[116].mxu0 }
0x14d1   : > { %v9269_v44 = vpop.f32.mrb[117].mxu0 }
0x14d2   : > { %v9270_v14 = vadd.f32 %v9269_v44, %v9268_v58  ;;  %10142 = vxpose.xlu1.b32.cont [2/16] (narrow) %v10141_v37, 8  ;;  %v9271_v1 = vpop.f32.mrb[118].mxu0 }
0x14d3   : > { %v9272_v36 = vpop.f32.mrb[119].mxu0 }
0x14d4   : > { %v10143_v17 = vpack.i.bf16 %v9270_v14, %v9158_v22  ;;  %v9273_v25 = vadd.f32 %v9272_v36, %v9271_v1  ;;  %v9162_v57 = vpop.f32.mrb[128].mxu1  ;;  %v13512_v1 = vld [vmem:[%s16272_s25] sm:$0xff] }
0x14d5   : > { %v9163_v62 = vpop.f32.mrb[129].mxu1 }
0x14d6   : > { %v10145_v4 = vpack.i.bf16 %v9273_v25, %v9161_v26  ;;  %v9164_v60 = vadd.f32 %v9163_v62, %v9162_v57  ;;  %10144 = vxpose.xlu1.b32.cont [3/16] (narrow) %v10143_v17, 8  ;;  %v9165_v51 = vpop.f32.mrb[130].mxu1  ;;  %v11598_v26 = vmov 9  }
0x14d7   : > { %v9166_v42 = vpop.f32.mrb[131].mxu1 }
0x14d8   : > { %v9167_v35 = vadd.f32 %v9166_v42, %v9165_v51  ;;  %v9274_v3 = vpop.f32.mrb[120].mxu0 }
0x14d9   : > { %v9275_v0 = vpop.f32.mrb[121].mxu0 }
0x14da   : > { %v9276_v61 = vadd.f32 %v9275_v0, %v9274_v3  ;;  %10146 = vxpose.xlu1.b32.cont [4/16] (narrow) %v10145_v4, 8  ;;  %v9277_v10 = vpop.f32.mrb[122].mxu0 }
0x14db   : > { %v9278_v27 = vpop.f32.mrb[123].mxu0 }
0x14dc   : > { %v10147_v23 = vpack.i.bf16 %v9276_v61, %v9164_v60  ;;  %v9279_v47 = vadd.f32 %v9278_v27, %v9277_v10  ;;  %v9168_v16 = vpop.f32.mrb[132].mxu1 }
0x14dd   : > { %v9169_v9 = vpop.f32.mrb[133].mxu1 }
0x14de   : > { %v10149_v50 = vpack.i.bf16 %v9279_v47, %v9167_v35  ;;  %v9170_v13 = vadd.f32 %v9169_v9, %v9168_v16  ;;  %10148 = vxpose.xlu1.b32.cont [5/16] (narrow) %v10147_v23, 8  ;;  %v9171_v59 = vpop.f32.mrb[134].mxu1 }
0x14df   : > { %v9172_v33 = vpop.f32.mrb[135].mxu1 }
0x14e0   : > { %v9173_v40 = vadd.f32 %v9172_v33, %v9171_v59  ;;  %v9280_v21 = vpop.f32.mrb[124].mxu0 }
0x14e1   : > { %v9281_v49 = vpop.f32.mrb[125].mxu0 }
0x14e2   : > { %v9282_v53 = vadd.f32 %v9281_v49, %v9280_v21  ;;  %10150 = vxpose.xlu1.b32.cont [6/16] (narrow) %v10149_v50, 8  ;;  %v9283_v63 = vpop.f32.mrb[126].mxu0 }
0x14e3   : > { %v9284_v19 = vpop.f32.mrb[127].mxu0 }
0x14e4   : > { %v10151_v31 = vpack.i.bf16 %v9282_v53, %v9170_v13  ;;  %v9285_v46 = vadd.f32 %v9284_v19, %v9283_v63  ;;  %v9174_v2 = vpop.f32.mrb[136].mxu1 }
0x14e5   : > { %v9175_v18 = vpop.f32.mrb[137].mxu1 }
0x14e6   : > { %v10153_v34 = vpack.i.bf16 %v9285_v46, %v9173_v40  ;;  %v9176_v45 = vadd.f32 %v9175_v18, %v9174_v2  ;;  %10152 = vxpose.xlu1.b32.cont [7/16] (narrow) %v10151_v31, 8  ;;  %v9177_v56 = vpop.f32.mrb[138].mxu1  ;;  %v13519_v31 = vld [vmem:[%s16272_s25 + $0x8] sm:$0xff] }
0x14e7   : > { %v9178_v15 = vpop.f32.mrb[139].mxu1 }
0x14e8   : > { %v9179_v24 = vadd.f32 %v9178_v15, %v9177_v56  ;;  %v9286_v39 = vpop.f32.mrb[128].mxu0 }
0x14e9   : > { %v9287_v6 = vpop.f32.mrb[129].mxu0 }
0x14ea   : > { %v9288_v11 = vadd.f32 %v9287_v6, %v9286_v39  ;;  %10154 = vxpose.xlu1.b32.cont [8/16] (narrow) %v10153_v34, 8  ;;  %v9289_v41 = vpop.f32.mrb[130].mxu0 }
0x14eb   : > { %v9290_v5 = vpop.f32.mrb[131].mxu0 }
0x14ec   : > { %v10155_v54 = vpack.i.bf16 %v9288_v11, %v9176_v45  ;;  %v9291_v48 = vadd.f32 %v9290_v5, %v9289_v41  ;;  %v9180_v8 = vpop.f32.mrb[140].mxu1  ;;  %v16653_v11 = vld [vmem:[#allocation31_spill] sm:$0xff] }
0x14ed   : > { %v9181_v52 = vpop.f32.mrb[141].mxu1 }
0x14ee   : > { %v10157_v28 = vpack.i.bf16 %v9291_v48, %v9179_v24  ;;  %v9182_v55 = vadd.f32 %v9181_v52, %v9180_v8  ;;  %10156 = vxpose.xlu1.b32.cont [9/16] (narrow) %v10155_v54, 8  ;;  %v9183_v7 = vpop.f32.mrb[142].mxu1  ;;  %v10656_v24 = vld [vmem:[%s15832_s11] sm:$0xff]   ;;  %v16654_v54 = vld [vmem:[#allocation32_spill] sm:$0xff] }
0x14ef   : > { %v9184_v29 = vpop.f32.mrb[143].mxu1 }
0x14f0   : > { %v9185_v12 = vadd.f32 %v9184_v29, %v9183_v7  ;;  %v9292_v30 = vpop.f32.mrb[132].mxu0 }
0x14f1   : > { %v9293_v37 = vpop.f32.mrb[133].mxu0 }
0x14f2   : > { %v9294_v22 = vadd.f32 %v9293_v37, %v9292_v30  ;;  %10158 = vxpose.xlu1.b32.cont [10/16] (narrow) %v10157_v28, 8  ;;  %v9295_v38 = vpop.f32.mrb[134].mxu0  ;;  %v16656_v30 = vld [vmem:[#allocation34_spill] sm:$0xff] }
0x14f3   : > { %v9296_v32 = vpop.f32.mrb[135].mxu0  ;;  %10213 = vset.pattern.permute.xlu0 %v11598_v26 }
0x14f4   : > { %v10159_v58 = vpack.i.bf16 %v9294_v22, %v9182_v55  ;;  %v9297_v44 = vadd.f32 %v9296_v32, %v9295_v38  ;;  %v9186_v14 = vpop.f32.mrb[144].mxu1  ;;  %4394 = vperm.xlu0 %10213, %v13512_v1   ;;  %v16655_v55 = vld [vmem:[#allocation33_spill] sm:$0xff] }
0x14f5   : > { %v9187_v36 = vpop.f32.mrb[145].mxu1 }
0x14f6   : > { %v10161_v17 = vpack.i.bf16 %v9297_v44, %v9185_v12  ;;  %v9188_v25 = vadd.f32 %v9187_v36, %v9186_v14  ;;  %10160 = vxpose.xlu1.b32.cont [11/16] (narrow) %v10159_v58, 8  ;;  %v9189_v57 = vpop.f32.mrb[146].mxu1  ;;  %v16657_v36 = vld [vmem:[#allocation30_spill] sm:$0xff] }
0x14f7   : > { %v9190_v62 = vpop.f32.mrb[147].mxu1 }
0x14f8   : > { %v9191_v4 = vadd.f32 %v9190_v62, %v9189_v57  ;;  %v9298_v60 = vpop.f32.mrb[136].mxu0  ;;  %10216 = vset.pattern.permute.xlu0 %v16651_v20 }
0x14f9   : > { %v9299_v51 = vpop.f32.mrb[137].mxu0 }
0x14fa   : > { %v9300_v42 = vadd.f32 %v9299_v51, %v9298_v60  ;;  %10162 = vxpose.xlu1.b32.cont [12/16] (narrow) %v10161_v17, 8  ;;  %v9301_v35 = vpop.f32.mrb[138].mxu0 }
0x14fb   : > { %v9302_v3 = vpop.f32.mrb[139].mxu0 }
0x14fc   : > { %v10163_v0 = vpack.i.bf16 %v9300_v42, %v9188_v25  ;;  %v9303_v61 = vadd.f32 %v9302_v3, %v9301_v35  ;;  %v9192_v10 = vpop.f32.mrb[148].mxu1 }
0x14fd   : > { %v9193_v27 = vpop.f32.mrb[149].mxu1 }
0x14fe   : > { %v10165_v23 = vpack.i.bf16 %v9303_v61, %v9191_v4  ;;  %v9194_v47 = vadd.f32 %v9193_v27, %v9192_v10  ;;  %10164 = vxpose.xlu1.b32.cont [13/16] (narrow) %v10163_v0, 8  ;;  %v9195_v16 = vpop.f32.mrb[150].mxu1 }
0x14ff   : > { %v9196_v9 = vpop.f32.mrb[151].mxu1 }
0x1500   : > { %v9197_v50 = vadd.f32 %v9196_v9, %v9195_v16  ;;  %v9304_v13 = vpop.f32.mrb[140].mxu0  ;;  %v16658_v9 = vmov 0.0  }
0x1501   : > { %v9305_v59 = vpop.f32.mrb[141].mxu0 }
0x1502   : > { %v9306_v33 = vadd.f32 %v9305_v59, %v9304_v13  ;;  %10166 = vxpose.xlu1.b32.cont [14/16] (narrow) %v10165_v23, 8  ;;  %v9307_v40 = vpop.f32.mrb[142].mxu0  ;;  %v16660_v13 = vld [vmem:[#allocation3_spill] sm:$0xff]  ;;  %v11599_v59 = vmov 12  }
0x1503   : > { %v9308_v21 = vpop.f32.mrb[143].mxu0 }
0x1504   : > { %v10167_v49 = vpack.i.bf16 %v9306_v33, %v9194_v47  ;;  %v9309_v53 = vadd.f32 %v9308_v21, %v9307_v40 }
0x1506   : > { %v10169_v63 = vpack.i.bf16 %v9309_v53, %v9197_v50  ;;  %10168 = vxpose.xlu1.b32.cont [15/16] (narrow) %v10167_v49, 8  ;;  %v16659_v50 = vld [vmem:[#allocation2_spill] sm:$0xff]  ;;  %v11600_v49 = vmov 11  }
0x150a   : > { %10170 = vxpose.xlu1.b32.end [16/16] (narrow) %v10169_v63, 8 }
0x150e   : > { %v10208_v19 = vpop.trf.xlu0 }
0x150f   : > { %v10212_v46 = vunpack.i.h.bf16 %v10208_v19  ;;  %v10209_v2 = vunpack.i.l.bf16 %v10208_v19 }
0x1511   : > { %v4336_v56 = vpack.c.bf16 %v10212_v46, %v10209_v2 }
0x1528   : > { %10214 = vset.pattern.permute.xlu1 %v11598_v26 }
0x1529   : > { %4398 = vperm.xlu1 %10214, %v13519_v31  }
0x152d   : > { %10215 = vset.pattern.permute.xlu1 %v16651_v20 }
0x154e   : > { %v10171_v18 = vpop.trf.xlu1 }
0x154f   : > { %v10175_v34 = vunpack.i.h.bf16 %v10171_v18  ;;  %v10172_v45 = vunpack.i.l.bf16 %v10171_v18 }
0x1551   : > { %v4337_v15 = vpack.c.bf16 %v10175_v34, %v10172_v45  ;;  %v10657_v45 = vld [vmem:[%s15834_s13] sm:$0xff]  }
0x1553   : > { %4346 = vmatprep.subr.bf16.mxu1 %v4337_v15 }
0x1554   : > { %4347 = vmatpush1.bf16.msra.mxu1 %v4336_v56 }
0x1557   : > { %8967 = vmatmul.mubr.msk.bf16.vlgmr.msra.gmra.mrb[152].mxu1 %vm1164_vm13, %v10656_v24 }
0x1558   : > { %9633 = vmatprep.mubr.msk.f32.mxu1 %vm1164_vm13, %v16652_v43 }
0x1573   : > { %v4395_v6 = vpop.permute.xlu0 %4394 }
0x15a8   : > { %v4399_v52 = vpop.permute.xlu1 %4398 }
0x162a   : > { %v4380_v39 = vpop.f32.mrb[152].mxu1 }
0x162b   : > { %v4389_v41 = vadd.f32 %v4380_v39, %v16653_v11  ;;  %v4382_v5 = vpop.f32.mrb[153].mxu1 }
0x162c   : > { %v4390_v48 = vadd.f32 %v4382_v5, %v16654_v54  ;;  %v4384_v8 = vpop.f32.mrb[154].mxu1 }
0x162d   : > { %v13531_v28 = vadd.f32 %v4395_v6, %v4389_v41  ;;  %v4391_v7 = vadd.f32 %v4384_v8, %v16655_v55  ;;  %v4386_v29 = vpop.f32.mrb[155].mxu1 }
0x162e   : > { %v13534_v12 = vadd.f32 %v4395_v6, %v4390_v48  ;;  %v4392_v37 = vadd.f32 %v4386_v29, %v16656_v30 }
0x162f   : > { %v13537_v22 = vadd.f32 %v4399_v52, %v4391_v7 }
0x1630   : > { %v13539_v38 = vadd.f32 %v4399_v52, %v4392_v37  ;;  %v4405_v32 = vadd.f32 %v13534_v12, %v13531_v28 }
0x1632   : > { %4406 = vadd.xlane.f32.xlu1 %v4405_v32  ;;  %v4408_v26 = vadd.f32 %v13539_v38, %v13537_v22 }
0x1634   : > { %4409 = vadd.xlane.f32.xlu0 %v4408_v26 }
0x16bf   : > { %v4407_v58 = vpop.xlane.xlu1 %4406 }
0x16c1   : > { %v4410_v44 = vpop.xlane.xlu0 %4409 }
0x16c2   : > { %v9695_v14 = vpack.c.bf16 %v4410_v44, %v4407_v58 }
0x16c4   : > { %9696 = vmatprep.subr.bf16.mxu1 %v9695_v14 }
0x16c5   : > { %9698 = vmatpush3.bf16.msra.mxu1 %v9695_v14 }
0x16c8   : > { %9634 = vmatmul.mubr.msk.f32.vlgmr.msra.gmra.mrb[10].mxu1 %vm1164_vm13, %v16657_v36 }
0x16c9   : > { %9655 = vmatprep.mubr.msk.f32.mxu1 %vm1164_vm13, %v16652_v43 }
0x179b   : > { %v9635_v17 = vpop.f32.mrb[10].mxu1 }
0x179c   : > { %4493 = vperm.xlu0 %10216, %v9635_v17   ;;  %v4477_v25 = vpop.f32.mrb[11].mxu1 }
0x179d   : > { %4488 = vperm.xlu1 %10215, %v4477_v25  }
0x17a0   : > { %10217 = vset.pattern.permute.xlu0 %v11600_v49 }
0x17a1   : > { %10218 = vset.pattern.permute.xlu1 %v11599_v59 }
0x181b   : > { %v4494_v57 = vpop.permute.xlu0 %4493 }
0x181c   : > { %v4498_v62 = vsub.f32 %v13537_v22, %v4494_v57  ;;  %v4499_v4 = vsub.f32 %v13539_v38, %v4494_v57  ;;  %v4489_v60 = vpop.permute.xlu1 %4488 }
0x181d   : > { %v4496_v51 = vsub.f32 %v13531_v28, %v4489_v60  ;;  %v4497_v42 = vsub.f32 %v13534_v12, %v4489_v60 }
0x181e   : > { %v4502_v35 = vmul.f32 %v4498_v62, %v4498_v62  ;;  %v4503_v3 = vmul.f32 %v4499_v4, %v4499_v4 }
0x181f   : > { %v4500_v0 = vmul.f32 %v4496_v51, %v4496_v51  ;;  %v4501_v61 = vmul.f32 %v4497_v42, %v4497_v42 }
0x1820   : > { %v4507_v10 = vadd.f32 %v4503_v3, %v4502_v35 }
0x1821   : > { %v4504_v27 = vadd.f32 %v4501_v61, %v4500_v0  ;;  %v10658_v0 = vld [vmem:[%s15833_s12 + $0x4] ss:$8 sps:$4 sm:$0xff]  }
0x1822   : > { %4508 = vadd.xlane.f32.xlu0 %v4507_v10 }
0x1823   : > { %4505 = vadd.xlane.f32.xlu1 %v4504_v27 }
0x18af   : > { %v4509_v23 = vpop.xlane.xlu0 %4508 }
0x18b0   : > { %v4506_v47 = vpop.xlane.xlu1 %4505 }
0x18b1   : > { %v9699_v16 = vpack.c.bf16 %v4509_v23, %v4506_v47 }
0x18b3   : > { %9700 = vmatprep.subr.bf16.mxu0 %v9699_v16 }
0x18b4   : > { %9702 = vmatpush3.bf16.msra.mxu0 %v9699_v16 }
0x18b5   : > { %9643 = vmatprep.subr.bf16.mxu0 %v16658_v9 }
0x18b7   : > { %9641 = vmatmul.mubr.msk.f32.vlgmr.msra.gmra.mrb[10].mxu0 %vm1164_vm13, %v16657_v36 }
0x18b8   : > { %9644 = vmatpush3.bf16.msra.mxu0 %v16659_v50  ;;  %9647 = vmatprep.mubr.msk.bf16.mxu0 %vm11575_vm0, %v16658_v9 }
0x18b9   : > { %9645 = vmatprep.subr.bf16.mxu0 %v16658_v9 }
0x18bc   : > { %9646 = vmatpush3.bf16.msra.mxu0 %v16660_v13 }
0x18bf   : > { %9648 = vmatmul.mubr.msk.bf16.vlgmr.msra.gmra.mrb[144].mxu0 %vm1027_vm2, %v10657_v45 }
0x18c0   : > { %8980 = vmatprep.mubr.msk.bf16.mxu0 %vm1164_vm13, %v10658_v0  ;;  %v16671_v0 = vld [vmem:[#allocation14_spill] sm:$0xff] }
0x198a   : > { %v9642_v33 = vpop.f32.mrb[10].mxu0 }
0x198b   : > { %v4576_v40 = vpop.f32.mrb[11].mxu0  ;;  %v4582_v53 = vadd.f32 1e-05, %v9642_v33 }
0x198c   : > { %v4577_v21 = vadd.f32 1e-05, %v4576_v40 }
0x198e   : > { %11122 = vrsqrt.f32 %v4577_v21 }
0x198f   : > { %11124 = vrsqrt.f32 %v4582_v53  ;;  %v16667_v53 = vld [vmem:[#allocation7_spill] sm:$0xff] }
0x1998   : > { %v11123_v63 = vpop.eup %11122 }
0x1999   : > { %4589 = vrot.lane.b32.xlu1 %v11123_v63, %s11601_s27  ;;  %v11125_v19 = vpop.eup %11124 }
0x199d   : > { %4591 = vrot.lane.b32.xlu1 %v11125_v19, %s11601_s27  ;;  %v16668_v19 = vld [vmem:[#allocation8_spill] sm:$0xff]  ;;  %s11614_s27 = smov 110  }
0x19a1   : > { %4612 = vperm.xlu1 %10218, %v13512_v1  }
0x19a5   : > { %10219 = vset.pattern.permute.xlu1 %v11600_v49 }
0x1a0b   : > { %v4590_v46 = vpop.permute.xlu1 %4589 }
0x1a0c   : > { %v4595_v2 = vmul.f32 %v13512_v1, %v4590_v46 }
0x1a0e   : > { %4599 = vperm.xlu1 %10219, %v4595_v2  }
0x1a0f   : > { %v4592_v18 = vpop.permute.xlu1 %4591 }
0x1a10   : > { %v4596_v34 = vmul.f32 %v13519_v31, %v4592_v18 }
0x1a12   : > { %4604 = vperm.xlu0 %10217, %v4596_v34   ;;  %10220 = vset.pattern.permute.xlu1 %v11599_v59 }
0x1a13   : > { %4616 = vperm.xlu1 %10220, %v13519_v31  }
0x1a16   : > { %10222 = vset.pattern.permute.xlu0 %v16651_v20 }
0x1a17   : > { %10221 = vset.pattern.permute.xlu1 %v16651_v20 }
0x1a20   : > { %v4613_v56 = vpop.permute.xlu1 %4612 }
0x1a8d   : > { %v4600_v15 = vpop.permute.xlu1 %4599 }
0x1a8e   : > { %v4607_v54 = vmul.f32 %v4600_v15, %v4496_v51  ;;  %v4608_v52 = vmul.f32 %v4600_v15, %v4497_v42 }
0x1a90   : > { %v4619_v55 = vadd.f32 %v4613_v56, %v4607_v54  ;;  %v4620_v7 = vadd.f32 %v4613_v56, %v4608_v52 }
0x1a91   : > { %v4605_v24 = vpop.permute.xlu0 %4604 }
0x1a92   : > { %v4609_v39 = vmul.f32 %v4605_v24, %v4498_v62  ;;  %v4610_v6 = vmul.f32 %v4605_v24, %v4499_v4  ;;  %v4617_v11 = vpop.permute.xlu1 %4616  ;;  %v8972_v29 = vmul.f32 -1.442695, %v4619_v55  ;;  %v8973_v37 = vmul.f32 -1.442695, %v4620_v7 }
0x1a94   : > { %v4621_v41 = vadd.f32 %v4617_v11, %v4609_v39  ;;  %v4622_v5 = vadd.f32 %v4617_v11, %v4610_v6 }
0x1a96   : > { %v8974_v48 = vmul.f32 -1.442695, %v4621_v41  ;;  %v8975_v8 = vmul.f32 -1.442695, %v4622_v5 }
0x1a98   : > { %11126 = vpow2.f32 %v8974_v48  ;;  %v16670_v48 = vld [vmem:[#allocation10_spill] sm:$0xff] }
0x1a99   : > { %11128 = vpow2.f32 %v8975_v8 }
0x1a9a   : > { %11130 = vpow2.f32 %v8972_v29  ;;  %v4847_v29 = vpop.f32.mrb[144].mxu0 }
0x1aa2   : > { %v11127_v30 = vpop.eup %11126 }
0x1aa3   : > { %v11129_v32 = vpop.eup %11128  ;;  %v4637_v26 = vadd.f32 1.0, %v11127_v30 }
0x1aa4   : > { %v4638_v58 = vadd.f32 1.0, %v11129_v32  ;;  %v11131_v44 = vpop.eup %11130 }
0x1aa5   : > { %11132 = vrcp.f32 %v4637_v26  ;;  %v4635_v17 = vadd.f32 1.0, %v11131_v44  ;;  %v9649_v26 = vpop.f32.mrb[145].mxu0 }
0x1aa6   : > { %11134 = vpow2.f32 %v8973_v37  ;;  %v16677_v26 = vld [vmem:[#allocation21_spill] sm:$0xff] }
0x1aa7   : > { %11136 = vrcp.f32 %v4638_v58  ;;  %v4850_v58 = vpop.f32.mrb[146].mxu0 }
0x1aa8   : > { %11138 = vrcp.f32 %v4635_v17  ;;  %v9650_v17 = vpop.f32.mrb[147].mxu0 }
0x1aaf   : > { %v11133_v14 = vpop.eup %11132 }
0x1ab0   : > { %v11135_v25 = vpop.eup %11134  ;;  %v13571_v57 = vmul.f32 %v11133_v14, %v4621_v41 }
0x1ab1   : > { %v11137_v62 = vpop.eup %11136  ;;  %v4636_v4 = vadd.f32 1.0, %v11135_v25 }
0x1ab2   : > { %4687 = vrot.lane.b32.xlu0 %v13571_v57, %s16089_s24  ;;  %4655 = vrot.lane.b32.xlu1 %v13571_v57, %s16661_s3  ;;  %v13577_v60 = vmul.f32 %v11137_v62, %v4622_v5  ;;  %v11139_v51 = vpop.eup %11138  ;;  %v16669_v5 = vld [vmem:[#allocation9_spill] sm:$0xff] }
0x1ab3   : > { %11140 = vrcp.f32 %v4636_v4  ;;  %v13591_v42 = vmul.f32 %v11139_v51, %v4619_v55  ;;  %v11602_v4 = vmov 13  }
0x1ab6   : > { %4691 = vrot.lane.b32.xlu0 %v13577_v60, %s16089_s24  ;;  %4659 = vrot.lane.b32.xlu1 %v13577_v60, %s16661_s3 }
0x1aba   : > { %4703 = vrot.lane.b32.xlu0 %v13571_v57, %s16662_s26  ;;  %4671 = vrot.lane.b32.xlu1 %v13571_v57, %s16663_s1 }
0x1abd   : > { %v11141_v35 = vpop.eup %11140 }
0x1abe   : > { %4707 = vrot.lane.b32.xlu0 %v13577_v60, %s16662_s26  ;;  %4675 = vrot.lane.b32.xlu1 %v13577_v60, %s16663_s1  ;;  %v13597_v3 = vmul.f32 %v11141_v35, %v4620_v7 }
0x1ac2   : > { %4723 = vrot.lane.b32.xlu0 %v13571_v57, %s16664_s22  ;;  %4653 = vrot.lane.b32.xlu1 %v13591_v42, %s16661_s3 }
0x1ac6   : > { %4727 = vrot.lane.b32.xlu0 %v13577_v60, %s16664_s22  ;;  %4657 = vrot.lane.b32.xlu1 %v13597_v3, %s16661_s3 }
0x1aca   : > { %4739 = vrot.lane.b32.xlu0 %v13571_v57, %s16665_s2  ;;  %4669 = vrot.lane.b32.xlu1 %v13591_v42, %s16663_s1 }
0x1ace   : > { %4743 = vrot.lane.b32.xlu0 %v13577_v60, %s16665_s2  ;;  %4673 = vrot.lane.b32.xlu1 %v13597_v3, %s16663_s1 }
0x1ad2   : > { %4755 = vrot.lane.b32.xlu0 %v13571_v57, %s16306_s29  ;;  %4685 = vrot.lane.b32.xlu1 %v13591_v42, %s16089_s24 }
0x1ad6   : > { %4759 = vrot.lane.b32.xlu0 %v13577_v60, %s16306_s29  ;;  %4689 = vrot.lane.b32.xlu1 %v13597_v3, %s16089_s24  ;;  %s16683_s24 = smov 15  }
0x1ada   : > { %4771 = vrot.lane.b32.xlu0 %v13571_v57, %s16307_s21  ;;  %4701 = vrot.lane.b32.xlu1 %v13591_v42, %s16662_s26 }
0x1ade   : > { %4775 = vrot.lane.b32.xlu0 %v13577_v60, %s16307_s21  ;;  %4705 = vrot.lane.b32.xlu1 %v13597_v3, %s16662_s26 }
0x1ae2   : > { %4721 = vrot.lane.b32.xlu1 %v13591_v42, %s16664_s22  ;;  %4861 = vperm.xlu0 %10222, %v4850_v58  }
0x1ae6   : > { %4725 = vrot.lane.b32.xlu1 %v13597_v3, %s16664_s22 }
0x1aea   : > { %4737 = vrot.lane.b32.xlu1 %v13591_v42, %s16665_s2 }
0x1aee   : > { %4741 = vrot.lane.b32.xlu1 %v13597_v3, %s16665_s2 }
0x1af2   : > { %4753 = vrot.lane.b32.xlu1 %v13591_v42, %s16306_s29 }
0x1af6   : > { %4757 = vrot.lane.b32.xlu1 %v13597_v3, %s16306_s29 }
0x1afa   : > { %4769 = vrot.lane.b32.xlu1 %v13591_v42, %s16307_s21 }
0x1afe   : > { %4773 = vrot.lane.b32.xlu1 %v13597_v3, %s16307_s21 }
0x1b02   : > { %4856 = vperm.xlu1 %10221, %v4847_v29  }
0x1b06   : > { %10223 = vset.pattern.permute.xlu1 %v11602_v4 }
0x1b07   : > { %4920 = vperm.xlu1 %10223, %v13512_v1  }
0x1b0b   : > { %4924 = vperm.xlu1 %10223, %v13519_v31  }
0x1b0f   : > { %10224 = vset.pattern.permute.xlu1 %v16651_v20 }
0x1b24   : > { %v4656_v61 = vpop.permute.xlu1 %4655  ;;  %v4688_v27 = vpop.permute.xlu0 %4687 }
0x1b28   : > { %v4660_v10 = vpop.permute.xlu1 %4659  ;;  %v4692_v47 = vpop.permute.xlu0 %4691 }
0x1b29   : > { %v4662_v59 = vsel %vm868_vm3, %v4656_v61, %v4660_v10  ;;  %v4664_v33 = vsel %vm868_vm3, %v4660_v10, %v4656_v61  ;;  %v4694_v44 = vsel %vm902_vm5, %v4688_v27, %v4692_v47  ;;  %v4696_v14 = vsel %vm902_vm5, %v4692_v47, %v4688_v27  ;;  %v16672_v10 = vld [vmem:[#allocation16_spill] sm:$0xff] }
0x1b2a   : > { %v4667_v63 = vmul.f32 %v4664_v33, %v16667_v53  ;;  %v4668_v46 = vmul.f32 %v4662_v59, %v16668_v19  ;;  %v4699_v61 = vmul.f32 %v4696_v14, %v16671_v0 }
0x1b2c   : > { %v4672_v23 = vpop.permute.xlu1 %4671  ;;  %v4704_v50 = vpop.permute.xlu0 %4703 }
0x1b30   : > { %v4676_v16 = vpop.permute.xlu1 %4675  ;;  %v4708_v34 = vpop.permute.xlu0 %4707 }
0x1b31   : > { %v4678_v24 = vsel %vm885_vm4, %v4672_v23, %v4676_v16  ;;  %v4680_v39 = vsel %vm885_vm4, %v4676_v16, %v4672_v23  ;;  %v4700_v23 = vmul.f32 %v4694_v44, %v16672_v10  ;;  %v16678_v44 = vld [vmem:[#allocation22_spill] sm:$0xff] }
0x1b32   : > { %v4683_v54 = vmul.f32 %v4680_v39, %v16669_v5  ;;  %v4684_v8 = vmul.f32 %v4678_v24, %v16670_v48 }
0x1b34   : > { %v4654_v9 = vpop.permute.xlu1 %4653  ;;  %v4724_v52 = vpop.permute.xlu0 %4723 }
0x1b38   : > { %v4658_v40 = vpop.permute.xlu1 %4657  ;;  %v4728_v25 = vpop.permute.xlu0 %4727 }
0x1b39   : > { %v4661_v21 = vsel %vm868_vm3, %v4654_v9, %v4658_v40  ;;  %v4663_v49 = vsel %vm868_vm3, %v4658_v40, %v4654_v9  ;;  %v4710_v40 = vsel %vm919_vm6, %v4704_v50, %v4708_v34  ;;  %v4732_v29 = vsel %vm946_vm7, %v4728_v25, %v4724_v52 }
0x1b3a   : > { %v4665_v2 = vmul.f32 %v4663_v49, %v16667_v53  ;;  %v4666_v18 = vmul.f32 %v4661_v21, %v16668_v19  ;;  %v4712_v21 = vsel %vm919_vm6, %v4708_v34, %v4704_v50  ;;  %v4736_v14 = vmul.f32 %v4732_v29, %v16678_v44 }
0x1b3c   : > { %v4785_v45 = vpack.c.bf16 %v4667_v63, %v4665_v2  ;;  %v4670_v56 = vpop.permute.xlu1 %4669  ;;  %v4786_v15 = vpack.c.bf16 %v4668_v46, %v4666_v18  ;;  %v4740_v33 = vpop.permute.xlu0 %4739  ;;  %v16673_v2 = vld [vmem:[#allocation20_spill] sm:$0xff] }
0x1b3d   : > { %v4720_v18 = vmul.f32 %v13577_v60, %v16673_v2 }
0x1b3e   : > { %4876 = vmatprep.subr.bf16.mxu0 %v4786_v15  ;;  %v16675_v15 = vld [vmem:[#allocation18_spill] sm:$0xff] }
0x1b3f   : > { %4877 = vmatpush1.bf16.msra.mxu0 %v4785_v45  ;;  %v16674_v45 = vld [vmem:[#allocation17_spill] sm:$0xff]  ;;  %v4716_v24 = vmul.f32 %v4710_v40, %v16675_v15 }
0x1b40   : > { %v4674_v6 = vpop.permute.xlu1 %4673  ;;  %v4744_v34 = vpop.permute.xlu0 %4743 }
0x1b41   : > { %v4677_v11 = vsel %vm885_vm4, %v4670_v56, %v4674_v6  ;;  %v4679_v41 = vsel %vm885_vm4, %v4674_v6, %v4670_v56  ;;  %v4715_v56 = vmul.f32 %v4712_v21, %v16674_v45 }
0x1b42   : > { %v4681_v55 = vmul.f32 %v4679_v41, %v16669_v5  ;;  %v4682_v7 = vmul.f32 %v4677_v11, %v16670_v48 }
0x1b44   : > { %v4787_v30 = vpack.c.bf16 %v4683_v54, %v4681_v55  ;;  %v4686_v37 = vpop.permute.xlu1 %4685  ;;  %v4788_v32 = vpack.c.bf16 %v4684_v8, %v4682_v7  ;;  %v4718_v54 = vmul.f32 %v13597_v3, %v16673_v2  ;;  %v16676_v8 = vld [vmem:[#allocation19_spill] sm:$0xff]  ;;  %v4730_v7 = vsel %vm946_vm7, %v4724_v52, %v4728_v25  ;;  %v4756_v17 = vpop.permute.xlu0 %4755 }
0x1b45   : > { %v4719_v60 = vmul.f32 %v13571_v57, %v16676_v8  ;;  %v4735_v58 = vmul.f32 %v4730_v7, %v16677_v26 }
0x1b46   : > { %4878 = vmatprep.subr.bf16.mxu0 %v4788_v32  ;;  %v4794_v55 = vpack.c.bf16 %v4720_v18, %v4718_v54 }
0x1b47   : > { %4879 = vmatpush1.bf16.msra.mxu0 %v4787_v30  ;;  %v4717_v30 = vmul.f32 %v13591_v42, %v16676_v8 }
0x1b48   : > { %v4690_v62 = vpop.permute.xlu1 %4689 }
0x1b49   : > { %v4693_v51 = vsel %vm902_vm5, %v4686_v37, %v4690_v62  ;;  %v4695_v35 = vsel %vm902_vm5, %v4690_v62, %v4686_v37  ;;  %v4793_v32 = vpack.c.bf16 %v4719_v60, %v4717_v30 }
0x1b4a   : > { %v4697_v27 = vmul.f32 %v4695_v35, %v16671_v0  ;;  %v4698_v47 = vmul.f32 %v4693_v51, %v16672_v10  ;;  %v4746_v51 = vsel %vm963_vm8, %v4740_v33, %v4744_v34  ;;  %v4748_v35 = vsel %vm963_vm8, %v4744_v34, %v4740_v33 }
0x1b4c   : > { %v4789_v16 = vpack.c.bf16 %v4699_v61, %v4697_v27  ;;  %v4702_v9 = vpop.permute.xlu1 %4701  ;;  %v4790_v59 = vpack.c.bf16 %v4700_v23, %v4698_v47  ;;  %v4760_v61 = vpop.permute.xlu0 %4759 }
0x1b4e   : > { %4880 = vmatprep.subr.bf16.mxu0 %v4790_v59  ;;  %v16680_v59 = vld [vmem:[#allocation26_spill] sm:$0xff] }
0x1b4f   : > { %4881 = vmatpush1.bf16.msra.mxu0 %v4789_v16  ;;  %v16679_v16 = vld [vmem:[#allocation25_spill] sm:$0xff]  ;;  %v4752_v40 = vmul.f32 %v4748_v35, %v16680_v59 }
0x1b50   : > { %v4706_v49 = vpop.permute.xlu1 %4705  ;;  %v4772_v18 = vpop.permute.xlu0 %4771 }
0x1b51   : > { %v4709_v63 = vsel %vm919_vm6, %v4702_v9, %v4706_v49  ;;  %v4711_v46 = vsel %vm919_vm6, %v4706_v49, %v4702_v9  ;;  %v4751_v9 = vmul.f32 %v4746_v51, %v16679_v16 }
0x1b52   : > { %v4713_v39 = vmul.f32 %v4711_v46, %v16674_v45  ;;  %v4714_v50 = vmul.f32 %v4709_v63, %v16675_v15 }
0x1b54   : > { %v4791_v6 = vpack.c.bf16 %v4715_v56, %v4713_v39  ;;  %v4722_v11 = vpop.permute.xlu1 %4721  ;;  %v4792_v41 = vpack.c.bf16 %v4716_v24, %v4714_v50  ;;  %v4762_v56 = vsel %vm980_vm9, %v4756_v17, %v4760_v61  ;;  %v4764_v24 = vsel %vm980_vm9, %v4760_v61, %v4756_v17  ;;  %v4776_v7 = vpop.permute.xlu0 %4775  ;;  %v13753_v17 = vld [vmem:[%s16280_s20 + $0x10] ss:$0 sm:$0xff]  ;;  %v10660_v61 = vld [vmem:[%s15833_s12] ss:$8 sps:$4 sm:$0xff]  }
0x1b56   : > { %4882 = vmatprep.subr.bf16.mxu0 %v4792_v41  ;;  %v16682_v41 = vld [vmem:[#allocation28_spill] sm:$0xff] }
0x1b57   : > { %4883 = vmatpush1.bf16.msra.mxu0 %v4791_v6  ;;  %v16681_v6 = vld [vmem:[#allocation27_spill] sm:$0xff]  ;;  %v4768_v54 = vmul.f32 %v4764_v24, %v16682_v41 }
0x1b58   : > { %4884 = vmatprep.subr.bf16.mxu0 %v4794_v55  ;;  %v4726_v37 = vpop.permute.xlu1 %4725 }
0x1b59   : > { %v4729_v3 = vsel %vm946_vm7, %v4722_v11, %v4726_v37  ;;  %v4731_v57 = vsel %vm946_vm7, %v4726_v37, %v4722_v11  ;;  %v4767_v11 = vmul.f32 %v4762_v56, %v16681_v6 }
0x1b5a   : > { %v4733_v52 = vmul.f32 %v4729_v3, %v16677_v26  ;;  %v4734_v25 = vmul.f32 %v4731_v57, %v16678_v44  ;;  %v4778_v3 = vsel %vm997_vm10, %v4772_v18, %v4776_v7  ;;  %v4780_v57 = vsel %vm997_vm10, %v4776_v7, %v4772_v18 }
0x1b5b   : > { %4885 = vmatpush1.bf16.msra.mxu0 %v4793_v32 }
0x1b5c   : > { %v4795_v42 = vpack.c.bf16 %v4735_v58, %v4733_v52  ;;  %v4738_v62 = vpop.permute.xlu1 %4737  ;;  %v4796_v4 = vpack.c.bf16 %v4736_v14, %v4734_v25  ;;  %v4783_v52 = vmul.f32 %v13753_v17, %v4778_v3  ;;  %v13759_v25 = vld [vmem:[%s16280_s20 + $0x18] ss:$0 sm:$0xff] }
0x1b5e   : > { %4886 = vmatprep.subr.bf16.mxu0 %v4796_v4 }
0x1b5f   : > { %4887 = vmatpush1.bf16.msra.mxu0 %v4795_v42  ;;  %v4784_v42 = vmul.f32 %v13759_v25, %v4780_v57 }
0x1b60   : > { %v4742_v23 = vpop.permute.xlu1 %4741 }
0x1b61   : > { %v4745_v27 = vsel %vm963_vm8, %v4738_v62, %v4742_v23  ;;  %v4747_v47 = vsel %vm963_vm8, %v4742_v23, %v4738_v62 }
0x1b62   : > { %v4749_v21 = vmul.f32 %v4745_v27, %v16679_v16  ;;  %v4750_v49 = vmul.f32 %v4747_v47, %v16680_v59 }
0x1b64   : > { %v4797_v63 = vpack.c.bf16 %v4751_v9, %v4749_v21  ;;  %v4754_v46 = vpop.permute.xlu1 %4753  ;;  %v4798_v33 = vpack.c.bf16 %v4752_v40, %v4750_v49  ;;  %v4862_v21 = vpop.permute.xlu0 %4861 }
0x1b66   : > { %4888 = vmatprep.subr.bf16.mxu0 %v4798_v33 }
0x1b67   : > { %4889 = vmatpush1.bf16.msra.mxu0 %v4797_v63 }
0x1b68   : > { %v4758_v39 = vpop.permute.xlu1 %4757 }
0x1b69   : > { %v4761_v50 = vsel %vm980_vm9, %v4754_v46, %v4758_v39  ;;  %v4763_v34 = vsel %vm980_vm9, %v4758_v39, %v4754_v46 }
0x1b6a   : > { %v4765_v60 = vmul.f32 %v4761_v50, %v16681_v6  ;;  %v4766_v55 = vmul.f32 %v4763_v34, %v16682_v41 }
0x1b6c   : > { %v4799_v29 = vpack.c.bf16 %v4767_v11, %v4765_v60  ;;  %v4770_v30 = vpop.permute.xlu1 %4769  ;;  %v4800_v37 = vpack.c.bf16 %v4768_v54, %v4766_v55 }
0x1b6e   : > { %4890 = vmatprep.subr.bf16.mxu0 %v4800_v37 }
0x1b6f   : > { %4891 = vmatpush1.bf16.msra.mxu0 %v4799_v29 }
0x1b70   : > { %v4774_v32 = vpop.permute.xlu1 %4773 }
0x1b71   : > { %v4777_v58 = vsel %vm997_vm10, %v4770_v30, %v4774_v32  ;;  %v4779_v14 = vsel %vm997_vm10, %v4774_v32, %v4770_v30 }
0x1b72   : > { %v4781_v62 = vmul.f32 %v13753_v17, %v4777_v58  ;;  %v4782_v4 = vmul.f32 %v13759_v25, %v4779_v14 }
0x1b74   : > { %v4801_v51 = vpack.c.bf16 %v4783_v52, %v4781_v62  ;;  %v4802_v35 = vpack.c.bf16 %v4784_v42, %v4782_v4 }
0x1b76   : > { %4892 = vmatprep.subr.bf16.mxu0 %v4802_v35 }
0x1b77   : > { %4893 = vmatpush1.bf16.msra.mxu0 %v4801_v51 }
0x1b7a   : > { %4909 = vmatmul.mubr.bf16.vlgmr.msra.gmra.mrb[148].mxu0 %v10660_v61 }
0x1b7b   : > { %9669 = vmatprep.mubr.msk.f32.mxu0 %vm1164_vm13, %v16652_v43 }
0x1b81   : > { %v4857_v23 = vpop.permute.xlu1 %4856 }
0x1b86   : > { %v4921_v27 = vpop.permute.xlu1 %4920 }
0x1b8a   : > { %v4925_v56 = vpop.permute.xlu1 %4924 }
0x1c4d   : > { %v4910_v47 = vpop.f32.mrb[148].mxu0 }
0x1c4e   : > { %v4911_v9 = vadd.f32 %v4910_v47, %v4857_v23  ;;  %v4912_v40 = vpop.f32.mrb[149].mxu0 }
0x1c4f   : > { %v4913_v49 = vadd.f32 %v4912_v40, %v4857_v23  ;;  %v4914_v63 = vpop.f32.mrb[150].mxu0 }
0x1c50   : > { %v4927_v46 = vadd.f32 %v4921_v27, %v4911_v9  ;;  %v4915_v33 = vadd.f32 %v4914_v63, %v4862_v21  ;;  %v4916_v18 = vpop.f32.mrb[151].mxu0 }
0x1c51   : > { %v4928_v24 = vadd.f32 %v4921_v27, %v4913_v49  ;;  %v4917_v39 = vadd.f32 %v4916_v18, %v4862_v21  ;;  %v11603_v49 = vmov 14  }
0x1c52   : > { %v4929_v50 = vadd.f32 %v4925_v56, %v4915_v33 }
0x1c53   : > { %v4930_v34 = vadd.f32 %v4925_v56, %v4917_v39  ;;  %v4931_v11 = vadd.f32 %v4928_v24, %v4927_v46  ;;  %v11605_v39 = vmov 15  }
0x1c55   : > { %4932 = vadd.xlane.f32.xlu0 %v4931_v11  ;;  %v4934_v54 = vadd.f32 %v4930_v34, %v4929_v50 }
0x1c57   : > { %4935 = vadd.xlane.f32.xlu1 %v4934_v54 }
0x1ce2   : > { %v4933_v60 = vpop.xlane.xlu0 %4932 }
0x1ce4   : > { %v4936_v55 = vpop.xlane.xlu1 %4935 }
0x1ce5   : > { %v9703_v7 = vpack.c.bf16 %v4936_v55, %v4933_v60 }
0x1ce7   : > { %9704 = vmatprep.subr.bf16.mxu1 %v9703_v7 }
0x1ce8   : > { %9706 = vmatpush3.bf16.msra.mxu1 %v9703_v7 }
0x1ceb   : > { %9656 = vmatmul.mubr.msk.f32.vlgmr.msra.gmra.mrb[156].mxu1 %vm1164_vm13, %v16657_v36 }
0x1cec   : > { %9662 = vmatprep.mubr.msk.f32.mxu1 %vm1164_vm13, %v16652_v43 }
0x1dbe   : > { %v9657_v29 = vpop.f32.mrb[156].mxu1 }
0x1dbf   : > { %5019 = vperm.xlu1 %10224, %v9657_v29   ;;  %v5003_v30 = vpop.f32.mrb[157].mxu1 }
0x1dc0   : > { %5014 = vperm.xlu0 %10222, %v5003_v30  }
0x1dc3   : > { %10225 = vset.pattern.permute.xlu1 %v11603_v49 }
0x1dc4   : > { %10227 = vset.pattern.permute.xlu0 %v11603_v49 }
0x1e3e   : > { %v5020_v37 = vpop.permute.xlu1 %5019 }
0x1e3f   : > { %v5024_v3 = vsub.f32 %v4929_v50, %v5020_v37  ;;  %v5025_v57 = vsub.f32 %v4930_v34, %v5020_v37  ;;  %v5015_v32 = vpop.permute.xlu0 %5014 }
0x1e40   : > { %v5022_v58 = vsub.f32 %v4927_v46, %v5015_v32  ;;  %v5023_v14 = vsub.f32 %v4928_v24, %v5015_v32 }
0x1e41   : > { %v5028_v52 = vmul.f32 %v5024_v3, %v5024_v3  ;;  %v5029_v42 = vmul.f32 %v5025_v57, %v5025_v57 }
0x1e42   : > { %v5026_v62 = vmul.f32 %v5022_v58, %v5022_v58  ;;  %v5027_v4 = vmul.f32 %v5023_v14, %v5023_v14 }
0x1e43   : > { %v5033_v51 = vadd.f32 %v5029_v42, %v5028_v52 }
0x1e44   : > { %v5030_v35 = vadd.f32 %v5027_v4, %v5026_v62 }
0x1e45   : > { %5034 = vadd.xlane.f32.xlu1 %v5033_v51 }
0x1e46   : > { %5031 = vadd.xlane.f32.xlu0 %v5030_v35 }
0x1ed2   : > { %v5035_v61 = vpop.xlane.xlu1 %5034 }
0x1ed3   : > { %v5032_v23 = vpop.xlane.xlu0 %5031 }
0x1ed4   : > { %v9707_v27 = vpack.c.bf16 %v5035_v61, %v5032_v23 }
0x1ed6   : > { %9708 = vmatprep.subr.bf16.mxu1 %v9707_v27 }
0x1ed7   : > { %9710 = vmatpush3.bf16.msra.mxu1 %v9707_v27 }
0x1eda   : > { %9663 = vmatmul.mubr.msk.f32.vlgmr.msra.gmra.mrb[158].mxu1 %vm1164_vm13, %v16657_v36 }
0x1fad   : > { %v9664_v47 = vpop.f32.mrb[158].mxu1 }
0x1fae   : > { %v5108_v9 = vadd.f32 1e-05, %v9664_v47  ;;  %v5102_v40 = vpop.f32.mrb[159].mxu1 }
0x1faf   : > { %v5103_v21 = vadd.f32 1e-05, %v5102_v40 }
0x1fb0   : > { %11142 = vrsqrt.f32 %v5108_v9 }
0x1fb1   : > { %11144 = vrsqrt.f32 %v5103_v21 }
0x1fba   : > { %v11143_v63 = vpop.eup %11142 }
0x1fbb   : > { %v11145_v46 = vpop.eup %11144  ;;  %5117 = vrot.lane.b32.xlu1 %v11143_v63, %s16091_s6 }
0x1fbc   : > { %5115 = vrot.lane.b32.xlu0 %v11145_v46, %s16091_s6  ;;  %s11610_s6 = smov 18  }
0x202d   : > { %v5118_v33 = vpop.permute.xlu1 %5117 }
0x202e   : > { %v5122_v18 = vmul.f32 %v13519_v31, %v5118_v33  ;;  %v5116_v56 = vpop.permute.xlu0 %5115 }
0x202f   : > { %v5121_v24 = vmul.f32 %v13512_v1, %v5116_v56 }
0x2030   : > { %5130 = vperm.xlu1 %10225, %v5122_v18  }
0x2031   : > { %5125 = vperm.xlu0 %10227, %v5121_v24  }
0x2034   : > { %10226 = vset.pattern.permute.xlu1 %v11605_v39 }
0x2035   : > { %5138 = vperm.xlu1 %10226, %v13512_v1   ;;  %10228 = vset.pattern.permute.xlu0 %v11605_v39 }
0x2036   : > { %5142 = vperm.xlu0 %10228, %v13519_v31  }
0x20af   : > { %v5131_v50 = vpop.permute.xlu1 %5130 }
0x20b0   : > { %v5126_v34 = vpop.permute.xlu0 %5125  ;;  %v5135_v60 = vmul.f32 %v5131_v50, %v5024_v3  ;;  %v5136_v55 = vmul.f32 %v5131_v50, %v5025_v57 }
0x20b1   : > { %v5133_v11 = vmul.f32 %v5126_v34, %v5022_v58  ;;  %v5134_v54 = vmul.f32 %v5126_v34, %v5023_v14  ;;  %v13837_v34 = vld [vmem:[%s16272_s25] sm:$0xff] }
0x20b4   : > { %v5139_v7 = vpop.permute.xlu1 %5138 }
0x20b5   : > { %v5145_v29 = vadd.f32 %v5139_v7, %v5133_v11  ;;  %v5146_v30 = vadd.f32 %v5139_v7, %v5134_v54  ;;  %v5143_v37 = vpop.permute.xlu0 %5142  ;;  %v11607_v11 = vmov 17  }
0x20b6   : > { %v5147_v32 = vadd.f32 %v5143_v37, %v5135_v60  ;;  %v5148_v52 = vadd.f32 %v5143_v37, %v5136_v55 }
0x20b7   : > { %v8985_v42 = vmul.f32 -1.442695, %v5145_v29  ;;  %v8986_v62 = vmul.f32 -1.442695, %v5146_v30 }
0x20b8   : > { %v8987_v4 = vmul.f32 -1.442695, %v5147_v32  ;;  %v8988_v51 = vmul.f32 -1.442695, %v5148_v52 }
0x20b9   : > { %11146 = vpow2.f32 %v8985_v42 }
0x20ba   : > { %11148 = vpow2.f32 %v8986_v62 }
0x20bb   : > { %11150 = vpow2.f32 %v8987_v4 }
0x20bc   : > { %11152 = vpow2.f32 %v8988_v51 }
0x20c3   : > { %v11147_v1 = vpop.eup %11146 }
0x20c4   : > { %v11149_v35 = vpop.eup %11148  ;;  %v5161_v58 = vadd.f32 1.0, %v11147_v1 }
0x20c5   : > { %v11151_v14 = vpop.eup %11150  ;;  %v5162_v3 = vadd.f32 1.0, %v11149_v35 }
0x20c6   : > { %v11153_v57 = vpop.eup %11152  ;;  %11154 = vrcp.f32 %v5161_v58  ;;  %v5163_v61 = vadd.f32 1.0, %v11151_v14 }
0x20c7   : > { %11156 = vrcp.f32 %v5162_v3  ;;  %v5164_v23 = vadd.f32 1.0, %v11153_v57 }
0x20c8   : > { %11158 = vrcp.f32 %v5163_v61 }
0x20c9   : > { %11160 = vrcp.f32 %v5164_v23 }
0x20d0   : > { %v11155_v27 = vpop.eup %11154 }
0x20d1   : > { %v11157_v47 = vpop.eup %11156  ;;  %v5173_v9 = vmul.f32 %v11155_v27, %v5145_v29 }
0x20d2   : > { %v11159_v40 = vpop.eup %11158  ;;  %v5174_v21 = vmul.f32 %v11157_v47, %v5146_v30 }
0x20d3   : > { %v11161_v49 = vpop.eup %11160  ;;  %v5175_v63 = vmul.f32 %v11159_v40, %v5147_v32  ;;  %v13782_v46 = vmul.f32 %v5173_v9, %v16676_v8 }
0x20d4   : > { %v5176_v33 = vmul.f32 %v11161_v49, %v5148_v52  ;;  %5183 = vrot.lane.b32.xlu0 %v5174_v21, %s16661_s3  ;;  %v13786_v18 = vmul.f32 %v5174_v21, %v16673_v2 }
0x20d5   : > { %5181 = vrot.lane.b32.xlu1 %v5175_v63, %s16661_s3  ;;  %v13790_v56 = vmul.f32 %v5175_v63, %v16676_v8  ;;  %v11606_v8 = vmov 16  }
0x20d6   : > { %v13793_v24 = vmul.f32 %v5176_v33, %v16673_v2  ;;  %v10661_v2 = vld [vmem:[%s15835_s14 + $0x4] ss:$8 sps:$4 sm:$0xff]   ;;  %10230 = vset.pattern.permute.xlu1 %v11606_v8  ;;  %10229 = vset.pattern.permute.xlu0 %v11606_v8 }
0x20d7   : > { %v5319_v39 = vpack.c.bf16 %v13790_v56, %v13782_v46  ;;  %8991 = vmatprep.mubr.msk.bf16.mxu1 %vm1164_vm13, %v10661_v2 }
0x20d8   : > { %5195 = vrot.lane.b32.xlu0 %v5173_v9, %s16663_s1  ;;  %v5320_v50 = vpack.c.bf16 %v13793_v24, %v13786_v18 }
0x20d9   : > { %5185 = vrot.lane.b32.xlu1 %v5176_v33, %s16661_s3 }
0x20dc   : > { %5199 = vrot.lane.b32.xlu0 %v5174_v21, %s16663_s1 }
0x20dd   : > { %5197 = vrot.lane.b32.xlu1 %v5175_v63, %s16663_s1 }
0x20e0   : > { %5211 = vrot.lane.b32.xlu0 %v5173_v9, %s16683_s24 }
0x20e1   : > { %5201 = vrot.lane.b32.xlu1 %v5176_v33, %s16663_s1 }
0x20e4   : > { %5215 = vrot.lane.b32.xlu0 %v5174_v21, %s16683_s24 }
0x20e5   : > { %5213 = vrot.lane.b32.xlu1 %v5175_v63, %s16683_s24 }
0x20e8   : > { %5227 = vrot.lane.b32.xlu0 %v5173_v9, %s16662_s26 }
0x20e9   : > { %5217 = vrot.lane.b32.xlu1 %v5176_v33, %s16683_s24 }
0x20ec   : > { %5231 = vrot.lane.b32.xlu0 %v5174_v21, %s16662_s26 }
0x20ed   : > { %5229 = vrot.lane.b32.xlu1 %v5175_v63, %s16662_s26 }
0x20f0   : > { %5247 = vrot.lane.b32.xlu0 %v5173_v9, %s16664_s22 }
0x20f1   : > { %5233 = vrot.lane.b32.xlu1 %v5176_v33, %s16662_s26 }
0x20f4   : > { %5251 = vrot.lane.b32.xlu0 %v5174_v21, %s16664_s22 }
0x20f5   : > { %5179 = vrot.lane.b32.xlu1 %v5173_v9, %s16661_s3 }
0x20f8   : > { %5263 = vrot.lane.b32.xlu0 %v5173_v9, %s16665_s2 }
0x20f9   : > { %5249 = vrot.lane.b32.xlu1 %v5175_v63, %s16664_s22 }
0x20fc   : > { %5267 = vrot.lane.b32.xlu0 %v5174_v21, %s16665_s2 }
0x20fd   : > { %5253 = vrot.lane.b32.xlu1 %v5176_v33, %s16664_s22 }
0x2100   : > { %5279 = vrot.lane.b32.xlu0 %v5173_v9, %s16306_s29 }
0x2101   : > { %5265 = vrot.lane.b32.xlu1 %v5175_v63, %s16665_s2 }
0x2104   : > { %5283 = vrot.lane.b32.xlu0 %v5174_v21, %s16306_s29 }
0x2105   : > { %5269 = vrot.lane.b32.xlu1 %v5176_v33, %s16665_s2 }
0x2108   : > { %5295 = vrot.lane.b32.xlu0 %v5173_v9, %s16307_s21 }
0x2109   : > { %5281 = vrot.lane.b32.xlu1 %v5175_v63, %s16306_s29 }
0x210c   : > { %5299 = vrot.lane.b32.xlu0 %v5174_v21, %s16307_s21 }
0x210d   : > { %5285 = vrot.lane.b32.xlu1 %v5176_v33, %s16306_s29 }
0x2110   : > { %5330 = vperm.xlu0 %10229, %v13837_v34  }
0x2111   : > { %5297 = vrot.lane.b32.xlu1 %v5175_v63, %s16307_s21 }
0x2114   : > { %10232 = vset.pattern.permute.xlu0 %v11607_v11 }
0x2115   : > { %5301 = vrot.lane.b32.xlu1 %v5176_v33, %s16307_s21  ;;  %5456 = vperm.xlu0 %10232, %v13519_v31  }
0x2119   : > { %5334 = vperm.xlu1 %10230, %v13519_v31   ;;  %10234 = vset.pattern.permute.xlu0 %v16651_v20 }
0x211d   : > { %10231 = vset.pattern.permute.xlu1 %v11607_v11 }
0x211e   : > { %5452 = vperm.xlu1 %10231, %v13837_v34  }
0x2122   : > { %10233 = vset.pattern.permute.xlu1 %v16651_v20 }
0x2146   : > { %v5184_v54 = vpop.permute.xlu0 %5183 }
0x2147   : > { %v5182_v60 = vpop.permute.xlu1 %5181 }
0x214a   : > { %v5196_v55 = vpop.permute.xlu0 %5195 }
0x214b   : > { %v5186_v7 = vpop.permute.xlu1 %5185 }
0x214c   : > { %v5190_v58 = vsel %vm868_vm3, %v5186_v7, %v5182_v60  ;;  %v5188_v14 = vsel %vm868_vm3, %v5182_v60, %v5186_v7 }
0x214d   : > { %v5193_v61 = vmul.f32 %v5190_v58, %v16667_v53  ;;  %v5194_v27 = vmul.f32 %v5188_v14, %v16668_v19 }
0x214e   : > { %v5200_v29 = vpop.permute.xlu0 %5199 }
0x214f   : > { %v5198_v30 = vpop.permute.xlu1 %5197  ;;  %v5203_v47 = vsel %vm885_vm4, %v5196_v55, %v5200_v29  ;;  %v5205_v11 = vsel %vm885_vm4, %v5200_v29, %v5196_v55 }
0x2150   : > { %v5208_v60 = vmul.f32 %v5203_v47, %v16670_v48 }
0x2152   : > { %v5212_v37 = vpop.permute.xlu0 %5211 }
0x2153   : > { %v5202_v32 = vpop.permute.xlu1 %5201 }
0x2154   : > { %v5204_v3 = vsel %vm885_vm4, %v5198_v30, %v5202_v32  ;;  %v5206_v21 = vsel %vm885_vm4, %v5202_v32, %v5198_v30 }
0x2155   : > { %v5210_v49 = vmul.f32 %v5204_v3, %v16670_v48  ;;  %v5209_v30 = vmul.f32 %v5206_v21, %v16669_v5  ;;  %v5207_v3 = vmul.f32 %v5205_v11, %v16669_v5 }
0x2156   : > { %v5216_v52 = vpop.permute.xlu0 %5215 }
0x2157   : > { %v5214_v42 = vpop.permute.xlu1 %5213  ;;  %v5219_v32 = vsel %vm902_vm5, %v5212_v37, %v5216_v52  ;;  %v5314_v14 = vpack.c.bf16 %v5210_v49, %v5208_v60  ;;  %v5221_v29 = vsel %vm902_vm5, %v5216_v52, %v5212_v37 }
0x215a   : > { %v5228_v62 = vpop.permute.xlu0 %5227 }
0x215b   : > { %v5218_v4 = vpop.permute.xlu1 %5217 }
0x215c   : > { %v5220_v2 = vsel %vm902_vm5, %v5214_v42, %v5218_v4 }
0x215e   : > { %v5232_v51 = vpop.permute.xlu0 %5231 }
0x215f   : > { %v5230_v1 = vpop.permute.xlu1 %5229 }
0x2162   : > { %v13844_v35 = vpop.permute.xlu0 %5247 }
0x2163   : > { %v5234_v31 = vpop.permute.xlu1 %5233 }
0x2164   : > { %v5236_v48 = vsel %vm919_vm6, %v5230_v1, %v5234_v31  ;;  %v5238_v5 = vsel %vm919_vm6, %v5234_v31, %v5230_v1 }
0x2165   : > { %v5242_v47 = vmul.f32 %v5236_v48, %v16675_v15 }
0x2166   : > { %v5252_v57 = vpop.permute.xlu0 %5251 }
0x2167   : > { %v5180_v23 = vpop.permute.xlu1 %5179  ;;  %v5255_v60 = vsel %vm946_vm7, %v13844_v35, %v5252_v57 }
0x2168   : > { %v5187_v9 = vsel %vm868_vm3, %v5180_v23, %v5184_v54  ;;  %v5189_v40 = vsel %vm868_vm3, %v5184_v54, %v5180_v23 }
0x2169   : > { %v5191_v63 = vmul.f32 %v5189_v40, %v16667_v53  ;;  %v5192_v33 = vmul.f32 %v5187_v9, %v16668_v19  ;;  %v5222_v53 = vsel %vm902_vm5, %v5218_v4, %v5214_v42  ;;  %v5226_v19 = vmul.f32 %v5220_v2, %v16672_v10 }
0x216a   : > { %v5264_v8 = vpop.permute.xlu0 %5263  ;;  %v5225_v42 = vmul.f32 %v5222_v53, %v16671_v0  ;;  %v5235_v4 = vsel %vm919_vm6, %v5228_v62, %v5232_v51  ;;  %v5223_v40 = vmul.f32 %v5221_v29, %v16671_v0 }
0x216b   : > { %v5311_v7 = vpack.c.bf16 %v5193_v61, %v5191_v63  ;;  %v5250_v54 = vpop.permute.xlu1 %5249  ;;  %v5312_v58 = vpack.c.bf16 %v5194_v27, %v5192_v33  ;;  %v5224_v61 = vmul.f32 %v5219_v32, %v16672_v10  ;;  %v5313_v27 = vpack.c.bf16 %v5209_v30, %v5207_v3 }
0x216c   : > { %v5237_v10 = vsel %vm919_vm6, %v5232_v51, %v5228_v62  ;;  %v5240_v52 = vmul.f32 %v5235_v4, %v16675_v15  ;;  %v5315_v49 = vpack.c.bf16 %v5225_v42, %v5223_v40  ;;  %v5241_v63 = vmul.f32 %v5238_v5, %v16674_v45 }
0x216d   : > { %5349 = vmatprep.subr.bf16.mxu1 %v5312_v58  ;;  %v5316_v9 = vpack.c.bf16 %v5226_v19, %v5224_v61  ;;  %v5239_v1 = vmul.f32 %v5237_v10, %v16674_v45  ;;  %v5257_v15 = vsel %vm946_vm7, %v5252_v57, %v13844_v35  ;;  %v5259_v35 = vmul.f32 %v5255_v60, %v16677_v26 }
0x216e   : > { %5350 = vmatpush1.bf16.msra.mxu1 %v5311_v7  ;;  %v5268_v55 = vpop.permute.xlu0 %5267  ;;  %v5318_v33 = vpack.c.bf16 %v5242_v47, %v5240_v52  ;;  %v5260_v7 = vmul.f32 %v5257_v15, %v16678_v44 }
0x216f   : > { %v5254_v23 = vpop.permute.xlu1 %5253  ;;  %5351 = vmatprep.subr.bf16.mxu1 %v5314_v14  ;;  %v5317_v11 = vpack.c.bf16 %v5241_v63, %v5239_v1  ;;  %v10663_v63 = vld [vmem:[%s15835_s14] ss:$8 sps:$4 sm:$0xff]  }
0x2170   : > { %v5258_v31 = vsel %vm946_vm7, %v5254_v23, %v5250_v54  ;;  %v5256_v62 = vsel %vm946_vm7, %v5250_v54, %v5254_v23  ;;  %v5273_v54 = vsel %vm963_vm8, %v5268_v55, %v5264_v8 }
0x2171   : > { %v5262_v51 = vmul.f32 %v5258_v31, %v16678_v44  ;;  %v5261_v30 = vmul.f32 %v5256_v62, %v16677_v26  ;;  %v5271_v44 = vsel %vm963_vm8, %v5264_v8, %v5268_v55  ;;  %v5276_v18 = vmul.f32 %v5273_v54, %v16680_v59 }
0x2172   : > { %5352 = vmatpush1.bf16.msra.mxu1 %v5313_v27  ;;  %v5280_v37 = vpop.permute.xlu0 %5279  ;;  %v5275_v8 = vmul.f32 %v5271_v44, %v16679_v16 }
0x2173   : > { %v5266_v21 = vpop.permute.xlu1 %5265  ;;  %5353 = vmatprep.subr.bf16.mxu1 %v5316_v9  ;;  %v5322_v14 = vpack.c.bf16 %v5262_v51, %v5260_v7 }
0x2176   : > { %5354 = vmatpush1.bf16.msra.mxu1 %v5315_v49  ;;  %v5284_v0 = vpop.permute.xlu0 %5283  ;;  %v5395_v49 = vpack.c.bf16 %v13539_v38, %v13534_v12 }
0x2177   : > { %v5270_v2 = vpop.permute.xlu1 %5269  ;;  %5355 = vmatprep.subr.bf16.mxu1 %v5318_v33  ;;  %v5289_v57 = vsel %vm980_vm9, %v5284_v0, %v5280_v37  ;;  %v5394_v33 = vpack.c.bf16 %v13537_v22, %v13531_v28 }
0x2178   : > { %v5274_v45 = vsel %vm963_vm8, %v5270_v2, %v5266_v21  ;;  %v5272_v32 = vsel %vm963_vm8, %v5266_v21, %v5270_v2  ;;  %v5292_v48 = vmul.f32 %v5289_v57, %v16682_v41 }
0x2179   : > { %v5278_v53 = vmul.f32 %v5274_v45, %v16680_v59  ;;  %v5277_v3 = vmul.f32 %v5272_v32, %v16679_v16  ;;  %v5287_v59 = vsel %vm980_vm9, %v5280_v37, %v5284_v0 }
0x217a   : > { %5356 = vmatpush1.bf16.msra.mxu1 %v5317_v11  ;;  %v5296_v19 = vpop.permute.xlu0 %5295  ;;  %v5291_v42 = vmul.f32 %v5287_v59, %v16681_v6 }
0x217b   : > { %v5282_v58 = vpop.permute.xlu1 %5281  ;;  %5357 = vmatprep.subr.bf16.mxu1 %v5320_v50  ;;  %v5321_v50 = vpack.c.bf16 %v5261_v30, %v5259_v35  ;;  %v5323_v61 = vpack.c.bf16 %v5277_v3, %v5275_v8 }
0x217e   : > { %5358 = vmatpush1.bf16.msra.mxu1 %v5319_v39  ;;  %v5324_v39 = vpack.c.bf16 %v5278_v53, %v5276_v18  ;;  %v5300_v55 = vpop.permute.xlu0 %5299 }
0x217f   : > { %v5286_v24 = vpop.permute.xlu1 %5285  ;;  %5359 = vmatprep.subr.bf16.mxu1 %v5322_v14  ;;  %v5303_v4 = vsel %vm997_vm10, %v5296_v19, %v5300_v55  ;;  %v5305_v16 = vsel %vm997_vm10, %v5300_v55, %v5296_v19  ;;  %v11608_v55 = vmov 19  }
0x2180   : > { %v5290_v26 = vsel %vm980_vm9, %v5286_v24, %v5282_v58  ;;  %v5288_v46 = vsel %vm980_vm9, %v5282_v58, %v5286_v24  ;;  %v5307_v40 = vmul.f32 %v13753_v17, %v5303_v4 }
0x2181   : > { %v5294_v56 = vmul.f32 %v5290_v26, %v16682_v41  ;;  %v5293_v23 = vmul.f32 %v5288_v46, %v16681_v6  ;;  %v5308_v6 = vmul.f32 %v13759_v25, %v5305_v16 }
0x2182   : > { %5360 = vmatpush1.bf16.msra.mxu1 %v5321_v50 }
0x2183   : > { %v5298_v29 = vpop.permute.xlu1 %5297  ;;  %5361 = vmatprep.subr.bf16.mxu1 %v5324_v39  ;;  %v5326_v27 = vpack.c.bf16 %v5294_v56, %v5292_v48  ;;  %v5325_v47 = vpack.c.bf16 %v5293_v23, %v5291_v42 }
0x2186   : > { %5362 = vmatpush1.bf16.msra.mxu1 %v5323_v61 }
0x2187   : > { %v5302_v5 = vpop.permute.xlu1 %5301  ;;  %5363 = vmatprep.subr.bf16.mxu1 %v5326_v27  ;;  %v11609_v27 = vmov 18  }
0x2188   : > { %v5304_v41 = vsel %vm997_vm10, %v5298_v29, %v5302_v5  ;;  %v5306_v9 = vsel %vm997_vm10, %v5302_v5, %v5298_v29 }
0x2189   : > { %v5309_v37 = vmul.f32 %v13753_v17, %v5304_v41  ;;  %v5310_v10 = vmul.f32 %v13759_v25, %v5306_v9  ;;  %v10664_v17 = vld [vmem:[%s15836_s15] sm:$0xff]   ;;  %v11559_v41 = vld [vmem:[%s16272_s25 + $0x8] sm:$0xff] }
0x218a   : > { %5364 = vmatpush1.bf16.msra.mxu1 %v5325_v47 }
0x218b   : > { %v5327_v52 = vpack.c.bf16 %v5309_v37, %v5307_v40  ;;  %v5328_v21 = vpack.c.bf16 %v5310_v10, %v5308_v6  ;;  %v11611_v40 = vmov 21   ;;  %v11560_v6 = vld [vmem:[%s16272_s25 + $0x20] sm:$0xff]  ;;  %v11561_v37 = vld [vmem:[%s16272_s25 + $0x10] sm:$0xff]  ;;  %v11562_v10 = vld [vmem:[%s16272_s25 + $0x18] sm:$0xff] }
0x218d   : > { %5365 = vmatprep.subr.bf16.mxu1 %v5328_v21 }
0x218e   : > { %5366 = vmatpush1.bf16.msra.mxu1 %v5327_v52 }
0x218f   : > { %5404 = vmatprep.subr.bf16.mxu1 %v5395_v49  ;;  %v5331_v38 = vpop.permute.xlu0 %5330 }
0x2191   : > { %5382 = vmatmul.mubr.bf16.vlgmr.msra.gmra.mrb[160].mxu1 %v10663_v63 }
0x2192   : > { %5405 = vmatpush1.bf16.msra.mxu1 %v5394_v33  ;;  %5436 = vmatprep.mubr.bf16.mxu1 %v16651_v20 }
0x2194   : > { %v5457_v22 = vpop.permute.xlu0 %5456 }
0x2198   : > { %v5335_v12 = vpop.permute.xlu1 %5334 }
0x219d   : > { %8993 = vmatmul.mubr.msk.bf16.vlgmr.msra.gmra.mrb[160].mxu1 %vm1164_vm13, %v10664_v17  ;;  %v5453_v1 = vpop.permute.xlu1 %5452 }
0x219e   : > { %6050 = vmatprep.mubr.bf16.mxu1 %v16651_v20 }
0x2270   : > { %v5438_v25 = vpop.f32.mrb[160].mxu1 }
0x2271   : > { %v9723_v31 = vadd.f32 %v5438_v25, %v5331_v38  ;;  %v5440_v0 = vpop.f32.mrb[161].mxu1 }
0x2272   : > { %v9724_v2 = vadd.f32 %v5440_v0, %v5331_v38  ;;  %v5442_v28 = vpop.f32.mrb[162].mxu1 }
0x2273   : > { %v13963_v11 = vadd.f32 %v9723_v31, %v5453_v1  ;;  %v9725_v15 = vadd.f32 %v5442_v28, %v5335_v12  ;;  %v5444_v62 = vpop.f32.mrb[163].mxu1  ;;  %v10665_v28 = vld [vmem:[%s15837_s16] sm:$0xff]  }
0x2274   : > { %v13965_v51 = vadd.f32 %v9724_v2, %v5453_v1  ;;  %v9726_v45 = vadd.f32 %v5444_v62, %v5335_v12 }
0x2275   : > { %16684 = vst [vmem:[#allocation114_spill] sm:$0xff] %v13963_v11  ;;  %v13967_v60 = vadd.f32 %v9725_v15, %v5457_v22  ;;  %v10667_v15 = vld [vmem:[%s15837_s16 + $0x10] sm:$0xff]  }
0x2276   : > { %16685 = vst [vmem:[#allocation120_spill] sm:$0xff] %v13965_v51  ;;  %v13969_v7 = vadd.f32 %v9726_v45, %v5457_v22  ;;  %v5463_v58 = vadd.f32 %v13965_v51, %v13963_v11  ;;  %v10666_v22 = vld [vmem:[%s15837_s16 + $0x8] sm:$0xff]  }
0x2277   : > { %16686 = vst [vmem:[#allocation109_spill] sm:$0xff] %v13967_v60 }
0x2278   : > { %16687 = vst [vmem:[#allocation111_spill] sm:$0xff] %v13969_v7  ;;  %5464 = vadd.xlane.f32.xlu1 %v5463_v58  ;;  %v5466_v54 = vadd.f32 %v13969_v7, %v13967_v60 }
0x227a   : > { %5467 = vadd.xlane.f32.xlu0 %v5466_v54 }
0x2305   : > { %v5465_v30 = vpop.xlane.xlu1 %5464 }
0x2307   : > { %v5468_v32 = vpop.xlane.xlu0 %5467 }
0x2308   : > { %v9711_v53 = vpack.c.bf16 %v5468_v32, %v5465_v30 }
0x230a   : > { %9712 = vmatprep.subr.bf16.mxu0 %v9711_v53 }
0x230b   : > { %9714 = vmatpush3.bf16.msra.mxu0 %v9711_v53 }
0x230e   : > { %9670 = vmatmul.mubr.msk.f32.vlgmr.msra.gmra.mrb[152].mxu0 %vm1164_vm13, %v16657_v36 }
0x230f   : > { %9676 = vmatprep.mubr.msk.f32.mxu0 %vm1164_vm13, %v16652_v43 }
0x23e1   : > { %v9671_v19 = vpop.f32.mrb[152].mxu0 }
0x23e2   : > { %5551 = vperm.xlu0 %10234, %v9671_v19   ;;  %v5535_v14 = vpop.f32.mrb[153].mxu0 }
0x23e3   : > { %5546 = vperm.xlu1 %10233, %v5535_v14  }
0x23e6   : > { %10235 = vset.pattern.permute.xlu0 %v11609_v27 }
0x23e7   : > { %10236 = vset.pattern.permute.xlu1 %v11608_v55 }
0x2461   : > { %v5552_v35 = vpop.permute.xlu0 %5551 }
0x2462   : > { %v5556_v44 = vsub.f32 %v13967_v60, %v5552_v35  ;;  %v5557_v18 = vsub.f32 %v13969_v7, %v5552_v35  ;;  %v5547_v24 = vpop.permute.xlu1 %5546 }
0x2463   : > { %v5554_v50 = vsub.f32 %v13963_v11, %v5547_v24  ;;  %v5555_v57 = vsub.f32 %v13965_v51, %v5547_v24 }
0x2464   : > { %v5560_v3 = vmul.f32 %v5556_v44, %v5556_v44  ;;  %v5561_v26 = vmul.f32 %v5557_v18, %v5557_v18 }
0x2465   : > { %v5558_v46 = vmul.f32 %v5554_v50, %v5554_v50  ;;  %v5559_v56 = vmul.f32 %v5555_v57, %v5555_v57 }
0x2466   : > { %v5565_v39 = vadd.f32 %v5561_v26, %v5560_v3 }
0x2467   : > { %v5562_v43 = vadd.f32 %v5559_v56, %v5558_v46 }
0x2468   : > { %5566 = vadd.xlane.f32.xlu0 %v5565_v39 }
0x2469   : > { %5563 = vadd.xlane.f32.xlu1 %v5562_v43 }
0x24f5   : > { %v5567_v8 = vpop.xlane.xlu0 %5566 }
0x24f6   : > { %v5564_v59 = vpop.xlane.xlu1 %5563 }
0x24f7   : > { %v9715_v48 = vpack.c.bf16 %v5567_v8, %v5564_v59 }
0x24f9   : > { %9716 = vmatprep.subr.bf16.mxu0 %v9715_v48 }
0x24fa   : > { %9718 = vmatpush3.bf16.msra.mxu0 %v9715_v48 }
0x24fd   : > { %9677 = vmatmul.mubr.msk.f32.vlgmr.msra.gmra.mrb[154].mxu0 %vm1164_vm13, %v16657_v36 }
0x24fe   : > { %5769 = vmatprep.mubr.bf16.mxu0 %v16651_v20 }
0x25d0   : > { %v9678_v29 = vpop.f32.mrb[154].mxu0 }
0x25d1   : > { %v5634_v61 = vpop.f32.mrb[155].mxu0  ;;  %v5640_v42 = vadd.f32 1e-05, %v9678_v29 }
0x25d2   : > { %v5635_v23 = vadd.f32 1e-05, %v5634_v61 }
0x25d4   : > { %11162 = vrsqrt.f32 %v5635_v23 }
0x25d5   : > { %11164 = vrsqrt.f32 %v5640_v42 }
0x25de   : > { %v11163_v4 = vpop.eup %11162 }
0x25df   : > { %5647 = vrot.lane.b32.xlu1 %v11163_v4, %s11610_s6  ;;  %v11165_v16 = vpop.eup %11164 }
0x25e3   : > { %5649 = vrot.lane.b32.xlu1 %v11165_v16, %s11610_s6  ;;  %s11613_s6 = smov 126  }
0x25e7   : > { %5670 = vperm.xlu1 %10236, %v13837_v34  }
0x25eb   : > { %10237 = vset.pattern.permute.xlu1 %v11609_v27 }
0x2651   : > { %v5648_v36 = vpop.permute.xlu1 %5647 }
0x2652   : > { %v5653_v5 = vmul.f32 %v13837_v34, %v5648_v36  ;;  %v11563_v36 = vld [vmem:[%s16272_s25 + $0x28] sm:$0xff] }
0x2654   : > { %5657 = vperm.xlu1 %10237, %v5653_v5  }
0x2655   : > { %v5650_v47 = vpop.permute.xlu1 %5649 }
0x2656   : > { %v5654_v9 = vmul.f32 %v11559_v41, %v5650_v47 }
0x2658   : > { %5662 = vperm.xlu0 %10235, %v5654_v9   ;;  %10238 = vset.pattern.permute.xlu1 %v11608_v55 }
0x2659   : > { %5674 = vperm.xlu1 %10238, %v11559_v41  }
0x265c   : > { %10240 = vset.pattern.permute.xlu0 %v11611_v40 }
0x265d   : > { %10239 = vset.pattern.permute.xlu1 %v11611_v40  ;;  %5706 = vperm.xlu0 %10240, %v11560_v6  }
0x265e   : > { %5690 = vperm.xlu1 %10239, %v13837_v34  }
0x2662   : > { %5694 = vperm.xlu1 %10239, %v11559_v41  }
0x2666   : > { %5698 = vperm.xlu1 %10239, %v11561_v37   ;;  %v5671_v52 = vpop.permute.xlu1 %5670 }
0x266a   : > { %5702 = vperm.xlu1 %10239, %v11562_v10  }
0x26d3   : > { %v5658_v21 = vpop.permute.xlu1 %5657 }
0x26d4   : > { %v5665_v49 = vmul.f32 %v5658_v21, %v5554_v50  ;;  %v5666_v34 = vmul.f32 %v5658_v21, %v5555_v57 }
0x26d6   : > { %v5677_v38 = vadd.f32 %v5671_v52, %v5665_v49  ;;  %v5678_v25 = vadd.f32 %v5671_v52, %v5666_v34 }
0x26d7   : > { %v5663_v63 = vpop.permute.xlu0 %5662 }
0x26d8   : > { %v5667_v33 = vmul.f32 %v5663_v63, %v5556_v44  ;;  %v5668_v17 = vmul.f32 %v5663_v63, %v5557_v18  ;;  %v5675_v12 = vpop.permute.xlu1 %5674 }
0x26da   : > { %v5679_v1 = vadd.f32 %v5675_v12, %v5667_v33  ;;  %v5680_v31 = vadd.f32 %v5675_v12, %v5668_v17 }
0x26dc   : > { %v5687_v0 = vpack.c.bf16 %v5679_v1, %v5677_v38  ;;  %v5688_v2 = vpack.c.bf16 %v5680_v31, %v5678_v25  ;;  %v14031_v5 = vpop.permute.xlu0 %5706 }
0x26dd   : > { %v5691_v62 = vpop.permute.xlu1 %5690 }
0x26de   : > { %5737 = vmatprep.subr.bf16.mxu0 %v5688_v2 }
0x26df   : > { %5738 = vmatpush1.bf16.msra.mxu0 %v5687_v0 }
0x26e1   : > { %v5695_v45 = vpop.permute.xlu1 %5694 }
0x26e2   : > { %9001 = vmatmul.mubr.msk.bf16.vlgmr.msra.gmra.mrb[156].mxu0 %vm1164_vm13, %v10665_v28 }
0x26e3   : > { %5779 = vmatprep.mubr.bf16.mxu0 %v16651_v20 }
0x26e5   : > { %v5699_v14 = vpop.permute.xlu1 %5698 }
0x26e9   : > { %v5703_v26 = vpop.permute.xlu1 %5702 }
0x26ea   : > { %9002 = vmatmul.mubr.msk.bf16.gmra.mrb[160].mxu0 %vm1164_vm13, %v10666_v22 }
0x26eb   : > { %5789 = vmatprep.mubr.bf16.mxu0 %v16651_v20 }
0x26f2   : > { %9003 = vmatmul.mubr.msk.bf16.gmra.mrb[164].mxu0 %vm1164_vm13, %v10667_v15 }
0x26f3   : > { %6297 = vmatprep.mubr.bf16.mxu0 %v16651_v20 }
0x27b5   : > { %v5771_v58 = vpop.f32.mrb[156].mxu0 }
0x27b6   : > { %v5773_v54 = vpop.f32.mrb[157].mxu0  ;;  %v5772_v32 = vadd.f32 %v5771_v58, %v5691_v62 }
0x27b7   : > { %v5775_v30 = vpop.f32.mrb[158].mxu0  ;;  %v5774_v35 = vadd.f32 %v5773_v54, %v5691_v62 }
0x27b8   : > { %v5776_v53 = vadd.f32 %v5775_v30, %v5695_v45  ;;  %v5777_v19 = vpop.f32.mrb[159].mxu0 }
0x27b9   : > { %v5778_v44 = vadd.f32 %v5777_v19, %v5695_v45 }
0x27ba   : > { %v10241_v18 = vpack.i.bf16 %v5776_v53, %v5772_v32 }
0x27bb   : > { %v10323_v24 = vpack.i.bf16 %v5778_v44, %v5774_v35 }
0x27bc   : > { %10242 = vxpose.xlu1.b32.start.end [1/1] (short) %v10241_v18, 128 }
0x27bd   : > { %v5781_v50 = vpop.f32.mrb[160].mxu0  ;;  %10324 = vxpose.xlu0.b32.start.end [1/1] (short) %v10323_v24, 128 }
0x27be   : > { %v5782_v57 = vadd.f32 %v5781_v50, %v5699_v14  ;;  %v5783_v3 = vpop.f32.mrb[161].mxu0 }
0x27bf   : > { %v5784_v46 = vadd.f32 %v5783_v3, %v5699_v14  ;;  %v5785_v56 = vpop.f32.mrb[162].mxu0 }
0x27c0   : > { %v5960_v39 = vpack.c.bf16 %v5782_v57, %v5782_v57  ;;  %v5786_v43 = vadd.f32 %v5785_v56, %v5703_v26  ;;  %v5787_v8 = vpop.f32.mrb[163].mxu0 }
0x27c1   : > { %v5961_v59 = vpack.c.bf16 %v5784_v46, %v5784_v46  ;;  %v5788_v48 = vadd.f32 %v5787_v8, %v5703_v26 }
0x27c2   : > { %v6013_v55 = vsel %vm1091_vm11, %v5960_v39, 0  ;;  %v5962_v29 = vpack.c.bf16 %v5786_v43, %v5786_v43 }
0x27c3   : > { %v5963_v61 = vpack.c.bf16 %v5788_v48, %v5788_v48  ;;  %9004 = vmatprep.subr.msk.bf16.mxu1 %vm1091_vm11, %v5961_v59 }
0x27c4   : > { %v6260_v23 = vsel %vm1091_vm11, %v5962_v29, 0  ;;  %6019 = vmatpush1.bf16.msra.mxu1 %v6013_v55 }
0x27c5   : > { %9021 = vmatprep.subr.msk.bf16.mxu0 %vm1091_vm11, %v5963_v61  ;;  %v14020_v27 = vpop.f32.mrb[164].mxu0 }
0x27c6   : > { %6266 = vmatpush1.bf16.msra.mxu0 %v6260_v23  ;;  %v14022_v42 = vpop.f32.mrb[165].mxu0 }
0x27c7   : > { %v14024_v4 = vpop.f32.mrb[166].mxu0 }
0x27c8   : > { %v14026_v16 = vpop.f32.mrb[167].mxu0 }
0x2816   : > { %5710 = vperm.xlu1 %10239, %v11563_v36  }
0x283c   : > { %v10243_v47 = vpop.trf.xlu1 }
0x283d   : > { %v14033_v41 = vpop.trf.xlu0  ;;  %v10247_v9 = vunpack.i.h.bf16 %v10243_v47  ;;  %v10244_v40 = vunpack.i.l.bf16 %v10243_v47 }
0x2840   : > { %v10248_v6 = vpop.trf.xlu1 }
0x2841   : > { %v10252_v37 = vunpack.i.h.bf16 %v10248_v6  ;;  %v10249_v10 = vunpack.i.l.bf16 %v10248_v6  ;;  %v14035_v52 = vpop.trf.xlu0 }
0x2843   : > { %v5928_v21 = vpack.c.bf16 %v10249_v10, %v10244_v40  ;;  %v5944_v49 = vpack.c.bf16 %v10252_v37, %v10247_v9 }
0x2844   : > { %v10253_v34 = vpop.trf.xlu1 }
0x2845   : > { %9005 = vmatmul.mubr.msk.bf16.vlgmr.msra.gmra.mrb[164].mxu1 %vm676_vm1, %v5928_v21  ;;  %9022 = vmatmul.mubr.msk.bf16.vlgmr.msra.gmra.mrb[168].mxu0 %vm676_vm1, %v5944_v49  ;;  %v14039_v63 = vpop.trf.xlu0  ;;  %v10257_v33 = vunpack.i.h.bf16 %v10253_v34  ;;  %v10254_v17 = vunpack.i.l.bf16 %v10253_v34 }
0x2846   : > { %6060 = vmatprep.mubr.bf16.mxu1 %v16651_v20  ;;  %6307 = vmatprep.mubr.bf16.mxu0 %v16651_v20 }
0x2848   : > { %v10258_v12 = vpop.trf.xlu1 }
0x2849   : > { %v10262_v38 = vunpack.i.h.bf16 %v10258_v12  ;;  %v10259_v25 = vunpack.i.l.bf16 %v10258_v12  ;;  %v14043_v1 = vpop.trf.xlu0 }
0x284b   : > { %v5929_v31 = vpack.c.bf16 %v10259_v25, %v10254_v17  ;;  %v5945_v0 = vpack.c.bf16 %v10262_v38, %v10257_v33 }
0x284c   : > { %v10263_v2 = vpop.trf.xlu1 }
0x284d   : > { %9006 = vmatmul.mubr.msk.bf16.gmra.mrb[168].mxu1 %vm676_vm1, %v5929_v31  ;;  %9023 = vmatmul.mubr.msk.bf16.gmra.mrb[172].mxu0 %vm676_vm1, %v5945_v0  ;;  %v14047_v28 = vpop.trf.xlu0  ;;  %v10267_v22 = vunpack.i.h.bf16 %v10263_v2  ;;  %v10264_v15 = vunpack.i.l.bf16 %v10263_v2 }
0x284e   : > { %6070 = vmatprep.mubr.bf16.mxu1 %v16651_v20  ;;  %6317 = vmatprep.mubr.bf16.mxu0 %v16651_v20 }
0x2850   : > { %v10268_v62 = vpop.trf.xlu1 }
0x2851   : > { %v10272_v45 = vunpack.i.h.bf16 %v10268_v62  ;;  %v10269_v58 = vunpack.i.l.bf16 %v10268_v62  ;;  %v14051_v54 = vpop.trf.xlu0 }
0x2853   : > { %v5930_v30 = vpack.c.bf16 %v10269_v58, %v10264_v15  ;;  %v5946_v32 = vpack.c.bf16 %v10272_v45, %v10267_v22 }
0x2854   : > { %v10273_v53 = vpop.trf.xlu1 }
0x2855   : > { %9007 = vmatmul.mubr.msk.bf16.gmra.mrb[172].mxu1 %vm676_vm1, %v5930_v30  ;;  %9024 = vmatmul.mubr.msk.bf16.gmra.mrb[176].mxu0 %vm676_vm1, %v5946_v32  ;;  %v14055_v19 = vpop.trf.xlu0  ;;  %v10277_v14 = vunpack.i.h.bf16 %v10273_v53  ;;  %v10274_v35 = vunpack.i.l.bf16 %v10273_v53 }
0x2856   : > { %6080 = vmatprep.mubr.bf16.mxu1 %v16651_v20  ;;  %6327 = vmatprep.mubr.bf16.mxu0 %v16651_v20 }
0x2858   : > { %v10278_v44 = vpop.trf.xlu1 }
0x2859   : > { %v10282_v18 = vunpack.i.h.bf16 %v10278_v44  ;;  %v10279_v24 = vunpack.i.l.bf16 %v10278_v44  ;;  %v14059_v50 = vpop.trf.xlu0  ;;  %v10329_v44 = vunpack.i.h.bf16 %v14033_v41 }
0x285b   : > { %v5931_v57 = vpack.c.bf16 %v10279_v24, %v10274_v35  ;;  %v5947_v3 = vpack.c.bf16 %v10282_v18, %v10277_v14  ;;  %v10326_v18 = vunpack.i.l.bf16 %v14033_v41  ;;  %v10334_v24 = vunpack.i.h.bf16 %v14035_v52 }
0x285c   : > { %v10283_v26 = vpop.trf.xlu1  ;;  %v10344_v41 = vunpack.i.h.bf16 %v14043_v1 }
0x285d   : > { %9008 = vmatmul.mubr.msk.bf16.gmra.mrb[176].mxu1 %vm676_vm1, %v5931_v57  ;;  %9025 = vmatmul.mubr.msk.bf16.gmra.mrb[180].mxu0 %vm676_vm1, %v5947_v3  ;;  %v14063_v46 = vpop.trf.xlu0  ;;  %v10287_v56 = vunpack.i.h.bf16 %v10283_v26  ;;  %v10284_v39 = vunpack.i.l.bf16 %v10283_v26  ;;  %v10331_v57 = vunpack.i.l.bf16 %v14035_v52  ;;  %v5952_v26 = vpack.c.bf16 %v10334_v24, %v10329_v44 }
0x285e   : > { %6090 = vmatprep.mubr.bf16.mxu1 %v16651_v20  ;;  %6337 = vmatprep.mubr.bf16.mxu0 %v16651_v20 }
0x285f   : > { %v5936_v3 = vpack.c.bf16 %v10331_v57, %v10326_v18 }
0x2860   : > { %v10288_v43 = vpop.trf.xlu1 }
0x2861   : > { %v10292_v8 = vunpack.i.h.bf16 %v10288_v43  ;;  %v10289_v59 = vunpack.i.l.bf16 %v10288_v43  ;;  %v14067_v48 = vpop.trf.xlu0  ;;  %v10341_v43 = vunpack.i.l.bf16 %v14043_v1 }
0x2863   : > { %v5932_v55 = vpack.c.bf16 %v10289_v59, %v10284_v39  ;;  %v5948_v29 = vpack.c.bf16 %v10292_v8, %v10287_v56  ;;  %v10339_v56 = vunpack.i.h.bf16 %v14039_v63  ;;  %v10336_v39 = vunpack.i.l.bf16 %v14039_v63 }
0x2864   : > { %v10293_v61 = vpop.trf.xlu1  ;;  %v10349_v59 = vunpack.i.h.bf16 %v14047_v28  ;;  %v10354_v63 = vunpack.i.h.bf16 %v14051_v54 }
0x2865   : > { %9009 = vmatmul.mubr.msk.bf16.gmra.mrb[180].mxu1 %vm676_vm1, %v5932_v55  ;;  %9026 = vmatmul.mubr.msk.bf16.gmra.mrb[184].mxu0 %vm676_vm1, %v5948_v29  ;;  %v14071_v23 = vpop.trf.xlu0  ;;  %v10297_v36 = vunpack.i.h.bf16 %v10293_v61  ;;  %v10294_v47 = vunpack.i.l.bf16 %v10293_v61  ;;  %v5937_v52 = vpack.c.bf16 %v10341_v43, %v10336_v39  ;;  %v5953_v8 = vpack.c.bf16 %v10344_v41, %v10339_v56 }
0x2866   : > { %6100 = vmatprep.mubr.bf16.mxu1 %v16651_v20  ;;  %6347 = vmatprep.mubr.bf16.mxu0 %v16651_v20  ;;  %v10346_v55 = vunpack.i.l.bf16 %v14047_v28  ;;  %v10351_v29 = vunpack.i.l.bf16 %v14051_v54  ;;  %v5954_v61 = vpack.c.bf16 %v10354_v63, %v10349_v59  ;;  %v10356_v28 = vunpack.i.l.bf16 %v14055_v19 }
0x2867   : > { %v10364_v54 = vunpack.i.h.bf16 %v14059_v50 }
0x2868   : > { %v10298_v9 = vpop.trf.xlu1  ;;  %v5938_v1 = vpack.c.bf16 %v10351_v29, %v10346_v55 }
0x2869   : > { %v10302_v40 = vunpack.i.h.bf16 %v10298_v9  ;;  %v10299_v6 = vunpack.i.l.bf16 %v10298_v9  ;;  %v14075_v37 = vpop.trf.xlu0 }
0x286b   : > { %v5933_v10 = vpack.c.bf16 %v10299_v6, %v10294_v47  ;;  %v5949_v21 = vpack.c.bf16 %v10302_v40, %v10297_v36  ;;  %v5792_v36 = vadd.f32 %v14020_v27, %v14031_v5  ;;  %v10359_v47 = vunpack.i.h.bf16 %v14055_v19 }
0x286c   : > { %v10303_v49 = vpop.trf.xlu1  ;;  %v10361_v40 = vunpack.i.l.bf16 %v14059_v50  ;;  %v5794_v6 = vadd.f32 %v14022_v42, %v14031_v5  ;;  %v10369_v50 = vunpack.i.h.bf16 %v14063_v46  ;;  %v10374_v42 = vunpack.i.h.bf16 %v14067_v48 }
0x286d   : > { %9010 = vmatmul.mubr.msk.bf16.gmra.mrb[184].mxu1 %vm676_vm1, %v5933_v10  ;;  %9027 = vmatmul.mubr.msk.bf16.gmra.mrb[188].mxu0 %vm676_vm1, %v5949_v21  ;;  %v14079_v34 = vpop.trf.xlu0  ;;  %v10307_v33 = vunpack.i.h.bf16 %v10303_v49  ;;  %v10304_v17 = vunpack.i.l.bf16 %v10303_v49 }
0x286e   : > { %6110 = vmatprep.mubr.bf16.mxu1 %v16651_v20  ;;  %6357 = vmatprep.mubr.bf16.mxu0 %v16651_v20  ;;  %v5939_v49 = vpack.c.bf16 %v10361_v40, %v10356_v28  ;;  %v5956_v5 = vpack.c.bf16 %v10374_v42, %v10369_v50 }
0x2870   : > { %v10308_v12 = vpop.trf.xlu1 }
0x2871   : > { %v10312_v38 = vunpack.i.h.bf16 %v10308_v12  ;;  %v10309_v25 = vunpack.i.l.bf16 %v10308_v12  ;;  %v14083_v31 = vpop.trf.xlu0  ;;  %v10379_v12 = vunpack.i.h.bf16 %v14071_v23 }
0x2873   : > { %v5934_v0 = vpack.c.bf16 %v10309_v25, %v10304_v17  ;;  %v5950_v2 = vpack.c.bf16 %v10312_v38, %v10307_v33  ;;  %v5955_v33 = vpack.c.bf16 %v10364_v54, %v10359_v47  ;;  %v10366_v17 = vunpack.i.l.bf16 %v14063_v46 }
0x2874   : > { %v10313_v22 = vpop.trf.xlu1  ;;  %v10376_v38 = vunpack.i.l.bf16 %v14071_v23  ;;  %v10384_v46 = vunpack.i.h.bf16 %v14075_v37  ;;  %v10381_v25 = vunpack.i.l.bf16 %v14075_v37  ;;  %v10394_v23 = vunpack.i.h.bf16 %v14083_v31 }
0x2875   : > { %9011 = vmatmul.mubr.msk.bf16.gmra.mrb[188].mxu1 %vm676_vm1, %v5934_v0  ;;  %9028 = vmatmul.mubr.msk.bf16.gmra.mrb[192].mxu0 %vm676_vm1, %v5950_v2  ;;  %v14087_v15 = vpop.trf.xlu0  ;;  %v10317_v62 = vunpack.i.h.bf16 %v10313_v22  ;;  %v10314_v45 = vunpack.i.l.bf16 %v10313_v22  ;;  %v10389_v2 = vunpack.i.h.bf16 %v14079_v34  ;;  %v10386_v22 = vunpack.i.l.bf16 %v14079_v34 }
0x2876   : > { %6120 = vmatprep.mubr.bf16.mxu1 %v16651_v20  ;;  %6367 = vmatprep.mubr.bf16.mxu0 %v16651_v20  ;;  %v5957_v0 = vpack.c.bf16 %v10384_v46, %v10379_v12 }
0x2878   : > { %v10318_v58 = vpop.trf.xlu1 }
0x2879   : > { %v10322_v30 = vunpack.i.h.bf16 %v10318_v58  ;;  %v10319_v32 = vunpack.i.l.bf16 %v10318_v58  ;;  %v14091_v53 = vpop.trf.xlu0  ;;  %v10399_v58 = vunpack.i.h.bf16 %v14087_v15 }
0x287a   : > { %v10404_v34 = vunpack.i.h.bf16 %v14091_v53 }
0x287b   : > { %v5935_v14 = vpack.c.bf16 %v10319_v32, %v10314_v45  ;;  %v5951_v35 = vpack.c.bf16 %v10322_v30, %v10317_v62  ;;  %v10391_v62 = vunpack.i.l.bf16 %v14083_v31  ;;  %v5958_v45 = vpack.c.bf16 %v10394_v23, %v10389_v2 }
0x287c   : > { %v10396_v30 = vunpack.i.l.bf16 %v14087_v15  ;;  %v10401_v32 = vunpack.i.l.bf16 %v14091_v53 }
0x287d   : > { %9012 = vmatmul.mubr.msk.bf16.gmra.mrb[192].mxu1 %vm676_vm1, %v5935_v14  ;;  %9029 = vmatmul.mubr.msk.bf16.gmra.mrb[196].mxu0 %vm676_vm1, %v5951_v35  ;;  %v5942_v37 = vpack.c.bf16 %v10391_v62, %v10386_v22  ;;  %v5959_v14 = vpack.c.bf16 %v10404_v34, %v10399_v58 }
0x287e   : > { %6130 = vmatprep.mubr.bf16.mxu1 %v16651_v20  ;;  %6377 = vmatprep.mubr.bf16.mxu0 %v16651_v20  ;;  %v5943_v31 = vpack.c.bf16 %v10401_v32, %v10396_v30 }
0x2885   : > { %9013 = vmatmul.mubr.msk.bf16.gmra.mrb[196].mxu1 %vm676_vm1, %v5936_v3  ;;  %9030 = vmatmul.mubr.msk.bf16.gmra.mrb[200].mxu0 %vm676_vm1, %v5952_v26 }
0x2886   : > { %6140 = vmatprep.mubr.bf16.mxu1 %v16651_v20  ;;  %6387 = vmatprep.mubr.bf16.mxu0 %v16651_v20 }
0x288d   : > { %9014 = vmatmul.mubr.msk.bf16.gmra.mrb[200].mxu1 %vm676_vm1, %v5937_v52  ;;  %9031 = vmatmul.mubr.msk.bf16.gmra.mrb[204].mxu0 %vm676_vm1, %v5953_v8 }
0x288e   : > { %6150 = vmatprep.mubr.bf16.mxu1 %v16651_v20  ;;  %6397 = vmatprep.mubr.bf16.mxu0 %v16651_v20 }
0x2895   : > { %v5711_v9 = vpop.permute.xlu1 %5710  ;;  %9015 = vmatmul.mubr.msk.bf16.gmra.mrb[204].mxu1 %vm676_vm1, %v5938_v1  ;;  %9032 = vmatmul.mubr.msk.bf16.gmra.mrb[208].mxu0 %vm676_vm1, %v5954_v61 }
0x2896   : > { %v5798_v10 = vadd.f32 %v14026_v16, %v5711_v9  ;;  %v5796_v27 = vadd.f32 %v14024_v4, %v5711_v9  ;;  %6160 = vmatprep.mubr.bf16.mxu1 %v16651_v20  ;;  %6407 = vmatprep.mubr.bf16.mxu0 %v16651_v20  ;;  %v10371_v4 = vunpack.i.l.bf16 %v14067_v48  ;;  %v5941_v48 = vpack.c.bf16 %v10381_v25, %v10376_v38 }
0x2898   : > { %v10487_v19 = vpack.i.bf16 %v5798_v10, %v5794_v6  ;;  %v10405_v21 = vpack.i.bf16 %v5796_v27, %v5792_v36  ;;  %v5940_v16 = vpack.c.bf16 %v10371_v4, %v10366_v17 }
0x289a   : > { %10488 = vxpose.xlu1.b32.start.end [1/1] (short) %v10487_v19, 128  ;;  %10406 = vxpose.xlu0.b32.start.end [1/1] (short) %v10405_v21, 128 }
0x289d   : > { %9016 = vmatmul.mubr.msk.bf16.gmra.mrb[208].mxu1 %vm676_vm1, %v5939_v49  ;;  %9033 = vmatmul.mubr.msk.bf16.gmra.mrb[212].mxu0 %vm676_vm1, %v5955_v33 }
0x289e   : > { %6170 = vmatprep.mubr.bf16.mxu1 %v16651_v20  ;;  %6417 = vmatprep.mubr.bf16.mxu0 %v16651_v20 }
0x28a5   : > { %9017 = vmatmul.mubr.msk.bf16.gmra.mrb[212].mxu1 %vm676_vm1, %v5940_v16  ;;  %9034 = vmatmul.mubr.msk.bf16.gmra.mrb[216].mxu0 %vm676_vm1, %v5956_v5 }
0x28a6   : > { %6180 = vmatprep.mubr.bf16.mxu1 %v16651_v20  ;;  %6427 = vmatprep.mubr.bf16.mxu0 %v16651_v20 }
0x28ad   : > { %9018 = vmatmul.mubr.msk.bf16.gmra.mrb[216].mxu1 %vm676_vm1, %v5941_v48  ;;  %9035 = vmatmul.mubr.msk.bf16.gmra.mrb[220].mxu0 %vm676_vm1, %v5957_v0 }
0x28ae   : > { %6190 = vmatprep.mubr.bf16.mxu1 %v16651_v20  ;;  %6437 = vmatprep.mubr.bf16.mxu0 %v16651_v20 }
0x28b5   : > { %9019 = vmatmul.mubr.msk.bf16.gmra.mrb[220].mxu1 %vm676_vm1, %v5942_v37  ;;  %9036 = vmatmul.mubr.msk.bf16.gmra.mrb[224].mxu0 %vm676_vm1, %v5958_v45 }
0x28b6   : > { %6200 = vmatprep.mubr.bf16.mxu1 %v16651_v20  ;;  %6447 = vmatprep.mubr.bf16.mxu0 %v16651_v20 }
0x28bd   : > { %9020 = vmatmul.mubr.msk.bf16.gmra.mrb[224].mxu1 %vm676_vm1, %v5943_v31  ;;  %9037 = vmatmul.mubr.msk.bf16.gmra.mrb[228].mxu0 %vm676_vm1, %v5959_v14 }
0x2918   : > { %v14165_v35 = vpop.f32.mrb[164].mxu1  ;;  %v14167_v15 = vpop.f32.mrb[168].mxu0 }
0x2919   : > { %v14169_v44 = vpop.f32.mrb[165].mxu1  ;;  %v14171_v18 = vpop.f32.mrb[169].mxu0 }
0x291a   : > { %v6458_v53 = vmax.f32 %v14165_v35, %v14169_v44  ;;  %v6554_v24 = vmax.f32 %v14167_v15, %v14171_v18  ;;  %v14177_v57 = vpop.f32.mrb[166].mxu1  ;;  %v14179_v3 = vpop.f32.mrb[170].mxu0 }
0x291b   : > { %v14181_v26 = vpop.f32.mrb[167].mxu1  ;;  %v14183_v56 = vpop.f32.mrb[171].mxu0 }
0x291c   : > { %v6461_v39 = vmax.f32 %v14177_v57, %v14181_v26  ;;  %v6557_v41 = vmax.f32 %v14179_v3, %v14183_v56  ;;  %6459 = vmax.xlane.f32.xlu1 %v6458_v53  ;;  %v10489_v43 = vpop.trf.xlu1  ;;  %v10407_v52 = vpop.trf.xlu0 }
0x291d   : > { %v10490_v9 = vunpack.i.l.bf16 %v10489_v43  ;;  %v10493_v54 = vunpack.i.h.bf16 %v10489_v43  ;;  %v10411_v27 = vunpack.i.h.bf16 %v10407_v52  ;;  %v10408_v19 = vunpack.i.l.bf16 %v10407_v52 }
0x291e   : > { %6462 = vmax.xlane.f32.xlu0 %v6461_v39 }
0x2920   : > { %v14189_v8 = vpop.f32.mrb[172].mxu0  ;;  %6555 = vmax.xlane.f32.xlu1 %v6554_v24  ;;  %v14191_v59 = vpop.f32.mrb[168].mxu1 }
0x2921   : > { %v14193_v55 = vpop.f32.mrb[169].mxu1  ;;  %v14195_v63 = vpop.f32.mrb[173].mxu0 }
0x2922   : > { %v6464_v29 = vmax.f32 %v14191_v59, %v14193_v55  ;;  %v6560_v1 = vmax.f32 %v14189_v8, %v14195_v63  ;;  %v14201_v61 = vpop.f32.mrb[170].mxu1  ;;  %v14203_v36 = vpop.f32.mrb[174].mxu0 }
0x2923   : > { %v14205_v47 = vpop.f32.mrb[171].mxu1  ;;  %v14207_v28 = vpop.f32.mrb[175].mxu0 }
0x2924   : > { %v6467_v40 = vmax.f32 %v14201_v61, %v14205_v47  ;;  %v6563_v6 = vmax.f32 %v14203_v36, %v14207_v28  ;;  %6558 = vmax.xlane.f32.xlu1 %v6557_v41  ;;  %6561 = vmax.xlane.f32.xlu0 %v6560_v1  ;;  %v10494_v10 = vpop.trf.xlu1  ;;  %v10412_v21 = vpop.trf.xlu0 }
0x2925   : > { %v10495_v49 = vunpack.i.l.bf16 %v10494_v10  ;;  %v10498_v33 = vunpack.i.h.bf16 %v10494_v10  ;;  %v10416_v50 = vunpack.i.h.bf16 %v10412_v21  ;;  %v10413_v17 = vunpack.i.l.bf16 %v10412_v21 }
0x2927   : > { %v7554_v42 = vpack.c.bf16 %v10495_v49, %v10490_v9  ;;  %v7570_v4 = vpack.c.bf16 %v10498_v33, %v10493_v54  ;;  %v7546_v12 = vpack.c.bf16 %v10413_v17, %v10408_v19  ;;  %v7562_v38 = vpack.c.bf16 %v10416_v50, %v10411_v27 }
0x2928   : > { %v14213_v16 = vpop.f32.mrb[176].mxu0  ;;  %6465 = vmax.xlane.f32.xlu1 %v6464_v29  ;;  %v14215_v5 = vpop.f32.mrb[172].mxu1 }
0x2929   : > { %v14217_v46 = vpop.f32.mrb[173].mxu1  ;;  %v14219_v25 = vpop.f32.mrb[177].mxu0  ;;  %9337 = vmatprep.subr.bf16.mxu1 %v7554_v42  ;;  %9449 = vmatprep.subr.bf16.mxu0 %v7570_v4 }
0x292a   : > { %v6470_v48 = vmax.f32 %v14215_v5, %v14217_v46  ;;  %v6566_v0 = vmax.f32 %v14213_v16, %v14219_v25  ;;  %v14225_v2 = vpop.f32.mrb[174].mxu1  ;;  %v14227_v22 = vpop.f32.mrb[178].mxu0  ;;  %9338 = vmatpush3.bf16.msra.mxu1 %v7546_v12  ;;  %9450 = vmatpush3.bf16.msra.mxu0 %v7562_v38 }
0x292b   : > { %v14229_v23 = vpop.f32.mrb[175].mxu1  ;;  %v14231_v62 = vpop.f32.mrb[179].mxu0 }
0x292c   : > { %v6473_v37 = vmax.f32 %v14225_v2, %v14229_v23  ;;  %v6569_v45 = vmax.f32 %v14227_v22, %v14231_v62  ;;  %6468 = vmax.xlane.f32.xlu1 %v6467_v40  ;;  %6471 = vmax.xlane.f32.xlu0 %v6470_v48  ;;  %v10499_v58 = vpop.trf.xlu1  ;;  %v10417_v30 = vpop.trf.xlu0 }
0x292d   : > { %v10500_v29 = vunpack.i.l.bf16 %v10499_v58  ;;  %v10503_v1 = vunpack.i.h.bf16 %v10499_v58  ;;  %v10418_v10 = vunpack.i.l.bf16 %v10417_v30 }
0x2930   : > { %v14237_v34 = vpop.f32.mrb[180].mxu0  ;;  %6564 = vmax.xlane.f32.xlu1 %v6563_v6  ;;  %6567 = vmax.xlane.f32.xlu0 %v6566_v0  ;;  %v14239_v32 = vpop.f32.mrb[176].mxu1  ;;  %v10421_v6 = vunpack.i.h.bf16 %v10417_v30 }
0x2931   : > { %v14241_v31 = vpop.f32.mrb[177].mxu1  ;;  %v14243_v14 = vpop.f32.mrb[181].mxu0 }
0x2932   : > { %v6476_v53 = vmax.f32 %v14239_v32, %v14241_v31  ;;  %v6572_v24 = vmax.f32 %v14237_v34, %v14243_v14  ;;  %v14249_v39 = vpop.f32.mrb[178].mxu1  ;;  %v14251_v41 = vpop.f32.mrb[182].mxu0 }
0x2933   : > { %v14253_v43 = vpop.f32.mrb[179].mxu1  ;;  %v14255_v52 = vpop.f32.mrb[183].mxu0 }
0x2934   : > { %v6479_v9 = vmax.f32 %v14249_v39, %v14253_v43  ;;  %v6575_v54 = vmax.f32 %v14251_v41, %v14255_v52  ;;  %6474 = vmax.xlane.f32.xlu1 %v6473_v37  ;;  %6477 = vmax.xlane.f32.xlu0 %v6476_v53  ;;  %v10504_v40 = vpop.trf.xlu1  ;;  %v10422_v27 = vpop.trf.xlu0 }
0x2935   : > { %v10505_v19 = vunpack.i.l.bf16 %v10504_v40  ;;  %v10508_v21 = vunpack.i.h.bf16 %v10504_v40  ;;  %v10426_v49 = vunpack.i.h.bf16 %v10422_v27  ;;  %v10423_v33 = vunpack.i.l.bf16 %v10422_v27 }
0x2937   : > { %v7555_v50 = vpack.c.bf16 %v10505_v19, %v10500_v29  ;;  %v7571_v17 = vpack.c.bf16 %v10508_v21, %v10503_v1  ;;  %v7547_v12 = vpack.c.bf16 %v10423_v33, %v10418_v10  ;;  %v7563_v38 = vpack.c.bf16 %v10426_v49, %v10421_v6 }
0x2938   : > { %v14261_v42 = vpop.f32.mrb[184].mxu0  ;;  %6570 = vmax.xlane.f32.xlu1 %v6569_v45  ;;  %6573 = vmax.xlane.f32.xlu0 %v6572_v24  ;;  %v14263_v4 = vpop.f32.mrb[180].mxu1 }
0x2939   : > { %v14265_v48 = vpop.f32.mrb[181].mxu1  ;;  %v14267_v0 = vpop.f32.mrb[185].mxu0  ;;  %9339 = vmatprep.subr.bf16.mxu1 %v7555_v50  ;;  %9451 = vmatprep.subr.bf16.mxu0 %v7571_v17 }
0x293a   : > { %16688 = vst [vmem:[#allocation116_spill] sm:$0xff] %v14267_v0  ;;  %v6482_v37 = vmax.f32 %v14263_v4, %v14265_v48  ;;  %v6578_v58 = vmax.f32 %v14261_v42, %v14267_v0  ;;  %v14273_v30 = vpop.f32.mrb[182].mxu1  ;;  %v14275_v45 = vpop.f32.mrb[186].mxu0  ;;  %9340 = vmatpush3.bf16.msra.mxu1 %v7547_v12  ;;  %9452 = vmatpush3.bf16.msra.mxu0 %v7563_v38 }
0x293b   : > { %16689 = vst [vmem:[#allocation118_spill] sm:$0xff] %v14273_v30  ;;  %16690 = vst [vmem:[#allocation117_spill] sm:$0xff] %v14275_v45  ;;  %v14277_v53 = vpop.f32.mrb[183].mxu1  ;;  %v14279_v24 = vpop.f32.mrb[187].mxu0 }
0x293c   : > { %16691 = vst [vmem:[#allocation119_spill] sm:$0xff] %v14277_v53  ;;  %16692 = vst [vmem:[#allocation39_spill] sm:$0xff] %v14279_v24  ;;  %v6485_v29 = vmax.f32 %v14273_v30, %v14277_v53  ;;  %v6581_v1 = vmax.f32 %v14275_v45, %v14279_v24  ;;  %6480 = vmax.xlane.f32.xlu1 %v6479_v9  ;;  %6483 = vmax.xlane.f32.xlu0 %v6482_v37  ;;  %v10509_v40 = vpop.trf.xlu1  ;;  %v10427_v6 = vpop.trf.xlu0 }
0x293d   : > { %v10510_v12 = vunpack.i.l.bf16 %v10509_v40  ;;  %v10513_v38 = vunpack.i.h.bf16 %v10509_v40  ;;  %v10431_v7 = vunpack.i.h.bf16 %v10427_v6  ;;  %v10428_v51 = vunpack.i.l.bf16 %v10427_v6 }
0x2940   : > { %6576 = vmax.xlane.f32.xlu1 %v6575_v54  ;;  %6579 = vmax.xlane.f32.xlu0 %v6578_v58  ;;  %v14285_v10 = vpop.f32.mrb[184].mxu1  ;;  %v14287_v27 = vpop.f32.mrb[188].mxu0 }
0x2941   : > { %16693 = vst [vmem:[#allocation38_spill] sm:$0xff] %v14285_v10  ;;  %16694 = vst [vmem:[#allocation36_spill] sm:$0xff] %v14287_v27  ;;  %v14289_v19 = vpop.f32.mrb[185].mxu1  ;;  %v14291_v21 = vpop.f32.mrb[189].mxu0 }
0x2942   : > { %16695 = vst [vmem:[#allocation46_spill] sm:$0xff] %v14289_v19  ;;  %16696 = vst [vmem:[#allocation45_spill] sm:$0xff] %v14291_v21  ;;  %v6488_v49 = vmax.f32 %v14285_v10, %v14289_v19  ;;  %v14295_v33 = vpop.f32.mrb[186].mxu1  ;;  %v6584_v9 = vmax.f32 %v14287_v27, %v14291_v21  ;;  %v14299_v50 = vpop.f32.mrb[190].mxu0 }
0x2943   : > { %16697 = vst [vmem:[#allocation37_spill] sm:$0xff] %v14295_v33  ;;  %16698 = vst [vmem:[#allocation35_spill] sm:$0xff] %v14299_v50  ;;  %v14301_v54 = vpop.f32.mrb[187].mxu1  ;;  %v14303_v17 = vpop.f32.mrb[191].mxu0 }
0x2944   : > { %16699 = vst [vmem:[#allocation43_spill] sm:$0xff] %v14301_v54  ;;  %16700 = vst [vmem:[#allocation40_spill] sm:$0xff] %v14303_v17  ;;  %v6491_v37 = vmax.f32 %v14295_v33, %v14301_v54  ;;  %v6587_v58 = vmax.f32 %v14299_v50, %v14303_v17  ;;  %6486 = vmax.xlane.f32.xlu1 %v6485_v29  ;;  %v10514_v13 = vpop.trf.xlu1  ;;  %v10432_v60 = vpop.trf.xlu0 }
0x2945   : > { %v10515_v11 = vunpack.i.l.bf16 %v10514_v13  ;;  %v10518_v20 = vunpack.i.h.bf16 %v10514_v13  ;;  %v10436_v21 = vunpack.i.h.bf16 %v10432_v60  ;;  %v10433_v27 = vunpack.i.l.bf16 %v10432_v60 }
0x2946   : > { %6492 = vmax.xlane.f32.xlu0 %v6491_v37 }
0x2947   : > { %v7556_v19 = vpack.c.bf16 %v10515_v11, %v10510_v12  ;;  %v7572_v10 = vpack.c.bf16 %v10518_v20, %v10513_v38  ;;  %v7548_v45 = vpack.c.bf16 %v10433_v27, %v10428_v51  ;;  %v7564_v54 = vpack.c.bf16 %v10436_v21, %v10431_v7 }
0x2948   : > { %v14309_v24 = vpop.f32.mrb[192].mxu0  ;;  %6582 = vmax.xlane.f32.xlu1 %v6581_v1  ;;  %v14311_v40 = vpop.f32.mrb[188].mxu1 }
0x2949   : > { %16701 = vst [vmem:[#allocation42_spill] sm:$0xff] %v14309_v24  ;;  %16702 = vst [vmem:[#allocation41_spill] sm:$0xff] %v14311_v40  ;;  %v14313_v17 = vpop.f32.mrb[193].mxu0  ;;  %v14315_v29 = vpop.f32.mrb[189].mxu1  ;;  %9341 = vmatprep.subr.bf16.mxu1 %v7556_v19  ;;  %9453 = vmatprep.subr.bf16.mxu0 %v7572_v10 }
0x294a   : > { %16703 = vst [vmem:[#allocation50_spill] sm:$0xff] %v14313_v17  ;;  %16704 = vst [vmem:[#allocation48_spill] sm:$0xff] %v14315_v29  ;;  %v14319_v6 = vpop.f32.mrb[194].mxu0  ;;  %v6494_v20 = vmax.f32 %v14311_v40, %v14315_v29  ;;  %v14323_v11 = vpop.f32.mrb[190].mxu1  ;;  %9342 = vmatpush3.bf16.msra.mxu1 %v7548_v45  ;;  %9454 = vmatpush3.bf16.msra.mxu0 %v7564_v54 }
0x294b   : > { %16705 = vst [vmem:[#allocation47_spill] sm:$0xff] %v14319_v6  ;;  %16706 = vst [vmem:[#allocation44_spill] sm:$0xff] %v14323_v11  ;;  %v14325_v51 = vpop.f32.mrb[195].mxu0  ;;  %v14327_v60 = vpop.f32.mrb[191].mxu1 }
0x294c   : > { %16707 = vst [vmem:[#allocation55_spill] sm:$0xff] %v14325_v51  ;;  %16708 = vst [vmem:[#allocation49_spill] sm:$0xff] %v14327_v60  ;;  %v6593_v7 = vmax.f32 %v14319_v6, %v14325_v51  ;;  %6489 = vmax.xlane.f32.xlu1 %v6488_v49  ;;  %v6497_v1 = vmax.f32 %v14323_v11, %v14327_v60  ;;  %v10519_v10 = vpop.trf.xlu1  ;;  %v10437_v27 = vpop.trf.xlu0 }
0x294d   : > { %v10520_v13 = vunpack.i.l.bf16 %v10519_v10  ;;  %v10523_v60 = vunpack.i.h.bf16 %v10519_v10  ;;  %v10441_v51 = vunpack.i.h.bf16 %v10437_v27  ;;  %v10438_v29 = vunpack.i.l.bf16 %v10437_v27 }
0x294e   : > { %6594 = vmax.xlane.f32.xlu0 %v6593_v7 }
0x2950   : > { %6585 = vmax.xlane.f32.xlu1 %v6584_v9  ;;  %v14333_v19 = vpop.f32.mrb[192].mxu1  ;;  %v14335_v21 = vpop.f32.mrb[196].mxu0 }
0x2951   : > { %16709 = vst [vmem:[#allocation52_spill] sm:$0xff] %v14333_v19  ;;  %16710 = vst [vmem:[#allocation60_spill] sm:$0xff] %v14335_v21  ;;  %v14337_v45 = vpop.f32.mrb[193].mxu1  ;;  %v14339_v54 = vpop.f32.mrb[197].mxu0 }
0x2952   : > { %16711 = vst [vmem:[#allocation62_spill] sm:$0xff] %v14337_v45  ;;  %16712 = vst [vmem:[#allocation53_spill] sm:$0xff] %v14339_v54  ;;  %v6500_v12 = vmax.f32 %v14333_v19, %v14337_v45  ;;  %v14343_v38 = vpop.f32.mrb[194].mxu1  ;;  %v14347_v37 = vpop.f32.mrb[198].mxu0 }
0x2953   : > { %16713 = vst [vmem:[#allocation51_spill] sm:$0xff] %v14343_v38  ;;  %16714 = vst [vmem:[#allocation61_spill] sm:$0xff] %v14347_v37  ;;  %v14349_v7 = vpop.f32.mrb[195].mxu1  ;;  %v14351_v9 = vpop.f32.mrb[199].mxu0 }
0x2954   : > { %16715 = vst [vmem:[#allocation63_spill] sm:$0xff] %v14349_v7  ;;  %16716 = vst [vmem:[#allocation58_spill] sm:$0xff] %v14351_v9  ;;  %v6503_v11 = vmax.f32 %v14343_v38, %v14349_v7  ;;  %6588 = vmax.xlane.f32.xlu1 %v6587_v58  ;;  %v6599_v45 = vmax.f32 %v14347_v37, %v14351_v9  ;;  %v10524_v19 = vpop.trf.xlu1  ;;  %v10442_v40 = vpop.trf.xlu0 }
0x2955   : > { %v10525_v49 = vunpack.i.l.bf16 %v10524_v19  ;;  %v10528_v6 = vunpack.i.h.bf16 %v10524_v19  ;;  %v10446_v50 = vunpack.i.h.bf16 %v10442_v40  ;;  %v10443_v33 = vunpack.i.l.bf16 %v10442_v40 }
0x2956   : > { %6504 = vmax.xlane.f32.xlu0 %v6503_v11 }
0x2957   : > { %v7557_v53 = vpack.c.bf16 %v10525_v49, %v10520_v13  ;;  %v7573_v30 = vpack.c.bf16 %v10528_v6, %v10523_v60  ;;  %v7549_v58 = vpack.c.bf16 %v10443_v33, %v10438_v29  ;;  %v7565_v7 = vpack.c.bf16 %v10446_v50, %v10441_v51 }
0x2958   : > { %6495 = vmax.xlane.f32.xlu1 %v6494_v20  ;;  %v14357_v10 = vpop.f32.mrb[196].mxu1  ;;  %v14359_v0 = vpop.f32.mrb[200].mxu0  ;;  %v16725_v51 = vmax.f32 %v14309_v24, %v14313_v17 }
0x2959   : > { %16717 = vst [vmem:[#allocation54_spill] sm:$0xff] %v14357_v10  ;;  %16718 = vst [vmem:[#allocation56_spill] sm:$0xff] %v14359_v0  ;;  %v14361_v38 = vpop.f32.mrb[197].mxu1  ;;  %v14363_v9 = vpop.f32.mrb[201].mxu0  ;;  %9343 = vmatprep.subr.bf16.mxu1 %v7557_v53  ;;  %9455 = vmatprep.subr.bf16.mxu0 %v7573_v30 }
0x295a   : > { %16719 = vst [vmem:[#allocation59_spill] sm:$0xff] %v14361_v38  ;;  %16720 = vst [vmem:[#allocation57_spill] sm:$0xff] %v14363_v9  ;;  %v6506_v11 = vmax.f32 %v14357_v10, %v14361_v38  ;;  %6600 = vmax.xlane.f32.xlu0 %v6599_v45  ;;  %v14367_v40 = vpop.f32.mrb[198].mxu1  ;;  %v14371_v6 = vpop.f32.mrb[202].mxu0  ;;  %9344 = vmatpush3.bf16.msra.mxu1 %v7549_v58 }
0x295b   : > { %16721 = vst [vmem:[#allocation70_spill] sm:$0xff] %v14367_v40  ;;  %16722 = vst [vmem:[#allocation68_spill] sm:$0xff] %v14371_v6  ;;  %v14373_v33 = vpop.f32.mrb[199].mxu1  ;;  %v14375_v50 = vpop.f32.mrb[203].mxu0  ;;  %9456 = vmatpush3.bf16.msra.mxu0 %v7565_v7 }
0x295c   : > { %16723 = vst [vmem:[#allocation66_spill] sm:$0xff] %v14373_v33  ;;  %16724 = vst [vmem:[#allocation64_spill] sm:$0xff] %v14375_v50  ;;  %v6509_v30 = vmax.f32 %v14367_v40, %v14373_v33  ;;  %6498 = vmax.xlane.f32.xlu1 %v6497_v1  ;;  %v6605_v53 = vmax.f32 %v14371_v6, %v14375_v50  ;;  %v10529_v29 = vpop.trf.xlu1  ;;  %v10447_v20 = vpop.trf.xlu0 }
0x295d   : > { %v10530_v13 = vunpack.i.l.bf16 %v10529_v29  ;;  %v10533_v38 = vunpack.i.h.bf16 %v10529_v29  ;;  %v10448_v50 = vunpack.i.l.bf16 %v10447_v20  ;;  %v16734_v29 = vmax.f32 %v14335_v21, %v14339_v54 }
0x295e   : > { %6510 = vmax.xlane.f32.xlu0 %v6509_v30 }
0x2960   : > { %6591 = vmax.xlane.f32.xlu1 %v16725_v51  ;;  %v14384_v60 = vpop.f32.mrb[200].mxu1  ;;  %v14386_v27 = vpop.f32.mrb[204].mxu0 }
0x2961   : > { %16726 = vst [vmem:[#allocation71_spill] sm:$0xff] %v14384_v60  ;;  %16727 = vst [vmem:[#allocation69_spill] sm:$0xff] %v14386_v27  ;;  %v14388_v19 = vpop.f32.mrb[201].mxu1  ;;  %v14390_v45 = vpop.f32.mrb[205].mxu0 }
0x2962   : > { %16728 = vst [vmem:[#allocation67_spill] sm:$0xff] %v14388_v19  ;;  %16729 = vst [vmem:[#allocation65_spill] sm:$0xff] %v14390_v45  ;;  %v6512_v1 = vmax.f32 %v14384_v60, %v14388_v19  ;;  %6606 = vmax.xlane.f32.xlu0 %v6605_v53  ;;  %v14394_v49 = vpop.f32.mrb[202].mxu1  ;;  %v14398_v58 = vpop.f32.mrb[206].mxu0  ;;  %v10451_v60 = vunpack.i.h.bf16 %v10447_v20 }
0x2963   : > { %16730 = vst [vmem:[#allocation78_spill] sm:$0xff] %v14394_v49  ;;  %16731 = vst [vmem:[#allocation76_spill] sm:$0xff] %v14398_v58  ;;  %v14400_v30 = vpop.f32.mrb[203].mxu1  ;;  %v14402_v51 = vpop.f32.mrb[207].mxu0 }
0x2964   : > { %16732 = vst [vmem:[#allocation74_spill] sm:$0xff] %v14400_v30  ;;  %16733 = vst [vmem:[#allocation72_spill] sm:$0xff] %v14402_v51  ;;  %v6515_v10 = vmax.f32 %v14394_v49, %v14400_v30  ;;  %6501 = vmax.xlane.f32.xlu1 %v6500_v12  ;;  %v6611_v53 = vmax.f32 %v14398_v58, %v14402_v51  ;;  %v10534_v19 = vpop.trf.xlu1  ;;  %v10452_v6 = vpop.trf.xlu0 }
0x2965   : > { %v10535_v7 = vunpack.i.l.bf16 %v10534_v19  ;;  %v10538_v33 = vunpack.i.h.bf16 %v10534_v19  ;;  %v10456_v40 = vunpack.i.h.bf16 %v10452_v6  ;;  %v10453_v17 = vunpack.i.l.bf16 %v10452_v6 }
0x2966   : > { %6516 = vmax.xlane.f32.xlu0 %v6515_v10 }
0x2967   : > { %v7558_v24 = vpack.c.bf16 %v10535_v7, %v10530_v13  ;;  %v7574_v37 = vpack.c.bf16 %v10538_v33, %v10533_v38  ;;  %v7550_v51 = vpack.c.bf16 %v10453_v17, %v10448_v50  ;;  %v7566_v58 = vpack.c.bf16 %v10456_v40, %v10451_v60 }
0x2968   : > { %6597 = vmax.xlane.f32.xlu1 %v16734_v29  ;;  %v14411_v30 = vpop.f32.mrb[204].mxu1  ;;  %v14413_v12 = vpop.f32.mrb[208].mxu0  ;;  %v16743_v60 = vmax.f32 %v14359_v0, %v14363_v9 }
0x2969   : > { %16735 = vst [vmem:[#allocation79_spill] sm:$0xff] %v14411_v30  ;;  %16736 = vst [vmem:[#allocation77_spill] sm:$0xff] %v14413_v12  ;;  %v14415_v49 = vpop.f32.mrb[205].mxu1  ;;  %v14417_v20 = vpop.f32.mrb[209].mxu0  ;;  %9345 = vmatprep.subr.bf16.mxu1 %v7558_v24  ;;  %9457 = vmatprep.subr.bf16.mxu0 %v7574_v37 }
0x296a   : > { %16737 = vst [vmem:[#allocation85_spill] sm:$0xff] %v14415_v49  ;;  %16738 = vst [vmem:[#allocation84_spill] sm:$0xff] %v14417_v20  ;;  %v6518_v10 = vmax.f32 %v14411_v30, %v14415_v49  ;;  %6612 = vmax.xlane.f32.xlu0 %v6611_v53  ;;  %v14421_v38 = vpop.f32.mrb[206].mxu1  ;;  %v14425_v6 = vpop.f32.mrb[210].mxu0  ;;  %9346 = vmatpush3.bf16.msra.mxu1 %v7550_v51 }
0x296b   : > { %16739 = vst [vmem:[#allocation90_spill] sm:$0xff] %v14421_v38  ;;  %16740 = vst [vmem:[#allocation87_spill] sm:$0xff] %v14425_v6  ;;  %v14427_v17 = vpop.f32.mrb[207].mxu1  ;;  %v14429_v40 = vpop.f32.mrb[211].mxu0  ;;  %9458 = vmatpush3.bf16.msra.mxu0 %v7566_v58 }
0x296c   : > { %16741 = vst [vmem:[#allocation73_spill] sm:$0xff] %v14427_v17  ;;  %16742 = vst [vmem:[#allocation86_spill] sm:$0xff] %v14429_v40  ;;  %v6521_v24 = vmax.f32 %v14421_v38, %v14427_v17  ;;  %6507 = vmax.xlane.f32.xlu1 %v6506_v11  ;;  %v6617_v37 = vmax.f32 %v14425_v6, %v14429_v40  ;;  %v10539_v33 = vpop.trf.xlu1  ;;  %v10457_v50 = vpop.trf.xlu0 }
0x296d   : > { %v10540_v49 = vunpack.i.l.bf16 %v10539_v33  ;;  %v10543_v30 = vunpack.i.h.bf16 %v10539_v33  ;;  %v10458_v6 = vunpack.i.l.bf16 %v10457_v50  ;;  %v16750_v33 = vmax.f32 %v14386_v27, %v14390_v45 }
0x296e   : > { %6522 = vmax.xlane.f32.xlu0 %v6521_v24 }
0x2970   : > { %6603 = vmax.xlane.f32.xlu1 %v16743_v60  ;;  %v14438_v19 = vpop.f32.mrb[208].mxu1  ;;  %v14440_v7 = vpop.f32.mrb[212].mxu0 }
0x2971   : > { %16744 = vst [vmem:[#allocation92_spill] sm:$0xff] %v14438_v19  ;;  %v14442_v51 = vpop.f32.mrb[209].mxu1  ;;  %v14444_v58 = vpop.f32.mrb[213].mxu0 }
0x2972   : > { %16745 = vst [vmem:[#allocation80_spill] sm:$0xff] %v14442_v51  ;;  %v6524_v11 = vmax.f32 %v14438_v19, %v14442_v51  ;;  %6618 = vmax.xlane.f32.xlu0 %v6617_v37  ;;  %v14448_v53 = vpop.f32.mrb[210].mxu1  ;;  %v14452_v24 = vpop.f32.mrb[214].mxu0  ;;  %v10461_v19 = vunpack.i.h.bf16 %v10457_v50 }
0x2973   : > { %16746 = vst [vmem:[#allocation75_spill] sm:$0xff] %v14448_v53  ;;  %16747 = vst [vmem:[#allocation83_spill] sm:$0xff] %v14452_v24  ;;  %v14454_v60 = vpop.f32.mrb[211].mxu1  ;;  %v14456_v13 = vpop.f32.mrb[215].mxu0 }
0x2974   : > { %16748 = vst [vmem:[#allocation81_spill] sm:$0xff] %v14454_v60  ;;  %16749 = vst [vmem:[#allocation91_spill] sm:$0xff] %v14456_v13  ;;  %v6527_v40 = vmax.f32 %v14448_v53, %v14454_v60  ;;  %6513 = vmax.xlane.f32.xlu1 %v6512_v1  ;;  %v6623_v37 = vmax.f32 %v14452_v24, %v14456_v13  ;;  %v10544_v51 = vpop.trf.xlu1  ;;  %v10462_v17 = vpop.trf.xlu0 }
0x2975   : > { %v10545_v29 = vunpack.i.l.bf16 %v10544_v51  ;;  %v10548_v38 = vunpack.i.h.bf16 %v10544_v51  ;;  %v10466_v9 = vunpack.i.h.bf16 %v10462_v17  ;;  %v10463_v0 = vunpack.i.l.bf16 %v10462_v17 }
0x2976   : > { %6528 = vmax.xlane.f32.xlu0 %v6527_v40 }
0x2977   : > { %v7559_v54 = vpack.c.bf16 %v10545_v29, %v10540_v49  ;;  %v7575_v21 = vpack.c.bf16 %v10548_v38, %v10543_v30  ;;  %v7551_v13 = vpack.c.bf16 %v10463_v0, %v10458_v6  ;;  %v7567_v24 = vpack.c.bf16 %v10466_v9, %v10461_v19 }
0x2978   : > { %6609 = vmax.xlane.f32.xlu1 %v16750_v33  ;;  %v14465_v60 = vpop.f32.mrb[212].mxu1  ;;  %v14467_v1 = vpop.f32.mrb[216].mxu0  ;;  %v16759_v19 = vmax.f32 %v14413_v12, %v14417_v20 }
0x2979   : > { %16751 = vst [vmem:[#allocation82_spill] sm:$0xff] %v14465_v60  ;;  %16752 = vst [vmem:[#allocation88_spill] sm:$0xff] %v14467_v1  ;;  %v14469_v53 = vpop.f32.mrb[213].mxu1  ;;  %v14471_v50 = vpop.f32.mrb[217].mxu0  ;;  %9347 = vmatprep.subr.bf16.mxu1 %v7559_v54  ;;  %9459 = vmatprep.subr.bf16.mxu0 %v7575_v21 }
0x297a   : > { %16753 = vst [vmem:[#allocation98_spill] sm:$0xff] %v14469_v53  ;;  %16754 = vst [vmem:[#allocation99_spill] sm:$0xff] %v14471_v50  ;;  %v6530_v49 = vmax.f32 %v14465_v60, %v14469_v53  ;;  %6624 = vmax.xlane.f32.xlu0 %v6623_v37  ;;  %v14475_v30 = vpop.f32.mrb[214].mxu1  ;;  %v14479_v17 = vpop.f32.mrb[218].mxu0  ;;  %9348 = vmatpush3.bf16.msra.mxu1 %v7551_v13 }
0x297b   : > { %16755 = vst [vmem:[#allocation89_spill] sm:$0xff] %v14475_v30  ;;  %16756 = vst [vmem:[#allocation93_spill] sm:$0xff] %v14479_v17  ;;  %v14481_v0 = vpop.f32.mrb[215].mxu1  ;;  %v14483_v9 = vpop.f32.mrb[219].mxu0  ;;  %9460 = vmatpush3.bf16.msra.mxu0 %v7567_v24 }
0x297c   : > { %16757 = vst [vmem:[#allocation94_spill] sm:$0xff] %v14481_v0  ;;  %16758 = vst [vmem:[#allocation101_spill] sm:$0xff] %v14483_v9  ;;  %v6533_v21 = vmax.f32 %v14475_v30, %v14481_v0  ;;  %6519 = vmax.xlane.f32.xlu1 %v6518_v10  ;;  %v6629_v54 = vmax.f32 %v14479_v17, %v14483_v9  ;;  %v10549_v6 = vpop.trf.xlu1  ;;  %v10467_v40 = vpop.trf.xlu0 }
0x297d   : > { %v10550_v53 = vunpack.i.l.bf16 %v10549_v6  ;;  %v10553_v60 = vunpack.i.h.bf16 %v10549_v6  ;;  %v10468_v17 = vunpack.i.l.bf16 %v10467_v40  ;;  %v16766_v6 = vmax.f32 %v14440_v7, %v14444_v58 }
0x297e   : > { %6534 = vmax.xlane.f32.xlu0 %v6533_v21 }
0x2980   : > { %6615 = vmax.xlane.f32.xlu1 %v16759_v19  ;;  %v14492_v13 = vpop.f32.mrb[216].mxu1  ;;  %v14494_v51 = vpop.f32.mrb[220].mxu0 }
0x2981   : > { %16760 = vst [vmem:[#allocation100_spill] sm:$0xff] %v14492_v13  ;;  %v14496_v29 = vpop.f32.mrb[217].mxu1  ;;  %v14498_v24 = vpop.f32.mrb[221].mxu0 }
0x2982   : > { %16761 = vst [vmem:[#allocation96_spill] sm:$0xff] %v14496_v29  ;;  %v6536_v10 = vmax.f32 %v14492_v13, %v14496_v29  ;;  %6630 = vmax.xlane.f32.xlu0 %v6629_v54  ;;  %v14502_v37 = vpop.f32.mrb[218].mxu1  ;;  %v14506_v21 = vpop.f32.mrb[222].mxu0  ;;  %v10471_v13 = vunpack.i.h.bf16 %v10467_v40 }
0x2983   : > { %16762 = vst [vmem:[#allocation104_spill] sm:$0xff] %v14502_v37  ;;  %16763 = vst [vmem:[#allocation106_spill] sm:$0xff] %v14506_v21  ;;  %v14508_v19 = vpop.f32.mrb[219].mxu1  ;;  %v14510_v38 = vpop.f32.mrb[223].mxu0 }
0x2984   : > { %16764 = vst [vmem:[#allocation107_spill] sm:$0xff] %v14508_v19  ;;  %16765 = vst [vmem:[#allocation97_spill] sm:$0xff] %v14510_v38  ;;  %v6539_v9 = vmax.f32 %v14502_v37, %v14508_v19  ;;  %6525 = vmax.xlane.f32.xlu1 %v6524_v11  ;;  %v6635_v54 = vmax.f32 %v14506_v21, %v14510_v38  ;;  %v10554_v29 = vpop.trf.xlu1  ;;  %v10472_v0 = vpop.trf.xlu0 }
0x2985   : > { %v10555_v33 = vunpack.i.l.bf16 %v10554_v29  ;;  %v10558_v30 = vunpack.i.h.bf16 %v10554_v29  ;;  %v10476_v20 = vunpack.i.h.bf16 %v10472_v0  ;;  %v10473_v12 = vunpack.i.l.bf16 %v10472_v0 }
0x2986   : > { %6540 = vmax.xlane.f32.xlu0 %v6539_v9 }
0x2987   : > { %v7560_v45 = vpack.c.bf16 %v10555_v33, %v10550_v53  ;;  %v7576_v27 = vpack.c.bf16 %v10558_v30, %v10553_v60  ;;  %v7552_v38 = vpack.c.bf16 %v10473_v12, %v10468_v17  ;;  %v7568_v21 = vpack.c.bf16 %v10476_v20, %v10471_v13 }
0x2988   : > { %6621 = vmax.xlane.f32.xlu1 %v16766_v6  ;;  %v14519_v19 = vpop.f32.mrb[220].mxu1  ;;  %v14521_v11 = vpop.f32.mrb[224].mxu0  ;;  %v16775_v13 = vmax.f32 %v14467_v1, %v14471_v50 }
0x2989   : > { %16767 = vst [vmem:[#allocation95_spill] sm:$0xff] %v14519_v19  ;;  %16768 = vst [vmem:[#allocation105_spill] sm:$0xff] %v14521_v11  ;;  %v14523_v37 = vpop.f32.mrb[221].mxu1  ;;  %v14525_v40 = vpop.f32.mrb[225].mxu0  ;;  %9349 = vmatprep.subr.bf16.mxu1 %v7560_v45  ;;  %9461 = vmatprep.subr.bf16.mxu0 %v7576_v27 }
0x298a   : > { %16769 = vst [vmem:[#allocation110_spill] sm:$0xff] %v14523_v37  ;;  %16770 = vst [vmem:[#allocation103_spill] sm:$0xff] %v14525_v40  ;;  %6636 = vmax.xlane.f32.xlu0 %v6635_v54  ;;  %v6542_v53 = vmax.f32 %v14519_v19, %v14523_v37  ;;  %v6638_v60 = vmax.f32 %v14521_v11, %v14525_v40  ;;  %v14531_v30 = vpop.f32.mrb[226].mxu0  ;;  %v14533_v0 = vpop.f32.mrb[222].mxu1  ;;  %9350 = vmatpush3.bf16.msra.mxu1 %v7552_v38 }
0x298b   : > { %16771 = vst [vmem:[#allocation102_spill] sm:$0xff] %v14531_v30  ;;  %16772 = vst [vmem:[#allocation108_spill] sm:$0xff] %v14533_v0  ;;  %v14535_v12 = vpop.f32.mrb[223].mxu1  ;;  %v14537_v20 = vpop.f32.mrb[227].mxu0  ;;  %9462 = vmatpush3.bf16.msra.mxu0 %v7568_v21 }
0x298c   : > { %16773 = vst [vmem:[#allocation113_spill] sm:$0xff] %v14535_v12  ;;  %16774 = vst [vmem:[#allocation115_spill] sm:$0xff] %v14537_v20  ;;  %6531 = vmax.xlane.f32.xlu1 %v6530_v49  ;;  %v6545_v27 = vmax.f32 %v14533_v0, %v14535_v12  ;;  %v6641_v45 = vmax.f32 %v14531_v30, %v14537_v20  ;;  %v10559_v17 = vpop.trf.xlu1  ;;  %v10477_v9 = vpop.trf.xlu0 }
0x298d   : > { %v10560_v11 = vunpack.i.l.bf16 %v10559_v17  ;;  %v10563_v12 = vunpack.i.h.bf16 %v10559_v17  ;;  %v10478_v20 = vunpack.i.l.bf16 %v10477_v9  ;;  %v16781_v17 = vmax.f32 %v14494_v51, %v14498_v24 }
0x298e   : > { %6543 = vmax.xlane.f32.xlu0 %v6542_v53 }
0x2990   : > { %6627 = vmax.xlane.f32.xlu1 %v16775_v13  ;;  %v14546_v38 = vpop.f32.mrb[224].mxu1  ;;  %v14548_v29 = vpop.f32.mrb[228].mxu0 }
0x2991   : > { %16776 = vst [vmem:[#allocation112_spill] sm:$0xff] %v14546_v38  ;;  %16777 = vst [vmem:[#allocation29_spill] sm:$0xff] %v14548_v29  ;;  %v14550_v33 = vpop.f32.mrb[225].mxu1  ;;  %v14552_v49 = vpop.f32.mrb[229].mxu0 }
0x2992   : > { %16778 = vst [vmem:[#allocation31_spill] sm:$0xff] %v14550_v33  ;;  %16779 = vst [vmem:[#allocation32_spill] sm:$0xff] %v14552_v49  ;;  %v6548_v21 = vmax.f32 %v14546_v38, %v14550_v33  ;;  %6642 = vmax.xlane.f32.xlu0 %v6641_v45  ;;  %v14556_v54 = vpop.f32.mrb[226].mxu1  ;;  %v6644_v6 = vmax.f32 %v14548_v29, %v14552_v49  ;;  %v14560_v53 = vpop.f32.mrb[230].mxu0  ;;  %v10481_v38 = vunpack.i.h.bf16 %v10477_v9 }
0x2993   : > { %v14562_v13 = vpop.f32.mrb[227].mxu1  ;;  %v14564_v40 = vpop.f32.mrb[231].mxu0 }
0x2994   : > { %16780 = vst [vmem:[#allocation33_spill] sm:$0xff] %v14562_v13  ;;  %v6551_v0 = vmax.f32 %v14556_v54, %v14562_v13  ;;  %6537 = vmax.xlane.f32.xlu1 %v6536_v10  ;;  %v6647_v45 = vmax.f32 %v14560_v53, %v14564_v40  ;;  %v10564_v33 = vpop.trf.xlu1  ;;  %v10482_v29 = vpop.trf.xlu0 }
0x2995   : > { %v10565_v30 = vunpack.i.l.bf16 %v10564_v33  ;;  %v10568_v49 = vunpack.i.h.bf16 %v10564_v33  ;;  %v10486_v37 = vunpack.i.h.bf16 %v10482_v29  ;;  %v10483_v19 = vunpack.i.l.bf16 %v10482_v29 }
0x2996   : > { %6552 = vmax.xlane.f32.xlu0 %v6551_v0 }
0x2997   : > { %v7561_v50 = vpack.c.bf16 %v10565_v30, %v10560_v11  ;;  %v7577_v1 = vpack.c.bf16 %v10568_v49, %v10563_v12  ;;  %v7553_v13 = vpack.c.bf16 %v10483_v19, %v10478_v20  ;;  %v7569_v10 = vpack.c.bf16 %v10486_v37, %v10481_v38 }
0x2998   : > { %6633 = vmax.xlane.f32.xlu1 %v16781_v17 }
0x2999   : > { %9351 = vmatprep.subr.bf16.mxu1 %v7561_v50  ;;  %9463 = vmatprep.subr.bf16.mxu0 %v7577_v1 }
0x299a   : > { %6648 = vmax.xlane.f32.xlu0 %v6647_v45  ;;  %9352 = vmatpush3.bf16.msra.mxu1 %v7553_v13 }
0x299b   : > { %9464 = vmatpush3.bf16.msra.mxu0 %v7569_v10 }
0x299c   : > { %6546 = vmax.xlane.f32.xlu1 %v6545_v27 }
0x29a0   : > { %6639 = vmax.xlane.f32.xlu1 %v6638_v60 }
0x29a4   : > { %6549 = vmax.xlane.f32.xlu1 %v6548_v21 }
0x29a8   : > { %6645 = vmax.xlane.f32.xlu1 %v6644_v6 }
0x29a9   : > { %v6460_v0 = vpop.xlane.xlu1 %6459 }
0x29aa   : > { %v6650_v9 = vsub.f32 %v14165_v35, %v6460_v0  ;;  %v6651_v11 = vsub.f32 %v14169_v44, %v6460_v0 }
0x29ab   : > { %v6463_v30 = vpop.xlane.xlu0 %6462 }
0x29ac   : > { %v6778_v12 = vmul.f32 1.442695, %v6650_v9  ;;  %v6780_v29 = vmul.f32 1.442695, %v6651_v11  ;;  %v6652_v19 = vsub.f32 %v14177_v57, %v6463_v30  ;;  %v6653_v50 = vsub.f32 %v14181_v26, %v6463_v30 }
0x29ad   : > { %v6556_v1 = vpop.xlane.xlu1 %6555 }
0x29ae   : > { %11166 = vpow2.f32 %v6778_v12  ;;  %v6782_v37 = vmul.f32 1.442695, %v6652_v19  ;;  %v6784_v20 = vmul.f32 1.442695, %v6653_v50  ;;  %v6714_v60 = vsub.f32 %v14167_v15, %v6556_v1 }
0x29af   : > { %11168 = vpow2.f32 %v6780_v29  ;;  %v6715_v27 = vsub.f32 %v14171_v18, %v6556_v1 }
0x29b0   : > { %11170 = vpow2.f32 %v6782_v37  ;;  %v6906_v35 = vmul.f32 1.442695, %v6714_v60 }
0x29b1   : > { %11172 = vpow2.f32 %v6784_v20  ;;  %v6908_v44 = vmul.f32 1.442695, %v6715_v27  ;;  %v6559_v38 = vpop.xlane.xlu1 %6558  ;;  %v6562_v33 = vpop.xlane.xlu0 %6561 }
0x29b2   : > { %11174 = vpow2.f32 %v6906_v35  ;;  %v6716_v57 = vsub.f32 %v14179_v3, %v6559_v38  ;;  %v6717_v26 = vsub.f32 %v14183_v56, %v6559_v38  ;;  %v6718_v49 = vsub.f32 %v14189_v8, %v6562_v33 }
0x29b3   : > { %11176 = vpow2.f32 %v6908_v44  ;;  %v6719_v15 = vsub.f32 %v14195_v63, %v6562_v33 }
0x29b4   : > { %v6910_v21 = vmul.f32 1.442695, %v6716_v57  ;;  %v6912_v6 = vmul.f32 1.442695, %v6717_v26  ;;  %v6914_v13 = vmul.f32 1.442695, %v6718_v49 }
0x29b5   : > { %v6466_v18 = vpop.xlane.xlu1 %6465  ;;  %v6916_v8 = vmul.f32 1.442695, %v6719_v15 }
0x29b6   : > { %11178 = vpow2.f32 %v6910_v21  ;;  %v6654_v45 = vsub.f32 %v14191_v59, %v6466_v18  ;;  %v6655_v17 = vsub.f32 %v14193_v55, %v6466_v18 }
0x29b7   : > { %11180 = vpow2.f32 %v6912_v6 }
0x29b8   : > { %v14585_v10 = vpop.eup %11166  ;;  %v6786_v3 = vmul.f32 1.442695, %v6654_v45  ;;  %v6788_v0 = vmul.f32 1.442695, %v6655_v17  ;;  %11182 = vpow2.f32 %v6914_v13 }
0x29b9   : > { %v14587_v56 = vpop.eup %11168  ;;  %v6469_v9 = vpop.xlane.xlu1 %6468 }
0x29ba   : > { %v6472_v11 = vpop.xlane.xlu0 %6471  ;;  %v14589_v30 = vpop.eup %11170  ;;  %11184 = vpow2.f32 %v6786_v3  ;;  %v6656_v63 = vsub.f32 %v14201_v61, %v6469_v9  ;;  %v6657_v59 = vsub.f32 %v14205_v47, %v6469_v9  ;;  %v7034_v19 = vadd.f32 %v14587_v56, %v14585_v10 }
0x29bb   : > { %v6658_v55 = vsub.f32 %v14215_v5, %v6472_v11  ;;  %v14594_v12 = vpop.eup %11172  ;;  %11186 = vpow2.f32 %v6788_v0  ;;  %v6659_v29 = vsub.f32 %v14217_v46, %v6472_v11 }
0x29bc   : > { %v14599_v50 = vpop.eup %11174  ;;  %v6790_v1 = vmul.f32 1.442695, %v6656_v63  ;;  %v6792_v37 = vmul.f32 1.442695, %v6657_v59  ;;  %v7037_v61 = vadd.f32 %v14594_v12, %v14589_v30  ;;  %11188 = vpow2.f32 %v6916_v8  ;;  %7035 = vadd.xlane.f32.xlu1 %v7034_v19 }
0x29bd   : > { %v6794_v20 = vmul.f32 1.442695, %v6658_v55  ;;  %v14603_v60 = vpop.eup %11176  ;;  %v6796_v47 = vmul.f32 1.442695, %v6659_v29  ;;  %v6565_v5 = vpop.xlane.xlu1 %6564 }
0x29be   : > { %v6568_v27 = vpop.xlane.xlu0 %6567  ;;  %11190 = vpow2.f32 %v6790_v1  ;;  %v6720_v46 = vsub.f32 %v14203_v36, %v6565_v5  ;;  %v6721_v35 = vsub.f32 %v14207_v28, %v6565_v5  ;;  %7038 = vadd.xlane.f32.xlu0 %v7037_v61  ;;  %v7130_v33 = vadd.f32 %v14603_v60, %v14599_v50 }
0x29bf   : > { %v6722_v44 = vsub.f32 %v14213_v16, %v6568_v27  ;;  %11192 = vpow2.f32 %v6792_v37  ;;  %v6723_v38 = vsub.f32 %v14219_v25, %v6568_v27 }
0x29c0   : > { %v14611_v57 = vpop.eup %11178  ;;  %11194 = vpow2.f32 %v6794_v20  ;;  %v6918_v26 = vmul.f32 1.442695, %v6720_v46  ;;  %v6920_v49 = vmul.f32 1.442695, %v6721_v35  ;;  %7131 = vadd.xlane.f32.xlu1 %v7130_v33 }
0x29c1   : > { %v6922_v21 = vmul.f32 1.442695, %v6722_v44  ;;  %v14613_v6 = vpop.eup %11180  ;;  %11196 = vpow2.f32 %v6796_v47  ;;  %v6924_v36 = vmul.f32 1.442695, %v6723_v38  ;;  %v6475_v28 = vpop.xlane.xlu1 %6474 }
0x29c2   : > { %v6478_v16 = vpop.xlane.xlu0 %6477  ;;  %11198 = vpow2.f32 %v6918_v26  ;;  %v6660_v15 = vsub.f32 %v14225_v2, %v6475_v28  ;;  %v6661_v25 = vsub.f32 %v14229_v23, %v6475_v28  ;;  %v14618_v18 = vpop.eup %11182  ;;  %v7133_v17 = vadd.f32 %v14613_v6, %v14611_v57 }
0x29c3   : > { %v6662_v13 = vsub.f32 %v14239_v32, %v6478_v16  ;;  %11200 = vpow2.f32 %v6920_v49  ;;  %v6663_v45 = vsub.f32 %v14241_v31, %v6478_v16 }
0x29c4   : > { %v14623_v3 = vpop.eup %11184  ;;  %11202 = vpow2.f32 %v6922_v21  ;;  %v6798_v0 = vmul.f32 1.442695, %v6660_v15  ;;  %v6800_v8 = vmul.f32 1.442695, %v6661_v25  ;;  %7134 = vadd.xlane.f32.xlu0 %v7133_v17 }
0x29c5   : > { %v6802_v9 = vmul.f32 1.442695, %v6662_v13  ;;  %v14625_v11 = vpop.eup %11186  ;;  %11204 = vpow2.f32 %v6924_v36  ;;  %v6804_v2 = vmul.f32 1.442695, %v6663_v45  ;;  %v6571_v23 = vpop.xlane.xlu1 %6570  ;;  %v16782_v45 = vld [vmem:[#allocation116_spill] sm:$0xff] }
0x29c6   : > { %v6574_v32 = vpop.xlane.xlu0 %6573  ;;  %11206 = vpow2.f32 %v6798_v0  ;;  %v6724_v63 = vsub.f32 %v14227_v22, %v6571_v23  ;;  %v6725_v31 = vsub.f32 %v14231_v62, %v6571_v23  ;;  %v14630_v55 = vpop.eup %11188  ;;  %v7040_v19 = vadd.f32 %v14625_v11, %v14623_v3 }
0x29c7   : > { %v6726_v59 = vsub.f32 %v14237_v34, %v6574_v32  ;;  %11208 = vpow2.f32 %v6800_v8  ;;  %v6727_v29 = vsub.f32 %v14243_v14, %v6574_v32  ;;  %v7136_v38 = vadd.f32 %v14630_v55, %v14618_v18 }
0x29c8   : > { %v14635_v1 = vpop.eup %11190  ;;  %11210 = vpow2.f32 %v6802_v9  ;;  %v6926_v37 = vmul.f32 1.442695, %v6724_v63  ;;  %v6928_v20 = vmul.f32 1.442695, %v6725_v31  ;;  %7041 = vadd.xlane.f32.xlu1 %v7040_v19  ;;  %v16783_v31 = vld [vmem:[#allocation118_spill] sm:$0xff] }
0x29c9   : > { %v6930_v61 = vmul.f32 1.442695, %v6726_v59  ;;  %v14637_v47 = vpop.eup %11192  ;;  %11212 = vpow2.f32 %v6804_v2  ;;  %v6932_v22 = vmul.f32 1.442695, %v6727_v29  ;;  %v6481_v62 = vpop.xlane.xlu1 %6480  ;;  %v16784_v29 = vld [vmem:[#allocation119_spill] sm:$0xff] }
0x29ca   : > { %v6484_v34 = vpop.xlane.xlu0 %6483  ;;  %v14639_v5 = vpop.eup %11194  ;;  %11214 = vpow2.f32 %v6926_v37  ;;  %v6664_v14 = vsub.f32 %v14249_v39, %v6481_v62  ;;  %v6665_v27 = vsub.f32 %v14253_v43, %v6481_v62  ;;  %v7043_v33 = vadd.f32 %v14637_v47, %v14635_v1 }
0x29cb   : > { %v6666_v46 = vsub.f32 %v14263_v4, %v6484_v34  ;;  %v14644_v35 = vpop.eup %11196  ;;  %11216 = vpow2.f32 %v6928_v20  ;;  %v6667_v44 = vsub.f32 %v14265_v48, %v6484_v34 }
0x29cc   : > { %v14651_v26 = vpop.eup %11198  ;;  %11218 = vpow2.f32 %v6930_v61  ;;  %v6806_v49 = vmul.f32 1.442695, %v6664_v14  ;;  %v6808_v39 = vmul.f32 1.442695, %v6665_v27  ;;  %7137 = vadd.xlane.f32.xlu1 %v7136_v38  ;;  %7044 = vadd.xlane.f32.xlu0 %v7043_v33  ;;  %v7046_v0 = vadd.f32 %v14644_v35, %v14639_v5  ;;  %v16785_v27 = vld [vmem:[#allocation37_spill] sm:$0xff]  ;;  %v16786_v38 = vld [vmem:[#allocation43_spill] sm:$0xff] }
0x29cd   : > { %v6810_v21 = vmul.f32 1.442695, %v6666_v46  ;;  %v14653_v43 = vpop.eup %11200  ;;  %11220 = vpow2.f32 %v6932_v22  ;;  %v6812_v4 = vmul.f32 1.442695, %v6667_v44  ;;  %v6577_v36 = vpop.xlane.xlu1 %6576 }
0x29ce   : > { %v6580_v48 = vpop.xlane.xlu0 %6579  ;;  %v14655_v28 = vpop.eup %11202  ;;  %11222 = vpow2.f32 %v6806_v49  ;;  %v6728_v16 = vsub.f32 %v14251_v41, %v6577_v36  ;;  %v6729_v15 = vsub.f32 %v14255_v52, %v6577_v36  ;;  %v7139_v8 = vadd.f32 %v14653_v43, %v14651_v26  ;;  %v16789_v36 = vld [vmem:[#allocation39_spill] sm:$0xff] }
0x29cf   : > { %v6730_v25 = vsub.f32 %v14261_v42, %v6580_v48  ;;  %v14660_v13 = vpop.eup %11204  ;;  %11224 = vpow2.f32 %v6808_v39  ;;  %v6731_v17 = vsub.f32 %v16782_v45, %v6580_v48 }
0x29d0   : > { %v14667_v9 = vpop.eup %11206  ;;  %11226 = vpow2.f32 %v6810_v21  ;;  %v6934_v2 = vmul.f32 1.442695, %v6728_v16  ;;  %v6936_v41 = vmul.f32 1.442695, %v6729_v15  ;;  %7047 = vadd.xlane.f32.xlu1 %v7046_v0  ;;  %7140 = vadd.xlane.f32.xlu0 %v7139_v8  ;;  %v7142_v22 = vadd.f32 %v14660_v13, %v14655_v28  ;;  %v16788_v21 = vld [vmem:[#allocation117_spill] sm:$0xff] }
0x29d1   : > { %v6938_v23 = vmul.f32 1.442695, %v6730_v25  ;;  %v14669_v52 = vpop.eup %11208  ;;  %11228 = vpow2.f32 %v6812_v4  ;;  %v6940_v42 = vmul.f32 1.442695, %v6731_v17  ;;  %v6487_v32 = vpop.xlane.xlu1 %6486 }
0x29d2   : > { %v14671_v63 = vpop.eup %11210  ;;  %11230 = vpow2.f32 %v6934_v2  ;;  %v6668_v59 = vsub.f32 %v16783_v31, %v6487_v32  ;;  %v6669_v19 = vsub.f32 %v16784_v29, %v6487_v32  ;;  %v7049_v37 = vadd.f32 %v14669_v52, %v14667_v9  ;;  %v16791_v32 = vld [vmem:[#allocation38_spill] sm:$0xff] }
0x29d3   : > { %v14677_v20 = vpop.eup %11212  ;;  %11232 = vpow2.f32 %v6936_v41  ;;  %v6493_v61 = vpop.xlane.xlu0 %6492 }
0x29d4   : > { %v14681_v62 = vpop.eup %11214  ;;  %11234 = vpow2.f32 %v6938_v23  ;;  %v6814_v34 = vmul.f32 1.442695, %v6668_v59  ;;  %v6816_v14 = vmul.f32 1.442695, %v6669_v19  ;;  %v6672_v46 = vsub.f32 %v16785_v27, %v6493_v61  ;;  %7143 = vadd.xlane.f32.xlu1 %v7142_v22  ;;  %7050 = vadd.xlane.f32.xlu0 %v7049_v37  ;;  %v16792_v59 = vld [vmem:[#allocation46_spill] sm:$0xff] }
0x29d5   : > { %v14684_v44 = vpop.eup %11216  ;;  %11236 = vpow2.f32 %v6940_v42  ;;  %v6673_v33 = vsub.f32 %v16786_v38, %v6493_v61  ;;  %v6583_v49 = vpop.xlane.xlu1 %6582  ;;  %v7052_v15 = vadd.f32 %v14677_v20, %v14671_v63 }
0x29d6   : > { %v14687_v39 = vpop.eup %11218  ;;  %11238 = vpow2.f32 %v6814_v34  ;;  %v6732_v4 = vsub.f32 %v16788_v21, %v6583_v49  ;;  %v6733_v48 = vsub.f32 %v16789_v36, %v6583_v49  ;;  %v7145_v25 = vadd.f32 %v14684_v44, %v14681_v62  ;;  %v16799_v36 = vld [vmem:[#allocation45_spill] sm:$0xff] }
0x29d7   : > { %16787 = vst [vmem:[#allocation34_spill] sm:$0xff] %v14687_v39  ;;  %v14691_v16 = vpop.eup %11220  ;;  %11240 = vpow2.f32 %v6816_v14  ;;  %v6822_v17 = vmul.f32 1.442695, %v6672_v46  ;;  %v6824_v41 = vmul.f32 1.442695, %v6673_v33  ;;  %v16797_v33 = vld [vmem:[#allocation36_spill] sm:$0xff] }
0x29d8   : > { %v14697_v45 = vpop.eup %11222  ;;  %v6942_v0 = vmul.f32 1.442695, %v6732_v4  ;;  %v6944_v8 = vmul.f32 1.442695, %v6733_v48  ;;  %7053 = vadd.xlane.f32.xlu1 %v7052_v15  ;;  %7146 = vadd.xlane.f32.xlu0 %v7145_v25  ;;  %v7148_v61 = vadd.f32 %v14691_v16, %v14687_v39 }
0x29d9   : > { %v14699_v2 = vpop.eup %11224  ;;  %v6490_v23 = vpop.xlane.xlu1 %6489 }
0x29da   : > { %v14701_v42 = vpop.eup %11226  ;;  %11242 = vpow2.f32 %v6942_v0  ;;  %v6670_v31 = vsub.f32 %v16791_v32, %v6490_v23  ;;  %v6671_v29 = vsub.f32 %v16792_v59, %v6490_v23  ;;  %v7055_v19 = vadd.f32 %v14699_v2, %v14697_v45  ;;  %v16802_v32 = vld [vmem:[#allocation35_spill] sm:$0xff]  ;;  %v16803_v59 = vld [vmem:[#allocation40_spill] sm:$0xff] }
0x29db   : > { %16790 = vst [vmem:[#allocation30_spill] sm:$0xff] %v14701_v42  ;;  %v14707_v37 = vpop.eup %11228  ;;  %11244 = vpow2.f32 %v6944_v8  ;;  %v6595_v4 = vpop.xlane.xlu0 %6594 }
0x29dc   : > { %16793 = vst [vmem:[#allocation2_spill] sm:$0xff] %v14707_v37  ;;  %v14711_v22 = vpop.eup %11230  ;;  %11246 = vpow2.f32 %v6822_v17  ;;  %v6818_v34 = vmul.f32 1.442695, %v6670_v31  ;;  %v6820_v14 = vmul.f32 1.442695, %v6671_v29  ;;  %7149 = vadd.xlane.f32.xlu1 %v7148_v61  ;;  %7056 = vadd.xlane.f32.xlu0 %v7055_v19  ;;  %v7058_v15 = vadd.f32 %v14707_v37, %v14701_v42 }
0x29dd   : > { %16794 = vst [vmem:[#allocation3_spill] sm:$0xff] %v14711_v22  ;;  %v14713_v27 = vpop.eup %11232  ;;  %11248 = vpow2.f32 %v6824_v41  ;;  %v6586_v46 = vpop.xlane.xlu1 %6585 }
0x29de   : > { %16795 = vst [vmem:[#allocation7_spill] sm:$0xff] %v14713_v27  ;;  %v14715_v38 = vpop.eup %11234  ;;  %11250 = vpow2.f32 %v6818_v34  ;;  %v6734_v49 = vsub.f32 %v16797_v33, %v6586_v46  ;;  %v6735_v48 = vsub.f32 %v16799_v36, %v6586_v46  ;;  %v7151_v25 = vadd.f32 %v14713_v27, %v14711_v22  ;;  %v16806_v36 = vld [vmem:[#allocation47_spill] sm:$0xff] }
0x29df   : > { %16796 = vst [vmem:[#allocation8_spill] sm:$0xff] %v14715_v38  ;;  %v14718_v21 = vpop.eup %11236  ;;  %11252 = vpow2.f32 %v6820_v14 }
0x29e0   : > { %16798 = vst [vmem:[#allocation9_spill] sm:$0xff] %v14718_v21  ;;  %v14725_v17 = vpop.eup %11238  ;;  %v6946_v0 = vmul.f32 1.442695, %v6734_v49  ;;  %v6948_v41 = vmul.f32 1.442695, %v6735_v48  ;;  %7059 = vadd.xlane.f32.xlu1 %v7058_v15  ;;  %7152 = vadd.xlane.f32.xlu0 %v7151_v25  ;;  %v7154_v34 = vadd.f32 %v14718_v21, %v14715_v38  ;;  %v6740_v48 = vsub.f32 %v16806_v36, %v6595_v4  ;;  %v16812_v36 = vld [vmem:[#allocation55_spill] sm:$0xff] }
0x29e1   : > { %16800 = vst [vmem:[#allocation10_spill] sm:$0xff] %v14725_v17  ;;  %v14727_v8 = vpop.eup %11240  ;;  %v6589_v23 = vpop.xlane.xlu1 %6588 }
0x29e2   : > { %16801 = vst [vmem:[#allocation14_spill] sm:$0xff] %v14727_v8  ;;  %11254 = vpow2.f32 %v6946_v0  ;;  %v6736_v31 = vsub.f32 %v16802_v32, %v6589_v23  ;;  %v6737_v29 = vsub.f32 %v16803_v59, %v6589_v23  ;;  %v7061_v19 = vadd.f32 %v14727_v8, %v14725_v17  ;;  %v16808_v0 = vld [vmem:[#allocation41_spill] sm:$0xff]  ;;  %v16810_v32 = vld [vmem:[#allocation48_spill] sm:$0xff] }
0x29e3   : > { %11256 = vpow2.f32 %v6948_v41  ;;  %v6505_v61 = vpop.xlane.xlu0 %6504  ;;  %v6958_v17 = vmul.f32 1.442695, %v6740_v48 }
0x29e4   : > { %v14735_v14 = vpop.eup %11242  ;;  %v6950_v46 = vmul.f32 1.442695, %v6736_v31  ;;  %v6952_v33 = vmul.f32 1.442695, %v6737_v29  ;;  %7155 = vadd.xlane.f32.xlu1 %v7154_v34  ;;  %7062 = vadd.xlane.f32.xlu0 %v7061_v19  ;;  %v6741_v34 = vsub.f32 %v16812_v36, %v6595_v4  ;;  %v16818_v36 = vld [vmem:[#allocation63_spill] sm:$0xff] }
0x29e5   : > { %16804 = vst [vmem:[#allocation16_spill] sm:$0xff] %v14735_v14  ;;  %v14737_v49 = vpop.eup %11244  ;;  %v6496_v15 = vpop.xlane.xlu1 %6495 }
0x29e6   : > { %16805 = vst [vmem:[#allocation20_spill] sm:$0xff] %v14737_v49  ;;  %v14740_v25 = vpop.eup %11246  ;;  %11258 = vpow2.f32 %v6950_v46  ;;  %v6674_v41 = vsub.f32 %v16808_v0, %v6496_v15  ;;  %v6675_v59 = vsub.f32 %v16810_v32, %v6496_v15  ;;  %v7157_v31 = vadd.f32 %v14737_v49, %v14735_v14  ;;  %v16814_v46 = vld [vmem:[#allocation51_spill] sm:$0xff]  ;;  %v16816_v32 = vld [vmem:[#allocation49_spill] sm:$0xff] }
0x29e7   : > { %16807 = vst [vmem:[#allocation17_spill] sm:$0xff] %v14740_v25  ;;  %v14743_v23 = vpop.eup %11248  ;;  %11260 = vpow2.f32 %v6952_v33  ;;  %v6601_v38 = vpop.xlane.xlu0 %6600  ;;  %v6680_v42 = vsub.f32 %v16814_v46, %v6505_v61  ;;  %v16815_v33 = vld [vmem:[#allocation44_spill] sm:$0xff]  ;;  %v6960_v48 = vmul.f32 1.442695, %v6741_v34 }
0x29e8   : > { %16809 = vst [vmem:[#allocation18_spill] sm:$0xff] %v14743_v23  ;;  %v14748_v29 = vpop.eup %11250  ;;  %v6826_v19 = vmul.f32 1.442695, %v6674_v41  ;;  %v6828_v0 = vmul.f32 1.442695, %v6675_v59  ;;  %7158 = vadd.xlane.f32.xlu0 %v7157_v31  ;;  %v7067_v4 = vadd.f32 %v14743_v23, %v14740_v25  ;;  %v6681_v59 = vsub.f32 %v16818_v36, %v6505_v61  ;;  %v16822_v25 = vld [vmem:[#allocation50_spill] sm:$0xff] }
0x29e9   : > { %16811 = vst [vmem:[#allocation19_spill] sm:$0xff] %v14748_v29  ;;  %v14751_v21 = vpop.eup %11252  ;;  %v6499_v8 = vpop.xlane.xlu1 %6498 }
0x29ea   : > { %16813 = vst [vmem:[#allocation21_spill] sm:$0xff] %v14751_v21  ;;  %11262 = vpow2.f32 %v6826_v19  ;;  %v6676_v15 = vsub.f32 %v16815_v33, %v6499_v8  ;;  %v6677_v37 = vsub.f32 %v16816_v32, %v6499_v8  ;;  %v7064_v49 = vadd.f32 %v14751_v21, %v14748_v29  ;;  %v16821_v29 = vld [vmem:[#allocation42_spill] sm:$0xff] }
0x29eb   : > { %11264 = vpow2.f32 %v6828_v0  ;;  %v6511_v14 = vpop.xlane.xlu0 %6510  ;;  %v6838_v19 = vmul.f32 1.442695, %v6680_v42  ;;  %v16820_v0 = vld [vmem:[#allocation61_spill] sm:$0xff]  ;;  %v6840_v42 = vmul.f32 1.442695, %v6681_v59 }
0x29ec   : > { %v14760_v41 = vpop.eup %11254  ;;  %v6830_v31 = vmul.f32 1.442695, %v6676_v15  ;;  %11266 = vpow2.f32 %v6958_v17  ;;  %v6744_v33 = vsub.f32 %v16820_v0, %v6601_v38  ;;  %v6832_v8 = vmul.f32 1.442695, %v6677_v37  ;;  %7065 = vadd.xlane.f32.xlu1 %v7064_v49  ;;  %7068 = vadd.xlane.f32.xlu0 %v7067_v4  ;;  %v16824_v17 = vld [vmem:[#allocation58_spill] sm:$0xff] }
0x29ed   : > { %16817 = vst [vmem:[#allocation22_spill] sm:$0xff] %v14760_v41  ;;  %v14763_v46 = vpop.eup %11256  ;;  %v6592_v32 = vpop.xlane.xlu1 %6591  ;;  %v6745_v36 = vsub.f32 %v16824_v17, %v6601_v38 }
0x29ee   : > { %16819 = vst [vmem:[#allocation25_spill] sm:$0xff] %v14763_v46  ;;  %11268 = vpow2.f32 %v6830_v31  ;;  %v6738_v21 = vsub.f32 %v16821_v29, %v6592_v32  ;;  %v6739_v23 = vsub.f32 %v16822_v25, %v6592_v32  ;;  %v7160_v61 = vadd.f32 %v14763_v46, %v14760_v41  ;;  %v16826_v31 = vld [vmem:[#allocation70_spill] sm:$0xff] }
0x29ef   : > { %11270 = vpow2.f32 %v6832_v8  ;;  %v6607_v34 = vpop.xlane.xlu0 %6606  ;;  %v6966_v4 = vmul.f32 1.442695, %v6744_v33  ;;  %v6684_v29 = vsub.f32 %v16826_v31, %v6511_v14  ;;  %v16827_v8 = vld [vmem:[#allocation52_spill] sm:$0xff]  ;;  %v16828_v41 = vld [vmem:[#allocation62_spill] sm:$0xff]  ;;  %v6968_v59 = vmul.f32 1.442695, %v6745_v36 }
0x29f0   : > { %v14770_v15 = vpop.eup %11258  ;;  %11272 = vpow2.f32 %v6960_v48  ;;  %v6954_v37 = vmul.f32 1.442695, %v6738_v21  ;;  %v6956_v0 = vmul.f32 1.442695, %v6739_v23  ;;  %7161 = vadd.xlane.f32.xlu1 %v7160_v61 }
0x29f1   : > { %16823 = vst [vmem:[#allocation26_spill] sm:$0xff] %v14770_v15  ;;  %v14773_v49 = vpop.eup %11260  ;;  %11274 = vpow2.f32 %v6838_v19  ;;  %v6502_v25 = vpop.xlane.xlu1 %6501  ;;  %v16830_v19 = vld [vmem:[#allocation66_spill] sm:$0xff]  ;;  %v6846_v17 = vmul.f32 1.442695, %v6684_v29 }
0x29f2   : > { %16825 = vst [vmem:[#allocation27_spill] sm:$0xff] %v14773_v49  ;;  %11276 = vpow2.f32 %v6954_v37  ;;  %v6678_v32 = vsub.f32 %v16827_v8, %v6502_v25  ;;  %v6679_v46 = vsub.f32 %v16828_v41, %v6502_v25  ;;  %v7163_v38 = vadd.f32 %v14773_v49, %v14770_v15  ;;  %v16832_v37 = vld [vmem:[#allocation68_spill] sm:$0xff] }
0x29f3   : > { %11278 = vpow2.f32 %v6956_v0  ;;  %v14778_v48 = vpop.xlane.xlu0 %6516  ;;  %v6685_v33 = vsub.f32 %v16830_v19, %v6511_v14  ;;  %v6748_v31 = vsub.f32 %v16832_v37, %v6607_v34  ;;  %v16833_v25 = vld [vmem:[#allocation60_spill] sm:$0xff]  ;;  %v16839_v37 = vld [vmem:[#allocation78_spill] sm:$0xff] }
0x29f4   : > { %v14782_v21 = vpop.eup %11262  ;;  %11280 = vpow2.f32 %v6840_v42  ;;  %v6834_v23 = vmul.f32 1.442695, %v6678_v32  ;;  %v6836_v0 = vmul.f32 1.442695, %v6679_v46  ;;  %7164 = vadd.xlane.f32.xlu0 %v7163_v38  ;;  %v16835_v42 = vld [vmem:[#allocation53_spill] sm:$0xff]  ;;  %v16837_v46 = vld [vmem:[#allocation64_spill] sm:$0xff] }
0x29f5   : > { %16829 = vst [vmem:[#allocation28_spill] sm:$0xff] %v14782_v21  ;;  %v14785_v61 = vpop.eup %11264  ;;  %11282 = vpow2.f32 %v6966_v4  ;;  %v6598_v41 = vpop.xlane.xlu1 %6597  ;;  %v6848_v29 = vmul.f32 1.442695, %v6685_v33  ;;  %v6749_v32 = vsub.f32 %v16837_v46, %v6607_v34  ;;  %v16843_v34 = vld [vmem:[#allocation59_spill] sm:$0xff] }
0x29f6   : > { %16831 = vst [vmem:[#allocation116_spill] sm:$0xff] %v14785_v61  ;;  %11284 = vpow2.f32 %v6834_v23  ;;  %v6742_v8 = vsub.f32 %v16833_v25, %v6598_v41  ;;  %v14789_v15 = vpop.eup %11266  ;;  %v6743_v36 = vsub.f32 %v16835_v42, %v6598_v41  ;;  %v7070_v14 = vadd.f32 %v14785_v61, %v14782_v21  ;;  %v16841_v21 = vld [vmem:[#allocation54_spill] sm:$0xff] }
0x29f7   : > { %16834 = vst [vmem:[#allocation118_spill] sm:$0xff] %v14789_v15  ;;  %11286 = vpow2.f32 %v6836_v0  ;;  %v14792_v49 = vpop.xlane.xlu0 %6612  ;;  %v6974_v23 = vmul.f32 1.442695, %v6748_v31  ;;  %v6688_v0 = vsub.f32 %v16839_v37, %v14778_v48 }
0x29f8   : > { %v14796_v4 = vpop.eup %11268  ;;  %11288 = vpow2.f32 %v6968_v59  ;;  %v6962_v38 = vmul.f32 1.442695, %v6742_v8  ;;  %v6964_v41 = vmul.f32 1.442695, %v6743_v36  ;;  %7071 = vadd.xlane.f32.xlu1 %v7070_v14  ;;  %v6976_v36 = vmul.f32 1.442695, %v6749_v32 }
0x29f9   : > { %16836 = vst [vmem:[#allocation119_spill] sm:$0xff] %v14796_v4  ;;  %v14799_v19 = vpop.eup %11270  ;;  %11290 = vpow2.f32 %v6846_v17  ;;  %v6508_v25 = vpop.xlane.xlu1 %6507  ;;  %v16845_v14 = vld [vmem:[#allocation74_spill] sm:$0xff] }
0x29fa   : > { %16838 = vst [vmem:[#allocation37_spill] sm:$0xff] %v14799_v19  ;;  %v14803_v42 = vpop.eup %11272  ;;  %11292 = vpow2.f32 %v6962_v38  ;;  %v6682_v61 = vsub.f32 %v16841_v21, %v6508_v25  ;;  %v6683_v33 = vsub.f32 %v16843_v34, %v6508_v25  ;;  %v7073_v17 = vadd.f32 %v14799_v19, %v14796_v4  ;;  %v16849_v4 = vld [vmem:[#allocation56_spill] sm:$0xff] }
0x29fb   : > { %16840 = vst [vmem:[#allocation43_spill] sm:$0xff] %v14803_v42  ;;  %v14806_v59 = vpop.eup %11274  ;;  %11294 = vpow2.f32 %v6964_v41  ;;  %v14809_v8 = vpop.xlane.xlu0 %6522  ;;  %v6689_v46 = vsub.f32 %v16845_v14, %v14778_v48  ;;  %v6854_v21 = vmul.f32 1.442695, %v6688_v0  ;;  %v16847_v41 = vld [vmem:[#allocation76_spill] sm:$0xff]  ;;  %v16851_v48 = vld [vmem:[#allocation57_spill] sm:$0xff]  ;;  %v7169_v0 = vadd.f32 %v14803_v42, %v14789_v15 }
0x29fc   : > { %16842 = vst [vmem:[#allocation117_spill] sm:$0xff] %v14806_v59  ;;  %v14813_v31 = vpop.eup %11276  ;;  %11296 = vpow2.f32 %v6848_v29  ;;  %v6842_v38 = vmul.f32 1.442695, %v6682_v61  ;;  %v6752_v25 = vsub.f32 %v16847_v41, %v14792_v49  ;;  %v6844_v34 = vmul.f32 1.442695, %v6683_v33  ;;  %7074 = vadd.xlane.f32.xlu0 %v7073_v17 }
0x29fd   : > { %16844 = vst [vmem:[#allocation39_spill] sm:$0xff] %v14813_v31  ;;  %v14817_v37 = vpop.eup %11278  ;;  %11298 = vpow2.f32 %v6974_v23  ;;  %v6604_v22 = vpop.xlane.xlu1 %6603  ;;  %v6856_v17 = vmul.f32 1.442695, %v6689_v46 }
0x29fe   : > { %16846 = vst [vmem:[#allocation38_spill] sm:$0xff] %v14817_v37  ;;  %v14821_v39 = vpop.eup %11280  ;;  %11300 = vpow2.f32 %v6842_v38  ;;  %v6746_v29 = vsub.f32 %v16849_v4, %v6604_v22  ;;  %v6747_v61 = vsub.f32 %v16851_v48, %v6604_v22  ;;  %v7166_v23 = vadd.f32 %v14817_v37, %v14813_v31  ;;  %v16853_v38 = vld [vmem:[#allocation72_spill] sm:$0xff] }
0x29ff   : > { %16848 = vst [vmem:[#allocation46_spill] sm:$0xff] %v14821_v39  ;;  %v14824_v32 = vpop.eup %11282  ;;  %11302 = vpow2.f32 %v6844_v34  ;;  %v14827_v14 = vpop.xlane.xlu0 %6618  ;;  %v6753_v4 = vsub.f32 %v16853_v38, %v14792_v49  ;;  %v6982_v22 = vmul.f32 1.442695, %v6752_v25  ;;  %v16855_v34 = vld [vmem:[#allocation90_spill] sm:$0xff]  ;;  %v16859_v49 = vld [vmem:[#allocation67_spill] sm:$0xff]  ;;  %v7079_v25 = vadd.f32 %v14821_v39, %v14806_v59 }
0x2a00   : > { %16850 = vst [vmem:[#allocation36_spill] sm:$0xff] %v14824_v32  ;;  %v14833_v33 = vpop.eup %11284  ;;  %11304 = vpow2.f32 %v6976_v36  ;;  %v6970_v41 = vmul.f32 1.442695, %v6746_v29  ;;  %v6692_v48 = vsub.f32 %v16855_v34, %v14809_v8  ;;  %v6972_v27 = vmul.f32 1.442695, %v6747_v61  ;;  %7167 = vadd.xlane.f32.xlu1 %v7166_v23  ;;  %7170 = vadd.xlane.f32.xlu0 %v7169_v0  ;;  %v16857_v36 = vld [vmem:[#allocation71_spill] sm:$0xff] }
0x2a01   : > { %16852 = vst [vmem:[#allocation45_spill] sm:$0xff] %v14833_v33  ;;  %v14837_v19 = vpop.eup %11286  ;;  %11306 = vpow2.f32 %v6854_v21  ;;  %v6514_v37 = vpop.xlane.xlu1 %6513  ;;  %v6984_v23 = vmul.f32 1.442695, %v6753_v4  ;;  %v16861_v0 = vld [vmem:[#allocation73_spill] sm:$0xff] }
0x2a02   : > { %16854 = vst [vmem:[#allocation35_spill] sm:$0xff] %v14837_v19  ;;  %v14841_v42 = vpop.eup %11288  ;;  %11308 = vpow2.f32 %v6970_v41  ;;  %v6686_v46 = vsub.f32 %v16857_v36, %v6514_v37  ;;  %v6687_v29 = vsub.f32 %v16859_v49, %v6514_v37  ;;  %v7076_v21 = vadd.f32 %v14837_v19, %v14833_v33  ;;  %v16863_v37 = vld [vmem:[#allocation87_spill] sm:$0xff] }
0x2a03   : > { %16856 = vst [vmem:[#allocation40_spill] sm:$0xff] %v14841_v42  ;;  %v14844_v15 = vpop.eup %11290  ;;  %11310 = vpow2.f32 %v6972_v27  ;;  %v14847_v38 = vpop.xlane.xlu0 %6528  ;;  %v6693_v41 = vsub.f32 %v16861_v0, %v14809_v8  ;;  %v6862_v27 = vmul.f32 1.442695, %v6692_v48  ;;  %v6756_v49 = vsub.f32 %v16863_v37, %v14827_v14  ;;  %v16867_v8 = vld [vmem:[#allocation65_spill] sm:$0xff] }
0x2a04   : > { %16858 = vst [vmem:[#allocation47_spill] sm:$0xff] %v14844_v15  ;;  %v14853_v61 = vpop.eup %11292  ;;  %11312 = vpow2.f32 %v6856_v17  ;;  %v6850_v34 = vmul.f32 1.442695, %v6686_v46  ;;  %v6852_v31 = vmul.f32 1.442695, %v6687_v29  ;;  %7077 = vadd.xlane.f32.xlu1 %v7076_v21  ;;  %7080 = vadd.xlane.f32.xlu0 %v7079_v25  ;;  %v16865_v17 = vld [vmem:[#allocation69_spill] sm:$0xff]  ;;  %v7175_v48 = vadd.f32 %v14841_v42, %v14824_v32 }
0x2a05   : > { %16860 = vst [vmem:[#allocation41_spill] sm:$0xff] %v14853_v61  ;;  %v14857_v36 = vpop.eup %11294  ;;  %11314 = vpow2.f32 %v6982_v22  ;;  %v6610_v19 = vpop.xlane.xlu1 %6609  ;;  %v6864_v21 = vmul.f32 1.442695, %v6693_v41  ;;  %v16869_v25 = vld [vmem:[#allocation86_spill] sm:$0xff] }
0x2a06   : > { %16862 = vst [vmem:[#allocation48_spill] sm:$0xff] %v14857_v36  ;;  %v14861_v39 = vpop.eup %11296  ;;  %11316 = vpow2.f32 %v6850_v34  ;;  %v6750_v4 = vsub.f32 %v16865_v17, %v6610_v19  ;;  %v6751_v46 = vsub.f32 %v16867_v8, %v6610_v19  ;;  %v7172_v22 = vadd.f32 %v14857_v36, %v14853_v61 }
0x2a07   : > { %16864 = vst [vmem:[#allocation55_spill] sm:$0xff] %v14861_v39  ;;  %v14864_v59 = vpop.eup %11298  ;;  %11318 = vpow2.f32 %v6852_v31  ;;  %v14867_v0 = vpop.xlane.xlu0 %6624  ;;  %v6757_v34 = vsub.f32 %v16869_v25, %v14827_v14  ;;  %v6990_v19 = vmul.f32 1.442695, %v6756_v49  ;;  %v16871_v31 = vld [vmem:[#allocation75_spill] sm:$0xff]  ;;  %v16874_v14 = vld [vmem:[#allocation85_spill] sm:$0xff]  ;;  %v7085_v49 = vadd.f32 %v14861_v39, %v14844_v15 }
0x2a08   : > { %16866 = vst [vmem:[#allocation51_spill] sm:$0xff] %v14864_v59  ;;  %v14873_v29 = vpop.eup %11300  ;;  %11320 = vpow2.f32 %v6984_v23  ;;  %v6978_v37 = vmul.f32 1.442695, %v6750_v4  ;;  %v6696_v8 = vsub.f32 %v16871_v31, %v14847_v38  ;;  %v6980_v33 = vmul.f32 1.442695, %v6751_v46  ;;  %7173 = vadd.xlane.f32.xlu1 %v7172_v22  ;;  %7176 = vadd.xlane.f32.xlu0 %v7175_v48  ;;  %v16873_v23 = vld [vmem:[#allocation79_spill] sm:$0xff] }
0x2a09   : > { %16868 = vst [vmem:[#allocation44_spill] sm:$0xff] %v14873_v29  ;;  %v14877_v17 = vpop.eup %11302  ;;  %11322 = vpow2.f32 %v6862_v27  ;;  %v6520_v36 = vpop.xlane.xlu1 %6519  ;;  %v6992_v22 = vmul.f32 1.442695, %v6757_v34  ;;  %v16876_v48 = vld [vmem:[#allocation81_spill] sm:$0xff] }
0x2a0a   : > { %16870 = vst [vmem:[#allocation49_spill] sm:$0xff] %v14877_v17  ;;  %v14881_v42 = vpop.eup %11304  ;;  %11324 = vpow2.f32 %v6978_v37  ;;  %v6690_v41 = vsub.f32 %v16873_v23, %v6520_v36  ;;  %v6691_v4 = vsub.f32 %v16874_v14, %v6520_v36  ;;  %v7082_v27 = vadd.f32 %v14877_v17, %v14873_v29  ;;  %v16878_v36 = vld [vmem:[#allocation83_spill] sm:$0xff] }
0x2a0b   : > { %16872 = vst [vmem:[#allocation63_spill] sm:$0xff] %v14881_v42  ;;  %v14884_v32 = vpop.eup %11306  ;;  %11326 = vpow2.f32 %v6980_v33  ;;  %v14887_v25 = vpop.xlane.xlu0 %6534  ;;  %v6697_v37 = vsub.f32 %v16876_v48, %v14847_v38  ;;  %v6870_v33 = vmul.f32 1.442695, %v6696_v8  ;;  %v6760_v14 = vsub.f32 %v16878_v36, %v14867_v0  ;;  %v16882_v38 = vld [vmem:[#allocation84_spill] sm:$0xff] }
0x2a0c   : > { %v14893_v46 = vpop.eup %11308  ;;  %11328 = vpow2.f32 %v6864_v21  ;;  %v6858_v31 = vmul.f32 1.442695, %v6690_v41  ;;  %v6860_v61 = vmul.f32 1.442695, %v6691_v4  ;;  %7083 = vadd.xlane.f32.xlu1 %v7082_v27  ;;  %7086 = vadd.xlane.f32.xlu0 %v7085_v49  ;;  %v16880_v21 = vld [vmem:[#allocation77_spill] sm:$0xff]  ;;  %v7181_v8 = vadd.f32 %v14881_v42, %v14864_v59  ;;  %v16883_v49 = vld [vmem:[#allocation91_spill] sm:$0xff] }
0x2a0d   : > { %16875 = vst [vmem:[#allocation61_spill] sm:$0xff] %v14893_v46  ;;  %v14897_v23 = vpop.eup %11310  ;;  %11330 = vpow2.f32 %v6990_v19  ;;  %v6616_v17 = vpop.xlane.xlu1 %6615  ;;  %v6872_v27 = vmul.f32 1.442695, %v6697_v37 }
0x2a0e   : > { %16877 = vst [vmem:[#allocation42_spill] sm:$0xff] %v14897_v23  ;;  %v14901_v39 = vpop.eup %11312  ;;  %11332 = vpow2.f32 %v6858_v31  ;;  %v6754_v34 = vsub.f32 %v16880_v21, %v6616_v17  ;;  %v6755_v41 = vsub.f32 %v16882_v38, %v6616_v17  ;;  %v7178_v19 = vadd.f32 %v14897_v23, %v14893_v46  ;;  %v16885_v17 = vld [vmem:[#allocation89_spill] sm:$0xff] }
0x2a0f   : > { %16879 = vst [vmem:[#allocation50_spill] sm:$0xff] %v14901_v39  ;;  %v14904_v15 = vpop.eup %11314  ;;  %11334 = vpow2.f32 %v6860_v61  ;;  %v14907_v48 = vpop.xlane.xlu0 %6630  ;;  %v6761_v31 = vsub.f32 %v16883_v49, %v14867_v0  ;;  %v6998_v61 = vmul.f32 1.442695, %v6760_v14  ;;  %v6700_v38 = vsub.f32 %v16885_v17, %v14887_v25  ;;  %v16889_v0 = vld [vmem:[#allocation80_spill] sm:$0xff] }
0x2a10   : > { %16881 = vst [vmem:[#allocation58_spill] sm:$0xff] %v14904_v15  ;;  %v14913_v4 = vpop.eup %11316  ;;  %11336 = vpow2.f32 %v6992_v22  ;;  %v6986_v36 = vmul.f32 1.442695, %v6754_v34  ;;  %v6988_v29 = vmul.f32 1.442695, %v6755_v41  ;;  %7179 = vadd.xlane.f32.xlu1 %v7178_v19  ;;  %7182 = vadd.xlane.f32.xlu0 %v7181_v8  ;;  %v16887_v22 = vld [vmem:[#allocation92_spill] sm:$0xff]  ;;  %v7091_v14 = vadd.f32 %v14901_v39, %v14884_v32 }
0x2a11   : > { %v14917_v21 = vpop.eup %11318  ;;  %11338 = vpow2.f32 %v6870_v33  ;;  %v6526_v23 = vpop.xlane.xlu1 %6525  ;;  %v7000_v19 = vmul.f32 1.442695, %v6761_v31  ;;  %v16891_v8 = vld [vmem:[#allocation94_spill] sm:$0xff] }
0x2a12   : > { %16884 = vst [vmem:[#allocation70_spill] sm:$0xff] %v14917_v21  ;;  %v14921_v42 = vpop.eup %11320  ;;  %11340 = vpow2.f32 %v6986_v36  ;;  %v6694_v37 = vsub.f32 %v16887_v22, %v6526_v23  ;;  %v6695_v34 = vsub.f32 %v16889_v0, %v6526_v23  ;;  %v7088_v33 = vadd.f32 %v14917_v21, %v14913_v4  ;;  %v16893_v23 = vld [vmem:[#allocation93_spill] sm:$0xff] }
0x2a13   : > { %16886 = vst [vmem:[#allocation52_spill] sm:$0xff] %v14921_v42  ;;  %v14924_v59 = vpop.eup %11322  ;;  %11342 = vpow2.f32 %v6988_v29  ;;  %v14927_v49 = vpop.xlane.xlu0 %6540  ;;  %v6701_v36 = vsub.f32 %v16891_v8, %v14887_v25  ;;  %v6878_v29 = vmul.f32 1.442695, %v6700_v38  ;;  %v6764_v0 = vsub.f32 %v16893_v23, %v14907_v48 }
0x2a14   : > { %16888 = vst [vmem:[#allocation62_spill] sm:$0xff] %v14924_v59  ;;  %v14933_v41 = vpop.eup %11324  ;;  %11344 = vpow2.f32 %v6872_v27  ;;  %v6866_v17 = vmul.f32 1.442695, %v6694_v37  ;;  %v6868_v46 = vmul.f32 1.442695, %v6695_v34  ;;  %7089 = vadd.xlane.f32.xlu1 %v7088_v33  ;;  %7092 = vadd.xlane.f32.xlu0 %v7091_v14  ;;  %v7187_v38 = vadd.f32 %v14921_v42, %v14904_v15  ;;  %v16896_v14 = vld [vmem:[#allocation101_spill] sm:$0xff] }
0x2a15   : > { %16890 = vst [vmem:[#allocation66_spill] sm:$0xff] %v14933_v41  ;;  %v14937_v22 = vpop.eup %11326  ;;  %11346 = vpow2.f32 %v6998_v61  ;;  %v6622_v21 = vpop.xlane.xlu1 %6621  ;;  %v6880_v33 = vmul.f32 1.442695, %v6701_v36 }
0x2a16   : > { %16892 = vst [vmem:[#allocation68_spill] sm:$0xff] %v14937_v22  ;;  %v14941_v39 = vpop.eup %11328  ;;  %11348 = vpow2.f32 %v6866_v17  ;;  %v6758_v27 = vsub.f32 %v14440_v7, %v6622_v21  ;;  %v6759_v25 = vsub.f32 %v14444_v58, %v6622_v21  ;;  %v7184_v61 = vadd.f32 %v14937_v22, %v14933_v41 }
0x2a17   : > { %16894 = vst [vmem:[#allocation60_spill] sm:$0xff] %v14941_v39  ;;  %v14944_v31 = vpop.eup %11330  ;;  %11350 = vpow2.f32 %v6868_v46  ;;  %v14947_v37 = vpop.xlane.xlu0 %6636  ;;  %v6765_v7 = vsub.f32 %v16896_v14, %v14907_v48  ;;  %v7006_v58 = vmul.f32 1.442695, %v6764_v0  ;;  %v16898_v46 = vld [vmem:[#allocation104_spill] sm:$0xff]  ;;  %v16901_v48 = vld [vmem:[#allocation98_spill] sm:$0xff]  ;;  %v7097_v0 = vadd.f32 %v14941_v39, %v14924_v59 }
0x2a18   : > { %16895 = vst [vmem:[#allocation53_spill] sm:$0xff] %v14944_v31  ;;  %v14953_v34 = vpop.eup %11332  ;;  %11352 = vpow2.f32 %v7000_v19  ;;  %v6994_v8 = vmul.f32 1.442695, %v6758_v27  ;;  %v6704_v21 = vsub.f32 %v16898_v46, %v14927_v49  ;;  %v6996_v23 = vmul.f32 1.442695, %v6759_v25  ;;  %7185 = vadd.xlane.f32.xlu1 %v7184_v61  ;;  %7188 = vadd.xlane.f32.xlu0 %v7187_v38  ;;  %v16900_v19 = vld [vmem:[#allocation82_spill] sm:$0xff] }
0x2a19   : > { %v14957_v17 = vpop.eup %11334  ;;  %11354 = vpow2.f32 %v6878_v29  ;;  %v6532_v22 = vpop.xlane.xlu1 %6531  ;;  %v7008_v61 = vmul.f32 1.442695, %v6765_v7  ;;  %v16903_v38 = vld [vmem:[#allocation107_spill] sm:$0xff] }
0x2a1a   : > { %16897 = vst [vmem:[#allocation64_spill] sm:$0xff] %v14957_v17  ;;  %v14961_v42 = vpop.eup %11336  ;;  %11356 = vpow2.f32 %v6994_v8  ;;  %v6698_v36 = vsub.f32 %v16900_v19, %v6532_v22  ;;  %v6699_v27 = vsub.f32 %v16901_v48, %v6532_v22  ;;  %v7094_v29 = vadd.f32 %v14957_v17, %v14953_v34 }
0x2a1b   : > { %16899 = vst [vmem:[#allocation78_spill] sm:$0xff] %v14961_v42  ;;  %v14964_v15 = vpop.eup %11338  ;;  %11358 = vpow2.f32 %v6996_v23  ;;  %v14967_v14 = vpop.xlane.xlu0 %6543  ;;  %v6705_v8 = vsub.f32 %v16903_v38, %v14927_v49  ;;  %v6886_v22 = vmul.f32 1.442695, %v6704_v21  ;;  %v16905_v23 = vld [vmem:[#allocation106_spill] sm:$0xff]  ;;  %v16908_v49 = vld [vmem:[#allocation99_spill] sm:$0xff]  ;;  %v7193_v21 = vadd.f32 %v14961_v42, %v14944_v31 }
0x2a1c   : > { %v14973_v25 = vpop.eup %11340  ;;  %11360 = vpow2.f32 %v6880_v33  ;;  %v6874_v46 = vmul.f32 1.442695, %v6698_v36  ;;  %v6768_v48 = vsub.f32 %v16905_v23, %v14947_v37  ;;  %v6876_v41 = vmul.f32 1.442695, %v6699_v27  ;;  %7095 = vadd.xlane.f32.xlu1 %v7094_v29  ;;  %7098 = vadd.xlane.f32.xlu0 %v7097_v0  ;;  %v16906_v33 = vld [vmem:[#allocation88_spill] sm:$0xff]  ;;  %v16910_v0 = vld [vmem:[#allocation97_spill] sm:$0xff] }
0x2a1d   : > { %16902 = vst [vmem:[#allocation54_spill] sm:$0xff] %v14973_v25  ;;  %v14977_v19 = vpop.eup %11342  ;;  %11362 = vpow2.f32 %v7006_v58  ;;  %v6628_v17 = vpop.xlane.xlu1 %6627  ;;  %v6888_v29 = vmul.f32 1.442695, %v6705_v8  ;;  %v6769_v38 = vsub.f32 %v16910_v0, %v14947_v37  ;;  %v16916_v37 = vld [vmem:[#allocation96_spill] sm:$0xff] }
0x2a1e   : > { %16904 = vst [vmem:[#allocation59_spill] sm:$0xff] %v14977_v19  ;;  %v14981_v39 = vpop.eup %11344  ;;  %11364 = vpow2.f32 %v6874_v46  ;;  %v6762_v7 = vsub.f32 %v16906_v33, %v6628_v17  ;;  %v6763_v36 = vsub.f32 %v16908_v49, %v6628_v17  ;;  %v7190_v58 = vadd.f32 %v14977_v19, %v14973_v25  ;;  %v16912_v17 = vld [vmem:[#allocation95_spill] sm:$0xff] }
0x2a1f   : > { %v14984_v59 = vpop.eup %11346  ;;  %11366 = vpow2.f32 %v6876_v41  ;;  %v7014_v41 = vmul.f32 1.442695, %v6768_v48  ;;  %v6706_v33 = vsub.f32 %v16912_v17, %v14967_v14  ;;  %v6643_v19 = vpop.xlane.xlu0 %6642  ;;  %v7103_v48 = vadd.f32 %v14981_v39, %v14964_v15 }
0x2a20   : > { %16907 = vst [vmem:[#allocation74_spill] sm:$0xff] %v14984_v59  ;;  %v14991_v27 = vpop.eup %11348  ;;  %11368 = vpow2.f32 %v7008_v61  ;;  %v7002_v46 = vmul.f32 1.442695, %v6762_v7  ;;  %v7004_v49 = vmul.f32 1.442695, %v6763_v36  ;;  %7191 = vadd.xlane.f32.xlu1 %v7190_v58  ;;  %7194 = vadd.xlane.f32.xlu0 %v7193_v21  ;;  %v16914_v61 = vld [vmem:[#allocation100_spill] sm:$0xff] }
0x2a21   : > { %16909 = vst [vmem:[#allocation76_spill] sm:$0xff] %v14991_v27  ;;  %v14995_v23 = vpop.eup %11350  ;;  %11370 = vpow2.f32 %v6886_v22  ;;  %v6538_v42 = vpop.xlane.xlu1 %6537  ;;  %v7016_v58 = vmul.f32 1.442695, %v6769_v38  ;;  %v16917_v21 = vld [vmem:[#allocation110_spill] sm:$0xff] }
0x2a22   : > { %16911 = vst [vmem:[#allocation56_spill] sm:$0xff] %v14995_v23  ;;  %v14999_v31 = vpop.eup %11352  ;;  %11372 = vpow2.f32 %v7002_v46  ;;  %v6702_v8 = vsub.f32 %v16914_v61, %v6538_v42  ;;  %v6703_v7 = vsub.f32 %v16916_v37, %v6538_v42  ;;  %v7100_v22 = vadd.f32 %v14995_v23, %v14991_v27  ;;  %v16919_v61 = vld [vmem:[#allocation102_spill] sm:$0xff] }
0x2a23   : > { %16913 = vst [vmem:[#allocation57_spill] sm:$0xff] %v14999_v31  ;;  %v15002_v25 = vpop.eup %11354  ;;  %11374 = vpow2.f32 %v7004_v49  ;;  %v6707_v0 = vsub.f32 %v16917_v21, %v14967_v14  ;;  %v6890_v49 = vmul.f32 1.442695, %v6706_v33  ;;  %v6772_v42 = vsub.f32 %v16919_v61, %v6643_v19  ;;  %v6553_v14 = vpop.xlane.xlu0 %6552 }
0x2a24   : > { %16915 = vst [vmem:[#allocation72_spill] sm:$0xff] %v15002_v25  ;;  %v15009_v36 = vpop.eup %11356  ;;  %11376 = vpow2.f32 %v6888_v29  ;;  %v6882_v46 = vmul.f32 1.442695, %v6702_v8  ;;  %v6884_v37 = vmul.f32 1.442695, %v6703_v7  ;;  %7101 = vadd.xlane.f32.xlu1 %v7100_v22  ;;  %7104 = vadd.xlane.f32.xlu0 %v7103_v48  ;;  %v7199_v33 = vadd.f32 %v14999_v31, %v14984_v59 }
0x2a25   : > { %v15013_v17 = vpop.eup %11358  ;;  %11378 = vpow2.f32 %v7014_v41  ;;  %v6634_v23 = vpop.xlane.xlu1 %6633  ;;  %v6892_v22 = vmul.f32 1.442695, %v6707_v0  ;;  %v7022_v61 = vmul.f32 1.442695, %v6772_v42 }
0x2a26   : > { %16918 = vst [vmem:[#allocation90_spill] sm:$0xff] %v15013_v17  ;;  %v15016_v27 = vpop.eup %11360  ;;  %11380 = vpow2.f32 %v6882_v46  ;;  %v6766_v29 = vsub.f32 %v14494_v51, %v6634_v23  ;;  %v6767_v8 = vsub.f32 %v14498_v24, %v6634_v23  ;;  %v7196_v41 = vadd.f32 %v15013_v17, %v15009_v36  ;;  %v16923_v51 = vld [vmem:[#allocation115_spill] sm:$0xff]  ;;  %v16925_v17 = vld [vmem:[#allocation108_spill] sm:$0xff] }
0x2a27   : > { %16920 = vst [vmem:[#allocation71_spill] sm:$0xff] %v15016_v27  ;;  %v15019_v38 = vpop.eup %11362  ;;  %11382 = vpow2.f32 %v6884_v37  ;;  %v6773_v46 = vsub.f32 %v16923_v51, %v6643_v19  ;;  %v7109_v19 = vadd.f32 %v15016_v27, %v15002_v25  ;;  %v6649_v51 = vpop.xlane.xlu0 %6648  ;;  %v16929_v27 = vld [vmem:[#allocation105_spill] sm:$0xff] }
0x2a28   : > { %16921 = vst [vmem:[#allocation67_spill] sm:$0xff] %v15019_v38  ;;  %v15026_v7 = vpop.eup %11364  ;;  %11384 = vpow2.f32 %v7016_v58  ;;  %v7010_v48 = vmul.f32 1.442695, %v6766_v29  ;;  %v7012_v37 = vmul.f32 1.442695, %v6767_v8  ;;  %7197 = vadd.xlane.f32.xlu1 %v7196_v41  ;;  %7200 = vadd.xlane.f32.xlu0 %v7199_v33  ;;  %v16926_v58 = vld [vmem:[#allocation113_spill] sm:$0xff]  ;;  %v6712_v29 = vsub.f32 %v14556_v54, %v6553_v14 }
0x2a29   : > { %v15028_v21 = vpop.eup %11366  ;;  %11386 = vpow2.f32 %v6890_v49  ;;  %v6547_v24 = vpop.xlane.xlu1 %6546  ;;  %v16927_v33 = vld [vmem:[#allocation33_spill] sm:$0xff] }
0x2a2a   : > { %16922 = vst [vmem:[#allocation73_spill] sm:$0xff] %v15028_v21  ;;  %v15031_v23 = vpop.eup %11368  ;;  %11388 = vpow2.f32 %v7010_v48  ;;  %v6708_v31 = vsub.f32 %v16925_v17, %v6547_v24  ;;  %v6709_v0 = vsub.f32 %v16926_v58, %v6547_v24  ;;  %v7106_v49 = vadd.f32 %v15028_v21, %v15026_v7 }
0x2a2b   : > { %16924 = vst [vmem:[#allocation87_spill] sm:$0xff] %v15031_v23  ;;  %v15034_v59 = vpop.eup %11370  ;;  %11390 = vpow2.f32 %v7012_v37  ;;  %v7024_v17 = vmul.f32 1.442695, %v6773_v46  ;;  %v6713_v48 = vsub.f32 %v16927_v33, %v6553_v14  ;;  %v7205_v14 = vadd.f32 %v15031_v23, %v15019_v38  ;;  %v16932_v38 = vld [vmem:[#allocation31_spill] sm:$0xff] }
0x2a2c   : > { %v15041_v42 = vpop.eup %11372  ;;  %11392 = vpow2.f32 %v6892_v22  ;;  %v6894_v8 = vmul.f32 1.442695, %v6708_v31  ;;  %v6896_v37 = vmul.f32 1.442695, %v6709_v0  ;;  %7107 = vadd.xlane.f32.xlu1 %v7106_v49  ;;  %7110 = vadd.xlane.f32.xlu0 %v7109_v19  ;;  %v16930_v22 = vld [vmem:[#allocation103_spill] sm:$0xff]  ;;  %v6776_v0 = vsub.f32 %v14560_v53, %v6649_v51 }
0x2a2d   : > { %v15044_v41 = vpop.eup %11374  ;;  %11394 = vpow2.f32 %v7022_v61  ;;  %v6640_v24 = vpop.xlane.xlu1 %6639  ;;  %v6902_v61 = vmul.f32 1.442695, %v6712_v29  ;;  %v6777_v33 = vsub.f32 %v14564_v40, %v6649_v51 }
0x2a2e   : > { %v15047_v58 = vpop.eup %11376  ;;  %11396 = vpow2.f32 %v6894_v8  ;;  %v6770_v25 = vsub.f32 %v16929_v27, %v6640_v24  ;;  %v6771_v21 = vsub.f32 %v16930_v22, %v6640_v24  ;;  %v7202_v54 = vadd.f32 %v15044_v41, %v15041_v42  ;;  %v16931_v22 = vld [vmem:[#allocation112_spill] sm:$0xff] }
0x2a2f   : > { %16928 = vst [vmem:[#allocation69_spill] sm:$0xff] %v15047_v58  ;;  %v15053_v31 = vpop.eup %11378  ;;  %11398 = vpow2.f32 %v6896_v37  ;;  %v6904_v27 = vmul.f32 1.442695, %v6713_v48 }
0x2a30   : > { %v15057_v46 = vpop.eup %11380  ;;  %v7018_v49 = vmul.f32 1.442695, %v6770_v25  ;;  %v7020_v19 = vmul.f32 1.442695, %v6771_v21  ;;  %11400 = vpow2.f32 %v7024_v17  ;;  %7203 = vadd.xlane.f32.xlu1 %v7202_v54  ;;  %7206 = vadd.xlane.f32.xlu0 %v7205_v14  ;;  %v7115_v21 = vadd.f32 %v15047_v58, %v15034_v59 }
0x2a31   : > { %v15060_v8 = vpop.eup %11382  ;;  %v6550_v24 = vpop.xlane.xlu1 %6549  ;;  %v7030_v17 = vmul.f32 1.442695, %v6776_v0  ;;  %v7032_v14 = vmul.f32 1.442695, %v6777_v33 }
0x2a32   : > { %v15063_v37 = vpop.eup %11384  ;;  %11402 = vpow2.f32 %v7018_v49  ;;  %v6710_v23 = vsub.f32 %v16931_v22, %v6550_v24  ;;  %v6711_v29 = vsub.f32 %v16932_v38, %v6550_v24  ;;  %v7112_v53 = vadd.f32 %v15060_v8, %v15057_v46  ;;  %v16934_v22 = vld [vmem:[#allocation32_spill] sm:$0xff] }
0x2a33   : > { %v15069_v25 = vpop.eup %11386  ;;  %11404 = vpow2.f32 %v7020_v19  ;;  %v16933_v19 = vld [vmem:[#allocation29_spill] sm:$0xff] }
0x2a34   : > { %v15073_v40 = vpop.eup %11388  ;;  %11406 = vpow2.f32 %v6902_v61  ;;  %v6898_v48 = vmul.f32 1.442695, %v6710_v23  ;;  %v6900_v51 = vmul.f32 1.442695, %v6711_v29  ;;  %7113 = vadd.xlane.f32.xlu1 %v7112_v53  ;;  %7116 = vadd.xlane.f32.xlu0 %v7115_v21  ;;  %v7211_v23 = vadd.f32 %v15063_v37, %v15053_v31 }
0x2a35   : > { %v15075_v54 = vpop.eup %11390  ;;  %11408 = vpow2.f32 %v6904_v27  ;;  %v6646_v38 = vpop.xlane.xlu1 %6645 }
0x2a36   : > { %v15077_v49 = vpop.eup %11392  ;;  %11410 = vpow2.f32 %v6898_v48  ;;  %v6774_v24 = vsub.f32 %v16933_v19, %v6646_v38  ;;  %v6775_v58 = vsub.f32 %v16934_v22, %v6646_v38  ;;  %v7208_v61 = vadd.f32 %v15075_v54, %v15073_v40 }
0x2a37   : > { %v15083_v0 = vpop.eup %11394  ;;  %11412 = vpow2.f32 %v6900_v51  ;;  %v7118_v51 = vadd.f32 %v15077_v49, %v15069_v25 }
0x2a38   : > { %16935 = vst [vmem:[#allocation65_spill] sm:$0xff] %v15083_v0  ;;  %v15087_v27 = vpop.eup %11396  ;;  %11414 = vpow2.f32 %v7030_v17  ;;  %v7026_v33 = vmul.f32 1.442695, %v6774_v24  ;;  %v7028_v29 = vmul.f32 1.442695, %v6775_v58  ;;  %7209 = vadd.xlane.f32.xlu1 %v7208_v61  ;;  %7212 = vadd.xlane.f32.xlu0 %v7211_v23 }
0x2a39   : > { %v15089_v53 = vpop.eup %11398  ;;  %11416 = vpow2.f32 %v7032_v14 }
0x2a3a   : > { %11418 = vpow2.f32 %v7026_v33  ;;  %v7121_v21 = vadd.f32 %v15089_v53, %v15087_v27  ;;  %v15093_v48 = vpop.eup %11400 }
0x2a3b   : > { %16936 = vst [vmem:[#allocation86_spill] sm:$0xff] %v15093_v48  ;;  %11420 = vpow2.f32 %v7028_v29  ;;  %v7217_v24 = vadd.f32 %v15093_v48, %v15083_v0 }
0x2a3c   : > { %v15097_v38 = vpop.eup %11402  ;;  %7119 = vadd.xlane.f32.xlu1 %v7118_v51  ;;  %7122 = vadd.xlane.f32.xlu0 %v7121_v21 }
0x2a3d   : > { %16937 = vst [vmem:[#allocation75_spill] sm:$0xff] %v15097_v38  ;;  %v15099_v17 = vpop.eup %11404 }
0x2a3e   : > { %16938 = vst [vmem:[#allocation79_spill] sm:$0xff] %v15099_v17  ;;  %v15101_v58 = vpop.eup %11406  ;;  %v7214_v14 = vadd.f32 %v15099_v17, %v15097_v38 }
0x2a3f   : > { %16939 = vst [vmem:[#allocation85_spill] sm:$0xff] %v15101_v58  ;;  %v15105_v19 = vpop.eup %11408 }
0x2a40   : > { %16940 = vst [vmem:[#allocation81_spill] sm:$0xff] %v15105_v19  ;;  %v15109_v22 = vpop.eup %11410  ;;  %7215 = vadd.xlane.f32.xlu1 %v7214_v14  ;;  %7218 = vadd.xlane.f32.xlu0 %v7217_v24  ;;  %v7127_v21 = vadd.f32 %v15105_v19, %v15101_v58 }
0x2a41   : > { %16941 = vst [vmem:[#allocation83_spill] sm:$0xff] %v15109_v22  ;;  %v15111_v61 = vpop.eup %11412 }
0x2a42   : > { %16942 = vst [vmem:[#allocation77_spill] sm:$0xff] %v15111_v61  ;;  %v15113_v23 = vpop.eup %11414  ;;  %v7124_v33 = vadd.f32 %v15111_v61, %v15109_v22 }
0x2a43   : > { %16943 = vst [vmem:[#allocation84_spill] sm:$0xff] %v15113_v23  ;;  %v15117_v29 = vpop.eup %11416 }
0x2a44   : > { %16944 = vst [vmem:[#allocation91_spill] sm:$0xff] %v15117_v29  ;;  %v15121_v51 = vpop.eup %11418  ;;  %7125 = vadd.xlane.f32.xlu1 %v7124_v33  ;;  %7128 = vadd.xlane.f32.xlu0 %v7127_v21  ;;  %v7223_v24 = vadd.f32 %v15117_v29, %v15113_v23 }
0x2a45   : > { %16945 = vst [vmem:[#allocation89_spill] sm:$0xff] %v15121_v51  ;;  %v15123_v17 = vpop.eup %11420 }
0x2a46   : > { %16946 = vst [vmem:[#allocation92_spill] sm:$0xff] %v15123_v17  ;;  %v7220_v14 = vadd.f32 %v15123_v17, %v15121_v51 }
0x2a48   : > { %7221 = vadd.xlane.f32.xlu1 %v7220_v14  ;;  %7224 = vadd.xlane.f32.xlu0 %v7223_v24 }
0x2a49   : > { %v7036_v61 = vpop.xlane.xlu1 %7035 }
0x2a4a   : > { %11422 = vrcp.f32 %v7036_v61 }
0x2a4b   : > { %v7039_v22 = vpop.xlane.xlu0 %7038 }
0x2a4c   : > { %11424 = vrcp.f32 %v7039_v22 }
0x2a4d   : > { %v7132_v48 = vpop.xlane.xlu1 %7131 }
0x2a4e   : > { %11426 = vrcp.f32 %v7132_v48 }
0x2a51   : > { %v7135_v19 = vpop.xlane.xlu0 %7134 }
0x2a52   : > { %11428 = vrcp.f32 %v7135_v19 }
0x2a54   : > { %v11423_v58 = vpop.eup %11422 }
0x2a55   : > { %v7042_v33 = vpop.xlane.xlu1 %7041  ;;  %v7290_v21 = vmul.f32 %v11423_v58, %v14585_v10  ;;  %v7291_v51 = vmul.f32 %v11423_v58, %v14587_v56 }
0x2a56   : > { %v11425_v0 = vpop.eup %11424  ;;  %11430 = vrcp.f32 %v7042_v33 }
0x2a57   : > { %v7292_v17 = vmul.f32 %v11425_v0, %v14589_v30  ;;  %v7293_v14 = vmul.f32 %v11425_v0, %v14594_v12 }
0x2a58   : > { %v11427_v61 = vpop.eup %11426 }
0x2a59   : > { %v7579_v24 = vpack.c.bf16 %v7293_v14, %v7291_v51  ;;  %v7578_v29 = vpack.c.bf16 %v7292_v17, %v7290_v21  ;;  %v7138_v22 = vpop.xlane.xlu1 %7137  ;;  %v7045_v23 = vpop.xlane.xlu0 %7044  ;;  %v7354_v19 = vmul.f32 %v11427_v61, %v14599_v50  ;;  %v7355_v56 = vmul.f32 %v11427_v61, %v14603_v60 }
0x2a5a   : > { %11432 = vrcp.f32 %v7045_v23 }
0x2a5b   : > { %7674 = vmatprep.mubr.bf16.mxu1 %v7579_v24  ;;  %11434 = vrcp.f32 %v7138_v22 }
0x2a5c   : > { %7675 = vmatmul.mubr.bf16.vlgmr.msra.gmra.mrb[228].mxu1 %v7578_v29  ;;  %v11429_v48 = vpop.eup %11428 }
0x2a5d   : > { %v7356_v10 = vmul.f32 %v11429_v48, %v14611_v57  ;;  %v7048_v30 = vpop.xlane.xlu1 %7047  ;;  %v7141_v38 = vpop.xlane.xlu0 %7140  ;;  %v7357_v12 = vmul.f32 %v11429_v48, %v14613_v6 }
0x2a5e   : > { %11436 = vrcp.f32 %v7141_v38 }
0x2a5f   : > { %v7611_v0 = vpack.c.bf16 %v7357_v12, %v7355_v56  ;;  %v7610_v17 = vpack.c.bf16 %v7356_v10, %v7354_v19  ;;  %11438 = vrcp.f32 %v7048_v30 }
0x2a60   : > { %v11431_v29 = vpop.eup %11430 }
0x2a61   : > { %v7144_v58 = vpop.xlane.xlu1 %7143  ;;  %7835 = vmatprep.mubr.bf16.mxu0 %v7611_v0  ;;  %v7051_v23 = vpop.xlane.xlu0 %7050  ;;  %v7295_v33 = vmul.f32 %v11431_v29, %v14625_v11  ;;  %v7294_v6 = vmul.f32 %v11431_v29, %v14623_v3 }
0x2a62   : > { %7836 = vmatmul.mubr.bf16.vlgmr.msra.gmra.mrb[232].mxu0 %v7610_v17  ;;  %11440 = vrcp.f32 %v7051_v23 }
0x2a63   : > { %11442 = vrcp.f32 %v7144_v58 }
0x2a64   : > { %v11433_v50 = vpop.eup %11432 }
0x2a65   : > { %v7054_v57 = vpop.xlane.xlu1 %7053  ;;  %v7147_v51 = vpop.xlane.xlu0 %7146  ;;  %v7297_v60 = vmul.f32 %v11433_v50, %v14637_v47  ;;  %v7296_v38 = vmul.f32 %v11433_v50, %v14635_v1 }
0x2a66   : > { %v11435_v21 = vpop.eup %11434  ;;  %11444 = vrcp.f32 %v7147_v51 }
0x2a67   : > { %11446 = vrcp.f32 %v7054_v57  ;;  %v7581_v14 = vpack.c.bf16 %v7297_v60, %v7295_v33  ;;  %v7580_v24 = vpack.c.bf16 %v7296_v38, %v7294_v6  ;;  %v7359_v19 = vmul.f32 %v11435_v21, %v14630_v55 }
0x2a68   : > { %v11437_v61 = vpop.eup %11436  ;;  %v7358_v11 = vmul.f32 %v11435_v21, %v14618_v18 }
0x2a69   : > { %v7150_v22 = vpop.xlane.xlu1 %7149  ;;  %v7057_v48 = vpop.xlane.xlu0 %7056  ;;  %7682 = vmatprep.mubr.bf16.mxu1 %v7581_v14  ;;  %v7361_v10 = vmul.f32 %v11437_v61, %v14653_v43  ;;  %v7360_v47 = vmul.f32 %v11437_v61, %v14651_v26 }
0x2a6a   : > { %v11439_v3 = vpop.eup %11438  ;;  %11448 = vrcp.f32 %v7057_v48  ;;  %7683 = vmatmul.mubr.bf16.gmra.mrb[232].mxu1 %v7580_v24 }
0x2a6b   : > { %11450 = vrcp.f32 %v7150_v22  ;;  %v7613_v1 = vpack.c.bf16 %v7361_v10, %v7359_v19  ;;  %v7612_v30 = vpack.c.bf16 %v7360_v47, %v7358_v11  ;;  %v7299_v17 = vmul.f32 %v11439_v3, %v14644_v35  ;;  %v16948_v11 = vld [vmem:[#allocation34_spill] sm:$0xff] }
0x2a6c   : > { %v11441_v56 = vpop.eup %11440  ;;  %v7298_v43 = vmul.f32 %v11439_v3, %v14639_v5  ;;  %v16949_v3 = vld [vmem:[#allocation3_spill] sm:$0xff] }
0x2a6d   : > { %v7060_v12 = vpop.xlane.xlu1 %7059  ;;  %v7153_v0 = vpop.xlane.xlu0 %7152  ;;  %7843 = vmatprep.mubr.bf16.mxu0 %v7613_v1  ;;  %v7301_v55 = vmul.f32 %v11441_v56, %v14669_v52  ;;  %v7300_v18 = vmul.f32 %v11441_v56, %v14667_v9 }
0x2a6e   : > { %v11443_v58 = vpop.eup %11442  ;;  %11452 = vrcp.f32 %v7153_v0  ;;  %7844 = vmatmul.mubr.bf16.gmra.mrb[236].mxu0 %v7612_v30  ;;  %v16950_v0 = vld [vmem:[#allocation2_spill] sm:$0xff] }
0x2a6f   : > { %v7583_v26 = vpack.c.bf16 %v7301_v55, %v7299_v17  ;;  %v7582_v23 = vpack.c.bf16 %v7300_v18, %v7298_v43  ;;  %11454 = vrcp.f32 %v7060_v12  ;;  %v7363_v33 = vmul.f32 %v11443_v58, %v14660_v13  ;;  %v16952_v43 = vld [vmem:[#allocation30_spill] sm:$0xff] }
0x2a70   : > { %v11445_v29 = vpop.eup %11444  ;;  %v7362_v52 = vmul.f32 %v11443_v58, %v14655_v28  ;;  %v16953_v58 = vld [vmem:[#allocation10_spill] sm:$0xff] }
0x2a71   : > { %v7156_v50 = vpop.xlane.xlu1 %7155  ;;  %v7063_v57 = vpop.xlane.xlu0 %7062  ;;  %7690 = vmatprep.mubr.bf16.mxu1 %v7583_v26  ;;  %v7365_v35 = vmul.f32 %v11445_v29, %v14684_v44  ;;  %v7364_v5 = vmul.f32 %v11445_v29, %v14681_v62 }
0x2a72   : > { %v11447_v51 = vpop.eup %11446  ;;  %11456 = vrcp.f32 %v7063_v57  ;;  %7691 = vmatmul.mubr.bf16.gmra.mrb[236].mxu1 %v7582_v23 }
0x2a73   : > { %11458 = vrcp.f32 %v7156_v50  ;;  %v7615_v9 = vpack.c.bf16 %v7365_v35, %v7363_v33  ;;  %v7614_v60 = vpack.c.bf16 %v7364_v5, %v7362_v52  ;;  %v7303_v21 = vmul.f32 %v11447_v51, %v14677_v20  ;;  %v16947_v20 = vld [vmem:[#allocation7_spill] sm:$0xff]  ;;  %v16955_v35 = vld [vmem:[#allocation20_spill] sm:$0xff] }
0x2a74   : > { %v11449_v6 = vpop.eup %11448  ;;  %v7302_v44 = vmul.f32 %v11447_v51, %v14671_v63  ;;  %v16954_v51 = vld [vmem:[#allocation9_spill] sm:$0xff]  ;;  %v16956_v5 = vld [vmem:[#allocation8_spill] sm:$0xff] }
0x2a75   : > { %v7159_v38 = vpop.xlane.xlu0 %7158  ;;  %v11451_v14 = vpop.eup %11450  ;;  %7851 = vmatprep.mubr.bf16.mxu0 %v7615_v9  ;;  %v7305_v13 = vmul.f32 %v11449_v6, %v14699_v2  ;;  %v7304_v28 = vmul.f32 %v11449_v6, %v14697_v45 }
0x2a76   : > { %11460 = vrcp.f32 %v7159_v38  ;;  %7852 = vmatmul.mubr.bf16.gmra.mrb[240].mxu0 %v7614_v60  ;;  %v7367_v19 = vmul.f32 %v11451_v14, %v14691_v16  ;;  %v7366_v47 = vmul.f32 %v11451_v14, %v16948_v11  ;;  %v16951_v16 = vld [vmem:[#allocation14_spill] sm:$0xff]  ;;  %v16957_v60 = vld [vmem:[#allocation16_spill] sm:$0xff] }
0x2a77   : > { %v7585_v62 = vpack.c.bf16 %v7305_v13, %v7303_v21  ;;  %v7584_v24 = vpack.c.bf16 %v7304_v28, %v7302_v44  ;;  %v16958_v28 = vld [vmem:[#allocation21_spill] sm:$0xff] }
0x2a78   : > { %v11453_v61 = vpop.eup %11452 }
0x2a79   : > { %v7066_v22 = vpop.xlane.xlu1 %7065  ;;  %v7069_v48 = vpop.xlane.xlu0 %7068  ;;  %7698 = vmatprep.mubr.bf16.mxu1 %v7585_v62  ;;  %v7369_v10 = vmul.f32 %v11453_v61, %v16947_v20  ;;  %v7368_v2 = vmul.f32 %v11453_v61, %v16949_v3 }
0x2a7a   : > { %11462 = vrcp.f32 %v7066_v22  ;;  %v11455_v1 = vpop.eup %11454  ;;  %7699 = vmatmul.mubr.bf16.gmra.mrb[240].mxu1 %v7584_v24  ;;  %v16959_v24 = vld [vmem:[#allocation19_spill] sm:$0xff]  ;;  %v16960_v22 = vld [vmem:[#allocation18_spill] sm:$0xff] }
0x2a7b   : > { %11464 = vrcp.f32 %v7069_v48  ;;  %v7617_v63 = vpack.c.bf16 %v7369_v10, %v7367_v19  ;;  %v7616_v45 = vpack.c.bf16 %v7368_v2, %v7366_v47  ;;  %v7307_v17 = vmul.f32 %v11455_v1, %v16950_v0  ;;  %v16961_v19 = vld [vmem:[#allocation17_spill] sm:$0xff]  ;;  %v16964_v0 = vld [vmem:[#allocation22_spill] sm:$0xff] }
0x2a7c   : > { %v11457_v30 = vpop.eup %11456  ;;  %v7306_v18 = vmul.f32 %v11455_v1, %v16952_v43 }
0x2a7d   : > { %v7162_v56 = vpop.xlane.xlu1 %7161  ;;  %v11459_v12 = vpop.eup %11458  ;;  %7859 = vmatprep.mubr.bf16.mxu0 %v7617_v63  ;;  %v7309_v55 = vmul.f32 %v11457_v30, %v16951_v16  ;;  %v7308_v26 = vmul.f32 %v11457_v30, %v16953_v58  ;;  %v16965_v16 = vld [vmem:[#allocation26_spill] sm:$0xff] }
0x2a7e   : > { %7860 = vmatmul.mubr.bf16.gmra.mrb[244].mxu0 %v7616_v45  ;;  %11466 = vrcp.f32 %v7162_v56  ;;  %v7371_v33 = vmul.f32 %v11459_v12, %v16954_v51  ;;  %v7370_v9 = vmul.f32 %v11459_v12, %v16956_v5  ;;  %v16962_v45 = vld [vmem:[#allocation25_spill] sm:$0xff]  ;;  %v16963_v56 = vld [vmem:[#allocation27_spill] sm:$0xff]  ;;  %v16966_v51 = vld [vmem:[#allocation116_spill] sm:$0xff] }
0x2a7f   : > { %v7587_v29 = vpack.c.bf16 %v7309_v55, %v7307_v17  ;;  %v7586_v50 = vpack.c.bf16 %v7308_v26, %v7306_v18  ;;  %v16968_v5 = vld [vmem:[#allocation28_spill] sm:$0xff] }
0x2a80   : > { %v11461_v23 = vpop.eup %11460 }
0x2a81   : > { %v7165_v57 = vpop.xlane.xlu0 %7164  ;;  %v7373_v52 = vmul.f32 %v11461_v23, %v16955_v35  ;;  %v7372_v6 = vmul.f32 %v11461_v23, %v16957_v60  ;;  %7706 = vmatprep.mubr.bf16.mxu1 %v7587_v29  ;;  %v16967_v35 = vld [vmem:[#allocation37_spill] sm:$0xff]  ;;  %v16969_v60 = vld [vmem:[#allocation119_spill] sm:$0xff] }
0x2a82   : > { %11468 = vrcp.f32 %v7165_v57  ;;  %7707 = vmatmul.mubr.bf16.gmra.mrb[244].mxu1 %v7586_v50 }
0x2a83   : > { %v7619_v38 = vpack.c.bf16 %v7373_v52, %v7371_v33  ;;  %v7618_v21 = vpack.c.bf16 %v7372_v6, %v7370_v9 }
0x2a84   : > { %v11463_v14 = vpop.eup %11462 }
0x2a85   : > { %v11465_v13 = vpop.eup %11464  ;;  %v7072_v44 = vpop.xlane.xlu1 %7071  ;;  %7867 = vmatprep.mubr.bf16.mxu0 %v7619_v38  ;;  %v7311_v62 = vmul.f32 %v11463_v14, %v16958_v28  ;;  %v7310_v61 = vmul.f32 %v11463_v14, %v16959_v24 }
0x2a86   : > { %v7313_v48 = vmul.f32 %v11465_v13, %v16960_v22  ;;  %v7312_v20 = vmul.f32 %v11465_v13, %v16961_v19  ;;  %7868 = vmatmul.mubr.bf16.gmra.mrb[248].mxu0 %v7618_v21  ;;  %11470 = vrcp.f32 %v7072_v44  ;;  %v16970_v44 = vld [vmem:[#allocation39_spill] sm:$0xff] }
0x2a88   : > { %v7589_v10 = vpack.c.bf16 %v7313_v48, %v7311_v62  ;;  %v7588_v11 = vpack.c.bf16 %v7312_v20, %v7310_v61  ;;  %v11467_v3 = vpop.eup %11466  ;;  %v16971_v61 = vld [vmem:[#allocation38_spill] sm:$0xff]  ;;  %v16973_v20 = vld [vmem:[#allocation43_spill] sm:$0xff] }
0x2a89   : > { %v7075_v47 = vpop.xlane.xlu0 %7074  ;;  %v7375_v30 = vmul.f32 %v11467_v3, %v16962_v45  ;;  %v7374_v17 = vmul.f32 %v11467_v3, %v16964_v0  ;;  %v16972_v48 = vld [vmem:[#allocation118_spill] sm:$0xff]  ;;  %v16976_v0 = vld [vmem:[#allocation117_spill] sm:$0xff] }
0x2a8a   : > { %7714 = vmatprep.mubr.bf16.mxu1 %v7589_v10  ;;  %11472 = vrcp.f32 %v7075_v47 }
0x2a8b   : > { %7715 = vmatmul.mubr.bf16.gmra.mrb[248].mxu1 %v7588_v11 }
0x2a8c   : > { %v11469_v2 = vpop.eup %11468 }
0x2a8d   : > { %v7168_v1 = vpop.xlane.xlu1 %7167  ;;  %v7171_v63 = vpop.xlane.xlu0 %7170  ;;  %v7377_v12 = vmul.f32 %v11469_v2, %v16963_v56  ;;  %v7376_v55 = vmul.f32 %v11469_v2, %v16965_v16  ;;  %v16975_v56 = vld [vmem:[#allocation35_spill] sm:$0xff]  ;;  %v16977_v16 = vld [vmem:[#allocation46_spill] sm:$0xff] }
0x2a8e   : > { %11474 = vrcp.f32 %v7168_v1  ;;  %v16974_v1 = vld [vmem:[#allocation45_spill] sm:$0xff] }
0x2a8f   : > { %11476 = vrcp.f32 %v7171_v63  ;;  %v7621_v43 = vpack.c.bf16 %v7377_v12, %v7375_v30  ;;  %v7620_v18 = vpack.c.bf16 %v7376_v55, %v7374_v17 }
0x2a90   : > { %v11471_v23 = vpop.eup %11470 }
0x2a91   : > { %v7078_v58 = vpop.xlane.xlu1 %7077  ;;  %7875 = vmatprep.mubr.bf16.mxu0 %v7621_v43  ;;  %v7081_v26 = vpop.xlane.xlu0 %7080  ;;  %v7315_v33 = vmul.f32 %v11471_v23, %v16966_v51  ;;  %v7314_v9 = vmul.f32 %v11471_v23, %v16968_v5  ;;  %v16978_v23 = vld [vmem:[#allocation41_spill] sm:$0xff]  ;;  %v16979_v51 = vld [vmem:[#allocation48_spill] sm:$0xff] }
0x2a92   : > { %11478 = vrcp.f32 %v7078_v58  ;;  %7876 = vmatmul.mubr.bf16.gmra.mrb[252].mxu0 %v7620_v18  ;;  %v16981_v5 = vld [vmem:[#allocation40_spill] sm:$0xff] }
0x2a93   : > { %11480 = vrcp.f32 %v7081_v26 }
0x2a94   : > { %v11473_v29 = vpop.eup %11472 }
0x2a95   : > { %v7174_v50 = vpop.xlane.xlu1 %7173  ;;  %v7177_v57 = vpop.xlane.xlu0 %7176  ;;  %v7317_v52 = vmul.f32 %v11473_v29, %v16967_v35  ;;  %v7316_v6 = vmul.f32 %v11473_v29, %v16969_v60  ;;  %v16980_v35 = vld [vmem:[#allocation36_spill] sm:$0xff] }
0x2a96   : > { %11482 = vrcp.f32 %v7174_v50 }
0x2a97   : > { %11484 = vrcp.f32 %v7177_v57  ;;  %v7591_v38 = vpack.c.bf16 %v7317_v52, %v7315_v33  ;;  %v7590_v21 = vpack.c.bf16 %v7316_v6, %v7314_v9 }
0x2a98   : > { %v11475_v14 = vpop.eup %11474 }
0x2a99   : > { %v11477_v13 = vpop.eup %11476  ;;  %v7378_v28 = vmul.f32 %v11475_v14, %v16970_v44  ;;  %v7084_v62 = vpop.xlane.xlu1 %7083  ;;  %7722 = vmatprep.mubr.bf16.mxu1 %v7591_v38  ;;  %v7379_v22 = vmul.f32 %v11475_v14, %v16971_v61  ;;  %v16982_v14 = vld [vmem:[#allocation44_spill] sm:$0xff]  ;;  %v16984_v61 = vld [vmem:[#allocation47_spill] sm:$0xff] }
0x2a9a   : > { %v7087_v24 = vpop.xlane.xlu0 %7086  ;;  %v7380_v19 = vmul.f32 %v11477_v13, %v16972_v48  ;;  %11486 = vrcp.f32 %v7084_v62  ;;  %7723 = vmatmul.mubr.bf16.gmra.mrb[252].mxu1 %v7590_v21  ;;  %v7381_v10 = vmul.f32 %v11477_v13, %v16973_v20  ;;  %v16983_v62 = vld [vmem:[#allocation49_spill] sm:$0xff]  ;;  %v16985_v48 = vld [vmem:[#allocation55_spill] sm:$0xff] }
0x2a9b   : > { %11488 = vrcp.f32 %v7087_v24 }
0x2a9c   : > { %v11479_v11 = vpop.eup %11478  ;;  %v7622_v47 = vpack.c.bf16 %v7380_v19, %v7378_v28  ;;  %v7623_v3 = vpack.c.bf16 %v7381_v10, %v7379_v22 }
0x2a9d   : > { %v11481_v2 = vpop.eup %11480  ;;  %v7318_v63 = vmul.f32 %v11479_v11, %v16974_v1  ;;  %v7180_v45 = vpop.xlane.xlu1 %7179  ;;  %v7319_v12 = vmul.f32 %v11479_v11, %v16975_v56  ;;  %v16988_v56 = vld [vmem:[#allocation51_spill] sm:$0xff] }
0x2a9e   : > { %v7183_v30 = vpop.xlane.xlu0 %7182  ;;  %v7320_v17 = vmul.f32 %v11481_v2, %v16976_v0  ;;  %11490 = vrcp.f32 %v7180_v45  ;;  %7883 = vmatprep.mubr.bf16.mxu0 %v7623_v3  ;;  %v7321_v55 = vmul.f32 %v11481_v2, %v16977_v16  ;;  %v16986_v3 = vld [vmem:[#allocation61_spill] sm:$0xff]  ;;  %v16987_v45 = vld [vmem:[#allocation42_spill] sm:$0xff]  ;;  %v16989_v0 = vld [vmem:[#allocation63_spill] sm:$0xff] }
0x2a9f   : > { %11492 = vrcp.f32 %v7183_v30  ;;  %7884 = vmatmul.mubr.bf16.gmra.mrb[4].mxu0 %v7622_v47 }
0x2aa0   : > { %v11483_v43 = vpop.eup %11482  ;;  %v7592_v18 = vpack.c.bf16 %v7320_v17, %v7318_v63  ;;  %v7593_v58 = vpack.c.bf16 %v7321_v55, %v7319_v12 }
0x2aa1   : > { %v11485_v26 = vpop.eup %11484  ;;  %v7382_v29 = vmul.f32 %v11483_v43, %v16978_v23  ;;  %v7090_v50 = vpop.xlane.xlu1 %7089  ;;  %v7383_v33 = vmul.f32 %v11483_v43, %v16979_v51  ;;  %v16991_v51 = vld [vmem:[#allocation50_spill] sm:$0xff] }
0x2aa2   : > { %v7093_v57 = vpop.xlane.xlu0 %7092  ;;  %v7384_v52 = vmul.f32 %v11485_v26, %v16980_v35  ;;  %11494 = vrcp.f32 %v7090_v50  ;;  %7730 = vmatprep.mubr.bf16.mxu1 %v7593_v58  ;;  %v7385_v9 = vmul.f32 %v11485_v26, %v16981_v5 }
0x2aa3   : > { %11496 = vrcp.f32 %v7093_v57  ;;  %7731 = vmatmul.mubr.bf16.gmra.mrb[4].mxu1 %v7592_v18 }
0x2aa4   : > { %v11487_v60 = vpop.eup %11486  ;;  %v7624_v6 = vpack.c.bf16 %v7384_v52, %v7382_v29  ;;  %v7625_v38 = vpack.c.bf16 %v7385_v9, %v7383_v33  ;;  %v16990_v29 = vld [vmem:[#allocation70_spill] sm:$0xff] }
0x2aa5   : > { %v11489_v21 = vpop.eup %11488  ;;  %v7322_v13 = vmul.f32 %v11487_v60, %v16982_v14  ;;  %v7186_v44 = vpop.xlane.xlu1 %7185  ;;  %v7323_v24 = vmul.f32 %v11487_v60, %v16983_v62  ;;  %v16992_v60 = vld [vmem:[#allocation66_spill] sm:$0xff] }
0x2aa6   : > { %v7189_v28 = vpop.xlane.xlu0 %7188  ;;  %v7324_v22 = vmul.f32 %v11489_v21, %v16984_v61  ;;  %11498 = vrcp.f32 %v7186_v44  ;;  %7891 = vmatprep.mubr.bf16.mxu0 %v7625_v38  ;;  %v7325_v19 = vmul.f32 %v11489_v21, %v16985_v48  ;;  %v16993_v21 = vld [vmem:[#allocation68_spill] sm:$0xff] }
0x2aa7   : > { %11500 = vrcp.f32 %v7189_v28  ;;  %7892 = vmatmul.mubr.bf16.gmra.mrb[0].mxu0 %v7624_v6 }
0x2aa8   : > { %v11491_v20 = vpop.eup %11490  ;;  %v7594_v10 = vpack.c.bf16 %v7324_v22, %v7322_v13  ;;  %v7595_v11 = vpack.c.bf16 %v7325_v19, %v7323_v24  ;;  %v16994_v13 = vld [vmem:[#allocation58_spill] sm:$0xff] }
0x2aa9   : > { %v11493_v47 = vpop.eup %11492  ;;  %v7386_v2 = vmul.f32 %v11491_v20, %v16986_v3  ;;  %v7096_v1 = vpop.xlane.xlu1 %7095  ;;  %v7387_v30 = vmul.f32 %v11491_v20, %v16987_v45 }
0x2aaa   : > { %v7099_v63 = vpop.xlane.xlu0 %7098  ;;  %v7388_v12 = vmul.f32 %v11493_v47, %v16988_v56  ;;  %11502 = vrcp.f32 %v7096_v1  ;;  %7738 = vmatprep.mubr.bf16.mxu1 %v7595_v11  ;;  %v7389_v17 = vmul.f32 %v11493_v47, %v16989_v0  ;;  %v16997_v47 = vld [vmem:[#allocation62_spill] sm:$0xff] }
0x2aab   : > { %11504 = vrcp.f32 %v7099_v63  ;;  %7739 = vmatmul.mubr.bf16.gmra.mrb[0].mxu1 %v7594_v10  ;;  %v16996_v10 = vld [vmem:[#allocation64_spill] sm:$0xff] }
0x2aac   : > { %v11495_v16 = vpop.eup %11494  ;;  %v7626_v55 = vpack.c.bf16 %v7388_v12, %v7386_v2  ;;  %v7627_v43 = vpack.c.bf16 %v7389_v17, %v7387_v30  ;;  %v16998_v2 = vld [vmem:[#allocation60_spill] sm:$0xff]  ;;  %v16999_v12 = vld [vmem:[#allocation54_spill] sm:$0xff] }
0x2aad   : > { %v11497_v18 = vpop.eup %11496  ;;  %v7326_v58 = vmul.f32 %v11495_v16, %v14913_v4  ;;  %v7192_v26 = vpop.xlane.xlu1 %7191  ;;  %v7327_v50 = vmul.f32 %v11495_v16, %v16990_v29  ;;  %v17000_v16 = vld [vmem:[#allocation59_spill] sm:$0xff] }
0x2aae   : > { %v7195_v23 = vpop.xlane.xlu0 %7194  ;;  %v7328_v57 = vmul.f32 %v11497_v18, %v14884_v32  ;;  %11506 = vrcp.f32 %v7192_v26  ;;  %7899 = vmatprep.mubr.bf16.mxu0 %v7627_v43  ;;  %v7329_v33 = vmul.f32 %v11497_v18, %v16991_v51  ;;  %v16995_v32 = vld [vmem:[#allocation52_spill] sm:$0xff]  ;;  %v17001_v43 = vld [vmem:[#allocation53_spill] sm:$0xff] }
0x2aaf   : > { %11508 = vrcp.f32 %v7195_v23  ;;  %7900 = vmatmul.mubr.bf16.gmra.mrb[12].mxu0 %v7626_v55  ;;  %v17003_v51 = vld [vmem:[#allocation76_spill] sm:$0xff] }
0x2ab0   : > { %v11499_v35 = vpop.eup %11498  ;;  %v7596_v52 = vpack.c.bf16 %v7328_v57, %v7326_v58  ;;  %v7597_v5 = vpack.c.bf16 %v7329_v33, %v7327_v50  ;;  %v17002_v58 = vld [vmem:[#allocation78_spill] sm:$0xff] }
0x2ab1   : > { %v11501_v9 = vpop.eup %11500  ;;  %v7390_v6 = vmul.f32 %v11499_v35, %v16992_v60  ;;  %v7102_v38 = vpop.xlane.xlu1 %7101  ;;  %v7391_v14 = vmul.f32 %v11499_v35, %v16993_v21 }
0x2ab2   : > { %v7105_v4 = vpop.xlane.xlu0 %7104  ;;  %v7392_v44 = vmul.f32 %v11501_v9, %v16994_v13  ;;  %11510 = vrcp.f32 %v7102_v38  ;;  %7746 = vmatprep.mubr.bf16.mxu1 %v7597_v5  ;;  %v7393_v28 = vmul.f32 %v11501_v9, %v16995_v32  ;;  %v17004_v5 = vld [vmem:[#allocation56_spill] sm:$0xff] }
0x2ab3   : > { %11512 = vrcp.f32 %v7105_v4  ;;  %7747 = vmatmul.mubr.bf16.gmra.mrb[12].mxu1 %v7596_v52 }
0x2ab4   : > { %v11503_v62 = vpop.eup %11502  ;;  %v7628_v24 = vpack.c.bf16 %v7392_v44, %v7390_v6  ;;  %v7629_v61 = vpack.c.bf16 %v7393_v28, %v7391_v14  ;;  %v17005_v28 = vld [vmem:[#allocation90_spill] sm:$0xff] }
0x2ab5   : > { %v11505_v22 = vpop.eup %11504  ;;  %v7330_v48 = vmul.f32 %v11503_v62, %v14953_v34  ;;  %v7198_v19 = vpop.xlane.xlu1 %7197  ;;  %v7331_v11 = vmul.f32 %v11503_v62, %v16996_v10 }
0x2ab6   : > { %v7201_v20 = vpop.xlane.xlu0 %7200  ;;  %v7332_v3 = vmul.f32 %v11505_v22, %v16997_v47  ;;  %11514 = vrcp.f32 %v7198_v19  ;;  %7907 = vmatprep.mubr.bf16.mxu0 %v7629_v61  ;;  %v7333_v1 = vmul.f32 %v11505_v22, %v16998_v2  ;;  %v17008_v47 = vld [vmem:[#allocation73_spill] sm:$0xff]  ;;  %v17009_v2 = vld [vmem:[#allocation72_spill] sm:$0xff] }
0x2ab7   : > { %11516 = vrcp.f32 %v7201_v20  ;;  %7908 = vmatmul.mubr.bf16.gmra.mrb[16].mxu0 %v7628_v24  ;;  %v17006_v24 = vld [vmem:[#allocation74_spill] sm:$0xff] }
0x2ab8   : > { %v11507_v63 = vpop.eup %11506  ;;  %v7598_v45 = vpack.c.bf16 %v7332_v3, %v7330_v48  ;;  %v7599_v30 = vpack.c.bf16 %v7333_v1, %v7331_v11 }
0x2ab9   : > { %v11509_v56 = vpop.eup %11508  ;;  %v7394_v0 = vmul.f32 %v11507_v63, %v16999_v12  ;;  %v7108_v17 = vpop.xlane.xlu1 %7107  ;;  %v7395_v55 = vmul.f32 %v11507_v63, %v17000_v16  ;;  %v17010_v63 = vld [vmem:[#allocation71_spill] sm:$0xff] }
0x2aba   : > { %v7111_v34 = vpop.xlane.xlu0 %7110  ;;  %v7396_v18 = vmul.f32 %v11509_v56, %v17001_v43  ;;  %11518 = vrcp.f32 %v7108_v17  ;;  %7754 = vmatprep.mubr.bf16.mxu1 %v7599_v30  ;;  %v7397_v26 = vmul.f32 %v11509_v56, %v17002_v58 }
0x2abb   : > { %11520 = vrcp.f32 %v7111_v34  ;;  %7755 = vmatmul.mubr.bf16.gmra.mrb[16].mxu1 %v7598_v45 }
0x2abc   : > { %v11511_v23 = vpop.eup %11510  ;;  %v7630_v29 = vpack.c.bf16 %v7396_v18, %v7394_v0  ;;  %v7631_v50 = vpack.c.bf16 %v7397_v26, %v7395_v55  ;;  %v17011_v55 = vld [vmem:[#allocation67_spill] sm:$0xff] }
0x2abd   : > { %v11513_v57 = vpop.eup %11512  ;;  %v7334_v33 = vmul.f32 %v11511_v23, %v17003_v51  ;;  %v7204_v35 = vpop.xlane.xlu1 %7203  ;;  %v7335_v9 = vmul.f32 %v11511_v23, %v17004_v5  ;;  %v17012_v18 = vld [vmem:[#allocation87_spill] sm:$0xff] }
0x2abe   : > { %v7207_v52 = vpop.xlane.xlu0 %7206  ;;  %v7336_v60 = vmul.f32 %v11513_v57, %v14964_v15  ;;  %11522 = vrcp.f32 %v7204_v35  ;;  %7915 = vmatprep.mubr.bf16.mxu0 %v7631_v50  ;;  %v7337_v6 = vmul.f32 %v11513_v57, %v14981_v39  ;;  %v17007_v15 = vld [vmem:[#allocation57_spill] sm:$0xff] }
0x2abf   : > { %11524 = vrcp.f32 %v7207_v52  ;;  %7916 = vmatmul.mubr.bf16.gmra.mrb[20].mxu0 %v7630_v29  ;;  %v17013_v35 = vld [vmem:[#allocation69_spill] sm:$0xff] }
0x2ac0   : > { %v11515_v38 = vpop.eup %11514  ;;  %v7600_v4 = vpack.c.bf16 %v7336_v60, %v7334_v33  ;;  %v7601_v21 = vpack.c.bf16 %v7337_v6, %v7335_v9 }
0x2ac1   : > { %v11517_v14 = vpop.eup %11516  ;;  %v7398_v13 = vmul.f32 %v11515_v38, %v15009_v36  ;;  %v7114_v44 = vpop.xlane.xlu1 %7113  ;;  %v7399_v62 = vmul.f32 %v11515_v38, %v17005_v28 }
0x2ac2   : > { %v7117_v32 = vpop.xlane.xlu0 %7116  ;;  %v7400_v61 = vmul.f32 %v11517_v14, %v17006_v24  ;;  %11526 = vrcp.f32 %v7114_v44  ;;  %7762 = vmatprep.mubr.bf16.mxu1 %v7601_v21  ;;  %v7401_v22 = vmul.f32 %v11517_v14, %v17007_v15 }
0x2ac3   : > { %11528 = vrcp.f32 %v7117_v32  ;;  %7763 = vmatmul.mubr.bf16.gmra.mrb[20].mxu1 %v7600_v4 }
0x2ac4   : > { %v11519_v39 = vpop.eup %11518  ;;  %v7632_v48 = vpack.c.bf16 %v7400_v61, %v7398_v13  ;;  %v7633_v19 = vpack.c.bf16 %v7401_v22, %v7399_v62 }
0x2ac5   : > { %v11521_v20 = vpop.eup %11520  ;;  %v7338_v10 = vmul.f32 %v11519_v39, %v15026_v7  ;;  %v7210_v11 = vpop.xlane.xlu1 %7209  ;;  %v7339_v3 = vmul.f32 %v11519_v39, %v17008_v47  ;;  %v17014_v39 = vld [vmem:[#allocation75_spill] sm:$0xff] }
0x2ac6   : > { %v7213_v36 = vpop.xlane.xlu0 %7212  ;;  %v7340_v1 = vmul.f32 %v11521_v20, %v17009_v2  ;;  %11530 = vrcp.f32 %v7210_v11  ;;  %7923 = vmatprep.mubr.bf16.mxu0 %v7633_v19  ;;  %v7341_v45 = vmul.f32 %v11521_v20, %v17010_v63  ;;  %v17015_v19 = vld [vmem:[#allocation79_spill] sm:$0xff]  ;;  %v17016_v20 = vld [vmem:[#allocation65_spill] sm:$0xff] }
0x2ac7   : > { %11532 = vrcp.f32 %v7213_v36  ;;  %7924 = vmatmul.mubr.bf16.gmra.mrb[24].mxu0 %v7632_v48 }
0x2ac8   : > { %v11523_v30 = vpop.eup %11522  ;;  %v7602_v56 = vpack.c.bf16 %v7340_v1, %v7338_v10  ;;  %v7603_v12 = vpack.c.bf16 %v7341_v45, %v7339_v3  ;;  %v17018_v3 = vld [vmem:[#allocation83_spill] sm:$0xff]  ;;  %v17019_v1 = vld [vmem:[#allocation77_spill] sm:$0xff] }
0x2ac9   : > { %v11525_v0 = vpop.eup %11524  ;;  %v7402_v17 = vmul.f32 %v11523_v30, %v15041_v42  ;;  %v7120_v34 = vpop.xlane.xlu1 %7119  ;;  %v7403_v16 = vmul.f32 %v11523_v30, %v15044_v41  ;;  %v17020_v45 = vld [vmem:[#allocation85_spill] sm:$0xff] }
0x2aca   : > { %v7123_v7 = vpop.xlane.xlu0 %7122  ;;  %v7404_v43 = vmul.f32 %v11525_v0, %v17011_v55  ;;  %11534 = vrcp.f32 %v7120_v34  ;;  %7770 = vmatprep.mubr.bf16.mxu1 %v7603_v12  ;;  %v7405_v58 = vmul.f32 %v11525_v0, %v17012_v18 }
0x2acb   : > { %11536 = vrcp.f32 %v7123_v7  ;;  %7771 = vmatmul.mubr.bf16.gmra.mrb[24].mxu1 %v7602_v56  ;;  %v17021_v56 = vld [vmem:[#allocation81_spill] sm:$0xff] }
0x2acc   : > { %v11527_v26 = vpop.eup %11526  ;;  %v7634_v23 = vpack.c.bf16 %v7404_v43, %v7402_v17  ;;  %v7635_v29 = vpack.c.bf16 %v7405_v58, %v7403_v16  ;;  %v17022_v16 = vld [vmem:[#allocation89_spill] sm:$0xff]  ;;  %v17023_v43 = vld [vmem:[#allocation92_spill] sm:$0xff] }
0x2acd   : > { %v11529_v50 = vpop.eup %11528  ;;  %v7342_v57 = vmul.f32 %v11527_v26, %v15057_v46  ;;  %v7216_v51 = vpop.xlane.xlu1 %7215  ;;  %v7343_v33 = vmul.f32 %v11527_v26, %v15060_v8  ;;  %v17024_v58 = vld [vmem:[#allocation84_spill] sm:$0xff] }
0x2ace   : > { %v7219_v42 = vpop.xlane.xlu0 %7218  ;;  %v7344_v41 = vmul.f32 %v11529_v50, %v15034_v59  ;;  %11538 = vrcp.f32 %v7216_v51  ;;  %7931 = vmatprep.mubr.bf16.mxu0 %v7635_v29  ;;  %v7345_v52 = vmul.f32 %v11529_v50, %v17013_v35  ;;  %v17026_v51 = vmov 0  }
0x2acf   : > { %11540 = vrcp.f32 %v7219_v42  ;;  %7932 = vmatmul.mubr.bf16.gmra.mrb[28].mxu0 %v7634_v23  ;;  %v17025_v23 = vld [vmem:[#allocation91_spill] sm:$0xff] }
0x2ad0   : > { %v11531_v5 = vpop.eup %11530  ;;  %v7604_v9 = vpack.c.bf16 %v7344_v41, %v7342_v57  ;;  %v7605_v60 = vpack.c.bf16 %v7345_v52, %v7343_v33 }
0x2ad1   : > { %v11533_v6 = vpop.eup %11532  ;;  %v7406_v38 = vmul.f32 %v11531_v5, %v15073_v40  ;;  %v7126_v4 = vpop.xlane.xlu1 %7125  ;;  %v7407_v21 = vmul.f32 %v11531_v5, %v15075_v54 }
0x2ad2   : > { %v7129_v46 = vpop.xlane.xlu0 %7128  ;;  %v7408_v8 = vmul.f32 %v11533_v6, %v15053_v31  ;;  %11542 = vrcp.f32 %v7126_v4  ;;  %7778 = vmatprep.mubr.bf16.mxu1 %v7605_v60  ;;  %v7409_v59 = vmul.f32 %v11533_v6, %v15063_v37 }
0x2ad3   : > { %11544 = vrcp.f32 %v7129_v46  ;;  %7779 = vmatmul.mubr.bf16.gmra.mrb[28].mxu1 %v7604_v9 }
0x2ad4   : > { %v11535_v14 = vpop.eup %11534  ;;  %v7636_v13 = vpack.c.bf16 %v7408_v8, %v7406_v38  ;;  %v7637_v44 = vpack.c.bf16 %v7409_v59, %v7407_v21 }
0x2ad5   : > { %v11537_v32 = vpop.eup %11536  ;;  %v7346_v28 = vmul.f32 %v11535_v14, %v15069_v25  ;;  %v7222_v62 = vpop.xlane.xlu1 %7221  ;;  %v7347_v24 = vmul.f32 %v11535_v14, %v15077_v49  ;;  %v17017_v49 = vld [vmem:[#allocation86_spill] sm:$0xff] }
0x2ad6   : > { %v7225_v40 = vpop.xlane.xlu0 %7224  ;;  %v7348_v54 = vmul.f32 %v11537_v32, %v15087_v27  ;;  %11546 = vrcp.f32 %v7222_v62  ;;  %7939 = vmatprep.mubr.bf16.mxu0 %v7637_v44  ;;  %v7349_v31 = vmul.f32 %v11537_v32, %v15089_v53 }
0x2ad7   : > { %11548 = vrcp.f32 %v7225_v40  ;;  %7940 = vmatmul.mubr.bf16.gmra.mrb[32].mxu0 %v7636_v13 }
0x2ad8   : > { %v11539_v37 = vpop.eup %11538  ;;  %v7606_v61 = vpack.c.bf16 %v7348_v54, %v7346_v28  ;;  %v7607_v15 = vpack.c.bf16 %v7349_v31, %v7347_v24 }
0x2ad9   : > { %v11541_v22 = vpop.eup %11540  ;;  %v7410_v48 = vmul.f32 %v11539_v37, %v17014_v39  ;;  %v7411_v25 = vmul.f32 %v11539_v37, %v17015_v19 }
0x2ada   : > { %v7412_v10 = vmul.f32 %v11541_v22, %v17016_v20  ;;  %7786 = vmatprep.mubr.bf16.mxu1 %v7607_v15  ;;  %v7413_v11 = vmul.f32 %v11541_v22, %v17017_v49 }
0x2adb   : > { %7787 = vmatmul.mubr.bf16.gmra.mrb[32].mxu1 %v7606_v61 }
0x2adc   : > { %v11543_v27 = vpop.eup %11542  ;;  %v7638_v36 = vpack.c.bf16 %v7412_v10, %v7410_v48  ;;  %v7639_v47 = vpack.c.bf16 %v7413_v11, %v7411_v25 }
0x2add   : > { %v11545_v53 = vpop.eup %11544  ;;  %v7350_v2 = vmul.f32 %v11543_v27, %v17018_v3  ;;  %v7351_v63 = vmul.f32 %v11543_v27, %v17019_v1 }
0x2ade   : > { %v7352_v30 = vmul.f32 %v11545_v53, %v17020_v45  ;;  %7947 = vmatprep.mubr.bf16.mxu0 %v7639_v47  ;;  %v7353_v12 = vmul.f32 %v11545_v53, %v17021_v56 }
0x2adf   : > { %7948 = vmatmul.mubr.bf16.gmra.mrb[36].mxu0 %v7638_v36 }
0x2ae0   : > { %v11547_v0 = vpop.eup %11546  ;;  %v7608_v17 = vpack.c.bf16 %v7352_v30, %v7350_v2  ;;  %v7609_v34 = vpack.c.bf16 %v7353_v12, %v7351_v63 }
0x2ae1   : > { %v11549_v7 = vpop.eup %11548  ;;  %v7414_v55 = vmul.f32 %v11547_v0, %v17022_v16  ;;  %v7415_v18 = vmul.f32 %v11547_v0, %v17023_v43 }
0x2ae2   : > { %v7416_v26 = vmul.f32 %v11549_v7, %v17024_v58  ;;  %7794 = vmatprep.mubr.bf16.mxu1 %v7609_v34  ;;  %v7417_v29 = vmul.f32 %v11549_v7, %v17025_v23 }
0x2ae3   : > { %7795 = vmatmul.mubr.bf16.gmra.mrb[36].mxu1 %v7608_v17 }
0x2ae4   : > { %v7640_v50 = vpack.c.bf16 %v7416_v26, %v7414_v55  ;;  %v7641_v57 = vpack.c.bf16 %v7417_v29, %v7415_v18  ;;  %8136 = vmatprep.mubr.bf16.mxu1 %v17026_v51 }
0x2ae6   : > { %7955 = vmatprep.mubr.bf16.mxu0 %v7641_v57 }
0x2ae7   : > { %7956 = vmatmul.mubr.bf16.gmra.mrb[40].mxu0 %v7640_v50 }
0x2b2f   : > { %v9353_v42 = vpop.f32.mrb[228].mxu1 }
0x2b30   : > { %v9354_v33 = vpop.f32.mrb[229].mxu1 }
0x2b31   : > { %v9355_v41 = vadd.f32 %v9354_v33, %v9353_v42  ;;  %v9356_v35 = vpop.f32.mrb[230].mxu1 }
0x2b32   : > { %v9357_v52 = vpop.f32.mrb[231].mxu1 }
0x2b33   : > { %v9358_v5 = vadd.f32 %v9357_v52, %v9356_v35 }
0x2b35   : > { %v9465_v9 = vpop.f32.mrb[232].mxu0 }
0x2b36   : > { %v9466_v60 = vpop.f32.mrb[233].mxu0 }
0x2b37   : > { %v9467_v6 = vadd.f32 %v9466_v60, %v9465_v9  ;;  %v9468_v38 = vpop.f32.mrb[234].mxu0 }
0x2b38   : > { %v9469_v4 = vpop.f32.mrb[235].mxu0 }
0x2b39   : > { %v10606_v46 = vpack.i.bf16 %v9467_v6, %v9355_v41  ;;  %v9470_v21 = vadd.f32 %v9469_v4, %v9468_v38 }
0x2b3b   : > { %v10608_v8 = vpack.i.bf16 %v9470_v21, %v9358_v5  ;;  %10607 = vxpose.xlu0.b32.start [1/16] (narrow) %v10606_v46, 8 }
0x2b3d   : > { %v9359_v59 = vpop.f32.mrb[232].mxu1 }
0x2b3e   : > { %v9360_v14 = vpop.f32.mrb[233].mxu1 }
0x2b3f   : > { %10609 = vxpose.xlu0.b32.cont [2/16] (narrow) %v10608_v8, 8  ;;  %v9361_v13 = vadd.f32 %v9360_v14, %v9359_v59  ;;  %v9362_v44 = vpop.f32.mrb[234].mxu1 }
0x2b40   : > { %v9363_v32 = vpop.f32.mrb[235].mxu1 }
0x2b41   : > { %v9364_v28 = vadd.f32 %v9363_v32, %v9362_v44  ;;  %v9471_v62 = vpop.f32.mrb[236].mxu0 }
0x2b42   : > { %v9472_v40 = vpop.f32.mrb[237].mxu0 }
0x2b43   : > { %v9473_v24 = vadd.f32 %v9472_v40, %v9471_v62  ;;  %v9474_v54 = vpop.f32.mrb[238].mxu0 }
0x2b44   : > { %v9475_v31 = vpop.f32.mrb[239].mxu0 }
0x2b45   : > { %v10610_v37 = vpack.i.bf16 %v9473_v24, %v9361_v13  ;;  %v9476_v61 = vadd.f32 %v9475_v31, %v9474_v54  ;;  %v9365_v15 = vpop.f32.mrb[236].mxu1 }
0x2b46   : > { %v9366_v22 = vpop.f32.mrb[237].mxu1 }
0x2b47   : > { %v10612_v39 = vpack.i.bf16 %v9476_v61, %v9364_v28  ;;  %v9367_v48 = vadd.f32 %v9366_v22, %v9365_v15  ;;  %10611 = vxpose.xlu0.b32.cont [3/16] (narrow) %v10610_v37, 8  ;;  %v9368_v19 = vpop.f32.mrb[238].mxu1 }
0x2b48   : > { %v9369_v25 = vpop.f32.mrb[239].mxu1 }
0x2b49   : > { %v9370_v20 = vadd.f32 %v9369_v25, %v9368_v19  ;;  %v9477_v10 = vpop.f32.mrb[240].mxu0 }
0x2b4a   : > { %v9478_v49 = vpop.f32.mrb[241].mxu0 }
0x2b4b   : > { %v9479_v11 = vadd.f32 %v9478_v49, %v9477_v10  ;;  %10613 = vxpose.xlu0.b32.cont [4/16] (narrow) %v10612_v39, 8  ;;  %v9480_v27 = vpop.f32.mrb[242].mxu0 }
0x2b4c   : > { %v9481_v36 = vpop.f32.mrb[243].mxu0 }
0x2b4d   : > { %v10614_v47 = vpack.i.bf16 %v9479_v11, %v9367_v48  ;;  %v9482_v53 = vadd.f32 %v9481_v36, %v9480_v27  ;;  %v9371_v3 = vpop.f32.mrb[240].mxu1 }
0x2b4e   : > { %v9372_v2 = vpop.f32.mrb[241].mxu1 }
0x2b4f   : > { %v10616_v1 = vpack.i.bf16 %v9482_v53, %v9370_v20  ;;  %v9373_v63 = vadd.f32 %v9372_v2, %v9371_v3  ;;  %10615 = vxpose.xlu0.b32.cont [5/16] (narrow) %v10614_v47, 8  ;;  %v9374_v45 = vpop.f32.mrb[242].mxu1 }
0x2b50   : > { %v9375_v30 = vpop.f32.mrb[243].mxu1 }
0x2b51   : > { %v9376_v56 = vadd.f32 %v9375_v30, %v9374_v45  ;;  %v9483_v12 = vpop.f32.mrb[244].mxu0 }
0x2b52   : > { %v9484_v0 = vpop.f32.mrb[245].mxu0 }
0x2b53   : > { %v9485_v17 = vadd.f32 %v9484_v0, %v9483_v12  ;;  %10617 = vxpose.xlu0.b32.cont [6/16] (narrow) %v10616_v1, 8  ;;  %v9486_v34 = vpop.f32.mrb[246].mxu0 }
0x2b54   : > { %v9487_v7 = vpop.f32.mrb[247].mxu0 }
0x2b55   : > { %v10618_v16 = vpack.i.bf16 %v9485_v17, %v9373_v63  ;;  %v9488_v55 = vadd.f32 %v9487_v7, %v9486_v34  ;;  %v9377_v43 = vpop.f32.mrb[244].mxu1 }
0x2b56   : > { %v9378_v18 = vpop.f32.mrb[245].mxu1 }
0x2b57   : > { %v10620_v58 = vpack.i.bf16 %v9488_v55, %v9376_v56  ;;  %v9379_v26 = vadd.f32 %v9378_v18, %v9377_v43  ;;  %10619 = vxpose.xlu0.b32.cont [7/16] (narrow) %v10618_v16, 8  ;;  %v9380_v23 = vpop.f32.mrb[246].mxu1 }
0x2b58   : > { %v9381_v29 = vpop.f32.mrb[247].mxu1 }
0x2b59   : > { %v9382_v50 = vadd.f32 %v9381_v29, %v9380_v23  ;;  %v9489_v57 = vpop.f32.mrb[248].mxu0 }
0x2b5a   : > { %v9490_v51 = vpop.f32.mrb[249].mxu0 }
0x2b5b   : > { %v9491_v42 = vadd.f32 %v9490_v51, %v9489_v57  ;;  %10621 = vxpose.xlu0.b32.cont [8/16] (narrow) %v10620_v58, 8  ;;  %v9492_v33 = vpop.f32.mrb[250].mxu0 }
0x2b5c   : > { %v9493_v41 = vpop.f32.mrb[251].mxu0 }
0x2b5d   : > { %v10622_v35 = vpack.i.bf16 %v9491_v42, %v9379_v26  ;;  %v9494_v52 = vadd.f32 %v9493_v41, %v9492_v33 }
0x2b5e   : > { %v9383_v5 = vpop.f32.mrb[248].mxu1 }
0x2b5f   : > { %v9384_v9 = vpop.f32.mrb[249].mxu1  ;;  %v10624_v60 = vpack.i.bf16 %v9494_v52, %v9382_v50  ;;  %10623 = vxpose.xlu0.b32.cont [9/16] (narrow) %v10622_v35, 8 }
0x2b60   : > { %v9385_v6 = vadd.f32 %v9384_v9, %v9383_v5  ;;  %v9386_v38 = vpop.f32.mrb[250].mxu1 }
0x2b61   : > { %v9387_v4 = vpop.f32.mrb[251].mxu1 }
0x2b62   : > { %v9388_v46 = vadd.f32 %v9387_v4, %v9386_v38 }
0x2b63   : > { %10625 = vxpose.xlu0.b32.cont [10/16] (narrow) %v10624_v60, 8 }
0x2b65   : > { %v9495_v21 = vpop.f32.mrb[252].mxu0 }
0x2b66   : > { %v9496_v8 = vpop.f32.mrb[253].mxu0 }
0x2b67   : > { %v9497_v59 = vadd.f32 %v9496_v8, %v9495_v21  ;;  %v9498_v14 = vpop.f32.mrb[254].mxu0 }
0x2b68   : > { %v9499_v13 = vpop.f32.mrb[255].mxu0 }
0x2b69   : > { %v10626_v44 = vpack.i.bf16 %v9497_v59, %v9385_v6  ;;  %v9500_v32 = vadd.f32 %v9499_v13, %v9498_v14 }
0x2b6b   : > { %v10628_v28 = vpack.i.bf16 %v9500_v32, %v9388_v46  ;;  %10627 = vxpose.xlu0.b32.cont [11/16] (narrow) %v10626_v44, 8 }
0x2b6d   : > { %v9389_v62 = vpop.f32.mrb[252].mxu1 }
0x2b6e   : > { %v9390_v40 = vpop.f32.mrb[253].mxu1 }
0x2b6f   : > { %v9391_v24 = vadd.f32 %v9390_v40, %v9389_v62  ;;  %10629 = vxpose.xlu0.b32.cont [12/16] (narrow) %v10628_v28, 8  ;;  %v9392_v54 = vpop.f32.mrb[254].mxu1 }
0x2b70   : > { %v9393_v31 = vpop.f32.mrb[255].mxu1 }
0x2b71   : > { %v9394_v37 = vadd.f32 %v9393_v31, %v9392_v54 }
0x2b72   : > { %v9501_v61 = vpop.f32.mrb[4].mxu0 }
0x2b73   : > { %v9502_v15 = vpop.f32.mrb[5].mxu0 }
0x2b74   : > { %v9503_v22 = vadd.f32 %v9502_v15, %v9501_v61  ;;  %v9504_v39 = vpop.f32.mrb[6].mxu0 }
0x2b75   : > { %v9505_v48 = vpop.f32.mrb[7].mxu0 }
0x2b76   : > { %v10630_v19 = vpack.i.bf16 %v9503_v22, %v9391_v24  ;;  %v9506_v25 = vadd.f32 %v9505_v48, %v9504_v39  ;;  %v9395_v20 = vpop.f32.mrb[4].mxu1 }
0x2b77   : > { %v9396_v10 = vpop.f32.mrb[5].mxu1 }
0x2b78   : > { %v10632_v49 = vpack.i.bf16 %v9506_v25, %v9394_v37  ;;  %v9397_v11 = vadd.f32 %v9396_v10, %v9395_v20  ;;  %10631 = vxpose.xlu0.b32.cont [13/16] (narrow) %v10630_v19, 8  ;;  %v9398_v27 = vpop.f32.mrb[6].mxu1 }
0x2b79   : > { %v9399_v36 = vpop.f32.mrb[7].mxu1 }
0x2b7a   : > { %v9400_v47 = vadd.f32 %v9399_v36, %v9398_v27  ;;  %v9507_v53 = vpop.f32.mrb[0].mxu0 }
0x2b7b   : > { %v9508_v3 = vpop.f32.mrb[1].mxu0 }
0x2b7c   : > { %v9509_v2 = vadd.f32 %v9508_v3, %v9507_v53  ;;  %10633 = vxpose.xlu0.b32.cont [14/16] (narrow) %v10632_v49, 8  ;;  %v9510_v1 = vpop.f32.mrb[2].mxu0 }
0x2b7d   : > { %v9511_v63 = vpop.f32.mrb[3].mxu0 }
0x2b7e   : > { %v10634_v45 = vpack.i.bf16 %v9509_v2, %v9397_v11  ;;  %v9512_v30 = vadd.f32 %v9511_v63, %v9510_v1  ;;  %v9401_v56 = vpop.f32.mrb[0].mxu1 }
0x2b7f   : > { %v9402_v12 = vpop.f32.mrb[1].mxu1 }
0x2b80   : > { %v10636_v0 = vpack.i.bf16 %v9512_v30, %v9400_v47  ;;  %v9403_v17 = vadd.f32 %v9402_v12, %v9401_v56  ;;  %10635 = vxpose.xlu0.b32.cont [15/16] (narrow) %v10634_v45, 8  ;;  %v9404_v34 = vpop.f32.mrb[2].mxu1 }
0x2b81   : > { %v9405_v7 = vpop.f32.mrb[3].mxu1 }
0x2b82   : > { %v9406_v16 = vadd.f32 %v9405_v7, %v9404_v34  ;;  %v9513_v55 = vpop.f32.mrb[12].mxu0 }
0x2b83   : > { %v9514_v43 = vpop.f32.mrb[13].mxu0 }
0x2b84   : > { %v9515_v18 = vadd.f32 %v9514_v43, %v9513_v55  ;;  %10637 = vxpose.xlu0.b32.end [16/16] (narrow) %v10636_v0, 8  ;;  %v9516_v58 = vpop.f32.mrb[14].mxu0 }
0x2b85   : > { %v9517_v26 = vpop.f32.mrb[15].mxu0 }
0x2b86   : > { %v10569_v23 = vpack.i.bf16 %v9515_v18, %v9403_v17  ;;  %v9518_v29 = vadd.f32 %v9517_v26, %v9516_v58  ;;  %v9407_v50 = vpop.f32.mrb[12].mxu1 }
0x2b87   : > { %v9408_v57 = vpop.f32.mrb[13].mxu1 }
0x2b88   : > { %v10571_v51 = vpack.i.bf16 %v9518_v29, %v9406_v16  ;;  %v9409_v42 = vadd.f32 %v9408_v57, %v9407_v50  ;;  %10570 = vxpose.xlu1.b32.start [1/16] (narrow) %v10569_v23, 8  ;;  %v9410_v33 = vpop.f32.mrb[14].mxu1 }
0x2b89   : > { %v9411_v41 = vpop.f32.mrb[15].mxu1 }
0x2b8a   : > { %v9412_v35 = vadd.f32 %v9411_v41, %v9410_v33  ;;  %v9519_v52 = vpop.f32.mrb[16].mxu0  ;;  %v11612_v33 = vmov 20  }
0x2b8b   : > { %v9520_v5 = vpop.f32.mrb[17].mxu0 }
0x2b8c   : > { %v9521_v9 = vadd.f32 %v9520_v5, %v9519_v52  ;;  %10572 = vxpose.xlu1.b32.cont [2/16] (narrow) %v10571_v51, 8  ;;  %v9522_v60 = vpop.f32.mrb[18].mxu0  ;;  %v15261_v5 = vld [vmem:[%s16272_s25] sm:$0xff] }
0x2b8d   : > { %v9523_v6 = vpop.f32.mrb[19].mxu0 }
0x2b8e   : > { %v10573_v38 = vpack.i.bf16 %v9521_v9, %v9409_v42  ;;  %v9524_v4 = vadd.f32 %v9523_v6, %v9522_v60  ;;  %v9413_v46 = vpop.f32.mrb[16].mxu1 }
0x2b8f   : > { %v9414_v21 = vpop.f32.mrb[17].mxu1 }
0x2b90   : > { %v10575_v8 = vpack.i.bf16 %v9524_v4, %v9412_v35  ;;  %v9415_v59 = vadd.f32 %v9414_v21, %v9413_v46  ;;  %10574 = vxpose.xlu1.b32.cont [3/16] (narrow) %v10573_v38, 8  ;;  %v9416_v14 = vpop.f32.mrb[18].mxu1 }
0x2b91   : > { %v9417_v13 = vpop.f32.mrb[19].mxu1 }
0x2b92   : > { %v9418_v44 = vadd.f32 %v9417_v13, %v9416_v14  ;;  %v9525_v32 = vpop.f32.mrb[20].mxu0 }
0x2b93   : > { %v9526_v28 = vpop.f32.mrb[21].mxu0 }
0x2b94   : > { %v9527_v62 = vadd.f32 %v9526_v28, %v9525_v32  ;;  %10576 = vxpose.xlu1.b32.cont [4/16] (narrow) %v10575_v8, 8  ;;  %v9528_v40 = vpop.f32.mrb[22].mxu0 }
0x2b95   : > { %v9529_v24 = vpop.f32.mrb[23].mxu0 }
0x2b96   : > { %v10577_v54 = vpack.i.bf16 %v9527_v62, %v9415_v59  ;;  %v9530_v31 = vadd.f32 %v9529_v24, %v9528_v40  ;;  %v9419_v37 = vpop.f32.mrb[20].mxu1 }
0x2b97   : > { %v9420_v61 = vpop.f32.mrb[21].mxu1 }
0x2b98   : > { %v10579_v15 = vpack.i.bf16 %v9530_v31, %v9418_v44  ;;  %v9421_v22 = vadd.f32 %v9420_v61, %v9419_v37  ;;  %10578 = vxpose.xlu1.b32.cont [5/16] (narrow) %v10577_v54, 8  ;;  %v9422_v39 = vpop.f32.mrb[22].mxu1 }
0x2b99   : > { %v9423_v48 = vpop.f32.mrb[23].mxu1 }
0x2b9a   : > { %v9424_v19 = vadd.f32 %v9423_v48, %v9422_v39  ;;  %v9531_v25 = vpop.f32.mrb[24].mxu0 }
0x2b9b   : > { %v9532_v20 = vpop.f32.mrb[25].mxu0 }
0x2b9c   : > { %v9533_v10 = vadd.f32 %v9532_v20, %v9531_v25  ;;  %10580 = vxpose.xlu1.b32.cont [6/16] (narrow) %v10579_v15, 8  ;;  %v9534_v49 = vpop.f32.mrb[26].mxu0 }
0x2b9d   : > { %v9535_v11 = vpop.f32.mrb[27].mxu0 }
0x2b9e   : > { %v10581_v27 = vpack.i.bf16 %v9533_v10, %v9421_v22  ;;  %v9536_v36 = vadd.f32 %v9535_v11, %v9534_v49  ;;  %v9425_v47 = vpop.f32.mrb[24].mxu1  ;;  %v15267_v49 = vld [vmem:[%s16272_s25 + $0x8] sm:$0xff] }
0x2b9f   : > { %v9426_v53 = vpop.f32.mrb[25].mxu1 }
0x2ba0   : > { %v10583_v3 = vpack.i.bf16 %v9536_v36, %v9424_v19  ;;  %v9427_v2 = vadd.f32 %v9426_v53, %v9425_v47  ;;  %10582 = vxpose.xlu1.b32.cont [7/16] (narrow) %v10581_v27, 8  ;;  %v9428_v1 = vpop.f32.mrb[26].mxu1 }
0x2ba1   : > { %v9429_v63 = vpop.f32.mrb[27].mxu1 }
0x2ba2   : > { %v9430_v45 = vadd.f32 %v9429_v63, %v9428_v1  ;;  %v9537_v30 = vpop.f32.mrb[28].mxu0  ;;  %v10668_v1 = vld [vmem:[%s15838_s17] sm:$0xff]  }
0x2ba3   : > { %v9538_v56 = vpop.f32.mrb[29].mxu0 }
0x2ba4   : > { %v9539_v12 = vadd.f32 %v9538_v56, %v9537_v30  ;;  %10584 = vxpose.xlu1.b32.cont [8/16] (narrow) %v10583_v3, 8  ;;  %v9540_v0 = vpop.f32.mrb[30].mxu0  ;;  %v17027_v30 = vld [vmem:[#allocation114_spill] sm:$0xff] }
0x2ba5   : > { %v9541_v17 = vpop.f32.mrb[31].mxu0 }
0x2ba6   : > { %v10585_v34 = vpack.i.bf16 %v9539_v12, %v9427_v2  ;;  %v9542_v7 = vadd.f32 %v9541_v17, %v9540_v0  ;;  %v9431_v16 = vpop.f32.mrb[28].mxu1 }
0x2ba7   : > { %v9432_v55 = vpop.f32.mrb[29].mxu1 }
0x2ba8   : > { %v10587_v43 = vpack.i.bf16 %v9542_v7, %v9430_v45  ;;  %v9433_v18 = vadd.f32 %v9432_v55, %v9431_v16  ;;  %10586 = vxpose.xlu1.b32.cont [9/16] (narrow) %v10585_v34, 8  ;;  %v9434_v58 = vpop.f32.mrb[30].mxu1  ;;  %v17028_v7 = vld [vmem:[#allocation109_spill] sm:$0xff] }
0x2ba9   : > { %v9435_v26 = vpop.f32.mrb[31].mxu1 }
0x2baa   : > { %v9436_v23 = vadd.f32 %v9435_v26, %v9434_v58  ;;  %v9543_v29 = vpop.f32.mrb[32].mxu0 }
0x2bab   : > { %v9544_v50 = vpop.f32.mrb[33].mxu0 }
0x2bac   : > { %v9545_v57 = vadd.f32 %v9544_v50, %v9543_v29  ;;  %10588 = vxpose.xlu1.b32.cont [10/16] (narrow) %v10587_v43, 8  ;;  %v9546_v51 = vpop.f32.mrb[34].mxu0 }
0x2bad   : > { %v9547_v42 = vpop.f32.mrb[35].mxu0  ;;  %10643 = vset.pattern.permute.xlu0 %v11612_v33 }
0x2bae   : > { %v10589_v41 = vpack.i.bf16 %v9545_v57, %v9433_v18  ;;  %v9548_v35 = vadd.f32 %v9547_v42, %v9546_v51  ;;  %v9437_v52 = vpop.f32.mrb[32].mxu1  ;;  %8152 = vperm.xlu0 %10643, %v15261_v5   ;;  %v17030_v18 = vld [vmem:[#allocation120_spill] sm:$0xff]  ;;  %v10671_v57 = vld [vmem:[%s15839_s18 + $0x4] ss:$8 sps:$4 sm:$0xff]  }
0x2baf   : > { %v9438_v9 = vpop.f32.mrb[33].mxu1  ;;  %8622 = vmatprep.mubr.bf16.mxu0 %v10671_v57 }
0x2bb0   : > { %v10591_v60 = vpack.i.bf16 %v9548_v35, %v9436_v23  ;;  %v9439_v6 = vadd.f32 %v9438_v9, %v9437_v52  ;;  %10590 = vxpose.xlu1.b32.cont [11/16] (narrow) %v10589_v41, 8  ;;  %v9440_v38 = vpop.f32.mrb[34].mxu1  ;;  %v17032_v23 = vld [vmem:[#allocation111_spill] sm:$0xff]  ;;  %v10673_v41 = vld [vmem:[%s15826_s5] sm:$0xff]  }
0x2bb1   : > { %v9441_v4 = vpop.f32.mrb[35].mxu1  ;;  %v10674_v35 = vld [vmem:[%s15826_s5 + $0x48] sm:$0xff]  }
0x2bb2   : > { %v9442_v46 = vadd.f32 %v9441_v4, %v9440_v38  ;;  %v9549_v21 = vpop.f32.mrb[36].mxu0  ;;  %v10675_v9 = vld [vmem:[%s15826_s5 + $0x8] sm:$0xff]   ;;  %v10677_v4 = vld [vmem:[%s15826_s5 + $0x10] sm:$0xff]  }
0x2bb3   : > { %v9550_v8 = vpop.f32.mrb[37].mxu0 }
0x2bb4   : > { %v9551_v59 = vadd.f32 %v9550_v8, %v9549_v21  ;;  %10592 = vxpose.xlu1.b32.cont [12/16] (narrow) %v10591_v60, 8  ;;  %v9552_v14 = vpop.f32.mrb[38].mxu0  ;;  %v10678_v21 = vld [vmem:[%s15826_s5 + $0x58] sm:$0xff]  }
0x2bb5   : > { %v9553_v13 = vpop.f32.mrb[39].mxu0 }
0x2bb6   : > { %v10593_v44 = vpack.i.bf16 %v9551_v59, %v9439_v6  ;;  %v9554_v32 = vadd.f32 %v9553_v13, %v9552_v14  ;;  %v9443_v28 = vpop.f32.mrb[36].mxu1  ;;  %v10676_v6 = vld [vmem:[%s15826_s5 + $0x50] sm:$0xff]   ;;  %v10679_v59 = vld [vmem:[%s15826_s5 + $0x18] sm:$0xff]   ;;  %v10680_v13 = vld [vmem:[%s15826_s5 + $0x60] sm:$0xff]  }
0x2bb7   : > { %v9444_v62 = vpop.f32.mrb[37].mxu1 }
0x2bb8   : > { %v10595_v40 = vpack.i.bf16 %v9554_v32, %v9442_v46  ;;  %v9445_v24 = vadd.f32 %v9444_v62, %v9443_v28  ;;  %10594 = vxpose.xlu1.b32.cont [13/16] (narrow) %v10593_v44, 8  ;;  %v9446_v54 = vpop.f32.mrb[38].mxu1  ;;  %v10681_v32 = vld [vmem:[%s15826_s5 + $0x20] sm:$0xff]   ;;  %v10682_v62 = vld [vmem:[%s15826_s5 + $0x68] sm:$0xff]  }
0x2bb9   : > { %v9447_v31 = vpop.f32.mrb[39].mxu1 }
0x2bba   : > { %v9448_v37 = vadd.f32 %v9447_v31, %v9446_v54  ;;  %v9555_v61 = vpop.f32.mrb[40].mxu0  ;;  %v10684_v31 = vld [vmem:[%s15826_s5 + $0x70] sm:$0xff]  }
0x2bbb   : > { %v9556_v15 = vpop.f32.mrb[41].mxu0 }
0x2bbc   : > { %v9557_v22 = vadd.f32 %v9556_v15, %v9555_v61  ;;  %10596 = vxpose.xlu1.b32.cont [14/16] (narrow) %v10595_v40, 8  ;;  %v9558_v39 = vpop.f32.mrb[42].mxu0 }
0x2bbd   : > { %v9559_v48 = vpop.f32.mrb[43].mxu0 }
0x2bbe   : > { %v10597_v19 = vpack.i.bf16 %v9557_v22, %v9445_v24  ;;  %v9560_v25 = vadd.f32 %v9559_v48, %v9558_v39  ;;  %v10683_v24 = vld [vmem:[%s15826_s5 + $0x28] sm:$0xff]  }
0x2bc0   : > { %v10599_v20 = vpack.i.bf16 %v9560_v25, %v9448_v37  ;;  %10598 = vxpose.xlu1.b32.cont [15/16] (narrow) %v10597_v19, 8 }
0x2bc4   : > { %10600 = vxpose.xlu1.b32.end [16/16] (narrow) %v10599_v20, 8 }
0x2bc8   : > { %v10638_v10 = vpop.trf.xlu0 }
0x2bc9   : > { %v10642_v11 = vunpack.i.h.bf16 %v10638_v10  ;;  %v10639_v27 = vunpack.i.l.bf16 %v10638_v10 }
0x2bcb   : > { %v8094_v3 = vpack.c.bf16 %v10642_v11, %v10639_v27 }
0x2be2   : > { %10644 = vset.pattern.permute.xlu1 %v11612_v33  ;;  %v10672_v33 = vld [vmem:[%s15826_s5 + $0x40] sm:$0xff]  }
0x2be3   : > { %8156 = vperm.xlu1 %10644, %v15267_v49  }
0x2c08   : > { %v10601_v36 = vpop.trf.xlu1 }
0x2c09   : > { %v10605_v47 = vunpack.i.h.bf16 %v10601_v36  ;;  %v10602_v53 = vunpack.i.l.bf16 %v10601_v36 }
0x2c0b   : > { %v8095_v2 = vpack.c.bf16 %v10605_v47, %v10602_v53 }
0x2c0d   : > { %8104 = vmatprep.subr.bf16.mxu1 %v8095_v2  ;;  %v15499_v2 = vld [vmem:[%s15825_s4] sm:$0xff] }
0x2c0e   : > { %8105 = vmatpush1.bf16.msra.mxu1 %v8094_v3 }
0x2c0f   : > { %9561 = vmatprep.subr.bf16.mxu1 %v10672_v33 }
0x2c11   : > { %9039 = vmatmul.mubr.msk.bf16.vlgmr.msra.gmra.mrb[40].mxu1 %vm1164_vm13, %v10668_v1  ;;  %v15504_v1 = vld [vmem:[%s15825_s4 + $0x8] sm:$0xff] }
0x2c12   : > { %9562 = vmatpush3.bf16.msra.mxu1 %v10673_v41 }
0x2c13   : > { %9563 = vmatprep.subr.bf16.mxu1 %v10674_v35 }
0x2c16   : > { %9564 = vmatpush3.bf16.msra.mxu1 %v10675_v9 }
0x2c17   : > { %9565 = vmatprep.subr.bf16.mxu1 %v10676_v6 }
0x2c1a   : > { %9566 = vmatpush3.bf16.msra.mxu1 %v10677_v4 }
0x2c1b   : > { %9567 = vmatprep.subr.bf16.mxu1 %v10678_v21 }
0x2c1e   : > { %9568 = vmatpush3.bf16.msra.mxu1 %v10679_v59  ;;  %v17036_v59 = vld [vmem:[#allocation11_spill] sm:$0xff] }
0x2c1f   : > { %9569 = vmatprep.subr.bf16.mxu1 %v10680_v13  ;;  %v8236_v13 = vrot.slane %v15504_v1, %v17036_v59 }
0x2c22   : > { %9570 = vmatpush3.bf16.msra.mxu1 %v10681_v32 }
0x2c23   : > { %9571 = vmatprep.subr.bf16.mxu1 %v10682_v62 }
0x2c26   : > { %9572 = vmatpush3.bf16.msra.mxu1 %v10683_v24 }
0x2c27   : > { %9573 = vmatprep.subr.bf16.mxu1 %v10684_v31 }
0x2c2d   : > { %v8153_v45 = vpop.permute.xlu0 %8152 }
0x2c62   : > { %v8157_v17 = vpop.permute.xlu1 %8156 }
0x2ce4   : > { %v8138_v63 = vpop.f32.mrb[40].mxu1 }
0x2ce5   : > { %v8147_v56 = vadd.f32 %v8138_v63, %v17027_v30  ;;  %v8140_v12 = vpop.f32.mrb[41].mxu1  ;;  %v17033_v63 = vld [vmem:[#allocation5_spill] sm:$0xff] }
0x2ce6   : > { %v8142_v0 = vpop.f32.mrb[42].mxu1  ;;  %v8148_v58 = vadd.f32 %v8140_v12, %v17030_v18  ;;  %v17034_v12 = vld [vmem:[#allocation4_spill] sm:$0xff]  ;;  %v17035_v18 = vld [vmem:[#allocation6_spill] sm:$0xff] }
0x2ce7   : > { %v15275_v34 = vadd.f32 %v8153_v45, %v8147_v56  ;;  %v8149_v16 = vadd.f32 %v8142_v0, %v17028_v7  ;;  %v8144_v55 = vpop.f32.mrb[43].mxu1  ;;  %v8188_v56 = vrot.slane %v15504_v1, %v17033_v63  ;;  %v8208_v21 = vrot.slane %v15499_v2, %v17035_v18 }
0x2ce8   : > { %v15311_v26 = vadd.f32 %v8153_v45, %v8148_v58  ;;  %v8150_v29 = vadd.f32 %v8144_v55, %v17032_v23  ;;  %v8184_v45 = vrot.slane %v15499_v2, %v17033_v63  ;;  %v8212_v58 = vrot.slane %v15504_v1, %v17035_v18 }
0x2ce9   : > { %v15278_v43 = vadd.f32 %v8157_v17, %v8149_v16  ;;  %8169 = vrot.lane.b32.xlu1 %v15275_v34, %s16661_s3  ;;  %vm8249_vm14 = vcmp.lt.s32.totalorder %v17034_v12, 14  ;;  %vm8334_vm15 = vcmp.lt.s32.totalorder %v17034_v12, 126  ;;  %vm8431_vm0 = vcmp.lt.s32.totalorder %v17034_v12, 110 }
0x2cea   : > { %v15336_v50 = vadd.f32 %v8157_v17, %v8150_v29  ;;  %vm8456_vm1 = vcmp.lt.s32.totalorder %v17034_v12, 97  ;;  %vm8481_vm2 = vcmp.lt.s32.totalorder %v17034_v12, 96 }
0x2ceb   : > { %8195 = vrot.lane.b32.xlu0 %v15278_v43, %s16663_s1 }
0x2ced   : > { %8193 = vrot.lane.b32.xlu1 %v15275_v34, %s16663_s1 }
0x2cef   : > { %8219 = vrot.lane.b32.xlu0 %v15278_v43, %s16683_s24 }
0x2cf1   : > { %8217 = vrot.lane.b32.xlu1 %v15275_v34, %s16683_s24 }
0x2cf3   : > { %8243 = vrot.lane.b32.xlu0 %v15278_v43, %s17029_s23 }
0x2cf5   : > { %8241 = vrot.lane.b32.xlu1 %v15275_v34, %s17029_s23 }
0x2cf7   : > { %8268 = vrot.lane.b32.xlu0 %v15278_v43, %s16662_s26 }
0x2cf9   : > { %8266 = vrot.lane.b32.xlu1 %v15275_v34, %s16662_s26 }
0x2cfb   : > { %8304 = vrot.lane.b32.xlu0 %v15278_v43, %s16664_s22 }
0x2cfd   : > { %8302 = vrot.lane.b32.xlu1 %v15275_v34, %s16664_s22 }
0x2cff   : > { %8328 = vrot.lane.b32.xlu0 %v15278_v43, %s11613_s6 }
0x2d01   : > { %8326 = vrot.lane.b32.xlu1 %v15275_v34, %s11613_s6 }
0x2d03   : > { %8353 = vrot.lane.b32.xlu0 %v15278_v43, %s16665_s2 }
0x2d05   : > { %8351 = vrot.lane.b32.xlu1 %v15275_v34, %s16665_s2 }
0x2d07   : > { %8377 = vrot.lane.b32.xlu0 %v15278_v43, %s16306_s29 }
0x2d09   : > { %8173 = vrot.lane.b32.xlu1 %v15311_v26, %s16661_s3 }
0x2d0b   : > { %8401 = vrot.lane.b32.xlu0 %v15278_v43, %s16307_s21 }
0x2d0d   : > { %8197 = vrot.lane.b32.xlu1 %v15311_v26, %s16663_s1 }
0x2d0f   : > { %8425 = vrot.lane.b32.xlu0 %v15278_v43, %s11614_s27 }
0x2d11   : > { %8221 = vrot.lane.b32.xlu1 %v15311_v26, %s16683_s24 }
0x2d13   : > { %8450 = vrot.lane.b32.xlu0 %v15278_v43, %s17031_s28 }
0x2d15   : > { %8245 = vrot.lane.b32.xlu1 %v15311_v26, %s17029_s23 }
0x2d17   : > { %8475 = vrot.lane.b32.xlu0 %v15278_v43, %s11615_s7 }
0x2d19   : > { %8270 = vrot.lane.b32.xlu1 %v15311_v26, %s16662_s26 }
0x2d1b   : > { %8500 = vrot.lane.b32.xlu0 %v15278_v43, %s11616_s8 }
0x2d1d   : > { %8306 = vrot.lane.b32.xlu1 %v15311_v26, %s16664_s22 }
0x2d1f   : > { %8175 = vrot.lane.b32.xlu0 %v15336_v50, %s16661_s3 }
0x2d21   : > { %8330 = vrot.lane.b32.xlu1 %v15311_v26, %s11613_s6 }
0x2d23   : > { %8199 = vrot.lane.b32.xlu0 %v15336_v50, %s16663_s1  ;;  %s11617_s1 = smov 94  }
0x2d25   : > { %8171 = vrot.lane.b32.xlu1 %v15278_v43, %s16661_s3 }
0x2d27   : > { %8223 = vrot.lane.b32.xlu0 %v15336_v50, %s16683_s24 }
0x2d29   : > { %8355 = vrot.lane.b32.xlu1 %v15311_v26, %s16665_s2 }
0x2d2b   : > { %8247 = vrot.lane.b32.xlu0 %v15336_v50, %s17029_s23 }
0x2d2d   : > { %8375 = vrot.lane.b32.xlu1 %v15275_v34, %s16306_s29 }
0x2d2f   : > { %8272 = vrot.lane.b32.xlu0 %v15336_v50, %s16662_s26 }
0x2d31   : > { %8379 = vrot.lane.b32.xlu1 %v15311_v26, %s16306_s29 }
0x2d33   : > { %8525 = vrot.lane.b32.xlu0 %v15278_v43, %s11617_s1 }
0x2d35   : > { %8399 = vrot.lane.b32.xlu1 %v15275_v34, %s16307_s21 }
0x2d37   : > { %8308 = vrot.lane.b32.xlu0 %v15336_v50, %s16664_s22 }
0x2d39   : > { %8403 = vrot.lane.b32.xlu1 %v15311_v26, %s16307_s21 }
0x2d3b   : > { %8332 = vrot.lane.b32.xlu0 %v15336_v50, %s11613_s6 }
0x2d3d   : > { %8423 = vrot.lane.b32.xlu1 %v15275_v34, %s11614_s27 }
0x2d3f   : > { %8357 = vrot.lane.b32.xlu0 %v15336_v50, %s16665_s2 }
0x2d41   : > { %8427 = vrot.lane.b32.xlu1 %v15311_v26, %s11614_s27 }
0x2d43   : > { %8381 = vrot.lane.b32.xlu0 %v15336_v50, %s16306_s29 }
0x2d45   : > { %8448 = vrot.lane.b32.xlu1 %v15275_v34, %s17031_s28 }
0x2d47   : > { %8405 = vrot.lane.b32.xlu0 %v15336_v50, %s16307_s21 }
0x2d49   : > { %8452 = vrot.lane.b32.xlu1 %v15311_v26, %s17031_s28 }
0x2d4b   : > { %8429 = vrot.lane.b32.xlu0 %v15336_v50, %s11614_s27 }
0x2d4d   : > { %8473 = vrot.lane.b32.xlu1 %v15275_v34, %s11615_s7 }
0x2d4f   : > { %8454 = vrot.lane.b32.xlu0 %v15336_v50, %s17031_s28 }
0x2d51   : > { %8477 = vrot.lane.b32.xlu1 %v15311_v26, %s11615_s7 }
0x2d53   : > { %8479 = vrot.lane.b32.xlu0 %v15336_v50, %s11615_s7 }
0x2d55   : > { %8498 = vrot.lane.b32.xlu1 %v15275_v34, %s11616_s8 }
0x2d57   : > { %8504 = vrot.lane.b32.xlu0 %v15336_v50, %s11616_s8 }
0x2d59   : > { %8502 = vrot.lane.b32.xlu1 %v15311_v26, %s11616_s8 }
0x2d5b   : > { %v15403_v51 = vpop.permute.xlu1 %8169  ;;  %8529 = vrot.lane.b32.xlu0 %v15336_v50, %s11617_s1 }
0x2d5d   : > { %v15407_v42 = vpop.permute.xlu0 %8195  ;;  %8523 = vrot.lane.b32.xlu1 %v15275_v34, %s11617_s1 }
0x2d5f   : > { %v15420_v52 = vpop.permute.xlu1 %8193 }
0x2d61   : > { %v15425_v60 = vpop.permute.xlu0 %8219  ;;  %8527 = vrot.lane.b32.xlu1 %v15311_v26, %s11617_s1  ;;  %s17042_s1 = sshll.u32 %s17044_s30, 4 }
0x2d62   : > { %s622_s2 = scalar_lea.vmem %s15840_s19, %s17042_s1 }
0x2d63   : > { %v15432_v38 = vpop.permute.xlu1 %8217 }
0x2d65   : > { %v15437_v46 = vpop.permute.xlu0 %8243 }
0x2d67   : > { %v15442_v8 = vpop.permute.xlu1 %8241 }
0x2d69   : > { %v15447_v14 = vpop.permute.xlu0 %8268 }
0x2d6b   : > { %v15452_v44 = vpop.permute.xlu1 %8266 }
0x2d6d   : > { %v15457_v28 = vpop.permute.xlu0 %8304 }
0x2d6f   : > { %v15462_v40 = vpop.permute.xlu1 %8302 }
0x2d71   : > { %v15467_v54 = vpop.permute.xlu0 %8328 }
0x2d73   : > { %v15472_v37 = vpop.permute.xlu1 %8326 }
0x2d75   : > { %v15474_v61 = vpop.permute.xlu0 %8353 }
0x2d77   : > { %v15476_v15 = vpop.permute.xlu1 %8351 }
0x2d79   : > { %v15478_v22 = vpop.permute.xlu0 %8377 }
0x2d7b   : > { %v8174_v39 = vpop.permute.xlu1 %8173 }
0x2d7c   : > { %v8179_v0 = vsel %vm868_vm3, %v8174_v39, %v15403_v51  ;;  %v8177_v17 = vsel %vm868_vm3, %v15403_v51, %v8174_v39 }
0x2d7d   : > { %v15480_v48 = vpop.permute.xlu0 %8401  ;;  %v8189_v55 = vmul.f32 %v8184_v45, %v8179_v0  ;;  %v8190_v29 = vmul.f32 %v8188_v56, %v8177_v17 }
0x2d7f   : > { %v8198_v19 = vpop.permute.xlu1 %8197 }
0x2d80   : > { %v8201_v57 = vsel %vm885_vm4, %v15420_v52, %v8198_v19  ;;  %v8203_v62 = vsel %vm885_vm4, %v8198_v19, %v15420_v52 }
0x2d81   : > { %v15482_v25 = vpop.permute.xlu0 %8425  ;;  %v8214_v24 = vmul.f32 %v8212_v58, %v8201_v57  ;;  %v8213_v19 = vmul.f32 %v8208_v21, %v8203_v62 }
0x2d83   : > { %v8222_v20 = vpop.permute.xlu1 %8221 }
0x2d85   : > { %v15484_v10 = vpop.permute.xlu0 %8450 }
0x2d87   : > { %v15486_v11 = vpop.permute.xlu1 %8245 }
0x2d88   : > { %v8250_v57 = vsel %vm8249_vm14, %v15442_v8, %v15486_v11 }
0x2d89   : > { %v15488_v27 = vpop.permute.xlu0 %8475 }
0x2d8b   : > { %v15490_v36 = vpop.permute.xlu1 %8270 }
0x2d8d   : > { %v15492_v47 = vpop.permute.xlu0 %8500 }
0x2d8f   : > { %v15494_v53 = vpop.permute.xlu1 %8306 }
0x2d91   : > { %v8176_v3 = vpop.permute.xlu0 %8175 }
0x2d93   : > { %v15508_v30 = vpop.permute.xlu1 %8330 }
0x2d95   : > { %v8200_v7 = vpop.permute.xlu0 %8199 }
0x2d96   : > { %v8202_v16 = vsel %vm885_vm4, %v15407_v42, %v8200_v7  ;;  %v8204_v41 = vsel %vm885_vm4, %v8200_v7, %v15407_v42  ;;  %v8232_v7 = vrot.slane %v15499_v2, %v17036_v59  ;;  %vm8531_vm4 = vcmp.lt.s32.totalorder %v17034_v12, 94 }
0x2d97   : > { %v8172_v23 = vpop.permute.xlu1 %8171  ;;  %v8216_v35 = vmul.f32 %v8212_v58, %v8202_v16 }
0x2d98   : > { %v8178_v33 = vsel %vm868_vm3, %v8172_v23, %v8176_v3  ;;  %v8180_v51 = vsel %vm868_vm3, %v8176_v3, %v8172_v23  ;;  %v8225_v3 = vsel %vm902_vm5, %v15432_v38, %v8222_v20  ;;  %v17037_v23 = vld [vmem:[#allocation12_spill] sm:$0xff]  ;;  %vm8506_vm3 = vcmp.lt.s32.totalorder %v17034_v12, 95  ;;  %v10686_v12 = vld [vmem:[%s15826_s5 + $0x78] sm:$0xff]  }
0x2d99   : > { %v8191_v9 = vmul.f32 %v8184_v45, %v8180_v51  ;;  %v8192_v6 = vmul.f32 %v8188_v56, %v8178_v33  ;;  %v8224_v4 = vpop.permute.xlu0 %8223  ;;  %v8215_v45 = vmul.f32 %v8208_v21, %v8204_v41  ;;  %v8551_v52 = vpack.c.bf16 %v8216_v35, %v8214_v24 }
0x2d9a   : > { %v8226_v32 = vsel %vm902_vm5, %v15425_v60, %v8224_v4  ;;  %v8228_v56 = vsel %vm902_vm5, %v8224_v4, %v15425_v60  ;;  %v8238_v58 = vmul.f32 %v8236_v13, %v8225_v3  ;;  %v8261_v60 = vrot.slane %v15504_v1, %v17037_v23 }
0x2d9b   : > { %v8548_v42 = vpack.c.bf16 %v8191_v9, %v8189_v55  ;;  %v15543_v31 = vpop.permute.xlu1 %8355  ;;  %v8549_v39 = vpack.c.bf16 %v8192_v6, %v8190_v29  ;;  %v8240_v0 = vmul.f32 %v8236_v13, %v8226_v32  ;;  %v8227_v55 = vsel %vm902_vm5, %v8222_v20, %v15432_v38  ;;  %v17038_v32 = vld [vmem:[#allocation13_spill] sm:$0xff] }
0x2d9c   : > { %v8550_v33 = vpack.c.bf16 %v8215_v45, %v8213_v19  ;;  %v8239_v51 = vmul.f32 %v8232_v7, %v8228_v56  ;;  %v8237_v9 = vmul.f32 %v8232_v7, %v8227_v55  ;;  %v8257_v6 = vrot.slane %v15499_v2, %v17037_v23  ;;  %v17039_v7 = vld [vmem:[#allocation15_spill] sm:$0xff] }
0x2d9d   : > { %8590 = vmatprep.subr.bf16.mxu0 %v8549_v39  ;;  %v8248_v17 = vpop.permute.xlu0 %8247  ;;  %v8553_v20 = vpack.c.bf16 %v8240_v0, %v8238_v58  ;;  %v8252_v21 = vsel %vm8249_vm14, %v15486_v11, %v15442_v8  ;;  %v8263_v13 = vmul.f32 %v8261_v60, %v8250_v57  ;;  %v8274_v24 = vsel %vm919_vm6, %v15452_v44, %v15490_v36 }
0x2d9e   : > { %v8251_v16 = vsel %vm8249_vm14, %v15437_v46, %v8248_v17  ;;  %8591 = vmatpush1.bf16.msra.mxu0 %v8548_v42  ;;  %v8253_v41 = vsel %vm8249_vm14, %v8248_v17, %v15437_v46  ;;  %v8285_v46 = vrot.slane %v15504_v1, %v17038_v32  ;;  %v8552_v42 = vpack.c.bf16 %v8239_v51, %v8237_v9 }
0x2d9f   : > { %v15562_v29 = vpop.permute.xlu1 %8375  ;;  %8592 = vmatprep.subr.bf16.mxu0 %v8551_v52  ;;  %v8265_v35 = vmul.f32 %v8261_v60, %v8251_v16  ;;  %v8264_v39 = vmul.f32 %v8257_v6, %v8253_v41  ;;  %v8262_v56 = vmul.f32 %v8257_v6, %v8252_v21  ;;  %v8281_v0 = vrot.slane %v15499_v2, %v17038_v32 }
0x2da0   : > { %v8276_v17 = vsel %vm919_vm6, %v15490_v36, %v15452_v44  ;;  %v8287_v52 = vmul.f32 %v8285_v46, %v8274_v24  ;;  %v8293_v44 = vrot.slane %v15499_v2, %v17039_v7  ;;  %v17040_v36 = vld [vmem:[#allocation23_spill] sm:$0xff]  ;;  %vm8812_vm5 = vcmask 523264  }
0x2da1   : > { %v8273_v38 = vpop.permute.xlu0 %8272  ;;  %v8555_v11 = vpack.c.bf16 %v8265_v35, %v8263_v13  ;;  %v8554_v16 = vpack.c.bf16 %v8264_v39, %v8262_v56  ;;  %v8321_v41 = vrot.slane %v15504_v1, %v17040_v36 }
0x2da2   : > { %v8275_v4 = vsel %vm919_vm6, %v15447_v14, %v8273_v38  ;;  %8593 = vmatpush1.bf16.msra.mxu0 %v8550_v33  ;;  %v8277_v3 = vsel %vm919_vm6, %v8273_v38, %v15447_v14  ;;  %v8297_v14 = vrot.slane %v15504_v1, %v17039_v7  ;;  %v8286_v33 = vmul.f32 %v8281_v0, %v8276_v17 }
0x2da3   : > { %v15582_v62 = vpop.permute.xlu1 %8379  ;;  %8594 = vmatprep.subr.bf16.mxu0 %v8553_v20  ;;  %v8289_v45 = vmul.f32 %v8285_v46, %v8275_v4  ;;  %v8288_v55 = vmul.f32 %v8281_v0, %v8277_v3  ;;  %v8300_v9 = vmul.f32 %v8293_v44, %v15278_v43  ;;  %v8298_v24 = vmul.f32 %v8293_v44, %v15275_v34  ;;  %v15644_v34 = vld [vmem:[%s15825_s4 + $0x18] sm:$0xff] }
0x2da4   : > { %v8301_v57 = vmul.f32 %v8297_v14, %v15336_v50  ;;  %v8299_v38 = vmul.f32 %v8297_v14, %v15311_v26  ;;  %v8312_v50 = vsel %vm946_vm7, %v15494_v53, %v15462_v40  ;;  %v8317_v26 = vrot.slane %v15499_v2, %v17040_v36 }
0x2da5   : > { %v15591_v8 = vpop.permute.xlu0 %8525  ;;  %v8557_v60 = vpack.c.bf16 %v8289_v45, %v8287_v52  ;;  %v8556_v20 = vpack.c.bf16 %v8288_v55, %v8286_v33  ;;  %v8310_v43 = vsel %vm946_vm7, %v15462_v40, %v15494_v53  ;;  %v8337_v45 = vsel %vm8334_vm15, %v15508_v30, %v15472_v37 }
0x2da6   : > { %8595 = vmatpush1.bf16.msra.mxu0 %v8552_v42  ;;  %v8559_v13 = vpack.c.bf16 %v8301_v57, %v8299_v38  ;;  %v8323_v42 = vmul.f32 %v8321_v41, %v8312_v50  ;;  %v8558_v56 = vpack.c.bf16 %v8300_v9, %v8298_v24  ;;  %v8322_v17 = vmul.f32 %v8317_v26, %v8310_v43 }
0x2da7   : > { %v15599_v19 = vpop.permute.xlu1 %8399  ;;  %8596 = vmatprep.subr.bf16.mxu0 %v8555_v11 }
0x2da9   : > { %v8309_v58 = vpop.permute.xlu0 %8308 }
0x2daa   : > { %v8313_v51 = vsel %vm946_vm7, %v8309_v58, %v15457_v28  ;;  %8597 = vmatpush1.bf16.msra.mxu0 %v8554_v16  ;;  %v8311_v6 = vsel %vm946_vm7, %v15457_v28, %v8309_v58  ;;  %v17041_v28 = vld [vmem:[#allocation24_spill] sm:$0xff]  ;;  %v8335_v16 = vsel %vm8334_vm15, %v15472_v37, %v15508_v30  ;;  %v8370_v58 = vrot.slane %v15644_v34, %v17033_v63 }
0x2dab   : > { %v15611_v35 = vpop.permute.xlu1 %8403  ;;  %8598 = vmatprep.subr.bf16.mxu0 %v8557_v60  ;;  %v8325_v4 = vmul.f32 %v8321_v41, %v8313_v51  ;;  %v8346_v39 = vrot.slane %v15504_v1, %v17041_v28  ;;  %v8324_v11 = vmul.f32 %v8317_v26, %v8311_v6  ;;  %v8342_v52 = vrot.slane %v15499_v2, %v17041_v28 }
0x2dac   : > { %v8361_v60 = vsel %vm963_vm8, %v15543_v31, %v15476_v15 }
0x2dad   : > { %v8333_v21 = vpop.permute.xlu0 %8332  ;;  %v8561_v0 = vpack.c.bf16 %v8325_v4, %v8323_v42  ;;  %v8348_v55 = vmul.f32 %v8346_v39, %v8337_v45  ;;  %v8560_v57 = vpack.c.bf16 %v8324_v11, %v8322_v17  ;;  %v8347_v41 = vmul.f32 %v8342_v52, %v8335_v16 }
0x2dae   : > { %v8338_v46 = vsel %vm8334_vm15, %v8333_v21, %v15467_v54  ;;  %8599 = vmatpush1.bf16.msra.mxu0 %v8556_v20  ;;  %v8336_v40 = vsel %vm8334_vm15, %v15467_v54, %v8333_v21  ;;  %v15661_v54 = vld [vmem:[%s15825_s4 + $0x10] sm:$0xff]  ;;  %v8359_v20 = vsel %vm963_vm8, %v15476_v15, %v15543_v31  ;;  %v8372_v9 = vmul.f32 %v8370_v58, %v8361_v60 }
0x2daf   : > { %v15635_v3 = vpop.permute.xlu1 %8423  ;;  %8600 = vmatprep.subr.bf16.mxu0 %v8559_v13  ;;  %v8350_v53 = vmul.f32 %v8346_v39, %v8338_v46  ;;  %v8349_v33 = vmul.f32 %v8342_v52, %v8336_v40  ;;  %v8366_v38 = vrot.slane %v15661_v54, %v17033_v63  ;;  %v8385_v63 = vsel %vm980_vm9, %v15582_v62, %v15562_v29 }
0x2db0   : > { %v8390_v24 = vrot.slane %v15661_v54, %v17035_v18  ;;  %v8383_v42 = vsel %vm980_vm9, %v15562_v29, %v15582_v62  ;;  %v8407_v52 = vsel %vm997_vm10, %v15599_v19, %v15611_v35 }
0x2db1   : > { %v8358_v1 = vpop.permute.xlu0 %8357  ;;  %v8563_v44 = vpack.c.bf16 %v8350_v53, %v8348_v55  ;;  %v8562_v4 = vpack.c.bf16 %v8349_v33, %v8347_v41  ;;  %v8371_v46 = vmul.f32 %v8366_v38, %v8359_v20 }
0x2db2   : > { %v8362_v14 = vsel %vm963_vm8, %v8358_v1, %v15474_v61  ;;  %8601 = vmatpush1.bf16.msra.mxu0 %v8558_v56  ;;  %v8360_v37 = vsel %vm963_vm8, %v15474_v61, %v8358_v1  ;;  %v8394_v61 = vrot.slane %v15644_v34, %v17035_v18  ;;  %v8409_v18 = vsel %vm997_vm10, %v15611_v35, %v15599_v19 }
0x2db3   : > { %v15665_v2 = vpop.permute.xlu1 %8427  ;;  %8602 = vmatprep.subr.bf16.mxu0 %v8561_v0  ;;  %v8374_v30 = vmul.f32 %v8370_v58, %v8362_v14  ;;  %v8373_v21 = vmul.f32 %v8366_v38, %v8360_v37  ;;  %v8395_v1 = vmul.f32 %v8390_v24, %v8383_v42  ;;  %v8414_v0 = vrot.slane %v15661_v54, %v17036_v59 }
0x2db4   : > { %v8396_v39 = vmul.f32 %v8394_v61, %v8385_v63  ;;  %v8439_v37 = vrot.slane %v15661_v54, %v17037_v23  ;;  %v8464_v63 = vrot.slane %v15661_v54, %v17038_v32 }
0x2db5   : > { %v8382_v51 = vpop.permute.xlu0 %8381  ;;  %v8565_v31 = vpack.c.bf16 %v8374_v30, %v8372_v9  ;;  %v8564_v11 = vpack.c.bf16 %v8373_v21, %v8371_v46  ;;  %v8419_v33 = vmul.f32 %v8414_v0, %v8407_v52 }
0x2db6   : > { %v8386_v50 = vsel %vm980_vm9, %v8382_v51, %v15478_v22  ;;  %8603 = vmatpush1.bf16.msra.mxu0 %v8560_v57  ;;  %v8384_v13 = vsel %vm980_vm9, %v15478_v22, %v8382_v51  ;;  %v8418_v22 = vrot.slane %v15644_v34, %v17036_v59  ;;  %v8434_v59 = vsel %vm8431_vm0, %v15665_v2, %v15635_v3 }
0x2db7   : > { %v15685_v6 = vpop.permute.xlu1 %8448  ;;  %8604 = vmatprep.subr.bf16.mxu0 %v8563_v44  ;;  %v8398_v26 = vmul.f32 %v8394_v61, %v8386_v50  ;;  %v8397_v56 = vmul.f32 %v8390_v24, %v8384_v13  ;;  %v8432_v51 = vsel %vm8431_vm0, %v15635_v3, %v15665_v2 }
0x2db8   : > { %v8420_v14 = vmul.f32 %v8418_v22, %v8409_v18  ;;  %v8444_v61 = vmul.f32 %v8439_v37, %v8432_v51  ;;  %v8518_v18 = vrot.slane %v15644_v34, %v17040_v36 }
0x2db9   : > { %v8406_v15 = vpop.permute.xlu0 %8405  ;;  %v8567_v53 = vpack.c.bf16 %v8398_v26, %v8396_v39  ;;  %v8566_v55 = vpack.c.bf16 %v8397_v56, %v8395_v1  ;;  %v8489_v39 = vrot.slane %v15661_v54, %v17039_v7 }
0x2dba   : > { %v8410_v43 = vsel %vm997_vm10, %v8406_v15, %v15480_v48  ;;  %8605 = vmatpush1.bf16.msra.mxu0 %v8562_v4  ;;  %v8408_v40 = vsel %vm997_vm10, %v15480_v48, %v8406_v15  ;;  %v8443_v48 = vrot.slane %v15644_v34, %v17037_v23 }
0x2dbb   : > { %v8453_v45 = vpop.permute.xlu1 %8452  ;;  %8606 = vmatprep.subr.bf16.mxu0 %v8565_v31  ;;  %v8422_v29 = vmul.f32 %v8418_v22, %v8410_v43  ;;  %v8421_v58 = vmul.f32 %v8414_v0, %v8408_v40  ;;  %v8514_v0 = vrot.slane %v15661_v54, %v17040_v36 }
0x2dbc   : > { %v8445_v44 = vmul.f32 %v8443_v48, %v8434_v59  ;;  %v8459_v23 = vsel %vm8456_vm1, %v8453_v45, %v15685_v6  ;;  %v8457_v21 = vsel %vm8456_vm1, %v15685_v6, %v8453_v45 }
0x2dbd   : > { %v8430_v62 = vpop.permute.xlu0 %8429  ;;  %v8569_v57 = vpack.c.bf16 %v8422_v29, %v8420_v14  ;;  %v8568_v38 = vpack.c.bf16 %v8421_v58, %v8419_v33  ;;  %v8469_v42 = vmul.f32 %v8464_v63, %v8457_v21  ;;  %v8543_v58 = vrot.slane %v15644_v34, %v17041_v28 }
0x2dbe   : > { %v8435_v17 = vsel %vm8431_vm0, %v8430_v62, %v15482_v25  ;;  %8607 = vmatpush1.bf16.msra.mxu0 %v8564_v11  ;;  %v8433_v60 = vsel %vm8431_vm0, %v15482_v25, %v8430_v62  ;;  %v8468_v25 = vrot.slane %v15644_v34, %v17038_v32 }
0x2dbf   : > { %v8474_v16 = vpop.permute.xlu1 %8473  ;;  %8608 = vmatprep.subr.bf16.mxu0 %v8567_v53  ;;  %v8447_v19 = vmul.f32 %v8443_v48, %v8435_v17  ;;  %v8446_v50 = vmul.f32 %v8439_v37, %v8433_v60 }
0x2dc0   : > { %v8470_v13 = vmul.f32 %v8468_v25, %v8459_v23 }
0x2dc1   : > { %v8455_v35 = vpop.permute.xlu0 %8454  ;;  %v8571_v2 = vpack.c.bf16 %v8447_v19, %v8445_v44  ;;  %v8570_v15 = vpack.c.bf16 %v8446_v50, %v8444_v61 }
0x2dc2   : > { %v8460_v30 = vsel %vm8456_vm1, %v8455_v35, %v15484_v10  ;;  %8609 = vmatpush1.bf16.msra.mxu0 %v8566_v55  ;;  %v8458_v20 = vsel %vm8456_vm1, %v15484_v10, %v8455_v35  ;;  %v8493_v10 = vrot.slane %v15644_v34, %v17039_v7  ;;  %v8539_v55 = vrot.slane %v15661_v54, %v17041_v28 }
0x2dc3   : > { %v8478_v41 = vpop.permute.xlu1 %8477  ;;  %8610 = vmatprep.subr.bf16.mxu0 %v8569_v57  ;;  %v8472_v9 = vmul.f32 %v8468_v25, %v8460_v30  ;;  %v8471_v31 = vmul.f32 %v8464_v63, %v8458_v20  ;;  %v10685_v25 = vld [vmem:[%s15826_s5 + $0x30] sm:$0xff]  }
0x2dc4   : > { %v8484_v32 = vsel %vm8481_vm2, %v8478_v41, %v8474_v16  ;;  %v8482_v22 = vsel %vm8481_vm2, %v8474_v16, %v8478_v41  ;;  %9574 = vmatpush3.bf16.msra.mxu1 %v10685_v25  ;;  %v10687_v41 = vld [vmem:[%s15826_s5 + $0x38] sm:$0xff]  }
0x2dc5   : > { %v8480_v3 = vpop.permute.xlu0 %8479  ;;  %v8573_v6 = vpack.c.bf16 %v8472_v9, %v8470_v13  ;;  %v8495_v45 = vmul.f32 %v8493_v10, %v8484_v32  ;;  %v8494_v1 = vmul.f32 %v8489_v39, %v8482_v22  ;;  %9575 = vmatprep.subr.bf16.mxu1 %v10686_v12 }
0x2dc6   : > { %v8485_v4 = vsel %vm8481_vm2, %v8480_v3, %v15488_v27  ;;  %8611 = vmatpush1.bf16.msra.mxu0 %v8568_v38  ;;  %v8483_v46 = vsel %vm8481_vm2, %v15488_v27, %v8480_v3  ;;  %v8572_v27 = vpack.c.bf16 %v8471_v31, %v8469_v42  ;;  %v11618_v38 = vmov 22  }
0x2dc7   : > { %v8499_v26 = vpop.permute.xlu1 %8498  ;;  %8612 = vmatprep.subr.bf16.mxu0 %v8571_v2  ;;  %v8497_v24 = vmul.f32 %v8493_v10, %v8485_v4  ;;  %v8496_v56 = vmul.f32 %v8489_v39, %v8483_v46  ;;  %10646 = vset.pattern.permute.xlu0 %v11618_v38 }
0x2dc8   : > { %9576 = vmatpush3.bf16.msra.mxu1 %v10687_v41  ;;  %10645 = vset.pattern.permute.xlu1 %v11618_v38 }
0x2dc9   : > { %v8505_v43 = vpop.permute.xlu0 %8504  ;;  %v8575_v53 = vpack.c.bf16 %v8497_v24, %v8495_v45  ;;  %v8574_v16 = vpack.c.bf16 %v8496_v56, %v8494_v1  ;;  %8668 = vperm.xlu1 %10645, %v15261_v5   ;;  %8672 = vperm.xlu0 %10646, %v15267_v49  }
0x2dca   : > { %8613 = vmatpush1.bf16.msra.mxu0 %v8570_v15  ;;  %v8510_v40 = vsel %vm8506_vm3, %v8505_v43, %v15492_v47  ;;  %v8508_v17 = vsel %vm8506_vm3, %v15492_v47, %v8505_v43 }
0x2dcb   : > { %v8503_v11 = vpop.permute.xlu1 %8502  ;;  %8614 = vmatprep.subr.bf16.mxu0 %v8573_v6  ;;  %v8522_v52 = vmul.f32 %v8518_v18, %v8510_v40  ;;  %v8521_v60 = vmul.f32 %v8514_v0, %v8508_v17 }
0x2dcc   : > { %v8509_v29 = vsel %vm8506_vm3, %v8503_v11, %v8499_v26  ;;  %v8507_v7 = vsel %vm8506_vm3, %v8499_v26, %v8503_v11 }
0x2dcd   : > { %v8520_v62 = vmul.f32 %v8518_v18, %v8509_v29  ;;  %v8530_v14 = vpop.permute.xlu0 %8529  ;;  %v8519_v59 = vmul.f32 %v8514_v0, %v8507_v7 }
0x2dce   : > { %8615 = vmatpush1.bf16.msra.mxu0 %v8572_v27  ;;  %v8533_v47 = vsel %vm8531_vm4, %v15591_v8, %v8530_v14  ;;  %v8535_v19 = vsel %vm8531_vm4, %v8530_v14, %v15591_v8  ;;  %v10669_v8 = vld [vmem:[%s15839_s18] ss:$8 sps:$4 sm:$0xff]  }
0x2dcf   : > { %v8524_v48 = vpop.permute.xlu1 %8523  ;;  %8616 = vmatprep.subr.bf16.mxu0 %v8575_v53  ;;  %v8577_v36 = vpack.c.bf16 %v8522_v52, %v8520_v62  ;;  %v8576_v57 = vpack.c.bf16 %v8521_v60, %v8519_v59  ;;  %v8546_v34 = vmul.f32 %v8539_v55, %v8533_v47  ;;  %v8547_v33 = vmul.f32 %v8543_v58, %v8535_v19 }
0x2dd2   : > { %8617 = vmatpush1.bf16.msra.mxu0 %v8574_v16 }
0x2dd3   : > { %v8528_v35 = vpop.permute.xlu1 %8527  ;;  %8618 = vmatprep.subr.bf16.mxu0 %v8577_v36 }
0x2dd4   : > { %v8532_v54 = vsel %vm8531_vm4, %v8524_v48, %v8528_v35  ;;  %v8534_v28 = vsel %vm8531_vm4, %v8528_v35, %v8524_v48 }
0x2dd5   : > { %v8544_v37 = vmul.f32 %v8539_v55, %v8532_v54  ;;  %v8545_v30 = vmul.f32 %v8543_v58, %v8534_v28 }
0x2dd6   : > { %8619 = vmatpush1.bf16.msra.mxu0 %v8576_v57 }
0x2dd7   : > { %v8578_v51 = vpack.c.bf16 %v8546_v34, %v8544_v37  ;;  %v8579_v44 = vpack.c.bf16 %v8547_v33, %v8545_v30 }
0x2dd9   : > { %8620 = vmatprep.subr.bf16.mxu0 %v8579_v44 }
0x2dda   : > { %8621 = vmatpush1.bf16.msra.mxu0 %v8578_v51 }
0x2ddd   : > { %8623 = vmatmul.mubr.bf16.vlgmr.msra.gmra.mrb[44].mxu0 %v10669_v8 }
0x2e48   : > { %v8669_v4 = vpop.permute.xlu1 %8668  ;;  %v8673_v49 = vpop.permute.xlu0 %8672 }
0x2eb0   : > { %v8624_v23 = vpop.f32.mrb[44].mxu0 }
0x2eb1   : > { %v8626_v50 = vpop.f32.mrb[45].mxu0 }
0x2eb2   : > { %v8628_v20 = vpop.f32.mrb[46].mxu0 }
0x2eb3   : > { %v8633_v9 = vpack.c.bf16 %v8628_v20, %v8624_v23  ;;  %v8630_v3 = vpop.f32.mrb[47].mxu0 }
0x2eb4   : > { %v8634_v2 = vpack.c.bf16 %v8630_v3, %v8626_v50 }
0x2eb6   : > { %8803 = vmatprep.mubr.bf16.mxu1 %v8634_v2 }
0x2eb7   : > { %8804 = vmatmul.mubr.bf16.vlgmr.msra.gmra.mrb[44].mxu1 %v8633_v9 }
0x2f8a   : > { %v9577_v61 = vpop.f32.mrb[44].mxu1 }
0x2f8b   : > { %v9578_v63 = vpop.f32.mrb[45].mxu1 }
0x2f8c   : > { %v9579_v21 = vadd.f32 %v9578_v63, %v9577_v61  ;;  %v9580_v13 = vpop.f32.mrb[46].mxu1 }
0x2f8d   : > { %v9581_v5 = vpop.f32.mrb[47].mxu1 }
0x2f8e   : > { %v9582_v10 = vadd.f32 %v9581_v5, %v9580_v13  ;;  %v8806_v26 = vadd.f32 %v9579_v21, %v8669_v4 }
0x2f90   : > { %8813 = vst.msk [vmem:[%s622_s2] sm:$0xff] %vm8812_vm5, %v8806_v26  ;;  %v8809_v15 = vadd.f32 %v9582_v10, %v8673_v49 }
0x2f92   : > { %8814 = vst.msk [vmem:[%s622_s2 + $0x8] sm:$0xff] %vm8812_vm5, %v8809_v15 }
0x2f93 PF: > { %s29_s0 = sadd.s32 1, %s11572_s0  }
0x2f94   : > { %p26_p4 = scmp.ge.s32.totalorder %s29_s0, 4  }
0x2f96   :  { %28 = sbr.rel (!%p26_p4) target bundleno = 8 (0x8), region = 129 }

</bundles_post_ra>
